<compile_context>
chip_gen: v7x
topology: tpu7x:2x2x1
jax: 0.10.0
libtpu: 0.0.40
codegen_flags: <defaults>
</compile_context>

<pallas_src>
import math

import jax
import jax.numpy as jnp
import numpy as np
from jax import lax
from jax.experimental import pallas as pl
from jax.experimental.pallas import tpu as pltpu

EPS = 1e-5  # InstanceNorm2d default eps


def _round_up(x, m):
    return ((x + m - 1) // m) * m


def _vmem_capacity_bytes():
    try:
        cap = int(pltpu.get_tpu_info().vmem_capacity_bytes)
        if cap > 0:
            return cap
    except Exception:
        pass
    return 64 << 20  # conservative default (v7x per-TC VMEM)


def _compiler_params(semantics, est_bytes):
    """dimension_semantics + a vmem limit derived from block sizes, capped safely
    below the physical VMEM of the current generation (never >= capacity)."""
    cap = _vmem_capacity_bytes()
    limit = max(32 << 20, int(1.5 * int(est_bytes)) + (16 << 20))
    limit = min(limit, cap - (8 << 20))
    return pltpu.CompilerParams(dimension_semantics=semantics,
                                vmem_limit_bytes=int(limit))


# ---------------------------------------------------------------------------
# Kernel 1: ConvTranspose2d(in_ch, out_ch, kernel_size=2, stride=2).
# Each input pixel owns a disjoint 2x2 output block:
#   y[n, 2i+di, 2j+dj, o] = sum_c x[n,i,j,c] * W[c,o,di,dj] + b[o]
# Row-tiled MXU matmuls; output is written in a layout that reshapes for free to
# NHWC, so no HBM interleave / transpose pass exists downstream.
# ---------------------------------------------------------------------------
def conv_transpose_2x2_s2(x_nhwc, up_w, up_b, out_dtype=jnp.float32):
    """x: (N,H,W,Cin) in the compute dtype; up_w: (2, Cin, 2*Cout) with
    up_w[di, c, dj*Cout+o] = W_pt[c,o,di,dj]; up_b: (1, 2*Cout) f32 (tiled over dj).
    Returns (N, 2H, 2W, Cout) in out_dtype."""
    N, H, W, Cin = x_nhwc.shape
    two_cout = up_w.shape[2]
    Cout = two_cout // 2
    cdt = up_w.dtype
    in_b = x_nhwc.dtype.itemsize
    out_b = jnp.dtype(out_dtype).itemsize
    cdt_b = jnp.dtype(cdt).itemsize

    NH = N * H
    x_rows = x_nhwc.reshape(NH * W, Cin)  # free reshape

    # Channel-aware row-tile: double-buffered blocks + f32 accumulators <= ~12 MiB.
    bytes_per_row = W * (2 * Cin * in_b + 4 * two_cout * out_b + 2 * two_cout * 4)
    align = 8 // math.gcd(W, 8)                      # TR*W must be a multiple of 8
    TR = ((12 << 20) // max(bytes_per_row, 1)) // align * align
    TR = int(max(align, min(TR, NH)))
    if TR > NH:
        TR = NH
    grid0 = pl.cdiv(NH, TR)

    def kernel(x_ref, w_ref, b_ref, o_ref):
        x = x_ref[...]
        if x.dtype != cdt:
            x = x.astype(cdt)
        # Both output-row parities (di) from one resident x block.
        for di in range(2):
            acc = jnp.dot(x, w_ref[di], preferred_element_type=jnp.float32)
            acc = acc + b_ref[...]
            o_ref[:, di:di + 1, :, :] = acc.reshape(
                TR, 1, W, two_cout).astype(o_ref.dtype)

    est = (2 * TR * W * Cin * in_b
           + 2 * TR * 2 * W * two_cout * out_b
           + 2 * 2 * Cin * two_cout * cdt_b
           + 2 * TR * W * two_cout * 4
           + two_cout * 4)

    out = pl.pallas_call(
        kernel,
        out_shape=jax.ShapeDtypeStruct((NH, 2, W, two_cout), out_dtype),
        grid_spec=pltpu.PrefetchScalarGridSpec(
            num_scalar_prefetch=0,
            grid=(grid0,),
            in_specs=[
                pl.BlockSpec((TR * W, Cin), lambda t: (t, 0)),
                pl.BlockSpec((2, Cin, two_cout), lambda t: (0, 0, 0)),   # resident
                pl.BlockSpec((1, two_cout), lambda t: (0, 0)),           # resident
            ],
            out_specs=pl.BlockSpec((TR, 2, W, two_cout), lambda t: (t, 0, 0, 0)),
        ),
        compiler_params=_compiler_params(("parallel",), est),
    )(x_rows, up_w, up_b)

    # (NH, 2, W, 2*Cout) -> (N, 2H, 2W, Cout): metadata-only reshape (row-major
    # orders coincide), so there is NO HBM transpose/interleave pass here.
    return out.reshape(N, 2 * H, 2 * W, Cout)


# ---------------------------------------------------------------------------
# Kernel 2: fused Conv2d(3x3, s=1, p=1, bias=False) -> InstanceNorm2d -> ReLU,
# one grid step per sample.  The Cin axis may be split across several inputs
# (skip-concat never touches HBM).  A single once-padded, alignment-padded slab
#   xpad[y, s, c] = in_pad[y, s, c]           shape (H+2, Wp, Cin), Wp = rup(W+2, 8)
# is built in VMEM; 3 accumulating matmuls (K=Cin, N=3*out_ch) over dy-shifted row
# views produce z, and the dx taps are folded with 3 shifted adds.  If the f32
# temporaries of a full sample do not fit VMEM, the kernel works in row chunks with
# a two-phase InstanceNorm (stats in f32, normalize in place in VMEM).
# ---------------------------------------------------------------------------
def conv3x3_in_relu(xs, w_stack, out_ch, out_dtype=jnp.float32, max_chunk_rows=None):
    """xs: list of NHWC inputs sharing (N, H, W); w_stack: (3, sum(Cin), 3*out_ch)
    with w_stack[dy, c, dx*out_ch + o] = w_pt[o, c, dy, dx]."""
    n_in = len(xs)
    assert all(x.shape[:3] == xs[0].shape[:3] for x in xs)
    N, Hh, Wh, _ = xs[0].shape
    cins = [int(x.shape[-1]) for x in xs]
    C = int(sum(cins))
    assert w_stack.shape == (3, C, 3 * out_ch), (w_stack.shape, C, out_ch)
    cdt = w_stack.dtype
    cdt_b = jnp.dtype(cdt).itemsize
    out_b = jnp.dtype(out_dtype).itemsize
    Wp = _round_up(Wh + 2, 8)   # lane/sublane-aligned width -> free reshapes

    # --- VMEM-aware row-chunk size (two-phase InstanceNorm when chunked). ---
    cap = _vmem_capacity_bytes()
    budget = cap - (12 << 20)
    fixed = (sum(2 * Hh * Wh * c * x.dtype.itemsize for c, x in zip(cins, xs))
             + 2 * Hh * Wh * out_ch * out_b
             + 2 * 3 * C * 3 * out_ch * cdt_b
             + (Hh + 2) * Wp * C * cdt_b)
    per_row = Wp * 3 * out_ch * 4 + 4 * Wh * out_ch * 4
    TH = Hh if (budget - fixed) >= per_row * Hh else max(8, (budget - fixed) // per_row)
    TH = int(max(1, min(TH, Hh)))
    if max_chunk_rows is not None:
        TH = int(max(1, min(TH, int(max_chunk_rows))))
    chunks = [(h0, min(TH, Hh - h0)) for h0 in range(0, Hh, TH)]
    single = len(chunks) == 1
    # TODO(synk): if even the per-sample inputs/xpad exceed VMEM (very large H*W on
    #             v7x), add HBM-level row tiling with a separate normalization pass.

    def kernel(*refs):
        x_refs = refs[:n_in]
        w_ref = refs[n_in]
        o_ref = refs[n_in + 1]
        xpad_ref = refs[n_in + 2]
        z_ref = refs[n_in + 3]

        # Once-padded input slab: zero halo strips (rows 0 / Hh+1, col 0, cols
        # Wh+1..Wp-1) + channel-stacked interior copies -> every element written.
        xpad_ref[0:1, :, :] = jnp.zeros((1, Wp, C), cdt)
        xpad_ref[Hh + 1:Hh + 2, :, :] = jnp.zeros((1, Wp, C), cdt)
        xpad_ref[1:Hh + 1, 0:1, :] = jnp.zeros((Hh, 1, C), cdt)
        xpad_ref[1:Hh + 1, Wh + 1:Wp, :] = jnp.zeros((Hh, Wp - Wh - 1, C), cdt)
        off = 0
        for x_ref, c in zip(x_refs, cins):
            xpad_ref[1:Hh + 1, 1:Wh + 1, off:off + c] = x_ref[0].astype(cdt)
            off += c

        def conv_rows(h0, hs):
            # 3 accumulating MXU matmuls (K = C, N = 3*out_ch); dy via row shift.
            for dy in range(3):
                lhs = xpad_ref[h0 + dy:h0 + dy + hs, :, :]         # (hs, Wp, C)
                part = jnp.dot(lhs.reshape(hs * Wp, C), w_ref[dy],
                               preferred_element_type=jnp.float32)
                if dy == 0:
                    z_ref[0:hs * Wp, :] = part
                else:
                    z_ref[0:hs * Wp, :] = z_ref[0:hs * Wp, :] + part
            z3 = z_ref[0:hs * Wp, :].reshape(hs, Wp, 3 * out_ch)   # free view
            # fold dx taps: out[y, x, o] = sum_dx z3[y, x+dx, dx*out_ch + o]
            return (z3[:, 0:Wh, 0:out_ch]
                    + z3[:, 1:Wh + 1, out_ch:2 * out_ch]
                    + z3[:, 2:Wh + 2, 2 * out_ch:3 * out_ch])      # (hs, Wh, out_ch) f32

        inv_n = 1.0 / float(Hh * Wh)
        if single:
            # Fully fused single pass (fits VMEM): conv -> stats -> norm -> ReLU.
            acc = conv_rows(0, Hh)
            mean = jnp.sum(acc, axis=(0, 1), keepdims=True) * inv_n
            msq = jnp.sum(acc * acc, axis=(0, 1), keepdims=True) * inv_n
            var = jnp.maximum(msq - mean * mean, 0.0)
            y = (acc - mean) * lax.rsqrt(var + EPS)
            o_ref[0] = jnp.maximum(y, 0.0).astype(o_ref.dtype)
        else:
            # Two-phase InstanceNorm inside the kernel: bounded VMEM temporaries.
            s = jnp.zeros((1, 1, out_ch), jnp.float32)
            ss = jnp.zeros((1, 1, out_ch), jnp.float32)
            for h0, hs in chunks:          # pass 1: pre-norm conv + f32 stats
                acc = conv_rows(h0, hs)
                s = s + jnp.sum(acc, axis=(0, 1), keepdims=True)
                ss = ss + jnp.sum(acc * acc, axis=(0, 1), keepdims=True)
                o_ref[0, h0:h0 + hs, :, :] = acc.astype(o_ref.dtype)
            mean = s * inv_n
            var = jnp.maximum(ss * inv_n - mean * mean, 0.0)
            rstd = lax.rsqrt(var + EPS)
            for h0, hs in chunks:          # pass 2: normalize + ReLU (VMEM only)
                v = o_ref[0, h0:h0 + hs, :, :].astype(jnp.float32)
                o_ref[0, h0:h0 + hs, :, :] = jnp.maximum(
                    (v - mean) * rstd, 0.0).astype(o_ref.dtype)

    in_specs = ([pl.BlockSpec((1, Hh, Wh, c), lambda n: (n, 0, 0, 0)) for c in cins]
                + [pl.BlockSpec((3, C, 3 * out_ch), lambda n: (0, 0, 0))])

    est = int(fixed + TH * Wp * 3 * out_ch * 4 + 4 * TH * Wh * out_ch * 4)

    return pl.pallas_call(
        kernel,
        out_shape=jax.ShapeDtypeStruct((N, Hh, Wh, out_ch), out_dtype),
        grid_spec=pltpu.PrefetchScalarGridSpec(
            num_scalar_prefetch=0,
            grid=(N,),
            in_specs=in_specs,
            out_specs=pl.BlockSpec((1, Hh, Wh, out_ch), lambda n: (n, 0, 0, 0)),
            scratch_shapes=[
                pltpu.VMEM((Hh + 2, Wp, C), cdt),                 # once-padded slab
                pltpu.VMEM((TH * Wp, 3 * out_ch), jnp.float32),   # f32 accumulator
            ],
        ),
        compiler_params=_compiler_params(("parallel",), est),
    )(*xs, w_stack)


# ---------------------------------------------------------------------------
# Parameters: PyTorch-layout init + one-time re-layout into kernel layout.
# ---------------------------------------------------------------------------
def init_params(key, in_ch, skip_ch, out_ch):
    k1, k2, k3, k4 = jax.random.split(key, 4)
    return {
        # PyTorch ConvTranspose2d weight: (in_ch, out_ch, kH, kW), bias: (out_ch,)
        "up_w": 0.1 * jax.random.normal(k1, (in_ch, out_ch, 2, 2), jnp.float32),
        "up_b": 0.1 * jax.random.normal(k2, (out_ch,), jnp.float32),
        # PyTorch Conv2d weights (bias=False): (out_ch, in_ch, 3, 3)
        "conv1_w": 0.1 * jax.random.normal(k3, (out_ch, out_ch + skip_ch, 3, 3), jnp.float32),
        "conv2_w": 0.1 * jax.random.normal(k4, (out_ch, out_ch, 3, 3), jnp.float32),
    }


def _stack_conv3x3(w_pt, compute_dtype):
    # (Cout, Cin, 3, 3) -> (3, Cin, 3*Cout): [dy, c, dx*Cout + o] = w_pt[o, c, dy, dx]
    cout, cin = w_pt.shape[0], w_pt.shape[1]
    return (jnp.transpose(w_pt, (2, 1, 3, 0))
            .reshape(3, cin, 3 * cout).astype(compute_dtype))


def prepare_params(params, compute_dtype=jnp.float32):
    """One-time weight re-layout (outside the hot path). compute_dtype=bf16 feeds the
    MXU bf16 operands; accumulation and InstanceNorm stay in f32."""
    in_ch, out_ch = params["up_w"].shape[0], params["up_w"].shape[1]
    # (Cin, Cout, 2, 2) -> (2, Cin, 2*Cout): [di, c, dj*Cout + o] = W[c, o, di, dj]
    up_w = (jnp.transpose(params["up_w"], (2, 0, 3, 1))
            .reshape(2, in_ch, 2 * out_ch).astype(compute_dtype))
    up_b = jnp.tile(params["up_b"], 2).reshape(1, 2 * out_ch).astype(jnp.float32)
    return {
        "up_w": up_w,
        "up_b": up_b,
        # conv1 keeps (up || skip) input channels concatenated along Cin so the
        # kernel issues ONE matmul per dy (no per-input matmul + f32 add).
        "conv1_w": _stack_conv3x3(params["conv1_w"], compute_dtype),
        "conv2_w": _stack_conv3x3(params["conv2_w"], compute_dtype),
    }


def upblock_forward(p, x_nchw, skip_nchw=None, conv_chunk_rows=None):
    """UpBlock forward; p = prepare_params(...); x/skip are NCHW like PyTorch."""
    out_ch = p["conv2_w"].shape[1]
    cdt = p["conv2_w"].dtype

    # NCHW -> NHWC; cast to compute dtype in the wrapper so the memory-bound upconv
    # streams half the bytes on the bf16 path.
    x = jnp.transpose(x_nchw, (0, 2, 3, 1)).astype(cdt)
    up = conv_transpose_2x2_s2(x, p["up_w"], p["up_b"], out_dtype=cdt)

    if skip_nchw is not None:
        skip = jnp.transpose(skip_nchw, (0, 2, 3, 1)).astype(cdt)
        h = conv3x3_in_relu([up, skip], p["conv1_w"], out_ch, out_dtype=cdt,
                            max_chunk_rows=conv_chunk_rows)
    else:
        h = conv3x3_in_relu([up], p["conv1_w"][:, :out_ch], out_ch, out_dtype=cdt,
                            max_chunk_rows=conv_chunk_rows)
    h = conv3x3_in_relu([h], p["conv2_w"], out_ch, out_dtype=jnp.float32,
                        max_chunk_rows=conv_chunk_rows)
    return jnp.transpose(h, (0, 3, 1, 2))                               # NHWC -> NCHW


# ---------------------------------------------------------------------------
# Pure-JAX reference (numerical verification of the Pallas path)
# ---------------------------------------------------------------------------
def _ref_conv_in_relu(x_nhwc, w_pt):
    w_hwio = jnp.transpose(w_pt, (2, 3, 1, 0))
    y = lax.conv_general_dilated(
        x_nhwc, w_hwio, window_strides=(1, 1), padding=((1, 1), (1, 1)),
        dimension_numbers=("NHWC", "HWIO", "NHWC"))
    mean = jnp.mean(y, axis=(1, 2), keepdims=True)
    var = jnp.mean((y - mean) ** 2, axis=(1, 2), keepdims=True)
    return jnp.maximum((y - mean) * lax.rsqrt(var + EPS), 0.0)


def ref_forward(params, x_nchw, skip_nchw=None):
    x = jnp.transpose(x_nchw, (0, 2, 3, 1)).astype(jnp.float32)
    N, H, W, _ = x.shape
    w, b = params["up_w"], params["up_b"]
    Cout = w.shape[1]
    up = jnp.einsum("nijc,code->nidjeo", x, w).reshape(N, 2 * H, 2 * W, Cout) + b
    if skip_nchw is not None:
        skip = jnp.transpose(skip_nchw, (0, 2, 3, 1)).astype(jnp.float32)
        up = jnp.concatenate([up, skip], axis=-1)
    h = _ref_conv_in_relu(up, params["conv1_w"])
    h = _ref_conv_in_relu(h, params["conv2_w"])
    return jnp.transpose(h, (0, 3, 1, 2))


if __name__ == "__main__":
    in_ch, skip_ch, out_ch = 8, 4, 8
    N, H, W = 2, 8, 8

    key = jax.random.PRNGKey(0)
    kp, kx, ks = jax.random.split(key, 3)
    params = init_params(kp, in_ch, skip_ch, out_ch)
    x = jax.random.normal(kx, (N, in_ch, H, W), jnp.float32)               # NCHW
    skip = jax.random.normal(ks, (N, skip_ch, 2 * H, 2 * W), jnp.float32)  # NCHW

    ref = ref_forward(params, x, skip)

    # f32 path: strict numerical check against the reference (fully fused conv).
    p32 = prepare_params(params, jnp.float32)
    out32 = jax.block_until_ready(jax.jit(upblock_forward)(p32, x, skip))
    assert out32.shape == (N, out_ch, 2 * H, 2 * W), out32.shape
    np.testing.assert_allclose(np.asarray(out32), np.asarray(ref),
                               atol=3e-4, rtol=3e-4)

    # f32 path, forcing the in-kernel row-chunked (two-phase InstanceNorm) path that
    # large decoder shapes would take on v7x.
    out32c = jax.block_until_ready(upblock_forward(p32, x, skip, conv_chunk_rows=4))
    np.testing.assert_allclose(np.asarray(out32c), np.asarray(ref),
                               atol=3e-4, rtol=3e-4)

    # bf16 MXU path (f32 accumulation / InstanceNorm stats): loose smoke check.
    pbf = prepare_params(params, jnp.bfloat16)
    outbf = jax.block_until_ready(jax.jit(upblock_forward)(pbf, x, skip))
    assert outbf.shape == (N, out_ch, 2 * H, 2 * W), outbf.shape
    np.testing.assert_allclose(np.asarray(outbf), np.asarray(ref),
                               atol=1e-1, rtol=1e-1)

    print("KERNEL_OK")
</pallas_src>

<mosaic_0001>
module attributes {stable_mosaic.version = 11 : i64} {
  func.func @kernel(%arg0: i32, %arg1: memref<128x8xf32, #tpu.memory_space<vmem>>, %arg2: memref<2x8x16xf32, #tpu.memory_space<vmem>>, %arg3: memref<1x16xf32, #tpu.memory_space<vmem>>, %arg4: memref<16x2x8x16xf32, #tpu.memory_space<vmem>>) attributes {dimension_semantics = [#tpu.dimension_semantics<parallel>], iteration_bounds = array<i64: 1>, scalar_prefetch = 0 : i64, scratch_operands = 0 : i64, tpu.core_type = #tpu.core_type<tc>, window_params = [{transform_indices = @transform_0, window_bounds = array<i64: 128, 8>}, {pipeline_mode = #tpu.pipeline_mode<synchronous>, transform_indices = @transform_1, window_bounds = array<i64: 2, 8, 16>}, {pipeline_mode = #tpu.pipeline_mode<synchronous>, transform_indices = @transform_2, window_bounds = array<i64: 1, 16>}, {transform_indices = @transform_3, window_bounds = array<i64: 16, 2, 8, 16>}]} {
    %c0 = arith.constant 0 : index
    %c0_0 = arith.constant 0 : index
    %0 = vector.load %arg1[%c0, %c0_0] : memref<128x8xf32, #tpu.memory_space<vmem>>, vector<128x8xf32>
    %c0_1 = arith.constant 0 : index
    %c0_2 = arith.constant 0 : index
    %c0_3 = arith.constant 0 : index
    %1 = vector.load %arg2[%c0_1, %c0_2, %c0_3] : memref<2x8x16xf32, #tpu.memory_space<vmem>>, vector<1x8x16xf32>
    %2 = vector.shape_cast %1 : vector<1x8x16xf32> to vector<8x16xf32>
    %cst = arith.constant dense<0.000000e+00> : vector<128x16xf32>
    %3 = tpu.matmul %0, %2, %cst {dimension_numbers = #tpu.dot_dimension_numbers<[1], [0], [0], [1], [0, 0, 1, 1], [], []>} : vector<128x8xf32>, vector<8x16xf32>, vector<128x16xf32> -> vector<128x16xf32>
    %c0_4 = arith.constant 0 : index
    %c0_5 = arith.constant 0 : index
    %4 = vector.load %arg3[%c0_4, %c0_5] : memref<1x16xf32, #tpu.memory_space<vmem>>, vector<1x16xf32>
    %5 = vector.broadcast %4 : vector<1x16xf32> to vector<128x16xf32>
    %6 = arith.addf %3, %5 : vector<128x16xf32>
    %7 = vector.shape_cast %6 : vector<128x16xf32> to vector<16x1x8x16xf32>
    %c0_6 = arith.constant 0 : index
    %c0_7 = arith.constant 0 : index
    %c0_8 = arith.constant 0 : index
    %c0_9 = arith.constant 0 : index
    %8 = vector.load %arg4[%c0_6, %c0_7, %c0_8, %c0_9] : memref<16x2x8x16xf32, #tpu.memory_space<vmem>>, vector<16x1x8x16xf32>
    tpu.vector_store %arg4[%c0_6, %c0_7, %c0_8, %c0_9], %7 {strides = array<i32>} : memref<16x2x8x16xf32, #tpu.memory_space<vmem>>, vector<16x1x8x16xf32>,
    %c1 = arith.constant 1 : index
    %c0_10 = arith.constant 0 : index
    %c0_11 = arith.constant 0 : index
    %9 = vector.load %arg2[%c1, %c0_10, %c0_11] : memref<2x8x16xf32, #tpu.memory_space<vmem>>, vector<1x8x16xf32>
    %10 = vector.shape_cast %9 : vector<1x8x16xf32> to vector<8x16xf32>
    %cst_12 = arith.constant dense<0.000000e+00> : vector<128x16xf32>
    %11 = tpu.matmul %0, %10, %cst_12 {dimension_numbers = #tpu.dot_dimension_numbers<[1], [0], [0], [1], [0, 0, 1, 1], [], []>} : vector<128x8xf32>, vector<8x16xf32>, vector<128x16xf32> -> vector<128x16xf32>
    %c0_13 = arith.constant 0 : index
    %c0_14 = arith.constant 0 : index
    %12 = vector.load %arg3[%c0_13, %c0_14] : memref<1x16xf32, #tpu.memory_space<vmem>>, vector<1x16xf32>
    %13 = vector.broadcast %12 : vector<1x16xf32> to vector<128x16xf32>
    %14 = arith.addf %11, %13 : vector<128x16xf32>
    %15 = vector.shape_cast %14 : vector<128x16xf32> to vector<16x1x8x16xf32>
    %c0_15 = arith.constant 0 : index
    %c1_16 = arith.constant 1 : index
    %c0_17 = arith.constant 0 : index
    %c0_18 = arith.constant 0 : index
    %16 = vector.load %arg4[%c0_15, %c1_16, %c0_17, %c0_18] : memref<16x2x8x16xf32, #tpu.memory_space<vmem>>, vector<16x1x8x16xf32>
    tpu.vector_store %arg4[%c0_15, %c1_16, %c0_17, %c0_18], %15 {strides = array<i32>} : memref<16x2x8x16xf32, #tpu.memory_space<vmem>>, vector<16x1x8x16xf32>,
    return
  }
  func.func @transform_0(%arg0: i32) -> (i32, i32) {
    %c0_i32 = arith.constant 0 : i32
    %c0_i32_0 = arith.constant 0 : i32
    return %arg0, %c0_i32 : i32, i32
  }
  func.func @transform_1(%arg0: i32) -> (i32, i32, i32) {
    %c0_i32 = arith.constant 0 : i32
    %c0_i32_0 = arith.constant 0 : i32
    %c0_i32_1 = arith.constant 0 : i32
    %c0_i32_2 = arith.constant 0 : i32
    return %c0_i32, %c0_i32_0, %c0_i32_1 : i32, i32, i32
  }
  func.func @transform_2(%arg0: i32) -> (i32, i32) {
    %c0_i32 = arith.constant 0 : i32
    %c0_i32_0 = arith.constant 0 : i32
    %c0_i32_1 = arith.constant 0 : i32
    return %c0_i32, %c0_i32_0 : i32, i32
  }
  func.func @transform_3(%arg0: i32) -> (i32, i32, i32, i32) {
    %c0_i32 = arith.constant 0 : i32
    %c0_i32_0 = arith.constant 0 : i32
    %c0_i32_1 = arith.constant 0 : i32
    %c0_i32_2 = arith.constant 0 : i32
    return %arg0, %c0_i32, %c0_i32_0, %c0_i32_1 : i32, i32, i32, i32
  }
}

module attributes {stable_mosaic.version = 11 : i64} {
  func.func @kernel(%arg0: i32, %arg1: memref<1x16x16x8xf32, #tpu.memory_space<vmem>>, %arg2: memref<1x16x16x4xf32, #tpu.memory_space<vmem>>, %arg3: memref<3x12x24xf32, #tpu.memory_space<vmem>>, %arg4: memref<1x16x16x8xf32, #tpu.memory_space<vmem>>, %arg5: memref<18x24x12xf32, #tpu.memory_space<vmem>>, %arg6: memref<384x24xf32, #tpu.memory_space<vmem>>) attributes {dimension_semantics = [#tpu.dimension_semantics<parallel>], iteration_bounds = array<i64: 2>, scalar_prefetch = 0 : i64, scratch_operands = 2 : i64, tpu.core_type = #tpu.core_type<tc>, window_params = [{transform_indices = @transform_0, window_bounds = array<i64: 1, 16, 16, 8>}, {transform_indices = @transform_1, window_bounds = array<i64: 1, 16, 16, 4>}, {pipeline_mode = #tpu.pipeline_mode<synchronous>, transform_indices = @transform_2, window_bounds = array<i64: 3, 12, 24>}, {transform_indices = @transform_3, window_bounds = array<i64: 1, 16, 16, 8>}]} {
    %cst = arith.constant 0.000000e+00 : f32
    %0 = vector.broadcast %cst : f32 to vector<1x24x12xf32>
    %c0 = arith.constant 0 : index
    %c0_0 = arith.constant 0 : index
    %c0_1 = arith.constant 0 : index
    %1 = vector.load %arg5[%c0, %c0_0, %c0_1] : memref<18x24x12xf32, #tpu.memory_space<vmem>>, vector<1x24x12xf32>
    tpu.vector_store %arg5[%c0, %c0_0, %c0_1], %0 {strides = array<i32>} : memref<18x24x12xf32, #tpu.memory_space<vmem>>, vector<1x24x12xf32>,
    %cst_2 = arith.constant 0.000000e+00 : f32
    %2 = vector.broadcast %cst_2 : f32 to vector<1x24x12xf32>
    %c17 = arith.constant 17 : index
    %c0_3 = arith.constant 0 : index
    %c0_4 = arith.constant 0 : index
    %3 = vector.load %arg5[%c17, %c0_3, %c0_4] : memref<18x24x12xf32, #tpu.memory_space<vmem>>, vector<1x24x12xf32>
    tpu.vector_store %arg5[%c17, %c0_3, %c0_4], %2 {strides = array<i32>} : memref<18x24x12xf32, #tpu.memory_space<vmem>>, vector<1x24x12xf32>,
    %cst_5 = arith.constant 0.000000e+00 : f32
    %4 = vector.broadcast %cst_5 : f32 to vector<16x1x12xf32>
    %c1 = arith.constant 1 : index
    %c0_6 = arith.constant 0 : index
    %c0_7 = arith.constant 0 : index
    %5 = vector.load %arg5[%c1, %c0_6, %c0_7] : memref<18x24x12xf32, #tpu.memory_space<vmem>>, vector<16x1x12xf32>
    tpu.vector_store %arg5[%c1, %c0_6, %c0_7], %4 {strides = array<i32>} : memref<18x24x12xf32, #tpu.memory_space<vmem>>, vector<16x1x12xf32>,
    %cst_8 = arith.constant 0.000000e+00 : f32
    %6 = vector.broadcast %cst_8 : f32 to vector<16x7x12xf32>
    %c1_9 = arith.constant 1 : index
    %c17_10 = arith.constant 17 : index
    %c0_11 = arith.constant 0 : index
    %7 = vector.load %arg5[%c1_9, %c17_10, %c0_11] : memref<18x24x12xf32, #tpu.memory_space<vmem>>, vector<16x7x12xf32>
    tpu.vector_store %arg5[%c1_9, %c17_10, %c0_11], %6 {strides = array<i32>} : memref<18x24x12xf32, #tpu.memory_space<vmem>>, vector<16x7x12xf32>,
    %c0_12 = arith.constant 0 : index
    %c0_13 = arith.constant 0 : index
    %c0_14 = arith.constant 0 : index
    %c0_15 = arith.constant 0 : index
    %8 = vector.load %arg1[%c0_12, %c0_13, %c0_14, %c0_15] : memref<1x16x16x8xf32, #tpu.memory_space<vmem>>, vector<1x16x16x8xf32>
    %9 = vector.shape_cast %8 : vector<1x16x16x8xf32> to vector<16x16x8xf32>
    %c1_16 = arith.constant 1 : index
    %c1_17 = arith.constant 1 : index
    %c0_18 = arith.constant 0 : index
    %10 = vector.load %arg5[%c1_16, %c1_17, %c0_18] : memref<18x24x12xf32, #tpu.memory_space<vmem>>, vector<16x16x8xf32>
    tpu.vector_store %arg5[%c1_16, %c1_17, %c0_18], %9 {strides = array<i32>} : memref<18x24x12xf32, #tpu.memory_space<vmem>>, vector<16x16x8xf32>,
    %c0_19 = arith.constant 0 : index
    %c0_20 = arith.constant 0 : index
    %c0_21 = arith.constant 0 : index
    %c0_22 = arith.constant 0 : index
    %11 = vector.load %arg2[%c0_19, %c0_20, %c0_21, %c0_22] : memref<1x16x16x4xf32, #tpu.memory_space<vmem>>, vector<1x16x16x4xf32>
    %12 = vector.shape_cast %11 : vector<1x16x16x4xf32> to vector<16x16x4xf32>
    %c1_23 = arith.constant 1 : index
    %c1_24 = arith.constant 1 : index
    %c8 = arith.constant 8 : index
    %13 = vector.load %arg5[%c1_23, %c1_24, %c8] : memref<18x24x12xf32, #tpu.memory_space<vmem>>, vector<16x16x4xf32>
    tpu.vector_store %arg5[%c1_23, %c1_24, %c8], %12 {strides = array<i32>} : memref<18x24x12xf32, #tpu.memory_space<vmem>>, vector<16x16x4xf32>,
    %c0_25 = arith.constant 0 : index
    %c0_26 = arith.constant 0 : index
    %c0_27 = arith.constant 0 : index
    %14 = vector.load %arg5[%c0_25, %c0_26, %c0_27] : memref<18x24x12xf32, #tpu.memory_space<vmem>>, vector<16x24x12xf32>
    %15 = vector.shape_cast %14 : vector<16x24x12xf32> to vector<384x12xf32>
    %c0_28 = arith.constant 0 : index
    %c0_29 = arith.constant 0 : index
    %c0_30 = arith.constant 0 : index
    %16 = vector.load %arg3[%c0_28, %c0_29, %c0_30] : memref<3x12x24xf32, #tpu.memory_space<vmem>>, vector<1x12x24xf32>
    %17 = vector.shape_cast %16 : vector<1x12x24xf32> to vector<12x24xf32>
    %cst_31 = arith.constant dense<0.000000e+00> : vector<384x24xf32>
    %18 = tpu.matmul %15, %17, %cst_31 {dimension_numbers = #tpu.dot_dimension_numbers<[1], [0], [0], [1], [0, 0, 1, 1], [], []>} : vector<384x12xf32>, vector<12x24xf32>, vector<384x24xf32> -> vector<384x24xf32>
    %c0_32 = arith.constant 0 : index
    %c0_33 = arith.constant 0 : index
    %19 = vector.load %arg6[%c0_32, %c0_33] : memref<384x24xf32, #tpu.memory_space<vmem>>, vector<384x24xf32>
    tpu.vector_store %arg6[%c0_32, %c0_33], %18 {strides = array<i32>} : memref<384x24xf32, #tpu.memory_space<vmem>>, vector<384x24xf32>,
    %c1_34 = arith.constant 1 : index
    %c0_35 = arith.constant 0 : index
    %c0_36 = arith.constant 0 : index
    %20 = vector.load %arg5[%c1_34, %c0_35, %c0_36] : memref<18x24x12xf32, #tpu.memory_space<vmem>>, vector<16x24x12xf32>
    %21 = vector.shape_cast %20 : vector<16x24x12xf32> to vector<384x12xf32>
    %c1_37 = arith.constant 1 : index
    %c0_38 = arith.constant 0 : index
    %c0_39 = arith.constant 0 : index
    %22 = vector.load %arg3[%c1_37, %c0_38, %c0_39] : memref<3x12x24xf32, #tpu.memory_space<vmem>>, vector<1x12x24xf32>
    %23 = vector.shape_cast %22 : vector<1x12x24xf32> to vector<12x24xf32>
    %cst_40 = arith.constant dense<0.000000e+00> : vector<384x24xf32>
    %24 = tpu.matmul %21, %23, %cst_40 {dimension_numbers = #tpu.dot_dimension_numbers<[1], [0], [0], [1], [0, 0, 1, 1], [], []>} : vector<384x12xf32>, vector<12x24xf32>, vector<384x24xf32> -> vector<384x24xf32>
    %c0_41 = arith.constant 0 : index
    %c0_42 = arith.constant 0 : index
    %25 = vector.load %arg6[%c0_41, %c0_42] : memref<384x24xf32, #tpu.memory_space<vmem>>, vector<384x24xf32>
    %26 = arith.addf %25, %24 : vector<384x24xf32>
    %c0_43 = arith.constant 0 : index
    %c0_44 = arith.constant 0 : index
    %27 = vector.load %arg6[%c0_43, %c0_44] : memref<384x24xf32, #tpu.memory_space<vmem>>, vector<384x24xf32>
    tpu.vector_store %arg6[%c0_43, %c0_44], %26 {strides = array<i32>} : memref<384x24xf32, #tpu.memory_space<vmem>>, vector<384x24xf32>,
    %c2 = arith.constant 2 : index
    %c0_45 = arith.constant 0 : index
    %c0_46 = arith.constant 0 : index
    %28 = vector.load %arg5[%c2, %c0_45, %c0_46] : memref<18x24x12xf32, #tpu.memory_space<vmem>>, vector<16x24x12xf32>
    %29 = vector.shape_cast %28 : vector<16x24x12xf32> to vector<384x12xf32>
    %c2_47 = arith.constant 2 : index
    %c0_48 = arith.constant 0 : index
    %c0_49 = arith.constant 0 : index
    %30 = vector.load %arg3[%c2_47, %c0_48, %c0_49] : memref<3x12x24xf32, #tpu.memory_space<vmem>>, vector<1x12x24xf32>
    %31 = vector.shape_cast %30 : vector<1x12x24xf32> to vector<12x24xf32>
    %cst_50 = arith.constant dense<0.000000e+00> : vector<384x24xf32>
    %32 = tpu.matmul %29, %31, %cst_50 {dimension_numbers = #tpu.dot_dimension_numbers<[1], [0], [0], [1], [0, 0, 1, 1], [], []>} : vector<384x12xf32>, vector<12x24xf32>, vector<384x24xf32> -> vector<384x24xf32>
    %c0_51 = arith.constant 0 : index
    %c0_52 = arith.constant 0 : index
    %33 = vector.load %arg6[%c0_51, %c0_52] : memref<384x24xf32, #tpu.memory_space<vmem>>, vector<384x24xf32>
    %34 = arith.addf %33, %32 : vector<384x24xf32>
    %c0_53 = arith.constant 0 : index
    %c0_54 = arith.constant 0 : index
    %35 = vector.load %arg6[%c0_53, %c0_54] : memref<384x24xf32, #tpu.memory_space<vmem>>, vector<384x24xf32>
    tpu.vector_store %arg6[%c0_53, %c0_54], %34 {strides = array<i32>} : memref<384x24xf32, #tpu.memory_space<vmem>>, vector<384x24xf32>,
    %c0_55 = arith.constant 0 : index
    %c0_56 = arith.constant 0 : index
    %36 = vector.load %arg6[%c0_55, %c0_56] : memref<384x24xf32, #tpu.memory_space<vmem>>, vector<384x24xf32>
    %37 = vector.shape_cast %36 : vector<384x24xf32> to vector<16x24x24xf32>
    %38 = vector.extract_strided_slice %37 {offsets = [0, 0, 0], sizes = [16, 16, 8], strides = [1, 1, 1]} : vector<16x24x24xf32> to vector<16x16x8xf32>
    %39 = vector.extract_strided_slice %37 {offsets = [0, 1, 8], sizes = [16, 16, 8], strides = [1, 1, 1]} : vector<16x24x24xf32> to vector<16x16x8xf32>
    %40 = arith.addf %38, %39 : vector<16x16x8xf32>
    %41 = vector.extract_strided_slice %37 {offsets = [0, 2, 16], sizes = [16, 16, 8], strides = [1, 1, 1]} : vector<16x24x24xf32> to vector<16x16x8xf32>
    %42 = arith.addf %40, %41 : vector<16x16x8xf32>
    %cst_57 = arith.constant dense<0.000000e+00> : vector<8xf32>
    %43 = vector.multi_reduction <add>, %42, %cst_57 [0, 1] : vector<16x16x8xf32> to vector<8xf32>
    %44 = vector.shape_cast %43 : vector<8xf32> to vector<1x1x8xf32>
    %cst_58 = arith.constant 3.906250e-03 : f32
    %45 = vector.broadcast %cst_58 : f32 to vector<1x1x8xf32>
    %46 = arith.mulf %44, %45 : vector<1x1x8xf32>
    %47 = arith.mulf %42, %42 : vector<16x16x8xf32>
    %cst_59 = arith.constant dense<0.000000e+00> : vector<8xf32>
    %48 = vector.multi_reduction <add>, %47, %cst_59 [0, 1] : vector<16x16x8xf32> to vector<8xf32>
    %49 = vector.shape_cast %48 : vector<8xf32> to vector<1x1x8xf32>
    %cst_60 = arith.constant 3.906250e-03 : f32
    %50 = vector.broadcast %cst_60 : f32 to vector<1x1x8xf32>
    %51 = arith.mulf %49, %50 : vector<1x1x8xf32>
    %52 = arith.mulf %46, %46 : vector<1x1x8xf32>
    %53 = arith.subf %51, %52 : vector<1x1x8xf32>
    %cst_61 = arith.constant 0.000000e+00 : f32
    %54 = vector.broadcast %cst_61 : f32 to vector<1x1x8xf32>
    %55 = arith.maximumf %53, %54 : vector<1x1x8xf32>
    %56 = vector.broadcast %46 : vector<1x1x8xf32> to vector<16x16x8xf32>
    %57 = arith.subf %42, %56 : vector<16x16x8xf32>
    %cst_62 = arith.constant 9.99999974E-6 : f32
    %58 = vector.broadcast %cst_62 : f32 to vector<1x1x8xf32>
    %59 = arith.addf %55, %58 : vector<1x1x8xf32>
    %60 = math.rsqrt %59 : vector<1x1x8xf32>
    %61 = vector.broadcast %60 : vector<1x1x8xf32> to vector<16x16x8xf32>
    %62 = arith.mulf %57, %61 : vector<16x16x8xf32>
    %cst_63 = arith.constant 0.000000e+00 : f32
    %63 = vector.broadcast %cst_63 : f32 to vector<16x16x8xf32>
    %64 = arith.maximumf %62, %63 : vector<16x16x8xf32>
    %c0_64 = arith.constant 0 : index
    %c0_65 = arith.constant 0 : index
    %c0_66 = arith.constant 0 : index
    %c0_67 = arith.constant 0 : index
    %65 = vector.load %arg4[%c0_64, %c0_65, %c0_66, %c0_67] : memref<1x16x16x8xf32, #tpu.memory_space<vmem>>, vector<1x16x16x8xf32>
    %66 = vector.shape_cast %65 : vector<1x16x16x8xf32> to vector<16x16x8xf32>
    %67 = vector.shape_cast %64 : vector<16x16x8xf32> to vector<1x16x16x8xf32>
    tpu.vector_store %arg4[%c0_64, %c0_65, %c0_66, %c0_67], %67 {strides = array<i32>} : memref<1x16x16x8xf32, #tpu.memory_space<vmem>>, vector<1x16x16x8xf32>,
    return
  }
  func.func @transform_0(%arg0: i32) -> (i32, i32, i32, i32) {
    %c0_i32 = arith.constant 0 : i32
    %c0_i32_0 = arith.constant 0 : i32
    %c0_i32_1 = arith.constant 0 : i32
    %c0_i32_2 = arith.constant 0 : i32
    return %arg0, %c0_i32, %c0_i32_0, %c0_i32_1 : i32, i32, i32, i32
  }
  func.func @transform_1(%arg0: i32) -> (i32, i32, i32, i32) {
    %c0_i32 = arith.constant 0 : i32
    %c0_i32_0 = arith.constant 0 : i32
    %c0_i32_1 = arith.constant 0 : i32
    %c0_i32_2 = arith.constant 0 : i32
    return %arg0, %c0_i32, %c0_i32_0, %c0_i32_1 : i32, i32, i32, i32
  }
  func.func @transform_2(%arg0: i32) -> (i32, i32, i32) {
    %c0_i32 = arith.constant 0 : i32
    %c0_i32_0 = arith.constant 0 : i32
    %c0_i32_1 = arith.constant 0 : i32
    %c0_i32_2 = arith.constant 0 : i32
    return %c0_i32, %c0_i32_0, %c0_i32_1 : i32, i32, i32
  }
  func.func @transform_3(%arg0: i32) -> (i32, i32, i32, i32) {
    %c0_i32 = arith.constant 0 : i32
    %c0_i32_0 = arith.constant 0 : i32
    %c0_i32_1 = arith.constant 0 : i32
    %c0_i32_2 = arith.constant 0 : i32
    return %arg0, %c0_i32, %c0_i32_0, %c0_i32_1 : i32, i32, i32, i32
  }
}

module attributes {stable_mosaic.version = 11 : i64} {
  func.func @kernel(%arg0: i32, %arg1: memref<1x16x16x8xf32, #tpu.memory_space<vmem>>, %arg2: memref<3x8x24xf32, #tpu.memory_space<vmem>>, %arg3: memref<1x16x16x8xf32, #tpu.memory_space<vmem>>, %arg4: memref<18x24x8xf32, #tpu.memory_space<vmem>>, %arg5: memref<384x24xf32, #tpu.memory_space<vmem>>) attributes {dimension_semantics = [#tpu.dimension_semantics<parallel>], iteration_bounds = array<i64: 2>, scalar_prefetch = 0 : i64, scratch_operands = 2 : i64, tpu.core_type = #tpu.core_type<tc>, window_params = [{transform_indices = @transform_0, window_bounds = array<i64: 1, 16, 16, 8>}, {pipeline_mode = #tpu.pipeline_mode<synchronous>, transform_indices = @transform_1, window_bounds = array<i64: 3, 8, 24>}, {transform_indices = @transform_2, window_bounds = array<i64: 1, 16, 16, 8>}]} {
    %cst = arith.constant 0.000000e+00 : f32
    %0 = vector.broadcast %cst : f32 to vector<1x24x8xf32>
    %c0 = arith.constant 0 : index
    %c0_0 = arith.constant 0 : index
    %c0_1 = arith.constant 0 : index
    %1 = vector.load %arg4[%c0, %c0_0, %c0_1] : memref<18x24x8xf32, #tpu.memory_space<vmem>>, vector<1x24x8xf32>
    tpu.vector_store %arg4[%c0, %c0_0, %c0_1], %0 {strides = array<i32>} : memref<18x24x8xf32, #tpu.memory_space<vmem>>, vector<1x24x8xf32>,
    %cst_2 = arith.constant 0.000000e+00 : f32
    %2 = vector.broadcast %cst_2 : f32 to vector<1x24x8xf32>
    %c17 = arith.constant 17 : index
    %c0_3 = arith.constant 0 : index
    %c0_4 = arith.constant 0 : index
    %3 = vector.load %arg4[%c17, %c0_3, %c0_4] : memref<18x24x8xf32, #tpu.memory_space<vmem>>, vector<1x24x8xf32>
    tpu.vector_store %arg4[%c17, %c0_3, %c0_4], %2 {strides = array<i32>} : memref<18x24x8xf32, #tpu.memory_space<vmem>>, vector<1x24x8xf32>,
    %cst_5 = arith.constant 0.000000e+00 : f32
    %4 = vector.broadcast %cst_5 : f32 to vector<16x1x8xf32>
    %c1 = arith.constant 1 : index
    %c0_6 = arith.constant 0 : index
    %c0_7 = arith.constant 0 : index
    %5 = vector.load %arg4[%c1, %c0_6, %c0_7] : memref<18x24x8xf32, #tpu.memory_space<vmem>>, vector<16x1x8xf32>
    tpu.vector_store %arg4[%c1, %c0_6, %c0_7], %4 {strides = array<i32>} : memref<18x24x8xf32, #tpu.memory_space<vmem>>, vector<16x1x8xf32>,
    %cst_8 = arith.constant 0.000000e+00 : f32
    %6 = vector.broadcast %cst_8 : f32 to vector<16x7x8xf32>
    %c1_9 = arith.constant 1 : index
    %c17_10 = arith.constant 17 : index
    %c0_11 = arith.constant 0 : index
    %7 = vector.load %arg4[%c1_9, %c17_10, %c0_11] : memref<18x24x8xf32, #tpu.memory_space<vmem>>, vector<16x7x8xf32>
    tpu.vector_store %arg4[%c1_9, %c17_10, %c0_11], %6 {strides = array<i32>} : memref<18x24x8xf32, #tpu.memory_space<vmem>>, vector<16x7x8xf32>,
    %c0_12 = arith.constant 0 : index
    %c0_13 = arith.constant 0 : index
    %c0_14 = arith.constant 0 : index
    %c0_15 = arith.constant 0 : index
    %8 = vector.load %arg1[%c0_12, %c0_13, %c0_14, %c0_15] : memref<1x16x16x8xf32, #tpu.memory_space<vmem>>, vector<1x16x16x8xf32>
    %9 = vector.shape_cast %8 : vector<1x16x16x8xf32> to vector<16x16x8xf32>
    %c1_16 = arith.constant 1 : index
    %c1_17 = arith.constant 1 : index
    %c0_18 = arith.constant 0 : index
    %10 = vector.load %arg4[%c1_16, %c1_17, %c0_18] : memref<18x24x8xf32, #tpu.memory_space<vmem>>, vector<16x16x8xf32>
    tpu.vector_store %arg4[%c1_16, %c1_17, %c0_18], %9 {strides = array<i32>} : memref<18x24x8xf32, #tpu.memory_space<vmem>>, vector<16x16x8xf32>,
    %c0_19 = arith.constant 0 : index
    %c0_20 = arith.constant 0 : index
    %c0_21 = arith.constant 0 : index
    %11 = vector.load %arg4[%c0_19, %c0_20, %c0_21] : memref<18x24x8xf32, #tpu.memory_space<vmem>>, vector<16x24x8xf32>
    %12 = vector.shape_cast %11 : vector<16x24x8xf32> to vector<384x8xf32>
    %c0_22 = arith.constant 0 : index
    %c0_23 = arith.constant 0 : index
    %c0_24 = arith.constant 0 : index
    %13 = vector.load %arg2[%c0_22, %c0_23, %c0_24] : memref<3x8x24xf32, #tpu.memory_space<vmem>>, vector<1x8x24xf32>
    %14 = vector.shape_cast %13 : vector<1x8x24xf32> to vector<8x24xf32>
    %cst_25 = arith.constant dense<0.000000e+00> : vector<384x24xf32>
    %15 = tpu.matmul %12, %14, %cst_25 {dimension_numbers = #tpu.dot_dimension_numbers<[1], [0], [0], [1], [0, 0, 1, 1], [], []>} : vector<384x8xf32>, vector<8x24xf32>, vector<384x24xf32> -> vector<384x24xf32>
    %c0_26 = arith.constant 0 : index
    %c0_27 = arith.constant 0 : index
    %16 = vector.load %arg5[%c0_26, %c0_27] : memref<384x24xf32, #tpu.memory_space<vmem>>, vector<384x24xf32>
    tpu.vector_store %arg5[%c0_26, %c0_27], %15 {strides = array<i32>} : memref<384x24xf32, #tpu.memory_space<vmem>>, vector<384x24xf32>,
    %c1_28 = arith.constant 1 : index
    %c0_29 = arith.constant 0 : index
    %c0_30 = arith.constant 0 : index
    %17 = vector.load %arg4[%c1_28, %c0_29, %c0_30] : memref<18x24x8xf32, #tpu.memory_space<vmem>>, vector<16x24x8xf32>
    %18 = vector.shape_cast %17 : vector<16x24x8xf32> to vector<384x8xf32>
    %c1_31 = arith.constant 1 : index
    %c0_32 = arith.constant 0 : index
    %c0_33 = arith.constant 0 : index
    %19 = vector.load %arg2[%c1_31, %c0_32, %c0_33] : memref<3x8x24xf32, #tpu.memory_space<vmem>>, vector<1x8x24xf32>
    %20 = vector.shape_cast %19 : vector<1x8x24xf32> to vector<8x24xf32>
    %cst_34 = arith.constant dense<0.000000e+00> : vector<384x24xf32>
    %21 = tpu.matmul %18, %20, %cst_34 {dimension_numbers = #tpu.dot_dimension_numbers<[1], [0], [0], [1], [0, 0, 1, 1], [], []>} : vector<384x8xf32>, vector<8x24xf32>, vector<384x24xf32> -> vector<384x24xf32>
    %c0_35 = arith.constant 0 : index
    %c0_36 = arith.constant 0 : index
    %22 = vector.load %arg5[%c0_35, %c0_36] : memref<384x24xf32, #tpu.memory_space<vmem>>, vector<384x24xf32>
    %23 = arith.addf %22, %21 : vector<384x24xf32>
    %c0_37 = arith.constant 0 : index
    %c0_38 = arith.constant 0 : index
    %24 = vector.load %arg5[%c0_37, %c0_38] : memref<384x24xf32, #tpu.memory_space<vmem>>, vector<384x24xf32>
    tpu.vector_store %arg5[%c0_37, %c0_38], %23 {strides = array<i32>} : memref<384x24xf32, #tpu.memory_space<vmem>>, vector<384x24xf32>,
    %c2 = arith.constant 2 : index
    %c0_39 = arith.constant 0 : index
    %c0_40 = arith.constant 0 : index
    %25 = vector.load %arg4[%c2, %c0_39, %c0_40] : memref<18x24x8xf32, #tpu.memory_space<vmem>>, vector<16x24x8xf32>
    %26 = vector.shape_cast %25 : vector<16x24x8xf32> to vector<384x8xf32>
    %c2_41 = arith.constant 2 : index
    %c0_42 = arith.constant 0 : index
    %c0_43 = arith.constant 0 : index
    %27 = vector.load %arg2[%c2_41, %c0_42, %c0_43] : memref<3x8x24xf32, #tpu.memory_space<vmem>>, vector<1x8x24xf32>
    %28 = vector.shape_cast %27 : vector<1x8x24xf32> to vector<8x24xf32>
    %cst_44 = arith.constant dense<0.000000e+00> : vector<384x24xf32>
    %29 = tpu.matmul %26, %28, %cst_44 {dimension_numbers = #tpu.dot_dimension_numbers<[1], [0], [0], [1], [0, 0, 1, 1], [], []>} : vector<384x8xf32>, vector<8x24xf32>, vector<384x24xf32> -> vector<384x24xf32>
    %c0_45 = arith.constant 0 : index
    %c0_46 = arith.constant 0 : index
    %30 = vector.load %arg5[%c0_45, %c0_46] : memref<384x24xf32, #tpu.memory_space<vmem>>, vector<384x24xf32>
    %31 = arith.addf %30, %29 : vector<384x24xf32>
    %c0_47 = arith.constant 0 : index
    %c0_48 = arith.constant 0 : index
    %32 = vector.load %arg5[%c0_47, %c0_48] : memref<384x24xf32, #tpu.memory_space<vmem>>, vector<384x24xf32>
    tpu.vector_store %arg5[%c0_47, %c0_48], %31 {strides = array<i32>} : memref<384x24xf32, #tpu.memory_space<vmem>>, vector<384x24xf32>,
    %c0_49 = arith.constant 0 : index
    %c0_50 = arith.constant 0 : index
    %33 = vector.load %arg5[%c0_49, %c0_50] : memref<384x24xf32, #tpu.memory_space<vmem>>, vector<384x24xf32>
    %34 = vector.shape_cast %33 : vector<384x24xf32> to vector<16x24x24xf32>
    %35 = vector.extract_strided_slice %34 {offsets = [0, 0, 0], sizes = [16, 16, 8], strides = [1, 1, 1]} : vector<16x24x24xf32> to vector<16x16x8xf32>
    %36 = vector.extract_strided_slice %34 {offsets = [0, 1, 8], sizes = [16, 16, 8], strides = [1, 1, 1]} : vector<16x24x24xf32> to vector<16x16x8xf32>
    %37 = arith.addf %35, %36 : vector<16x16x8xf32>
    %38 = vector.extract_strided_slice %34 {offsets = [0, 2, 16], sizes = [16, 16, 8], strides = [1, 1, 1]} : vector<16x24x24xf32> to vector<16x16x8xf32>
    %39 = arith.addf %37, %38 : vector<16x16x8xf32>
    %cst_51 = arith.constant dense<0.000000e+00> : vector<8xf32>
    %40 = vector.multi_reduction <add>, %39, %cst_51 [0, 1] : vector<16x16x8xf32> to vector<8xf32>
    %41 = vector.shape_cast %40 : vector<8xf32> to vector<1x1x8xf32>
    %cst_52 = arith.constant 3.906250e-03 : f32
    %42 = vector.broadcast %cst_52 : f32 to vector<1x1x8xf32>
    %43 = arith.mulf %41, %42 : vector<1x1x8xf32>
    %44 = arith.mulf %39, %39 : vector<16x16x8xf32>
    %cst_53 = arith.constant dense<0.000000e+00> : vector<8xf32>
    %45 = vector.multi_reduction <add>, %44, %cst_53 [0, 1] : vector<16x16x8xf32> to vector<8xf32>
    %46 = vector.shape_cast %45 : vector<8xf32> to vector<1x1x8xf32>
    %cst_54 = arith.constant 3.906250e-03 : f32
    %47 = vector.broadcast %cst_54 : f32 to vector<1x1x8xf32>
    %48 = arith.mulf %46, %47 : vector<1x1x8xf32>
    %49 = arith.mulf %43, %43 : vector<1x1x8xf32>
    %50 = arith.subf %48, %49 : vector<1x1x8xf32>
    %cst_55 = arith.constant 0.000000e+00 : f32
    %51 = vector.broadcast %cst_55 : f32 to vector<1x1x8xf32>
    %52 = arith.maximumf %50, %51 : vector<1x1x8xf32>
    %53 = vector.broadcast %43 : vector<1x1x8xf32> to vector<16x16x8xf32>
    %54 = arith.subf %39, %53 : vector<16x16x8xf32>
    %cst_56 = arith.constant 9.99999974E-6 : f32
    %55 = vector.broadcast %cst_56 : f32 to vector<1x1x8xf32>
    %56 = arith.addf %52, %55 : vector<1x1x8xf32>
    %57 = math.rsqrt %56 : vector<1x1x8xf32>
    %58 = vector.broadcast %57 : vector<1x1x8xf32> to vector<16x16x8xf32>
    %59 = arith.mulf %54, %58 : vector<16x16x8xf32>
    %cst_57 = arith.constant 0.000000e+00 : f32
    %60 = vector.broadcast %cst_57 : f32 to vector<16x16x8xf32>
    %61 = arith.maximumf %59, %60 : vector<16x16x8xf32>
    %c0_58 = arith.constant 0 : index
    %c0_59 = arith.constant 0 : index
    %c0_60 = arith.constant 0 : index
    %c0_61 = arith.constant 0 : index
    %62 = vector.load %arg3[%c0_58, %c0_59, %c0_60, %c0_61] : memref<1x16x16x8xf32, #tpu.memory_space<vmem>>, vector<1x16x16x8xf32>
    %63 = vector.shape_cast %62 : vector<1x16x16x8xf32> to vector<16x16x8xf32>
    %64 = vector.shape_cast %61 : vector<16x16x8xf32> to vector<1x16x16x8xf32>
    tpu.vector_store %arg3[%c0_58, %c0_59, %c0_60, %c0_61], %64 {strides = array<i32>} : memref<1x16x16x8xf32, #tpu.memory_space<vmem>>, vector<1x16x16x8xf32>,
    return
  }
  func.func @transform_0(%arg0: i32) -> (i32, i32, i32, i32) {
    %c0_i32 = arith.constant 0 : i32
    %c0_i32_0 = arith.constant 0 : i32
    %c0_i32_1 = arith.constant 0 : i32
    %c0_i32_2 = arith.constant 0 : i32
    return %arg0, %c0_i32, %c0_i32_0, %c0_i32_1 : i32, i32, i32, i32
  }
  func.func @transform_1(%arg0: i32) -> (i32, i32, i32) {
    %c0_i32 = arith.constant 0 : i32
    %c0_i32_0 = arith.constant 0 : i32
    %c0_i32_1 = arith.constant 0 : i32
    %c0_i32_2 = arith.constant 0 : i32
    return %c0_i32, %c0_i32_0, %c0_i32_1 : i32, i32, i32
  }
  func.func @transform_2(%arg0: i32) -> (i32, i32, i32, i32) {
    %c0_i32 = arith.constant 0 : i32
    %c0_i32_0 = arith.constant 0 : i32
    %c0_i32_1 = arith.constant 0 : i32
    %c0_i32_2 = arith.constant 0 : i32
    return %arg0, %c0_i32, %c0_i32_0, %c0_i32_1 : i32, i32, i32, i32
  }
}

</mosaic_0001>

<bundles_post_ra>
// kernel: upblock_forward.3
= control target key start
LH: loop header
LB: loop body
LE: loop exit
PB: predicated region body
PF: predicated region fallthrough
CT: control target
= control target key end

     0   :  { %vm38_vm0 = vcmask 64512   ;;  %vm232_vm1 = vcmask 130048   ;;  %s832_s1 = inlined_call_operand.vmem [shape: f32[2,8,16], index: 1, kind: input, shape index: {}]   ;;  %s833_s0 = inlined_call_operand.vmem [shape: f32[128,8], index: 0, kind: input, shape index: {}]   ;;  %s834_s2 = inlined_call_operand.vmem [shape: f32[1,16], index: 2, kind: input, shape index: {}]   ;;  %s835_s3 = inlined_call_operand.vmem [shape: f32[16,2,8,16], index: 3, kind: output, shape index: {}]  }
   0x1   :  { %v30_v0 = vld [vmem:[%s832_s1] sm:$0xff]  ;;  %v441_v1 = vld [vmem:[%s832_s1 + $0x8] sm:$0xff]  ;;  %v16_v4 = vld [vmem:[%s833_s0 + $0x10] sm:$0xff] }
   0x2   :  { %v14_v2 = vld [vmem:[%s833_s0] sm:$0xff]  ;;  %509 = vmatprep.subr.mxu0 %v30_v0  ;;  %535 = vmatprep.subr.mxu1 %v441_v1  ;;  %v15_v3 = vld [vmem:[%s833_s0 + $0x8] sm:$0xff]  ;;  %v17_v5 = vld [vmem:[%s833_s0 + $0x18] sm:$0xff] }
   0x3   :  { %510 = vmatpush3.msra.mxu0 %v30_v0  ;;  %511 = vmatprep.mubr.msk.f32.mxu0 %vm38_vm0, %v14_v2  ;;  %v18_v6 = vld [vmem:[%s833_s0 + $0x20] sm:$0xff]  ;;  %v19_v7 = vld [vmem:[%s833_s0 + $0x28] sm:$0xff]  ;;  %v20_v8 = vld [vmem:[%s833_s0 + $0x30] sm:$0xff] }
   0x4   :  { %536 = vmatpush3.msra.mxu1 %v441_v1  ;;  %537 = vmatprep.mubr.msk.f32.mxu1 %vm38_vm0, %v14_v2  ;;  %v21_v9 = vld [vmem:[%s833_s0 + $0x38] sm:$0xff]  ;;  %v22_v10 = vld [vmem:[%s833_s0 + $0x40] sm:$0xff]  ;;  %v23_v11 = vld [vmem:[%s833_s0 + $0x48] sm:$0xff] }
   0x5   :  { %512 = vmatmul.mubr.msk.f32.vlgmr.msra.gmra.mrb[0].mxu0 %vm38_vm0, %v15_v3  ;;  %538 = vmatmul.mubr.msk.f32.vlgmr.msra.gmra.mrb[0].mxu1 %vm38_vm0, %v15_v3  ;;  %v24_v12 = vld [vmem:[%s833_s0 + $0x50] sm:$0xff]  ;;  %v25_v13 = vld [vmem:[%s833_s0 + $0x58] sm:$0xff]  ;;  %v26_v14 = vld [vmem:[%s833_s0 + $0x60] sm:$0xff] }
   0x6   :  { %514 = vmatprep.mubr.msk.f32.mxu0 %vm38_vm0, %v16_v4  ;;  %540 = vmatprep.mubr.msk.f32.mxu1 %vm38_vm0, %v16_v4  ;;  %v27_v15 = vld [vmem:[%s833_s0 + $0x68] sm:$0xff]  ;;  %v28_v16 = vld [vmem:[%s833_s0 + $0x70] sm:$0xff]  ;;  %v29_v17 = vld [vmem:[%s833_s0 + $0x78] sm:$0xff] }
   0x7   :  { %v670_v18 = vld [vmem:[%s834_s2] ss:$0 sm:$0xff] }
   0x9   :  { %515 = vmatmul.mubr.msk.f32.gmra.mrb[2].mxu0 %vm38_vm0, %v17_v5  ;;  %541 = vmatmul.mubr.msk.f32.gmra.mrb[2].mxu1 %vm38_vm0, %v17_v5 }
   0xa   :  { %517 = vmatprep.mubr.msk.f32.mxu0 %vm38_vm0, %v18_v6  ;;  %543 = vmatprep.mubr.msk.f32.mxu1 %vm38_vm0, %v18_v6 }
   0xd   :  { %518 = vmatmul.mubr.msk.f32.gmra.mrb[4].mxu0 %vm38_vm0, %v19_v7  ;;  %544 = vmatmul.mubr.msk.f32.gmra.mrb[4].mxu1 %vm38_vm0, %v19_v7 }
   0xe   :  { %520 = vmatprep.mubr.msk.f32.mxu0 %vm38_vm0, %v20_v8  ;;  %546 = vmatprep.mubr.msk.f32.mxu1 %vm38_vm0, %v20_v8 }
  0x11   :  { %521 = vmatmul.mubr.msk.f32.gmra.mrb[6].mxu0 %vm38_vm0, %v21_v9  ;;  %547 = vmatmul.mubr.msk.f32.gmra.mrb[6].mxu1 %vm38_vm0, %v21_v9 }
  0x12   :  { %523 = vmatprep.mubr.msk.f32.mxu0 %vm38_vm0, %v22_v10  ;;  %549 = vmatprep.mubr.msk.f32.mxu1 %vm38_vm0, %v22_v10 }
  0x15   :  { %524 = vmatmul.mubr.msk.f32.gmra.mrb[8].mxu0 %vm38_vm0, %v23_v11  ;;  %550 = vmatmul.mubr.msk.f32.gmra.mrb[8].mxu1 %vm38_vm0, %v23_v11 }
  0x16   :  { %526 = vmatprep.mubr.msk.f32.mxu0 %vm38_vm0, %v24_v12  ;;  %552 = vmatprep.mubr.msk.f32.mxu1 %vm38_vm0, %v24_v12 }
  0x19   :  { %527 = vmatmul.mubr.msk.f32.gmra.mrb[10].mxu0 %vm38_vm0, %v25_v13  ;;  %553 = vmatmul.mubr.msk.f32.gmra.mrb[10].mxu1 %vm38_vm0, %v25_v13 }
  0x1a   :  { %529 = vmatprep.mubr.msk.f32.mxu0 %vm38_vm0, %v26_v14  ;;  %555 = vmatprep.mubr.msk.f32.mxu1 %vm38_vm0, %v26_v14 }
  0x1d   :  { %530 = vmatmul.mubr.msk.f32.gmra.mrb[12].mxu0 %vm38_vm0, %v27_v15  ;;  %556 = vmatmul.mubr.msk.f32.gmra.mrb[12].mxu1 %vm38_vm0, %v27_v15 }
  0x1e   :  { %532 = vmatprep.mubr.msk.f32.mxu0 %vm38_vm0, %v28_v16  ;;  %558 = vmatprep.mubr.msk.f32.mxu1 %vm38_vm0, %v28_v16 }
  0x21   :  { %533 = vmatmul.mubr.msk.f32.gmra.mrb[14].mxu0 %vm38_vm0, %v29_v17  ;;  %559 = vmatmul.mubr.msk.f32.gmra.mrb[14].mxu1 %vm38_vm0, %v29_v17 }
  0xd8   :  { %v513_v19 = vpop.f32.mrb[0].mxu0  ;;  %v539_v20 = vpop.f32.mrb[0].mxu1 }
  0xd9   :  { %v159_v21 = vadd.f32 %v513_v19, %v670_v18  ;;  %v330_v22 = vadd.f32 %v539_v20, %v670_v18  ;;  %v153_v23 = vpop.f32.mrb[1].mxu0  ;;  %v324_v24 = vpop.f32.mrb[1].mxu1 }
  0xda   :  { %v154_v25 = vadd.f32 %v670_v18, %v153_v23  ;;  %v325_v26 = vadd.f32 %v670_v18, %v324_v24 }
  0xdb   :  { %234 = vst.msk [vmem:[%s835_s3 + $0x10] sm:$0xff] %vm232_vm1, %v159_v21  ;;  %460 = vst.msk [vmem:[%s835_s3 + $0x18] sm:$0xff] %vm232_vm1, %v330_v22 }
  0xdc   :  { %233 = vst.msk [vmem:[%s835_s3] sm:$0xff] %vm232_vm1, %v154_v25  ;;  %459 = vst.msk [vmem:[%s835_s3 + $0x8] sm:$0xff] %vm232_vm1, %v325_v26  ;;  %v516_v27 = vpop.f32.mrb[2].mxu0  ;;  %v542_v28 = vpop.f32.mrb[2].mxu1 }
  0xdd   :  { %v169_v29 = vadd.f32 %v516_v27, %v670_v18  ;;  %v340_v30 = vadd.f32 %v542_v28, %v670_v18  ;;  %v163_v31 = vpop.f32.mrb[3].mxu0  ;;  %v334_v32 = vpop.f32.mrb[3].mxu1 }
  0xde   :  { %v164_v33 = vadd.f32 %v670_v18, %v163_v31  ;;  %v335_v34 = vadd.f32 %v670_v18, %v334_v32 }
  0xdf   :  { %236 = vst.msk [vmem:[%s835_s3 + $0x30] sm:$0xff] %vm232_vm1, %v169_v29  ;;  %462 = vst.msk [vmem:[%s835_s3 + $0x38] sm:$0xff] %vm232_vm1, %v340_v30 }
  0xe0   :  { %235 = vst.msk [vmem:[%s835_s3 + $0x20] sm:$0xff] %vm232_vm1, %v164_v33  ;;  %461 = vst.msk [vmem:[%s835_s3 + $0x28] sm:$0xff] %vm232_vm1, %v335_v34  ;;  %v519_v35 = vpop.f32.mrb[4].mxu0  ;;  %v545_v36 = vpop.f32.mrb[4].mxu1 }
  0xe1   :  { %v179_v37 = vadd.f32 %v519_v35, %v670_v18  ;;  %v350_v38 = vadd.f32 %v545_v36, %v670_v18  ;;  %v173_v39 = vpop.f32.mrb[5].mxu0  ;;  %v344_v40 = vpop.f32.mrb[5].mxu1 }
  0xe2   :  { %v174_v41 = vadd.f32 %v670_v18, %v173_v39  ;;  %v345_v42 = vadd.f32 %v670_v18, %v344_v40 }
  0xe3   :  { %238 = vst.msk [vmem:[%s835_s3 + $0x50] sm:$0xff] %vm232_vm1, %v179_v37  ;;  %464 = vst.msk [vmem:[%s835_s3 + $0x58] sm:$0xff] %vm232_vm1, %v350_v38 }
  0xe4   :  { %237 = vst.msk [vmem:[%s835_s3 + $0x40] sm:$0xff] %vm232_vm1, %v174_v41  ;;  %463 = vst.msk [vmem:[%s835_s3 + $0x48] sm:$0xff] %vm232_vm1, %v345_v42  ;;  %v522_v43 = vpop.f32.mrb[6].mxu0  ;;  %v548_v44 = vpop.f32.mrb[6].mxu1 }
  0xe5   :  { %v189_v45 = vadd.f32 %v522_v43, %v670_v18  ;;  %v360_v46 = vadd.f32 %v548_v44, %v670_v18  ;;  %v183_v47 = vpop.f32.mrb[7].mxu0  ;;  %v354_v48 = vpop.f32.mrb[7].mxu1 }
  0xe6   :  { %v184_v49 = vadd.f32 %v670_v18, %v183_v47  ;;  %v355_v50 = vadd.f32 %v670_v18, %v354_v48 }
  0xe7   :  { %240 = vst.msk [vmem:[%s835_s3 + $0x70] sm:$0xff] %vm232_vm1, %v189_v45  ;;  %466 = vst.msk [vmem:[%s835_s3 + $0x78] sm:$0xff] %vm232_vm1, %v360_v46 }
  0xe8   :  { %239 = vst.msk [vmem:[%s835_s3 + $0x60] sm:$0xff] %vm232_vm1, %v184_v49  ;;  %465 = vst.msk [vmem:[%s835_s3 + $0x68] sm:$0xff] %vm232_vm1, %v355_v50  ;;  %v525_v51 = vpop.f32.mrb[8].mxu0  ;;  %v551_v52 = vpop.f32.mrb[8].mxu1 }
  0xe9   :  { %v199_v53 = vadd.f32 %v525_v51, %v670_v18  ;;  %v370_v54 = vadd.f32 %v551_v52, %v670_v18  ;;  %v193_v55 = vpop.f32.mrb[9].mxu0  ;;  %v364_v56 = vpop.f32.mrb[9].mxu1 }
  0xea   :  { %v194_v57 = vadd.f32 %v670_v18, %v193_v55  ;;  %v365_v58 = vadd.f32 %v670_v18, %v364_v56 }
  0xeb   :  { %242 = vst.msk [vmem:[%s835_s3 + $0x90] sm:$0xff] %vm232_vm1, %v199_v53  ;;  %468 = vst.msk [vmem:[%s835_s3 + $0x98] sm:$0xff] %vm232_vm1, %v370_v54 }
  0xec   :  { %241 = vst.msk [vmem:[%s835_s3 + $0x80] sm:$0xff] %vm232_vm1, %v194_v57  ;;  %467 = vst.msk [vmem:[%s835_s3 + $0x88] sm:$0xff] %vm232_vm1, %v365_v58  ;;  %v528_v59 = vpop.f32.mrb[10].mxu0  ;;  %v554_v60 = vpop.f32.mrb[10].mxu1 }
  0xed   :  { %v209_v61 = vadd.f32 %v528_v59, %v670_v18  ;;  %v380_v62 = vadd.f32 %v554_v60, %v670_v18  ;;  %v203_v63 = vpop.f32.mrb[11].mxu0  ;;  %v374_v0 = vpop.f32.mrb[11].mxu1 }
  0xee   :  { %v204_v1 = vadd.f32 %v670_v18, %v203_v63  ;;  %v375_v2 = vadd.f32 %v670_v18, %v374_v0 }
  0xef   :  { %244 = vst.msk [vmem:[%s835_s3 + $0xb0] sm:$0xff] %vm232_vm1, %v209_v61  ;;  %470 = vst.msk [vmem:[%s835_s3 + $0xb8] sm:$0xff] %vm232_vm1, %v380_v62 }
  0xf0   :  { %243 = vst.msk [vmem:[%s835_s3 + $0xa0] sm:$0xff] %vm232_vm1, %v204_v1  ;;  %469 = vst.msk [vmem:[%s835_s3 + $0xa8] sm:$0xff] %vm232_vm1, %v375_v2  ;;  %v531_v3 = vpop.f32.mrb[12].mxu0  ;;  %v557_v4 = vpop.f32.mrb[12].mxu1 }
  0xf1   :  { %v219_v5 = vadd.f32 %v531_v3, %v670_v18  ;;  %v390_v6 = vadd.f32 %v557_v4, %v670_v18  ;;  %v213_v7 = vpop.f32.mrb[13].mxu0  ;;  %v384_v8 = vpop.f32.mrb[13].mxu1 }
  0xf2   :  { %v214_v9 = vadd.f32 %v670_v18, %v213_v7  ;;  %v385_v10 = vadd.f32 %v670_v18, %v384_v8 }
  0xf3   :  { %246 = vst.msk [vmem:[%s835_s3 + $0xd0] sm:$0xff] %vm232_vm1, %v219_v5  ;;  %472 = vst.msk [vmem:[%s835_s3 + $0xd8] sm:$0xff] %vm232_vm1, %v390_v6 }
  0xf4   :  { %245 = vst.msk [vmem:[%s835_s3 + $0xc0] sm:$0xff] %vm232_vm1, %v214_v9  ;;  %471 = vst.msk [vmem:[%s835_s3 + $0xc8] sm:$0xff] %vm232_vm1, %v385_v10  ;;  %v534_v11 = vpop.f32.mrb[14].mxu0  ;;  %v560_v12 = vpop.f32.mrb[14].mxu1 }
  0xf5   :  { %v229_v13 = vadd.f32 %v534_v11, %v670_v18  ;;  %v400_v14 = vadd.f32 %v560_v12, %v670_v18  ;;  %v223_v15 = vpop.f32.mrb[15].mxu0  ;;  %v394_v16 = vpop.f32.mrb[15].mxu1 }
  0xf6   :  { %v224_v17 = vadd.f32 %v670_v18, %v223_v15  ;;  %v395_v19 = vadd.f32 %v670_v18, %v394_v16 }
  0xf7   :  { %248 = vst.msk [vmem:[%s835_s3 + $0xf0] sm:$0xff] %vm232_vm1, %v229_v13  ;;  %474 = vst.msk [vmem:[%s835_s3 + $0xf8] sm:$0xff] %vm232_vm1, %v400_v14 }
  0xf8   :  { %247 = vst.msk [vmem:[%s835_s3 + $0xe0] sm:$0xff] %vm232_vm1, %v224_v17  ;;  %473 = vst.msk [vmem:[%s835_s3 + $0xe8] sm:$0xff] %vm232_vm1, %v395_v19 }

// kernel: upblock_forward.4
= control target key start
LH: loop header
LB: loop body
LE: loop exit
PB: predicated region body
PF: predicated region fallthrough
CT: control target
= control target key end

     0   :  { %s3846_s12 = smov 0   ;;  %s5349_s0 = inlined_call_operand.vmem [shape: f32[2,16,16,8], index: 0, kind: input, shape index: {}]   ;;  %s5350_s1 = inlined_call_operand.vmem [shape: f32[2,16,16,4], index: 1, kind: input, shape index: {}]   ;;  %s5351_s2 = inlined_call_operand.vmem [shape: f32[3,12,24], index: 2, kind: input, shape index: {}]   ;;  %s5352_s3 = inlined_call_operand.vmem [shape: f32[2,16,16,8], index: 3, kind: output, shape index: {}]  }
   0x1 LB: > { %s3225_s13 = sadd.s32 4294967295, %s3819_s12   ;;  %p3229_p0 = scmp.ge.s32.totalorder %s3819_s12, 1  ;;  %s3819_s12 = sphi %s3846_s12, %s13_s12  }
   0x2   : > { %p147_p1 = scmp.lt.s32.totalorder %s3819_s12, 3 }
   0x4   : > { %p148_p2 = pnand %p3229_p0, %p147_p1 }
   0x6   : > { %151 = sbr.rel (%p148_p2) target bundleno = 738 (0x2e2), region = 32 }
   0xd   : > { %p176_p3 = scmp.lt.s32.totalorder %s3225_s13, 1  ;;  %v540_v0 = vld [vmem:[%s5351_s2] sm:$0xff]  ;;  %vm686_vm0 = vcmask 1043456   ;;  %v541_v1 = vld [vmem:[%s5351_s2 + $0x8] sm:$0xf]  ;;  %vm191_vm1 = vcmask 97280  }
   0xe   : > { %vm200_vm2 = vcmask 90112   ;;  %v3770_v2 = vpack.c.bf16 %v541_v1, %v540_v0  ;;  %vm3821_vm3 = vmmov 1   ;;  %v3822_v4 = vmov 0.0   ;;  %s3823_s22 = smov 8   ;;  %v3285_v26 = vld [vmem:[%s5351_s2 + $0x10] sm:$0xff]  ;;  %v3336_v35 = vld [vmem:[%s5351_s2 + $0x20] sm:$0xff] }
   0xf   : > { %s5389_s13 = smov (!%p176_p3, %s3225_s13), 1  ;;  %vm3862_vm4 = vmpackc.low %vm686_vm0, %vm3821_vm3  ;;  %208 = vst.msk [vmem:[#allocation2 + $0xc0] sm:$0x1] %vm200_vm2, %v3822_v4  ;;  %vm217_vm5 = vcmask 96256   ;;  %vm266_vm6 = vcmask 64512   ;;  %vm459_vm7 = vcmask 97344  }
  0x10   : > { %192 = vst.msk [vmem:[#allocation2] sm:$0xff] %vm191_vm1, %v3822_v4  ;;  %193 = vst.msk [vmem:[#allocation2 + $0x8] sm:$0xff] %vm191_vm1, %v3822_v4  ;;  %s3905_s18 = sshll.u32 %s5389_s13, 8  ;;  %3788 = vmatprep.subr.msk.bf16.mxu1 %vm3862_vm4, %v3770_v2  ;;  %3772 = vmatprep.subr.msk.bf16.mxu0 %vm3862_vm4, %v3770_v2  ;;  %v3286_v27 = vld [vmem:[%s5351_s2 + $0x18] sm:$0xf]  ;;  %vm995_vm8 = vcmask 195584  }
  0x11   : > { %194 = vst.msk [vmem:[#allocation2 + $0x10] sm:$0xff] %vm191_vm1, %v3822_v4  ;;  %196 = vst.msk [vmem:[#allocation2 + $0x198] sm:$0xff] %vm191_vm1, %v3822_v4  ;;  %s3915_s21 = scalar_lea.vmem %s5350_s1, %s3905_s18  ;;  %3789 = vmatpush3.bf16.msk.msra.mxu1 %vm3862_vm4, %v3770_v2  ;;  %3775 = vmatpush3.bf16.msk.msra.mxu0 %vm3862_vm4, %v3770_v2  ;;  %s3936_s25 = scalar_lea.vmem %s5349_s0, %s3905_s18  ;;  %v3971_v29 = vpack.c.bf16 %v3286_v27, %v3285_v26  ;;  %v3337_v37 = vld [vmem:[%s5351_s2 + $0x28] sm:$0xf]  ;;  %vm2644_vm9 = vcmask 1045504   ;;  %vm2435_vm10 = vcmask 1046528  }
  0x12   : > { %197 = vst.msk [vmem:[#allocation2 + $0x1a0] sm:$0xff] %vm191_vm1, %v3822_v4  ;;  %198 = vst.msk [vmem:[#allocation2 + $0x1a8] sm:$0xff] %vm191_vm1, %v3822_v4  ;;  %v315_v5 = vld [vmem:[%s3915_s21 + $0x80] sm:$0xff]  ;;  %v313_v6 = vld [vmem:[%s3915_s21 + $0x70] sm:$0xff]  ;;  %v3782_v39 = vpack.c.bf16 %v3337_v37, %v3336_v35  ;;  %s3824_s7 = smov 112   ;;  %s3825_s8 = smov 120  }
  0x13   : > { %201 = vst.msk [vmem:[#allocation2 + $0x18] sm:$0x1] %vm200_vm2, %v3822_v4  ;;  %202 = vst.msk [vmem:[#allocation2 + $0x30] sm:$0x1] %vm200_vm2, %v3822_v4  ;;  %395 = vrot.lane.b32.xlu1 %v315_v5, %s3823_s22  ;;  %391 = vrot.lane.b32.xlu0 %v313_v6, %s3823_s22  ;;  %v316_v7 = vld [vmem:[%s3915_s21 + $0x88] sm:$0xff]  ;;  %v314_v8 = vld [vmem:[%s3915_s21 + $0x78] sm:$0xff]  ;;  %s5260_s11 = scalar_lea.vmem %s5352_s3, %s3905_s18 }
  0x14   : > { %203 = vst.msk [vmem:[#allocation2 + $0x48] sm:$0x1] %vm200_vm2, %v3822_v4  ;;  %204 = vst.msk [vmem:[#allocation2 + $0x60] sm:$0x1] %vm200_vm2, %v3822_v4  ;;  %v318_v10 = vld [vmem:[%s3915_s21 + $0x98] sm:$0xff]  ;;  %v317_v11 = vld [vmem:[%s3915_s21 + $0x90] sm:$0xff]  ;;  %3778 = vmatprep.subr.msk.bf16.mxu1 %vm3862_vm4, %v3971_v29  ;;  %3784 = vmatprep.subr.msk.bf16.mxu0 %vm3862_vm4, %v3782_v39 }
  0x15   : > { %205 = vst.msk [vmem:[#allocation2 + $0x78] sm:$0x1] %vm200_vm2, %v3822_v4  ;;  %206 = vst.msk [vmem:[#allocation2 + $0x90] sm:$0x1] %vm200_vm2, %v3822_v4  ;;  %v319_v13 = vld [vmem:[%s3915_s21 + $0xa0] sm:$0xff]  ;;  %v248_v16 = vld [vmem:[%s3936_s25 + $0x70] sm:$0xff] }
  0x16   : > { %207 = vst.msk [vmem:[#allocation2 + $0xa8] sm:$0x1] %vm200_vm2, %v3822_v4  ;;  %209 = vst.msk [vmem:[#allocation2 + $0xd8] sm:$0x1] %vm200_vm2, %v3822_v4  ;;  %v299_v14 = vld [vmem:[%s3915_s21] sm:$0xff]  ;;  %v251_v17 = vld [vmem:[%s3936_s25 + $0x88] sm:$0xff] }
  0x17   : > { %210 = vst.msk [vmem:[#allocation2 + $0xf0] sm:$0x1] %vm200_vm2, %v3822_v4  ;;  %211 = vst.msk [vmem:[#allocation2 + $0x108] sm:$0x1] %vm200_vm2, %v3822_v4  ;;  %397 = vrot.lane.b32.xlu1 %v316_v7, %s3823_s22  ;;  %393 = vrot.lane.b32.xlu0 %v314_v8, %s3823_s22  ;;  %v492_v9 = vld [vmem:[#allocation2] sm:$0xff]  ;;  %v493_v12 = vld [vmem:[#allocation2 + $0x8] sm:$0xff] }
  0x18   : > { %212 = vst.msk [vmem:[#allocation2 + $0x120] sm:$0x1] %vm200_vm2, %v3822_v4  ;;  %213 = vst.msk [vmem:[#allocation2 + $0x138] sm:$0x1] %vm200_vm2, %v3822_v4  ;;  %3546 = vmatprep.mubr.msk.f32.mxu0 %vm191_vm1, %v492_v9  ;;  %v250_v15 = vld [vmem:[%s3936_s25 + $0x80] sm:$0xff]  ;;  %v320_v18 = vld [vmem:[%s3915_s21 + $0xa8] sm:$0xff] }
  0x19   : > { %214 = vst.msk [vmem:[#allocation2 + $0x150] sm:$0x1] %vm200_vm2, %v3822_v4  ;;  %215 = vst.msk [vmem:[#allocation2 + $0x168] sm:$0x1] %vm200_vm2, %v3822_v4  ;;  %3547 = vmatmul.mubr.msk.f32.vlgmr.msra.gmra.mrb[0].mxu0 %vm191_vm1, %v493_v12  ;;  %v300_v19 = vld [vmem:[%s3915_s21 + $0x8] sm:$0xff]  ;;  %v249_v20 = vld [vmem:[%s3936_s25 + $0x78] sm:$0xff] }
  0x1a   : > { %216 = vst.msk [vmem:[#allocation2 + $0x180] sm:$0x1] %vm200_vm2, %v3822_v4  ;;  %v253_v21 = vld [vmem:[%s3936_s25 + $0x98] sm:$0xff]  ;;  %v252_v22 = vld [vmem:[%s3936_s25 + $0x90] sm:$0xff]  ;;  %v254_v23 = vld [vmem:[%s3936_s25 + $0xa0] sm:$0xff]  ;;  %3787 = vmatpush3.bf16.msk.msra.mxu0 %vm3862_vm4, %v3782_v39 }
  0x1b   : > { %225 = vst.msk [vmem:[#allocation2 + $0xd1] sm:$0x7f] %vm217_vm5, %v3822_v4  ;;  %218 = vst.msk [vmem:[#allocation2 + $0x29] sm:$0x7f] %vm217_vm5, %v3822_v4  ;;  %401 = vrot.lane.b32.xlu1 %v318_v10, %s3823_s22  ;;  %399 = vrot.lane.b32.xlu0 %v317_v11, %s3823_s22  ;;  %v234_v24 = vld [vmem:[%s3936_s25] sm:$0xff]  ;;  %v494_v25 = vld [vmem:[#allocation2 + $0x10] sm:$0xff] }
  0x1c   : > { %219 = vst.msk [vmem:[#allocation2 + $0x41] sm:$0x7f] %vm217_vm5, %v3822_v4  ;;  %220 = vst.msk [vmem:[#allocation2 + $0x59] sm:$0x7f] %vm217_vm5, %v3822_v4  ;;  %v255_v28 = vld [vmem:[%s3936_s25 + $0xa8] sm:$0xff]  ;;  %3549 = vmatprep.mubr.msk.f32.mxu0 %vm191_vm1, %v494_v25  ;;  %v237_v31 = vld [vmem:[%s3936_s25 + $0x18] sm:$0xff] }
  0x1d   : > { %221 = vst.msk [vmem:[#allocation2 + $0x71] sm:$0x7f] %vm217_vm5, %v3822_v4  ;;  %222 = vst.msk [vmem:[#allocation2 + $0x89] sm:$0x7f] %vm217_vm5, %v3822_v4  ;;  %v235_v30 = vld [vmem:[%s3936_s25 + $0x8] sm:$0xff]  ;;  %v236_v32 = vld [vmem:[%s3936_s25 + $0x10] sm:$0xff] }
  0x1e   : > { %223 = vst.msk [vmem:[#allocation2 + $0xa1] sm:$0x7f] %vm217_vm5, %v3822_v4  ;;  %224 = vst.msk [vmem:[#allocation2 + $0xb9] sm:$0x7f] %vm217_vm5, %v3822_v4  ;;  %v257_v33 = vld [vmem:[%s3936_s25 + $0xb8] sm:$0xff]  ;;  %v256_v34 = vld [vmem:[%s3936_s25 + $0xb0] sm:$0xff] }
  0x1f   : > { %226 = vst.msk [vmem:[#allocation2 + $0xe9] sm:$0x7f] %vm217_vm5, %v3822_v4  ;;  %227 = vst.msk [vmem:[#allocation2 + $0x101] sm:$0x7f] %vm217_vm5, %v3822_v4  ;;  %403 = vrot.lane.b32.xlu1 %v319_v13, %s3823_s22  ;;  %363 = vrot.lane.b32.xlu0 %v299_v14, %s3823_s22  ;;  %v302_v36 = vld [vmem:[%s3915_s21 + $0x18] sm:$0xff]  ;;  %v301_v38 = vld [vmem:[%s3915_s21 + $0x10] sm:$0xff] }
  0x20   : > { %228 = vst.msk [vmem:[#allocation2 + $0x119] sm:$0x7f] %vm217_vm5, %v3822_v4  ;;  %229 = vst.msk [vmem:[#allocation2 + $0x131] sm:$0x7f] %vm217_vm5, %v3822_v4  ;;  %v258_v40 = vld [vmem:[%s3936_s25 + $0xc0] sm:$0xff]  ;;  %v259_v42 = vld [vmem:[%s3936_s25 + $0xc8] sm:$0xff] }
  0x21   : > { %230 = vst.msk [vmem:[#allocation2 + $0x149] sm:$0x7f] %vm217_vm5, %v3822_v4  ;;  %231 = vst.msk [vmem:[#allocation2 + $0x161] sm:$0x7f] %vm217_vm5, %v3822_v4  ;;  %v238_v41 = vld [vmem:[%s3936_s25 + $0x20] sm:$0xff]  ;;  %v239_v43 = vld [vmem:[%s3936_s25 + $0x28] sm:$0xff] }
  0x22   : > { %232 = vst.msk [vmem:[#allocation2 + $0x179] sm:$0x7f] %vm217_vm5, %v3822_v4  ;;  %233 = vst.msk [vmem:[#allocation2 + $0x191] sm:$0x7f] %vm217_vm5, %v3822_v4  ;;  %v322_v44 = vld [vmem:[%s3915_s21 + $0xb8] sm:$0xff]  ;;  %v321_v45 = vld [vmem:[%s3915_s21 + $0xb0] sm:$0xff] }
  0x23   : > { %283 = vst.msk [vmem:[#allocation2 + $0xd9] sm:$0xff] %vm266_vm6, %v250_v15  ;;  %281 = vst.msk [vmem:[#allocation2 + $0xc1] sm:$0xff] %vm266_vm6, %v248_v16  ;;  %405 = vrot.lane.b32.xlu1 %v320_v18, %s3823_s22  ;;  %365 = vrot.lane.b32.xlu0 %v300_v19, %s3823_s22  ;;  %v241_v46 = vld [vmem:[%s3936_s25 + $0x38] sm:$0xff]  ;;  %v240_v47 = vld [vmem:[%s3936_s25 + $0x30] sm:$0xff] }
  0x24   : > { %284 = vst.msk [vmem:[#allocation2 + $0xe1] sm:$0xff] %vm266_vm6, %v251_v17  ;;  %282 = vst.msk [vmem:[#allocation2 + $0xc9] sm:$0xff] %vm266_vm6, %v249_v20  ;;  %v323_v48 = vld [vmem:[%s3915_s21 + $0xc0] sm:$0xff]  ;;  %v261_v50 = vld [vmem:[%s3936_s25 + $0xd8] sm:$0xff] }
  0x25   : > { %286 = vst.msk [vmem:[#allocation2 + $0xf9] sm:$0xff] %vm266_vm6, %v253_v21  ;;  %285 = vst.msk [vmem:[#allocation2 + $0xf1] sm:$0xff] %vm266_vm6, %v252_v22  ;;  %v303_v49 = vld [vmem:[%s3915_s21 + $0x20] sm:$0xff]  ;;  %v260_v51 = vld [vmem:[%s3936_s25 + $0xd0] sm:$0xff] }
  0x26   : > { %287 = vst.msk [vmem:[#allocation2 + $0x109] sm:$0xff] %vm266_vm6, %v254_v23  ;;  %267 = vst.msk [vmem:[#allocation2 + $0x19] sm:$0xff] %vm266_vm6, %v234_v24  ;;  %v324_v52 = vld [vmem:[%s3915_s21 + $0xc8] sm:$0xff]  ;;  %v242_v54 = vld [vmem:[%s3936_s25 + $0x40] sm:$0xff] }
  0x27   : > { %288 = vst.msk [vmem:[#allocation2 + $0x111] sm:$0xff] %vm266_vm6, %v255_v28  ;;  %268 = vst.msk [vmem:[#allocation2 + $0x21] sm:$0xff] %vm266_vm6, %v235_v30  ;;  %369 = vrot.lane.b32.xlu1 %v302_v36, %s3823_s22  ;;  %367 = vrot.lane.b32.xlu0 %v301_v38, %s3823_s22  ;;  %v304_v53 = vld [vmem:[%s3915_s21 + $0x28] sm:$0xff]  ;;  %v262_v55 = vld [vmem:[%s3936_s25 + $0xe0] sm:$0xff] }
  0x28   : > { %270 = vst.msk [vmem:[#allocation2 + $0x39] sm:$0xff] %vm266_vm6, %v237_v31  ;;  %269 = vst.msk [vmem:[#allocation2 + $0x31] sm:$0xff] %vm266_vm6, %v236_v32  ;;  %v306_v56 = vld [vmem:[%s3915_s21 + $0x38] sm:$0xff]  ;;  %v305_v57 = vld [vmem:[%s3915_s21 + $0x30] sm:$0xff] }
  0x29   : > { %290 = vst.msk [vmem:[#allocation2 + $0x129] sm:$0xff] %vm266_vm6, %v257_v33  ;;  %289 = vst.msk [vmem:[#allocation2 + $0x121] sm:$0xff] %vm266_vm6, %v256_v34  ;;  %v263_v58 = vld [vmem:[%s3936_s25 + $0xe8] sm:$0xff]  ;;  %v326_v60 = vld [vmem:[%s3915_s21 + $0xd8] sm:$0xff] }
  0x2a   : > { %291 = vst.msk [vmem:[#allocation2 + $0x139] sm:$0xff] %vm266_vm6, %v258_v40  ;;  %271 = vst.msk [vmem:[#allocation2 + $0x49] sm:$0xff] %vm266_vm6, %v238_v41  ;;  %v243_v59 = vld [vmem:[%s3936_s25 + $0x48] sm:$0xff]  ;;  %v325_v61 = vld [vmem:[%s3915_s21 + $0xd0] sm:$0xff] }
  0x2b   : > { %292 = vst.msk [vmem:[#allocation2 + $0x141] sm:$0xff] %vm266_vm6, %v259_v42  ;;  %272 = vst.msk [vmem:[#allocation2 + $0x51] sm:$0xff] %vm266_vm6, %v239_v43  ;;  %409 = vrot.lane.b32.xlu1 %v322_v44, %s3823_s22  ;;  %407 = vrot.lane.b32.xlu0 %v321_v45, %s3823_s22  ;;  %v245_v62 = vld [vmem:[%s3936_s25 + $0x58] sm:$0xff]  ;;  %v244_v63 = vld [vmem:[%s3936_s25 + $0x50] sm:$0xff] }
  0x2c   : > { %274 = vst.msk [vmem:[#allocation2 + $0x69] sm:$0xff] %vm266_vm6, %v241_v46  ;;  %273 = vst.msk [vmem:[#allocation2 + $0x61] sm:$0xff] %vm266_vm6, %v240_v47  ;;  %v327_v0 = vld [vmem:[%s3915_s21 + $0xe0] sm:$0xff]  ;;  %v247_v2 = vld [vmem:[%s3936_s25 + $0x68] sm:$0xff] }
  0x2d   : > { %294 = vst.msk [vmem:[#allocation2 + $0x159] sm:$0xff] %vm266_vm6, %v261_v50  ;;  %293 = vst.msk [vmem:[#allocation2 + $0x151] sm:$0xff] %vm266_vm6, %v260_v51  ;;  %v307_v1 = vld [vmem:[%s3915_s21 + $0x40] sm:$0xff]  ;;  %v328_v5 = vld [vmem:[%s3915_s21 + $0xe8] sm:$0xff] }
  0x2e   : > { %275 = vst.msk [vmem:[#allocation2 + $0x79] sm:$0xff] %vm266_vm6, %v242_v54  ;;  %295 = vst.msk [vmem:[#allocation2 + $0x169] sm:$0xff] %vm266_vm6, %v262_v55  ;;  %v246_v4 = vld [vmem:[%s3936_s25 + $0x60] sm:$0xff]  ;;  %v308_v6 = vld [vmem:[%s3915_s21 + $0x48] sm:$0xff] }
  0x2f   : > { %411 = vrot.lane.b32.xlu1 %v323_v48, %s3823_s22  ;;  %371 = vrot.lane.b32.xlu0 %v303_v49, %s3823_s22  ;;  %296 = vst.msk [vmem:[#allocation2 + $0x171] sm:$0xff] %vm266_vm6, %v263_v58  ;;  %276 = vst.msk [vmem:[#allocation2 + $0x81] sm:$0xff] %vm266_vm6, %v243_v59  ;;  %v310_v7 = vld [vmem:[%s3915_s21 + $0x58] sm:$0xff]  ;;  %v309_v8 = vld [vmem:[%s3915_s21 + $0x50] sm:$0xff] }
  0x30   : > { %278 = vst.msk [vmem:[#allocation2 + $0x99] sm:$0xff] %vm266_vm6, %v245_v62  ;;  %277 = vst.msk [vmem:[#allocation2 + $0x91] sm:$0xff] %vm266_vm6, %v244_v63  ;;  %v312_v9 = vld [vmem:[%s3915_s21 + $0x68] sm:$0xff]  ;;  %v311_v10 = vld [vmem:[%s3915_s21 + $0x60] sm:$0xff] }
  0x31   : > { %280 = vst.msk [vmem:[#allocation2 + $0xb1] sm:$0xff] %vm266_vm6, %v247_v2  ;;  %279 = vst.msk [vmem:[#allocation2 + $0xa9] sm:$0xff] %vm266_vm6, %v246_v4  ;;  %v329_v11 = vld [vmem:[%s3915_s21 + $0xf0] sm:$0xff]  ;;  %v330_v12 = vld [vmem:[%s3915_s21 + $0xf8] sm:$0xff] }
  0x32   : > { %v264_v20 = vld [vmem:[%s3936_s25 + $0xf0] sm:$0xff]  ;;  %v265_v25 = vld [vmem:[%s3936_s25 + $0xf8] sm:$0xff] }
  0x33   : > { %413 = vrot.lane.b32.xlu1 %v324_v52, %s3823_s22  ;;  %373 = vrot.lane.b32.xlu0 %v304_v53, %s3823_s22  ;;  %297 = vst.msk [vmem:[#allocation2 + $0x181] sm:$0xff] %vm266_vm6, %v264_v20  ;;  %298 = vst.msk [vmem:[#allocation2 + $0x189] sm:$0xff] %vm266_vm6, %v265_v25 }
  0x37   : > { %377 = vrot.lane.b32.xlu1 %v306_v56, %s3823_s22  ;;  %375 = vrot.lane.b32.xlu0 %v305_v57, %s3823_s22 }
  0x3b   : > { %417 = vrot.lane.b32.xlu1 %v326_v60, %s3823_s22  ;;  %415 = vrot.lane.b32.xlu0 %v325_v61, %s3823_s22 }
  0x3f   : > { %419 = vrot.lane.b32.xlu1 %v327_v0, %s3823_s22  ;;  %379 = vrot.lane.b32.xlu0 %v307_v1, %s3823_s22 }
  0x43   : > { %421 = vrot.lane.b32.xlu1 %v328_v5, %s3823_s22  ;;  %381 = vrot.lane.b32.xlu0 %v308_v6, %s3823_s22 }
  0x47   : > { %385 = vrot.lane.b32.xlu1 %v310_v7, %s3823_s22  ;;  %383 = vrot.lane.b32.xlu0 %v309_v8, %s3823_s22 }
  0x4b   : > { %389 = vrot.lane.b32.xlu1 %v312_v9, %s3823_s22  ;;  %387 = vrot.lane.b32.xlu0 %v311_v10, %s3823_s22 }
  0x4f   : > { %423 = vrot.lane.b32.xlu0 %v329_v11, %s3823_s22  ;;  %425 = vrot.lane.b32.xlu1 %v330_v12, %s3823_s22 }
  0x85   : > { %v396_v13 = vpop.permute.xlu1 %395  ;;  %v392_v14 = vpop.permute.xlu0 %391 }
  0x86   : > { %476 = vst.msk [vmem:[#allocation2 + $0xd9] sm:$0xff] %vm459_vm7, %v396_v13  ;;  %474 = vst.msk [vmem:[#allocation2 + $0xc1] sm:$0xff] %vm459_vm7, %v392_v14 }
  0x89   : > { %v398_v15 = vpop.permute.xlu1 %397  ;;  %v394_v16 = vpop.permute.xlu0 %393 }
  0x8a   : > { %477 = vst.msk [vmem:[#allocation2 + $0xe1] sm:$0xff] %vm459_vm7, %v398_v15  ;;  %475 = vst.msk [vmem:[#allocation2 + $0xc9] sm:$0xff] %vm459_vm7, %v394_v16 }
  0x8d   : > { %v402_v17 = vpop.permute.xlu1 %401  ;;  %v400_v18 = vpop.permute.xlu0 %399  ;;  %v4079_v19 = vld [vmem:[#allocation2 + $0xc0] sm:$0xff]  ;;  %v4101_v28 = vld [vmem:[#allocation2 + $0xd8] sm:$0xff] }
  0x8e   : > { %479 = vst.msk [vmem:[#allocation2 + $0xf9] sm:$0xff] %vm459_vm7, %v402_v17  ;;  %478 = vst.msk [vmem:[#allocation2 + $0xf1] sm:$0xff] %vm459_vm7, %v400_v18  ;;  %3582 = vmatprep.mubr.msk.f32.mxu1 %vm191_vm1, %v4079_v19 }
  0x91   : > { %v404_v21 = vpop.permute.xlu1 %403  ;;  %v364_v22 = vpop.permute.xlu0 %363  ;;  %v4086_v23 = vld [vmem:[#allocation2 + $0xc8] sm:$0xff]  ;;  %v4088_v24 = vld [vmem:[#allocation2 + $0xd0] sm:$0xff]  ;;  %v4108_v30 = vld [vmem:[#allocation2 + $0xe0] sm:$0xff] }
  0x92   : > { %480 = vst.msk [vmem:[#allocation2 + $0x109] sm:$0xff] %vm459_vm7, %v404_v21  ;;  %460 = vst.msk [vmem:[#allocation2 + $0x19] sm:$0xff] %vm459_vm7, %v364_v22  ;;  %3583 = vmatmul.mubr.msk.f32.vlgmr.msra.gmra.mrb[0].mxu1 %vm191_vm1, %v4086_v23  ;;  %v4114_v32 = vld [vmem:[#allocation2 + $0xe8] sm:$0xff] }
  0x93   : > { %3585 = vmatprep.mubr.msk.f32.mxu1 %vm191_vm1, %v4088_v24  ;;  %3781 = vmatpush3.bf16.msk.msra.mxu1 %vm3862_vm4, %v3971_v29 }
  0x95   : > { %v406_v26 = vpop.permute.xlu1 %405  ;;  %v366_v27 = vpop.permute.xlu0 %365  ;;  %v4122_v33 = vld [vmem:[#allocation2 + $0xf0] sm:$0xff]  ;;  %v4128_v37 = vld [vmem:[#allocation2 + $0xf8] sm:$0xff]  ;;  %v4138_v39 = vld [vmem:[#allocation2 + $0x100] sm:$0xff] }
  0x96   : > { %481 = vst.msk [vmem:[#allocation2 + $0x111] sm:$0xff] %vm459_vm7, %v406_v26  ;;  %461 = vst.msk [vmem:[#allocation2 + $0x21] sm:$0xff] %vm459_vm7, %v366_v27  ;;  %3586 = vmatmul.mubr.msk.f32.gmra.mrb[2].mxu1 %vm191_vm1, %v4101_v28 }
  0x97   : > { %3588 = vmatprep.mubr.msk.f32.mxu1 %vm191_vm1, %v4108_v30 }
  0x99   : > { %v370_v3 = vpop.permute.xlu1 %369  ;;  %v368_v29 = vpop.permute.xlu0 %367  ;;  %v4112_v31 = vld [vmem:[#allocation2 + $0x18] sm:$0xff]  ;;  %v4144_v40 = vld [vmem:[#allocation2 + $0x108] sm:$0xff] }
  0x9a   : > { %463 = vst.msk [vmem:[#allocation2 + $0x39] sm:$0xff] %vm459_vm7, %v370_v3  ;;  %462 = vst.msk [vmem:[#allocation2 + $0x31] sm:$0xff] %vm459_vm7, %v368_v29  ;;  %3550 = vmatmul.mubr.msk.f32.gmra.mrb[2].mxu0 %vm191_vm1, %v4112_v31  ;;  %3589 = vmatmul.mubr.msk.f32.gmra.mrb[4].mxu1 %vm191_vm1, %v4114_v32 }
  0x9b   : > { %3591 = vmatprep.mubr.msk.f32.mxu1 %vm191_vm1, %v4122_v33 }
  0x9d   : > { %v410_v34 = vpop.permute.xlu1 %409  ;;  %v408_v35 = vpop.permute.xlu0 %407  ;;  %v4126_v36 = vld [vmem:[#allocation2 + $0x20] sm:$0xff]  ;;  %v4130_v38 = vld [vmem:[#allocation2 + $0x28] sm:$0xff]  ;;  %v4158_v46 = vld [vmem:[#allocation2 + $0x110] sm:$0xff] }
  0x9e   : > { %483 = vst.msk [vmem:[#allocation2 + $0x129] sm:$0xff] %vm459_vm7, %v410_v34  ;;  %482 = vst.msk [vmem:[#allocation2 + $0x121] sm:$0xff] %vm459_vm7, %v408_v35  ;;  %3552 = vmatprep.mubr.msk.f32.mxu0 %vm191_vm1, %v4126_v36  ;;  %3592 = vmatmul.mubr.msk.f32.gmra.mrb[6].mxu1 %vm191_vm1, %v4128_v37  ;;  %v4166_v49 = vld [vmem:[#allocation2 + $0x118] sm:$0xff] }
  0x9f   : > { %3553 = vmatmul.mubr.msk.f32.gmra.mrb[4].mxu0 %vm191_vm1, %v4130_v38  ;;  %3594 = vmatprep.mubr.msk.f32.mxu1 %vm191_vm1, %v4138_v39 }
  0xa1   : > { %v412_v41 = vpop.permute.xlu1 %411  ;;  %v372_v42 = vpop.permute.xlu0 %371  ;;  %v4146_v43 = vld [vmem:[#allocation2 + $0x30] sm:$0xff]  ;;  %v4148_v44 = vld [vmem:[#allocation2 + $0x38] sm:$0xff]  ;;  %v4150_v45 = vld [vmem:[#allocation2 + $0x40] sm:$0xff] }
  0xa2   : > { %484 = vst.msk [vmem:[#allocation2 + $0x139] sm:$0xff] %vm459_vm7, %v412_v41  ;;  %464 = vst.msk [vmem:[#allocation2 + $0x49] sm:$0xff] %vm459_vm7, %v372_v42  ;;  %3555 = vmatprep.mubr.msk.f32.mxu0 %vm191_vm1, %v4146_v43  ;;  %3595 = vmatmul.mubr.msk.f32.gmra.mrb[8].mxu1 %vm191_vm1, %v4144_v40 }
  0xa3   : > { %3556 = vmatmul.mubr.msk.f32.gmra.mrb[6].mxu0 %vm191_vm1, %v4148_v44  ;;  %3597 = vmatprep.mubr.msk.f32.mxu1 %vm191_vm1, %v4158_v46 }
  0xa4   : > { %3558 = vmatprep.mubr.msk.f32.mxu0 %vm191_vm1, %v4150_v45 }
  0xa5   : > { %v414_v47 = vpop.permute.xlu1 %413  ;;  %v374_v48 = vpop.permute.xlu0 %373  ;;  %v4168_v50 = vld [vmem:[#allocation2 + $0x120] sm:$0xff]  ;;  %v4178_v54 = vld [vmem:[#allocation2 + $0x128] sm:$0xff]  ;;  %v4186_v55 = vld [vmem:[#allocation2 + $0x130] sm:$0xff] }
  0xa6   : > { %485 = vst.msk [vmem:[#allocation2 + $0x141] sm:$0xff] %vm459_vm7, %v414_v47  ;;  %465 = vst.msk [vmem:[#allocation2 + $0x51] sm:$0xff] %vm459_vm7, %v374_v48  ;;  %3598 = vmatmul.mubr.msk.f32.gmra.mrb[10].mxu1 %vm191_vm1, %v4166_v49 }
  0xa7   : > { %3600 = vmatprep.mubr.msk.f32.mxu1 %vm191_vm1, %v4168_v50 }
  0xa9   : > { %v378_v51 = vpop.permute.xlu1 %377  ;;  %v376_v52 = vpop.permute.xlu0 %375  ;;  %v4176_v53 = vld [vmem:[#allocation2 + $0x48] sm:$0xff]  ;;  %v4190_v56 = vld [vmem:[#allocation2 + $0x138] sm:$0xff] }
  0xaa   : > { %467 = vst.msk [vmem:[#allocation2 + $0x69] sm:$0xff] %vm459_vm7, %v378_v51  ;;  %466 = vst.msk [vmem:[#allocation2 + $0x61] sm:$0xff] %vm459_vm7, %v376_v52  ;;  %3559 = vmatmul.mubr.msk.f32.gmra.mrb[8].mxu0 %vm191_vm1, %v4176_v53  ;;  %3601 = vmatmul.mubr.msk.f32.gmra.mrb[12].mxu1 %vm191_vm1, %v4178_v54 }
  0xab   : > { %3603 = vmatprep.mubr.msk.f32.mxu1 %vm191_vm1, %v4186_v55 }
  0xad   : > { %v418_v57 = vpop.permute.xlu1 %417  ;;  %v416_v58 = vpop.permute.xlu0 %415  ;;  %v4192_v59 = vld [vmem:[#allocation2 + $0x50] sm:$0xff]  ;;  %v4194_v60 = vld [vmem:[#allocation2 + $0x58] sm:$0xff]  ;;  %v4196_v61 = vld [vmem:[#allocation2 + $0x140] sm:$0xff] }
  0xae   : > { %487 = vst.msk [vmem:[#allocation2 + $0x159] sm:$0xff] %vm459_vm7, %v418_v57  ;;  %486 = vst.msk [vmem:[#allocation2 + $0x151] sm:$0xff] %vm459_vm7, %v416_v58  ;;  %3561 = vmatprep.mubr.msk.f32.mxu0 %vm191_vm1, %v4192_v59  ;;  %3604 = vmatmul.mubr.msk.f32.gmra.mrb[14].mxu1 %vm191_vm1, %v4190_v56  ;;  %v4208_v62 = vld [vmem:[#allocation2 + $0x148] sm:$0xff] }
  0xaf   : > { %3562 = vmatmul.mubr.msk.f32.gmra.mrb[10].mxu0 %vm191_vm1, %v4194_v60  ;;  %3606 = vmatprep.mubr.msk.f32.mxu1 %vm191_vm1, %v4196_v61 }
  0xb1   : > { %v420_v63 = vpop.permute.xlu1 %419  ;;  %v380_v0 = vpop.permute.xlu0 %379  ;;  %v4210_v1 = vld [vmem:[#allocation2 + $0x60] sm:$0xff]  ;;  %v4212_v2 = vld [vmem:[#allocation2 + $0x68] sm:$0xff]  ;;  %v4214_v4 = vld [vmem:[#allocation2 + $0x70] sm:$0xff] }
  0xb2   : > { %488 = vst.msk [vmem:[#allocation2 + $0x169] sm:$0xff] %vm459_vm7, %v420_v63  ;;  %468 = vst.msk [vmem:[#allocation2 + $0x79] sm:$0xff] %vm459_vm7, %v380_v0  ;;  %3564 = vmatprep.mubr.msk.f32.mxu0 %vm191_vm1, %v4210_v1  ;;  %3607 = vmatmul.mubr.msk.f32.gmra.mrb[16].mxu1 %vm191_vm1, %v4208_v62 }
  0xb3   : > { %3565 = vmatmul.mubr.msk.f32.gmra.mrb[12].mxu0 %vm191_vm1, %v4212_v2 }
  0xb4   : > { %3567 = vmatprep.mubr.msk.f32.mxu0 %vm191_vm1, %v4214_v4 }
  0xb5   : > { %v422_v5 = vpop.permute.xlu1 %421  ;;  %v382_v6 = vpop.permute.xlu0 %381  ;;  %v4226_v7 = vld [vmem:[#allocation2 + $0x150] sm:$0xff]  ;;  %v4228_v8 = vld [vmem:[#allocation2 + $0x158] sm:$0xff]  ;;  %v4230_v9 = vld [vmem:[#allocation2 + $0x160] sm:$0xff] }
  0xb6   : > { %489 = vst.msk [vmem:[#allocation2 + $0x171] sm:$0xff] %vm459_vm7, %v422_v5  ;;  %469 = vst.msk [vmem:[#allocation2 + $0x81] sm:$0xff] %vm459_vm7, %v382_v6  ;;  %3609 = vmatprep.mubr.msk.f32.mxu1 %vm191_vm1, %v4226_v7 }
  0xb7   : > { %3610 = vmatmul.mubr.msk.f32.gmra.mrb[18].mxu1 %vm191_vm1, %v4228_v8 }
  0xb8   : > { %3612 = vmatprep.mubr.msk.f32.mxu1 %vm191_vm1, %v4230_v9 }
  0xb9   : > { %v386_v10 = vpop.permute.xlu1 %385  ;;  %v384_v11 = vpop.permute.xlu0 %383  ;;  %v507_v12 = vld [vmem:[#allocation2 + $0x78] sm:$0xff]  ;;  %v4240_v13 = vld [vmem:[#allocation2 + $0x168] sm:$0xff] }
  0xba   : > { %471 = vst.msk [vmem:[#allocation2 + $0x99] sm:$0xff] %vm459_vm7, %v386_v10  ;;  %470 = vst.msk [vmem:[#allocation2 + $0x91] sm:$0xff] %vm459_vm7, %v384_v11  ;;  %3568 = vmatmul.mubr.msk.f32.gmra.mrb[14].mxu0 %vm191_vm1, %v507_v12 }
  0xbb   : > { %3613 = vmatmul.mubr.msk.f32.gmra.mrb[20].mxu1 %vm191_vm1, %v4240_v13 }
  0xbd   : > { %v390_v14 = vpop.permute.xlu1 %389  ;;  %v388_v15 = vpop.permute.xlu0 %387  ;;  %v508_v16 = vld [vmem:[#allocation2 + $0x80] sm:$0xff]  ;;  %v4247_v17 = vld [vmem:[#allocation2 + $0x170] sm:$0xff]  ;;  %v509_v18 = vld [vmem:[#allocation2 + $0x88] sm:$0xff] }
  0xbe   : > { %473 = vst.msk [vmem:[#allocation2 + $0xb1] sm:$0xff] %vm459_vm7, %v390_v14  ;;  %472 = vst.msk [vmem:[#allocation2 + $0xa9] sm:$0xff] %vm459_vm7, %v388_v15  ;;  %3570 = vmatprep.mubr.msk.f32.mxu0 %vm191_vm1, %v508_v16  ;;  %3615 = vmatprep.mubr.msk.f32.mxu1 %vm191_vm1, %v4247_v17  ;;  %v4254_v20 = vld [vmem:[#allocation2 + $0x178] sm:$0xff] }
  0xbf   : > { %3571 = vmatmul.mubr.msk.f32.gmra.mrb[16].mxu0 %vm191_vm1, %v509_v18  ;;  %3616 = vmatmul.mubr.msk.f32.gmra.mrb[22].mxu1 %vm191_vm1, %v4254_v20 }
  0xc0   : > { %3622 = vmatprep.mubr.msk.f32.mxu1 %vm191_vm1, %v4112_v31 }
  0xc1   : > { %v510_v21 = vld [vmem:[#allocation2 + $0x90] sm:$0xff]  ;;  %v511_v22 = vld [vmem:[#allocation2 + $0x98] sm:$0xff]  ;;  %v512_v25 = vld [vmem:[#allocation2 + $0xa0] sm:$0xff]  ;;  %v424_v26 = vpop.permute.xlu0 %423  ;;  %v426_v27 = vpop.permute.xlu1 %425 }
  0xc2   : > { %3573 = vmatprep.mubr.msk.f32.mxu0 %vm191_vm1, %v510_v21  ;;  %490 = vst.msk [vmem:[#allocation2 + $0x181] sm:$0xff] %vm459_vm7, %v424_v26  ;;  %491 = vst.msk [vmem:[#allocation2 + $0x189] sm:$0xff] %vm459_vm7, %v426_v27 }
  0xc3   : > { %3574 = vmatmul.mubr.msk.f32.gmra.mrb[18].mxu0 %vm191_vm1, %v511_v22  ;;  %3623 = vmatmul.mubr.msk.f32.vlgmr.msra.gmra.mrb[24].mxu1 %vm191_vm1, %v4126_v36 }
  0xc4   : > { %3576 = vmatprep.mubr.msk.f32.mxu0 %vm191_vm1, %v512_v25  ;;  %3625 = vmatprep.mubr.msk.f32.mxu1 %vm191_vm1, %v4130_v38 }
  0xc5   : > { %v513_v3 = vld [vmem:[#allocation2 + $0xa8] sm:$0xff]  ;;  %v514_v29 = vld [vmem:[#allocation2 + $0xb0] sm:$0xff]  ;;  %v515_v31 = vld [vmem:[#allocation2 + $0xb8] sm:$0xff] }
  0xc7   : > { %3577 = vmatmul.mubr.msk.f32.gmra.mrb[20].mxu0 %vm191_vm1, %v513_v3  ;;  %3626 = vmatmul.mubr.msk.f32.gmra.mrb[26].mxu1 %vm191_vm1, %v4146_v43 }
  0xc8   : > { %3579 = vmatprep.mubr.msk.f32.mxu0 %vm191_vm1, %v514_v29  ;;  %3628 = vmatprep.mubr.msk.f32.mxu1 %vm191_vm1, %v4148_v44 }
  0xcb   : > { %3580 = vmatmul.mubr.msk.f32.gmra.mrb[22].mxu0 %vm191_vm1, %v515_v31  ;;  %3629 = vmatmul.mubr.msk.f32.gmra.mrb[28].mxu1 %vm191_vm1, %v4150_v45 }
  0xcc   : > { %3631 = vmatprep.mubr.msk.f32.mxu1 %vm191_vm1, %v4176_v53  ;;  %3698 = vmatprep.mubr.msk.f32.mxu0 %vm191_vm1, %v4146_v43 }
  0xcf   : > { %3632 = vmatmul.mubr.msk.f32.gmra.mrb[30].mxu1 %vm191_vm1, %v4192_v59  ;;  %3699 = vmatmul.mubr.msk.f32.vlgmr.msra.gmra.mrb[24].mxu0 %vm191_vm1, %v4148_v44 }
  0xd0   : > { %3634 = vmatprep.mubr.msk.f32.mxu1 %vm191_vm1, %v4194_v60  ;;  %3701 = vmatprep.mubr.msk.f32.mxu0 %vm191_vm1, %v4150_v45 }
  0xd3   : > { %3635 = vmatmul.mubr.msk.f32.gmra.mrb[32].mxu1 %vm191_vm1, %v4210_v1  ;;  %3702 = vmatmul.mubr.msk.f32.gmra.mrb[26].mxu0 %vm191_vm1, %v4176_v53 }
  0xd4   : > { %3637 = vmatprep.mubr.msk.f32.mxu1 %vm191_vm1, %v4212_v2  ;;  %3704 = vmatprep.mubr.msk.f32.mxu0 %vm191_vm1, %v4192_v59 }
  0xd7   : > { %3638 = vmatmul.mubr.msk.f32.gmra.mrb[34].mxu1 %vm191_vm1, %v4214_v4  ;;  %3705 = vmatmul.mubr.msk.f32.gmra.mrb[28].mxu0 %vm191_vm1, %v4194_v60 }
  0xd8   : > { %3640 = vmatprep.mubr.msk.f32.mxu1 %vm191_vm1, %v507_v12  ;;  %3707 = vmatprep.mubr.msk.f32.mxu0 %vm191_vm1, %v4210_v1 }
  0xdb   : > { %3641 = vmatmul.mubr.msk.f32.gmra.mrb[36].mxu1 %vm191_vm1, %v508_v16  ;;  %3708 = vmatmul.mubr.msk.f32.gmra.mrb[30].mxu0 %vm191_vm1, %v4212_v2 }
  0xdc   : > { %3643 = vmatprep.mubr.msk.f32.mxu1 %vm191_vm1, %v509_v18  ;;  %3710 = vmatprep.mubr.msk.f32.mxu0 %vm191_vm1, %v4214_v4 }
  0xdf   : > { %3644 = vmatmul.mubr.msk.f32.gmra.mrb[38].mxu1 %vm191_vm1, %v510_v21  ;;  %3711 = vmatmul.mubr.msk.f32.gmra.mrb[32].mxu0 %vm191_vm1, %v507_v12 }
  0xe0   : > { %3646 = vmatprep.mubr.msk.f32.mxu1 %vm191_vm1, %v511_v22  ;;  %3713 = vmatprep.mubr.msk.f32.mxu0 %vm191_vm1, %v508_v16 }
  0xe3   : > { %3647 = vmatmul.mubr.msk.f32.gmra.mrb[40].mxu1 %vm191_vm1, %v512_v25  ;;  %3714 = vmatmul.mubr.msk.f32.gmra.mrb[34].mxu0 %vm191_vm1, %v509_v18 }
  0xe4   : > { %3649 = vmatprep.mubr.msk.f32.mxu1 %vm191_vm1, %v513_v3  ;;  %3716 = vmatprep.mubr.msk.f32.mxu0 %vm191_vm1, %v510_v21 }
  0xe7   : > { %3650 = vmatmul.mubr.msk.f32.gmra.mrb[42].mxu1 %vm191_vm1, %v514_v29  ;;  %3717 = vmatmul.mubr.msk.f32.gmra.mrb[36].mxu0 %vm191_vm1, %v511_v22 }
  0xe8   : > { %3652 = vmatprep.mubr.msk.f32.mxu1 %vm191_vm1, %v515_v31  ;;  %3719 = vmatprep.mubr.msk.f32.mxu0 %vm191_vm1, %v512_v25 }
  0xeb   : > { %3653 = vmatmul.mubr.msk.f32.gmra.mrb[44].mxu1 %vm191_vm1, %v4079_v19  ;;  %3720 = vmatmul.mubr.msk.f32.gmra.mrb[38].mxu0 %vm191_vm1, %v513_v3 }
  0xec   : > { %3655 = vmatprep.mubr.msk.f32.mxu1 %vm191_vm1, %v4086_v23  ;;  %3722 = vmatprep.mubr.msk.f32.mxu0 %vm191_vm1, %v514_v29  ;;  %v3548_v34 = vpop.f32.mrb[0].mxu0 }
  0xed   : > { %997 = vst.msk [vmem:[#allocation3 + $0x8] sm:$0xff] %vm995_vm8, %v3548_v34  ;;  %v756_v35 = vpop.f32.mrb[1].mxu0 }
  0xee   : > { %996 = vst.msk [vmem:[#allocation3] sm:$0xff] %vm995_vm8, %v756_v35 }
  0xef   : > { %3656 = vmatmul.mubr.msk.f32.gmra.mrb[46].mxu1 %vm191_vm1, %v4088_v24  ;;  %3723 = vmatmul.mubr.msk.f32.gmra.mrb[40].mxu0 %vm191_vm1, %v515_v31 }
  0xf0   : > { %3658 = vmatprep.mubr.msk.f32.mxu1 %vm191_vm1, %v4101_v28  ;;  %3725 = vmatprep.mubr.msk.f32.mxu0 %vm191_vm1, %v4079_v19  ;;  %v1089_v19 = vld [vmem:[#allocation2 + $0x180] sm:$0xff] }
  0xf3   : > { %3659 = vmatmul.mubr.msk.f32.gmra.mrb[48].mxu1 %vm191_vm1, %v4108_v30  ;;  %3726 = vmatmul.mubr.msk.f32.gmra.mrb[42].mxu0 %vm191_vm1, %v4086_v23  ;;  %v1090_v23 = vld [vmem:[#allocation2 + $0x188] sm:$0xff] }
  0xf4   : > { %3661 = vmatprep.mubr.msk.f32.mxu1 %vm191_vm1, %v4114_v32  ;;  %3728 = vmatprep.mubr.msk.f32.mxu0 %vm191_vm1, %v4088_v24  ;;  %v1091_v24 = vld [vmem:[#allocation2 + $0x190] sm:$0xff]  ;;  %v1548_v14 = vld [vmem:[#allocation3 + $0x8] sm:$0xff] }
  0xf5   : > { %v1547_v18 = vld [vmem:[#allocation3] sm:$0xff] }
  0xf7   : > { %3662 = vmatmul.mubr.msk.f32.gmra.mrb[50].mxu1 %vm191_vm1, %v4122_v33  ;;  %3729 = vmatmul.mubr.msk.f32.gmra.mrb[44].mxu0 %vm191_vm1, %v4101_v28  ;;  %v1737_v28 = vld [vmem:[#allocation2 + $0x198] sm:$0xff] }
  0xf8   : > { %3664 = vmatprep.mubr.msk.f32.mxu1 %vm191_vm1, %v4128_v37  ;;  %3731 = vmatprep.mubr.msk.f32.mxu0 %vm191_vm1, %v4108_v30  ;;  %v1738_v30 = vld [vmem:[#allocation2 + $0x1a0] sm:$0xff] }
  0xfb   : > { %3665 = vmatmul.mubr.msk.f32.gmra.mrb[52].mxu1 %vm191_vm1, %v4138_v39  ;;  %3732 = vmatmul.mubr.msk.f32.gmra.mrb[46].mxu0 %vm191_vm1, %v4114_v32  ;;  %v1739_v32 = vld [vmem:[#allocation2 + $0x1a8] sm:$0xff] }
  0xfc   : > { %3667 = vmatprep.mubr.msk.f32.mxu1 %vm191_vm1, %v4144_v40  ;;  %3734 = vmatprep.mubr.msk.f32.mxu0 %vm191_vm1, %v4122_v33 }
  0xff   : > { %3668 = vmatmul.mubr.msk.f32.gmra.mrb[54].mxu1 %vm191_vm1, %v4158_v46  ;;  %3735 = vmatmul.mubr.msk.f32.gmra.mrb[48].mxu0 %vm191_vm1, %v4128_v37 }
 0x100   : > { %3670 = vmatprep.mubr.msk.f32.mxu1 %vm191_vm1, %v4166_v49  ;;  %3737 = vmatprep.mubr.msk.f32.mxu0 %vm191_vm1, %v4138_v39 }
 0x103   : > { %3671 = vmatmul.mubr.msk.f32.gmra.mrb[56].mxu1 %vm191_vm1, %v4168_v50  ;;  %3738 = vmatmul.mubr.msk.f32.gmra.mrb[50].mxu0 %vm191_vm1, %v4144_v40 }
 0x104   : > { %3673 = vmatprep.mubr.msk.f32.mxu1 %vm191_vm1, %v4178_v54  ;;  %3740 = vmatprep.mubr.msk.f32.mxu0 %vm191_vm1, %v4158_v46 }
 0x107   : > { %3674 = vmatmul.mubr.msk.f32.gmra.mrb[58].mxu1 %vm191_vm1, %v4186_v55  ;;  %3741 = vmatmul.mubr.msk.f32.gmra.mrb[52].mxu0 %vm191_vm1, %v4166_v49 }
 0x108   : > { %3676 = vmatprep.mubr.msk.f32.mxu1 %vm191_vm1, %v4190_v56  ;;  %3743 = vmatprep.mubr.msk.f32.mxu0 %vm191_vm1, %v4168_v50 }
 0x10b   : > { %3677 = vmatmul.mubr.msk.f32.gmra.mrb[60].mxu1 %vm191_vm1, %v4196_v61  ;;  %3744 = vmatmul.mubr.msk.f32.gmra.mrb[54].mxu0 %vm191_vm1, %v4178_v54 }
 0x10c   : > { %3679 = vmatprep.mubr.msk.f32.mxu1 %vm191_vm1, %v4208_v62  ;;  %3746 = vmatprep.mubr.msk.f32.mxu0 %vm191_vm1, %v4186_v55 }
 0x10f   : > { %3680 = vmatmul.mubr.msk.f32.gmra.mrb[62].mxu1 %vm191_vm1, %v4226_v7  ;;  %3747 = vmatmul.mubr.msk.f32.gmra.mrb[56].mxu0 %vm191_vm1, %v4190_v56 }
 0x110   : > { %3682 = vmatprep.mubr.msk.f32.mxu1 %vm191_vm1, %v4228_v8  ;;  %3749 = vmatprep.mubr.msk.f32.mxu0 %vm191_vm1, %v4196_v61 }
 0x113   : > { %3683 = vmatmul.mubr.msk.f32.gmra.mrb[64].mxu1 %vm191_vm1, %v4230_v9  ;;  %3750 = vmatmul.mubr.msk.f32.gmra.mrb[58].mxu0 %vm191_vm1, %v4208_v62 }
 0x114   : > { %3685 = vmatprep.mubr.msk.f32.mxu1 %vm191_vm1, %v4240_v13  ;;  %3752 = vmatprep.mubr.msk.f32.mxu0 %vm191_vm1, %v4226_v7 }
 0x117   : > { %3686 = vmatmul.mubr.msk.f32.gmra.mrb[66].mxu1 %vm191_vm1, %v4247_v17  ;;  %3753 = vmatmul.mubr.msk.f32.gmra.mrb[60].mxu0 %vm191_vm1, %v4228_v8 }
 0x118   : > { %3688 = vmatprep.mubr.msk.f32.mxu1 %vm191_vm1, %v4254_v20  ;;  %3755 = vmatprep.mubr.msk.f32.mxu0 %vm191_vm1, %v4230_v9 }
 0x11b   : > { %3689 = vmatmul.mubr.msk.f32.gmra.mrb[68].mxu1 %vm191_vm1, %v1089_v19  ;;  %3756 = vmatmul.mubr.msk.f32.gmra.mrb[62].mxu0 %vm191_vm1, %v4240_v13 }
 0x11c   : > { %3758 = vmatprep.mubr.msk.f32.mxu0 %vm191_vm1, %v4247_v17  ;;  %3691 = vmatprep.mubr.msk.f32.mxu1 %vm191_vm1, %v1090_v23 }
 0x11f   : > { %3692 = vmatmul.mubr.msk.f32.gmra.mrb[70].mxu1 %vm191_vm1, %v1091_v24  ;;  %3759 = vmatmul.mubr.msk.f32.gmra.mrb[64].mxu0 %vm191_vm1, %v4254_v20 }
 0x120   : > { %3761 = vmatprep.mubr.msk.f32.mxu0 %vm191_vm1, %v1089_v19 }
 0x123   : > { %3762 = vmatmul.mubr.msk.f32.gmra.mrb[66].mxu0 %vm191_vm1, %v1090_v23 }
 0x124   : > { %3764 = vmatprep.mubr.msk.f32.mxu0 %vm191_vm1, %v1091_v24 }
 0x127   : > { %3765 = vmatmul.mubr.msk.f32.gmra.mrb[68].mxu0 %vm191_vm1, %v1737_v28 }
 0x128   : > { %3767 = vmatprep.mubr.msk.f32.mxu0 %vm191_vm1, %v1738_v30 }
 0x12b   : > { %3768 = vmatmul.mubr.msk.f32.gmra.mrb[70].mxu0 %vm191_vm1, %v1739_v32 }
 0x165   : > { %v3584_v33 = vpop.f32.mrb[0].mxu1 }
 0x166   : > { %1021 = vst.msk [vmem:[#allocation3 + $0xc8] sm:$0xff] %vm995_vm8, %v3584_v33  ;;  %v876_v36 = vpop.f32.mrb[1].mxu1 }
 0x167   : > { %1020 = vst.msk [vmem:[#allocation3 + $0xc0] sm:$0xff] %vm995_vm8, %v876_v36 }
 0x169   : > { %v3587_v37 = vpop.f32.mrb[2].mxu1 }
 0x16a   : > { %1023 = vst.msk [vmem:[#allocation3 + $0xd8] sm:$0xff] %vm995_vm8, %v3587_v37  ;;  %v886_v38 = vpop.f32.mrb[3].mxu1 }
 0x16b   : > { %1022 = vst.msk [vmem:[#allocation3 + $0xd0] sm:$0xff] %vm995_vm8, %v886_v38 }
 0x16d   : > { %v3551_v39 = vpop.f32.mrb[2].mxu0  ;;  %v3590_v40 = vpop.f32.mrb[4].mxu1 }
 0x16e   : > { %999 = vst.msk [vmem:[#allocation3 + $0x18] sm:$0xff] %vm995_vm8, %v3551_v39  ;;  %1025 = vst.msk [vmem:[#allocation3 + $0xe8] sm:$0xff] %vm995_vm8, %v3590_v40  ;;  %v766_v41 = vpop.f32.mrb[3].mxu0  ;;  %v896_v42 = vpop.f32.mrb[5].mxu1 }
 0x16f   : > { %998 = vst.msk [vmem:[#allocation3 + $0x10] sm:$0xff] %vm995_vm8, %v766_v41  ;;  %1024 = vst.msk [vmem:[#allocation3 + $0xe0] sm:$0xff] %vm995_vm8, %v896_v42 }
 0x171   : > { %v3593_v43 = vpop.f32.mrb[6].mxu1 }
 0x172   : > { %1027 = vst.msk [vmem:[#allocation3 + $0xf8] sm:$0xff] %vm995_vm8, %v3593_v43  ;;  %v3554_v44 = vpop.f32.mrb[4].mxu0  ;;  %v906_v45 = vpop.f32.mrb[7].mxu1 }
 0x173   : > { %1001 = vst.msk [vmem:[#allocation3 + $0x28] sm:$0xff] %vm995_vm8, %v3554_v44  ;;  %1026 = vst.msk [vmem:[#allocation3 + $0xf0] sm:$0xff] %vm995_vm8, %v906_v45  ;;  %v776_v46 = vpop.f32.mrb[5].mxu0 }
 0x174   : > { %1000 = vst.msk [vmem:[#allocation3 + $0x20] sm:$0xff] %vm995_vm8, %v776_v46 }
 0x175   : > { %v3596_v47 = vpop.f32.mrb[8].mxu1  ;;  %v1550_v25 = vld [vmem:[#allocation3 + $0x18] sm:$0xff] }
 0x176   : > { %1029 = vst.msk [vmem:[#allocation3 + $0x108] sm:$0xff] %vm995_vm8, %v3596_v47  ;;  %v3557_v48 = vpop.f32.mrb[6].mxu0  ;;  %v916_v49 = vpop.f32.mrb[9].mxu1  ;;  %v1549_v29 = vld [vmem:[#allocation3 + $0x10] sm:$0xff] }
 0x177   : > { %1003 = vst.msk [vmem:[#allocation3 + $0x38] sm:$0xff] %vm995_vm8, %v3557_v48  ;;  %1028 = vst.msk [vmem:[#allocation3 + $0x100] sm:$0xff] %vm995_vm8, %v916_v49  ;;  %v786_v50 = vpop.f32.mrb[7].mxu0 }
 0x178   : > { %1002 = vst.msk [vmem:[#allocation3 + $0x30] sm:$0xff] %vm995_vm8, %v786_v50 }
 0x179   : > { %v3599_v51 = vpop.f32.mrb[10].mxu1 }
 0x17a   : > { %1031 = vst.msk [vmem:[#allocation3 + $0x118] sm:$0xff] %vm995_vm8, %v3599_v51  ;;  %v926_v52 = vpop.f32.mrb[11].mxu1  ;;  %v1552_v19 = vld [vmem:[#allocation3 + $0x28] sm:$0xff] }
 0x17b   : > { %1030 = vst.msk [vmem:[#allocation3 + $0x110] sm:$0xff] %vm995_vm8, %v926_v52  ;;  %v1551_v30 = vld [vmem:[#allocation3 + $0x20] sm:$0xff] }
 0x17d   : > { %v3560_v53 = vpop.f32.mrb[8].mxu0  ;;  %v3602_v54 = vpop.f32.mrb[12].mxu1 }
 0x17e   : > { %1005 = vst.msk [vmem:[#allocation3 + $0x48] sm:$0xff] %vm995_vm8, %v3560_v53  ;;  %1033 = vst.msk [vmem:[#allocation3 + $0x128] sm:$0xff] %vm995_vm8, %v3602_v54  ;;  %v796_v55 = vpop.f32.mrb[9].mxu0  ;;  %v936_v56 = vpop.f32.mrb[13].mxu1  ;;  %v1554_v36 = vld [vmem:[#allocation3 + $0x38] sm:$0xff] }
 0x17f   : > { %1004 = vst.msk [vmem:[#allocation3 + $0x40] sm:$0xff] %vm995_vm8, %v796_v55  ;;  %1032 = vst.msk [vmem:[#allocation3 + $0x120] sm:$0xff] %vm995_vm8, %v936_v56  ;;  %v1553_v42 = vld [vmem:[#allocation3 + $0x30] sm:$0xff] }
 0x181   : > { %v3605_v57 = vpop.f32.mrb[14].mxu1 }
 0x182   : > { %1035 = vst.msk [vmem:[#allocation3 + $0x138] sm:$0xff] %vm995_vm8, %v3605_v57  ;;  %v3563_v58 = vpop.f32.mrb[10].mxu0  ;;  %v946_v59 = vpop.f32.mrb[15].mxu1 }
 0x183   : > { %1007 = vst.msk [vmem:[#allocation3 + $0x58] sm:$0xff] %vm995_vm8, %v3563_v58  ;;  %1034 = vst.msk [vmem:[#allocation3 + $0x130] sm:$0xff] %vm995_vm8, %v946_v59  ;;  %v806_v60 = vpop.f32.mrb[11].mxu0 }
 0x184   : > { %1006 = vst.msk [vmem:[#allocation3 + $0x50] sm:$0xff] %vm995_vm8, %v806_v60 }
 0x185   : > { %v3608_v61 = vpop.f32.mrb[16].mxu1  ;;  %v1556_v48 = vld [vmem:[#allocation3 + $0x48] sm:$0xff] }
 0x186   : > { %1037 = vst.msk [vmem:[#allocation3 + $0x148] sm:$0xff] %vm995_vm8, %v3608_v61  ;;  %v3566_v62 = vpop.f32.mrb[12].mxu0  ;;  %v956_v63 = vpop.f32.mrb[17].mxu1  ;;  %v1555_v54 = vld [vmem:[#allocation3 + $0x40] sm:$0xff] }
 0x187   : > { %1009 = vst.msk [vmem:[#allocation3 + $0x68] sm:$0xff] %vm995_vm8, %v3566_v62  ;;  %1036 = vst.msk [vmem:[#allocation3 + $0x140] sm:$0xff] %vm995_vm8, %v956_v63  ;;  %v816_v0 = vpop.f32.mrb[13].mxu0 }
 0x188   : > { %1008 = vst.msk [vmem:[#allocation3 + $0x60] sm:$0xff] %vm995_vm8, %v816_v0 }
 0x18a   : > { %v3611_v1 = vpop.f32.mrb[18].mxu1  ;;  %v1558_v60 = vld [vmem:[#allocation3 + $0x58] sm:$0xff] }
 0x18b   : > { %1039 = vst.msk [vmem:[#allocation3 + $0x158] sm:$0xff] %vm995_vm8, %v3611_v1  ;;  %v966_v2 = vpop.f32.mrb[19].mxu1 }
 0x18c   : > { %1038 = vst.msk [vmem:[#allocation3 + $0x150] sm:$0xff] %vm995_vm8, %v966_v2  ;;  %v1557_v2 = vld [vmem:[#allocation3 + $0x50] sm:$0xff] }
 0x18d   : > { %v3569_v4 = vpop.f32.mrb[14].mxu0 }
 0x18e   : > { %1011 = vst.msk [vmem:[#allocation3 + $0x78] sm:$0xff] %vm995_vm8, %v3569_v4  ;;  %v826_v5 = vpop.f32.mrb[15].mxu0  ;;  %v3614_v6 = vpop.f32.mrb[20].mxu1 }
 0x18f   : > { %1010 = vst.msk [vmem:[#allocation3 + $0x70] sm:$0xff] %vm995_vm8, %v826_v5  ;;  %1041 = vst.msk [vmem:[#allocation3 + $0x168] sm:$0xff] %vm995_vm8, %v3614_v6  ;;  %v976_v7 = vpop.f32.mrb[21].mxu1 }
 0x190   : > { %1040 = vst.msk [vmem:[#allocation3 + $0x160] sm:$0xff] %vm995_vm8, %v976_v7 }
 0x192   : > { %v3572_v8 = vpop.f32.mrb[16].mxu0  ;;  %v3617_v9 = vpop.f32.mrb[22].mxu1 }
 0x193   : > { %1013 = vst.msk [vmem:[#allocation3 + $0x88] sm:$0xff] %vm995_vm8, %v3572_v8  ;;  %1043 = vst.msk [vmem:[#allocation3 + $0x178] sm:$0xff] %vm995_vm8, %v3617_v9  ;;  %v836_v10 = vpop.f32.mrb[17].mxu0  ;;  %v986_v11 = vpop.f32.mrb[23].mxu1 }
 0x194   : > { %1012 = vst.msk [vmem:[#allocation3 + $0x80] sm:$0xff] %vm995_vm8, %v836_v10  ;;  %1042 = vst.msk [vmem:[#allocation3 + $0x170] sm:$0xff] %vm995_vm8, %v986_v11 }
 0x196   : > { %v3575_v12 = vpop.f32.mrb[18].mxu0  ;;  %v3624_v13 = vpop.f32.mrb[24].mxu1 }
 0x197   : > { %1015 = vst.msk [vmem:[#allocation3 + $0x98] sm:$0xff] %vm995_vm8, %v3575_v12  ;;  %v1596_v15 = vadd.f32 %v3624_v13, %v1548_v14  ;;  %v846_v16 = vpop.f32.mrb[19].mxu0  ;;  %v1308_v17 = vpop.f32.mrb[25].mxu1  ;;  %v1560_v13 = vld [vmem:[#allocation3 + $0x68] sm:$0xff] }
 0x198   : > { %1014 = vst.msk [vmem:[#allocation3 + $0x90] sm:$0xff] %vm995_vm8, %v846_v16  ;;  %v1595_v20 = vadd.f32 %v1547_v18, %v1308_v17 }
 0x199   : > { %1644 = vst.msk [vmem:[#allocation3 + $0x8] sm:$0xff] %vm995_vm8, %v1596_v15 }
 0x19a   : > { %1643 = vst.msk [vmem:[#allocation3] sm:$0xff] %vm995_vm8, %v1595_v20  ;;  %v3578_v21 = vpop.f32.mrb[20].mxu0  ;;  %v3627_v22 = vpop.f32.mrb[26].mxu1 }
 0x19b   : > { %1017 = vst.msk [vmem:[#allocation3 + $0xa8] sm:$0xff] %vm995_vm8, %v3578_v21  ;;  %v1598_v26 = vadd.f32 %v3627_v22, %v1550_v25  ;;  %v856_v27 = vpop.f32.mrb[21].mxu0  ;;  %v1318_v3 = vpop.f32.mrb[27].mxu1  ;;  %v1559_v22 = vld [vmem:[#allocation3 + $0x60] sm:$0xff] }
 0x19c   : > { %1016 = vst.msk [vmem:[#allocation3 + $0xa0] sm:$0xff] %vm995_vm8, %v856_v27  ;;  %v1597_v31 = vadd.f32 %v1549_v29, %v1318_v3 }
 0x19d   : > { %1646 = vst.msk [vmem:[#allocation3 + $0x18] sm:$0xff] %vm995_vm8, %v1598_v26 }
 0x19e   : > { %1645 = vst.msk [vmem:[#allocation3 + $0x10] sm:$0xff] %vm995_vm8, %v1597_v31  ;;  %v3581_v34 = vpop.f32.mrb[22].mxu0  ;;  %v3630_v35 = vpop.f32.mrb[28].mxu1 }
 0x19f   : > { %1019 = vst.msk [vmem:[#allocation3 + $0xb8] sm:$0xff] %vm995_vm8, %v3581_v34  ;;  %v1600_v23 = vadd.f32 %v3630_v35, %v1552_v19  ;;  %v866_v24 = vpop.f32.mrb[23].mxu0  ;;  %v1328_v28 = vpop.f32.mrb[29].mxu1  ;;  %v1562_v19 = vld [vmem:[#allocation3 + $0x78] sm:$0xff] }
 0x1a0   : > { %1018 = vst.msk [vmem:[#allocation3 + $0xb0] sm:$0xff] %vm995_vm8, %v866_v24  ;;  %v1599_v32 = vadd.f32 %v1551_v30, %v1328_v28  ;;  %v2196_v38 = vld [vmem:[#allocation3 + $0x8] sm:$0xff] }
 0x1a1   : > { %1648 = vst.msk [vmem:[#allocation3 + $0x28] sm:$0xff] %vm995_vm8, %v1600_v23  ;;  %v2195_v44 = vld [vmem:[#allocation3] sm:$0xff] }
 0x1a2   : > { %1647 = vst.msk [vmem:[#allocation3 + $0x20] sm:$0xff] %vm995_vm8, %v1599_v32  ;;  %v3633_v33 = vpop.f32.mrb[30].mxu1  ;;  %v3700_v37 = vpop.f32.mrb[24].mxu0 }
 0x1a3   : > { %v1602_v39 = vadd.f32 %v3633_v33, %v1554_v36  ;;  %v2244_v40 = vadd.f32 %v3700_v37, %v2196_v38  ;;  %v1338_v41 = vpop.f32.mrb[31].mxu1  ;;  %v1956_v43 = vpop.f32.mrb[25].mxu0  ;;  %v1561_v37 = vld [vmem:[#allocation3 + $0x70] sm:$0xff] }
 0x1a4   : > { %v1601_v45 = vadd.f32 %v1553_v42, %v1338_v41  ;;  %v2243_v46 = vadd.f32 %v2195_v44, %v1956_v43  ;;  %v2198_v50 = vld [vmem:[#allocation3 + $0x18] sm:$0xff] }
 0x1a5   : > { %1650 = vst.msk [vmem:[#allocation3 + $0x38] sm:$0xff] %vm995_vm8, %v1602_v39  ;;  %2292 = vst.msk [vmem:[#allocation3 + $0x8] sm:$0xff] %vm995_vm8, %v2244_v40  ;;  %v2197_v56 = vld [vmem:[#allocation3 + $0x10] sm:$0xff] }
 0x1a6   : > { %1649 = vst.msk [vmem:[#allocation3 + $0x30] sm:$0xff] %vm995_vm8, %v1601_v45  ;;  %2291 = vst.msk [vmem:[#allocation3] sm:$0xff] %vm995_vm8, %v2243_v46  ;;  %v3636_v47 = vpop.f32.mrb[32].mxu1  ;;  %v3703_v49 = vpop.f32.mrb[26].mxu0 }
 0x1a7   : > { %v1604_v51 = vadd.f32 %v3636_v47, %v1556_v48  ;;  %v2246_v52 = vadd.f32 %v3703_v49, %v2198_v50  ;;  %v1348_v53 = vpop.f32.mrb[33].mxu1  ;;  %v1966_v55 = vpop.f32.mrb[27].mxu0  ;;  %v1564_v49 = vld [vmem:[#allocation3 + $0x88] sm:$0xff] }
 0x1a8   : > { %v1603_v57 = vadd.f32 %v1555_v54, %v1348_v53  ;;  %v2245_v58 = vadd.f32 %v2197_v56, %v1966_v55  ;;  %v2200_v62 = vld [vmem:[#allocation3 + $0x28] sm:$0xff] }
 0x1a9   : > { %1652 = vst.msk [vmem:[#allocation3 + $0x48] sm:$0xff] %vm995_vm8, %v1604_v51  ;;  %2294 = vst.msk [vmem:[#allocation3 + $0x18] sm:$0xff] %vm995_vm8, %v2246_v52  ;;  %v2199_v5 = vld [vmem:[#allocation3 + $0x20] sm:$0xff] }
 0x1aa   : > { %1651 = vst.msk [vmem:[#allocation3 + $0x40] sm:$0xff] %vm995_vm8, %v1603_v57  ;;  %2293 = vst.msk [vmem:[#allocation3 + $0x10] sm:$0xff] %vm995_vm8, %v2245_v58  ;;  %v3639_v59 = vpop.f32.mrb[34].mxu1  ;;  %v3706_v61 = vpop.f32.mrb[28].mxu0  ;;  %v1563_v57 = vld [vmem:[#allocation3 + $0x80] sm:$0xff] }
 0x1ab   : > { %v1606_v63 = vadd.f32 %v3639_v59, %v1558_v60  ;;  %v2248_v0 = vadd.f32 %v3706_v61, %v2200_v62  ;;  %v1358_v1 = vpop.f32.mrb[35].mxu1  ;;  %v1976_v4 = vpop.f32.mrb[29].mxu0 }
 0x1ac   : > { %v1605_v6 = vadd.f32 %v1557_v2, %v1358_v1  ;;  %v2247_v7 = vadd.f32 %v2199_v5, %v1976_v4  ;;  %v2340_v8 = vld [vmem:[#allocation3 + $0x8] sm:$0xff]  ;;  %v2202_v15 = vld [vmem:[#allocation3 + $0x38] sm:$0xff] }
 0x1ad   : > { %1654 = vst.msk [vmem:[#allocation3 + $0x58] sm:$0xff] %vm995_vm8, %v1606_v63  ;;  %2296 = vst.msk [vmem:[#allocation3 + $0x28] sm:$0xff] %vm995_vm8, %v2248_v0  ;;  %v2339_v9 = vld [vmem:[#allocation3] sm:$0xff]  ;;  %v2646_v10 = vrot.slane %v2340_v8, 2  ;;  %v2437_v11 = vrot.slane %v2340_v8, 1  ;;  %v2201_v26 = vld [vmem:[#allocation3 + $0x30] sm:$0xff] }
 0x1ae   : > { %1653 = vst.msk [vmem:[#allocation3 + $0x50] sm:$0xff] %vm995_vm8, %v1605_v6  ;;  %2295 = vst.msk [vmem:[#allocation3 + $0x20] sm:$0xff] %vm995_vm8, %v2247_v7  ;;  %v3642_v12 = vpop.f32.mrb[36].mxu1  ;;  %v3709_v14 = vpop.f32.mrb[30].mxu0  ;;  %v2645_v16 = vrot.slane %v2339_v9, 2  ;;  %v2436_v17 = vrot.slane %v2339_v9, 1 }
 0x1af   : > { %v1608_v18 = vadd.f32 %v3642_v12, %v1560_v13  ;;  %v2250_v20 = vadd.f32 %v3709_v14, %v2202_v15  ;;  %v1368_v21 = vpop.f32.mrb[37].mxu1  ;;  %v1986_v25 = vpop.f32.mrb[31].mxu0  ;;  %v1566_v6 = vld [vmem:[#allocation3 + $0x98] sm:$0xff]  ;;  %v1565_v14 = vld [vmem:[#allocation3 + $0x90] sm:$0xff] }
 0x1b0   : > { %v1607_v27 = vadd.f32 %v1559_v22, %v1368_v21  ;;  %v2249_v3 = vadd.f32 %v2201_v26, %v1986_v25  ;;  %v2647_v29 = vsel %vm2644_vm9, %v2645_v16, %v2646_v10  ;;  %v2438_v31 = vsel %vm2435_vm10, %v2436_v17, %v2437_v11  ;;  %v2204_v24 = vld [vmem:[#allocation3 + $0x48] sm:$0xff]  ;;  %v2342_v40 = vld [vmem:[#allocation3 + $0x18] sm:$0xff] }
 0x1b1   : > { %1656 = vst.msk [vmem:[#allocation3 + $0x68] sm:$0xff] %vm995_vm8, %v1608_v18  ;;  %2298 = vst.msk [vmem:[#allocation3 + $0x38] sm:$0xff] %vm995_vm8, %v2250_v20  ;;  %2725 = vrot.lane.b32.xlu1 %v2647_v29, %s3824_s7  ;;  %2516 = vrot.lane.b32.xlu0 %v2438_v31, %s3825_s8  ;;  %v2341_v34 = vld [vmem:[#allocation3 + $0x10] sm:$0xff]  ;;  %v2203_v39 = vld [vmem:[#allocation3 + $0x40] sm:$0xff]  ;;  %v2441_v53 = vrot.slane %v2342_v40, 1  ;;  %v2650_v9 = vrot.slane %v2342_v40, 2 }
 0x1b2   : > { %1655 = vst.msk [vmem:[#allocation3 + $0x60] sm:$0xff] %vm995_vm8, %v1607_v27  ;;  %2297 = vst.msk [vmem:[#allocation3 + $0x30] sm:$0xff] %vm995_vm8, %v2249_v3  ;;  %v3645_v35 = vpop.f32.mrb[38].mxu1  ;;  %v3712_v23 = vpop.f32.mrb[32].mxu0  ;;  %v2648_v28 = vrot.slane %v2341_v34, 2  ;;  %v2439_v30 = vrot.slane %v2341_v34, 1 }
 0x1b3   : > { %v1610_v32 = vadd.f32 %v3645_v35, %v1562_v19  ;;  %v2252_v33 = vadd.f32 %v3712_v23, %v2204_v24  ;;  %v1378_v36 = vpop.f32.mrb[39].mxu1  ;;  %v1996_v38 = vpop.f32.mrb[33].mxu0  ;;  %v1568_v27 = vld [vmem:[#allocation3 + $0xa8] sm:$0xff]  ;;  %v1567_v23 = vld [vmem:[#allocation3 + $0xa0] sm:$0xff] }
 0x1b4   : > { %v1609_v41 = vadd.f32 %v1561_v37, %v1378_v36  ;;  %v2251_v42 = vadd.f32 %v2203_v39, %v1996_v38  ;;  %v2649_v43 = vsel %vm2644_vm9, %v2646_v10, %v2648_v28  ;;  %v2440_v44 = vsel %vm2435_vm10, %v2437_v11, %v2439_v30  ;;  %v4508_v45 = vld [vmem:[#allocation3 + $0x28] sm:$0xff]  ;;  %v2206_v51 = vld [vmem:[#allocation3 + $0x58] sm:$0xff] }
 0x1b5   : > { %1658 = vst.msk [vmem:[#allocation3 + $0x78] sm:$0xff] %vm995_vm8, %v1610_v32  ;;  %2300 = vst.msk [vmem:[#allocation3 + $0x48] sm:$0xff] %vm995_vm8, %v2252_v33  ;;  %2727 = vrot.lane.b32.xlu0 %v2649_v43, %s3824_s7  ;;  %2518 = vrot.lane.b32.xlu1 %v2440_v44, %s3825_s8  ;;  %v4514_v46 = vld [vmem:[#allocation3 + $0x20] sm:$0xff]  ;;  %v2444_v47 = vrot.slane %v4508_v45, 1  ;;  %v2205_v59 = vld [vmem:[#allocation3 + $0x50] sm:$0xff]  ;;  %v2653_v17 = vrot.slane %v4508_v45, 2 }
 0x1b6   : > { %1657 = vst.msk [vmem:[#allocation3 + $0x70] sm:$0xff] %vm995_vm8, %v1609_v41  ;;  %2299 = vst.msk [vmem:[#allocation3 + $0x40] sm:$0xff] %vm995_vm8, %v2251_v42  ;;  %v3648_v48 = vpop.f32.mrb[40].mxu1  ;;  %v3715_v50 = vpop.f32.mrb[34].mxu0  ;;  %v2442_v52 = vrot.slane %v4514_v46, 1  ;;  %v2651_v60 = vrot.slane %v4514_v46, 2 }
 0x1b7   : > { %v1612_v54 = vadd.f32 %v3648_v48, %v1564_v49  ;;  %v2254_v55 = vadd.f32 %v3715_v50, %v2206_v51  ;;  %v1388_v56 = vpop.f32.mrb[41].mxu1  ;;  %v2006_v58 = vpop.f32.mrb[35].mxu0  ;;  %v1570_v41 = vld [vmem:[#allocation3 + $0xb8] sm:$0xff] }
 0x1b8   : > { %v1611_v61 = vadd.f32 %v1563_v57, %v1388_v56  ;;  %v2253_v62 = vadd.f32 %v2205_v59, %v2006_v58  ;;  %v2445_v63 = vsel %vm2435_vm10, %v2442_v52, %v2444_v47  ;;  %v2443_v0 = vsel %vm2435_vm10, %v2441_v53, %v2442_v52  ;;  %v4523_v1 = vld [vmem:[#allocation3 + $0x38] sm:$0xff]  ;;  %v2208_v8 = vld [vmem:[#allocation3 + $0x68] sm:$0xff]  ;;  %v1569_v52 = vld [vmem:[#allocation3 + $0xb0] sm:$0xff] }
 0x1b9   : > { %1660 = vst.msk [vmem:[#allocation3 + $0x88] sm:$0xff] %vm995_vm8, %v1612_v54  ;;  %2302 = vst.msk [vmem:[#allocation3 + $0x58] sm:$0xff] %vm995_vm8, %v2254_v55  ;;  %2522 = vrot.lane.b32.xlu1 %v2445_v63, %s3825_s8  ;;  %2520 = vrot.lane.b32.xlu0 %v2443_v0, %s3825_s8  ;;  %v4529_v2 = vld [vmem:[#allocation3 + $0x30] sm:$0xff]  ;;  %v2447_v4 = vrot.slane %v4523_v1, 1  ;;  %v2207_v16 = vld [vmem:[#allocation3 + $0x60] sm:$0xff]  ;;  %v2652_v21 = vsel %vm2644_vm9, %v2650_v9, %v2651_v60  ;;  %v2654_v30 = vsel %vm2644_vm9, %v2651_v60, %v2653_v17 }
 0x1ba   : > { %1659 = vst.msk [vmem:[#allocation3 + $0x80] sm:$0xff] %vm995_vm8, %v1611_v61  ;;  %2301 = vst.msk [vmem:[#allocation3 + $0x50] sm:$0xff] %vm995_vm8, %v2253_v62  ;;  %v3651_v5 = vpop.f32.mrb[42].mxu1  ;;  %v3718_v7 = vpop.f32.mrb[36].mxu0  ;;  %v2446_v10 = vrot.slane %v4529_v2, 1  ;;  %v2656_v32 = vrot.slane %v4523_v1, 2 }
 0x1bb   : > { %v1614_v11 = vadd.f32 %v3651_v5, %v1566_v6  ;;  %v2256_v12 = vadd.f32 %v3718_v7, %v2208_v8  ;;  %v1398_v13 = vpop.f32.mrb[43].mxu1  ;;  %v2016_v15 = vpop.f32.mrb[37].mxu0  ;;  %v2655_v39 = vrot.slane %v4529_v2, 2  ;;  %v1572_v63 = vld [vmem:[#allocation3 + $0xc8] sm:$0xff]  ;;  %v1571_v7 = vld [vmem:[#allocation3 + $0xc0] sm:$0xff] }
 0x1bc   : > { %v1613_v18 = vadd.f32 %v1565_v14, %v1398_v13  ;;  %v2255_v20 = vadd.f32 %v2207_v16, %v2016_v15  ;;  %v2448_v22 = vsel %vm2435_vm10, %v2446_v10, %v2447_v4  ;;  %v2210_v29 = vld [vmem:[#allocation3 + $0x78] sm:$0xff]  ;;  %v4546_v33 = vld [vmem:[#allocation3 + $0x48] sm:$0xff] }
 0x1bd   : > { %1662 = vst.msk [vmem:[#allocation3 + $0x98] sm:$0xff] %vm995_vm8, %v1614_v11  ;;  %2304 = vst.msk [vmem:[#allocation3 + $0x68] sm:$0xff] %vm995_vm8, %v2256_v12  ;;  %2729 = vrot.lane.b32.xlu0 %v2652_v21, %s3824_s7  ;;  %2524 = vrot.lane.b32.xlu1 %v2448_v22, %s3825_s8  ;;  %v2347_v25 = vld [vmem:[#allocation3 + $0x40] sm:$0xff]  ;;  %v2209_v28 = vld [vmem:[#allocation3 + $0x70] sm:$0xff]  ;;  %v2451_v46 = vrot.slane %v4546_v33, 1  ;;  %v2657_v58 = vsel %vm2644_vm9, %v2655_v39, %v2656_v32  ;;  %v2660_v16 = vrot.slane %v4546_v33, 2 }
 0x1be   : > { %1661 = vst.msk [vmem:[#allocation3 + $0x90] sm:$0xff] %vm995_vm8, %v1613_v18  ;;  %2303 = vst.msk [vmem:[#allocation3 + $0x60] sm:$0xff] %vm995_vm8, %v2255_v20  ;;  %v3654_v26 = vpop.f32.mrb[44].mxu1  ;;  %v3721_v3 = vpop.f32.mrb[38].mxu0  ;;  %v2449_v31 = vrot.slane %v2347_v25, 1  ;;  %v2658_v48 = vrot.slane %v2347_v25, 2 }
 0x1bf   : > { %v1616_v34 = vadd.f32 %v3654_v26, %v1568_v27  ;;  %v2258_v35 = vadd.f32 %v3721_v3, %v2210_v29  ;;  %v1408_v19 = vpop.f32.mrb[45].mxu1  ;;  %v2026_v24 = vpop.f32.mrb[39].mxu0  ;;  %v1574_v20 = vld [vmem:[#allocation3 + $0xd8] sm:$0xff]  ;;  %v1573_v29 = vld [vmem:[#allocation3 + $0xd0] sm:$0xff]  ;;  %v1576_v33 = vld [vmem:[#allocation3 + $0xe8] sm:$0xff] }
 0x1c0   : > { %v1615_v36 = vadd.f32 %v1567_v23, %v1408_v19  ;;  %v2257_v37 = vadd.f32 %v2209_v28, %v2026_v24  ;;  %v2450_v38 = vsel %vm2435_vm10, %v2447_v4, %v2449_v31  ;;  %v4550_v40 = vld [vmem:[#allocation3 + $0x58] sm:$0xff]  ;;  %v2212_v45 = vld [vmem:[#allocation3 + $0x88] sm:$0xff]  ;;  %v2659_v2 = vsel %vm2644_vm9, %v2656_v32, %v2658_v48 }
 0x1c1   : > { %1664 = vst.msk [vmem:[#allocation3 + $0xa8] sm:$0xff] %vm995_vm8, %v1616_v34  ;;  %2306 = vst.msk [vmem:[#allocation3 + $0x78] sm:$0xff] %vm995_vm8, %v2258_v35  ;;  %2731 = vrot.lane.b32.xlu0 %v2654_v30, %s3824_s7  ;;  %2526 = vrot.lane.b32.xlu1 %v2450_v38, %s3825_s8  ;;  %v4556_v42 = vld [vmem:[#allocation3 + $0x50] sm:$0xff]  ;;  %v2211_v54 = vld [vmem:[#allocation3 + $0x80] sm:$0xff]  ;;  %v2454_v55 = vrot.slane %v4550_v40, 1  ;;  %v2663_v25 = vrot.slane %v4550_v40, 2 }
 0x1c2   : > { %1663 = vst.msk [vmem:[#allocation3 + $0xa0] sm:$0xff] %vm995_vm8, %v1615_v36  ;;  %2305 = vst.msk [vmem:[#allocation3 + $0x70] sm:$0xff] %vm995_vm8, %v2257_v37  ;;  %v3657_v43 = vpop.f32.mrb[46].mxu1  ;;  %v3724_v44 = vpop.f32.mrb[40].mxu0  ;;  %v2452_v47 = vrot.slane %v4556_v42, 1  ;;  %v2661_v11 = vrot.slane %v4556_v42, 2 }
 0x1c3   : > { %v1618_v49 = vadd.f32 %v3657_v43, %v1570_v41  ;;  %v2260_v50 = vadd.f32 %v3724_v44, %v2212_v45  ;;  %v1418_v51 = vpop.f32.mrb[47].mxu1  ;;  %v2036_v53 = vpop.f32.mrb[41].mxu0  ;;  %v1575_v38 = vld [vmem:[#allocation3 + $0xe0] sm:$0xff] }
 0x1c4   : > { %v1617_v56 = vadd.f32 %v1569_v52, %v1418_v51  ;;  %v2259_v57 = vadd.f32 %v2211_v54, %v2036_v53  ;;  %v2453_v59 = vsel %vm2435_vm10, %v2451_v46, %v2452_v47  ;;  %v4571_v61 = vld [vmem:[#allocation3 + $0x68] sm:$0xff]  ;;  %v2214_v1 = vld [vmem:[#allocation3 + $0x98] sm:$0xff]  ;;  %v2455_v10 = vsel %vm2435_vm10, %v2452_v47, %v2454_v55 }
 0x1c5   : > { %1666 = vst.msk [vmem:[#allocation3 + $0xb8] sm:$0xff] %vm995_vm8, %v1618_v49  ;;  %2308 = vst.msk [vmem:[#allocation3 + $0x88] sm:$0xff] %vm995_vm8, %v2260_v50  ;;  %2733 = vrot.lane.b32.xlu0 %v2657_v58, %s3824_s7  ;;  %2528 = vrot.lane.b32.xlu1 %v2453_v59, %s3825_s8  ;;  %v4569_v60 = vld [vmem:[#allocation3 + $0x60] sm:$0xff]  ;;  %v2213_v9 = vld [vmem:[#allocation3 + $0x90] sm:$0xff]  ;;  %v2457_v15 = vrot.slane %v4571_v61, 1  ;;  %v2662_v35 = vsel %vm2644_vm9, %v2660_v16, %v2661_v11  ;;  %v2664_v39 = vsel %vm2644_vm9, %v2661_v11, %v2663_v25 }
 0x1c6   : > { %1665 = vst.msk [vmem:[#allocation3 + $0xb0] sm:$0xff] %vm995_vm8, %v1617_v56  ;;  %2307 = vst.msk [vmem:[#allocation3 + $0x80] sm:$0xff] %vm995_vm8, %v2259_v57  ;;  %v3660_v62 = vpop.f32.mrb[48].mxu1  ;;  %v3727_v0 = vpop.f32.mrb[42].mxu0  ;;  %v2456_v14 = vrot.slane %v4569_v60, 1  ;;  %v2665_v45 = vrot.slane %v4569_v60, 2 }
 0x1c7   : > { %v1620_v4 = vadd.f32 %v3660_v62, %v1572_v63  ;;  %v2262_v5 = vadd.f32 %v3727_v0, %v2214_v1  ;;  %v1428_v6 = vpop.f32.mrb[49].mxu1  ;;  %v2046_v8 = vpop.f32.mrb[43].mxu0  ;;  %v2666_v46 = vrot.slane %v4571_v61, 2  ;;  %v1578_v54 = vld [vmem:[#allocation3 + $0xf8] sm:$0xff]  ;;  %v1577_v0 = vld [vmem:[#allocation3 + $0xf0] sm:$0xff] }
 0x1c8   : > { %v1619_v12 = vadd.f32 %v1571_v7, %v1428_v6  ;;  %v2261_v13 = vadd.f32 %v2213_v9, %v2046_v8  ;;  %v2216_v22 = vld [vmem:[#allocation3 + $0xa8] sm:$0xff]  ;;  %v2458_v24 = vsel %vm2435_vm10, %v2456_v14, %v2457_v15  ;;  %v4604_v47 = vld [vmem:[#allocation3 + $0x78] sm:$0xff] }
 0x1c9   : > { %1668 = vst.msk [vmem:[#allocation3 + $0xc8] sm:$0xff] %vm995_vm8, %v1620_v4  ;;  %2310 = vst.msk [vmem:[#allocation3 + $0x98] sm:$0xff] %vm995_vm8, %v2262_v5  ;;  %2735 = vrot.lane.b32.xlu0 %v2659_v2, %s3824_s7  ;;  %2530 = vrot.lane.b32.xlu1 %v2455_v10, %s3825_s8  ;;  %v4585_v17 = vld [vmem:[#allocation3 + $0x70] sm:$0xff]  ;;  %v2215_v34 = vld [vmem:[#allocation3 + $0xa0] sm:$0xff]  ;;  %v2461_v57 = vrot.slane %v4604_v47, 1  ;;  %v2667_v7 = vsel %vm2644_vm9, %v2665_v45, %v2666_v46 }
 0x1ca   : > { %1667 = vst.msk [vmem:[#allocation3 + $0xc0] sm:$0xff] %vm995_vm8, %v1619_v12  ;;  %2309 = vst.msk [vmem:[#allocation3 + $0x90] sm:$0xff] %vm995_vm8, %v2261_v13  ;;  %v3663_v18 = vpop.f32.mrb[50].mxu1  ;;  %v3730_v21 = vpop.f32.mrb[44].mxu0  ;;  %v2459_v28 = vrot.slane %v4585_v17, 1  ;;  %v2668_v58 = vrot.slane %v4585_v17, 2 }
 0x1cb   : > { %v1622_v26 = vadd.f32 %v3663_v18, %v1574_v20  ;;  %v2264_v27 = vadd.f32 %v3730_v21, %v2216_v22  ;;  %v1438_v3 = vpop.f32.mrb[51].mxu1  ;;  %v2056_v31 = vpop.f32.mrb[45].mxu0  ;;  %v1580_v12 = vld [vmem:[#allocation3 + $0x108] sm:$0xff]  ;;  %v1579_v20 = vld [vmem:[#allocation3 + $0x100] sm:$0xff] }
 0x1cc   : > { %v1621_v19 = vadd.f32 %v1573_v29, %v1438_v3  ;;  %v2263_v23 = vadd.f32 %v2215_v34, %v2056_v31  ;;  %v2218_v37 = vld [vmem:[#allocation3 + $0xb8] sm:$0xff]  ;;  %v2460_v50 = vsel %vm2435_vm10, %v2457_v15, %v2459_v28  ;;  %v4608_v52 = vld [vmem:[#allocation3 + $0x88] sm:$0xff]  ;;  %v2669_v15 = vsel %vm2644_vm9, %v2666_v46, %v2668_v58 }
 0x1cd   : > { %1670 = vst.msk [vmem:[#allocation3 + $0xd8] sm:$0xff] %vm995_vm8, %v1622_v26  ;;  %2312 = vst.msk [vmem:[#allocation3 + $0xa8] sm:$0xff] %vm995_vm8, %v2264_v27  ;;  %2737 = vrot.lane.b32.xlu0 %v2662_v35, %s3824_s7  ;;  %2532 = vrot.lane.b32.xlu1 %v2458_v24, %s3825_s8  ;;  %v4597_v30 = vld [vmem:[#allocation3 + $0x80] sm:$0xff]  ;;  %v2217_v44 = vld [vmem:[#allocation3 + $0xb0] sm:$0xff]  ;;  %v2464_v4 = vrot.slane %v4608_v52, 1  ;;  %v2670_v34 = vrot.slane %v4604_v47, 2 }
 0x1ce   : > { %1669 = vst.msk [vmem:[#allocation3 + $0xd0] sm:$0xff] %vm995_vm8, %v1621_v19  ;;  %2311 = vst.msk [vmem:[#allocation3 + $0xa0] sm:$0xff] %vm995_vm8, %v2263_v23  ;;  %v3666_v32 = vpop.f32.mrb[52].mxu1  ;;  %v3733_v36 = vpop.f32.mrb[46].mxu0  ;;  %v2462_v51 = vrot.slane %v4597_v30, 1  ;;  %v2671_v26 = vrot.slane %v4597_v30, 2 }
 0x1cf   : > { %v1624_v40 = vadd.f32 %v3666_v32, %v1576_v33  ;;  %v2266_v41 = vadd.f32 %v3733_v36, %v2218_v37  ;;  %v1448_v42 = vpop.f32.mrb[53].mxu1  ;;  %v2066_v43 = vpop.f32.mrb[47].mxu0  ;;  %v1582_v23 = vld [vmem:[#allocation3 + $0x118] sm:$0xff]  ;;  %v2673_v32 = vrot.slane %v4608_v52, 2  ;;  %v1583_v52 = vld [vmem:[#allocation3 + $0x120] sm:$0xff] }
 0x1d0   : > { %v1623_v48 = vadd.f32 %v1575_v38, %v1448_v42  ;;  %v2265_v49 = vadd.f32 %v2217_v44, %v2066_v43  ;;  %v2220_v56 = vld [vmem:[#allocation3 + $0xc8] sm:$0xff]  ;;  %v2463_v8 = vsel %vm2435_vm10, %v2461_v57, %v2462_v51  ;;  %v4627_v10 = vld [vmem:[#allocation3 + $0x98] sm:$0xff]  ;;  %v2465_v25 = vsel %vm2435_vm10, %v2462_v51, %v2464_v4  ;;  %v1581_v38 = vld [vmem:[#allocation3 + $0x110] sm:$0xff] }
 0x1d1   : > { %1672 = vst.msk [vmem:[#allocation3 + $0xe8] sm:$0xff] %vm995_vm8, %v1624_v40  ;;  %2314 = vst.msk [vmem:[#allocation3 + $0xb8] sm:$0xff] %vm995_vm8, %v2266_v41  ;;  %2739 = vrot.lane.b32.xlu0 %v2664_v39, %s3824_s7  ;;  %2534 = vrot.lane.b32.xlu1 %v2460_v50, %s3825_s8  ;;  %v2219_v2 = vld [vmem:[#allocation3 + $0xc0] sm:$0xff]  ;;  %v4625_v9 = vld [vmem:[#allocation3 + $0x90] sm:$0xff]  ;;  %v2467_v31 = vrot.slane %v4627_v10, 1  ;;  %v2672_v41 = vsel %vm2644_vm9, %v2670_v34, %v2671_v26 }
 0x1d2   : > { %1671 = vst.msk [vmem:[#allocation3 + $0xe0] sm:$0xff] %vm995_vm8, %v1623_v48  ;;  %2313 = vst.msk [vmem:[#allocation3 + $0xb0] sm:$0xff] %vm995_vm8, %v2265_v49  ;;  %v3669_v53 = vpop.f32.mrb[54].mxu1  ;;  %v3736_v55 = vpop.f32.mrb[48].mxu0  ;;  %v2466_v29 = vrot.slane %v4625_v9, 1  ;;  %v1584_v49 = vld [vmem:[#allocation3 + $0x128] sm:$0xff] }
 0x1d3   : > { %v1626_v59 = vadd.f32 %v3669_v53, %v1578_v54  ;;  %v2268_v62 = vadd.f32 %v3736_v55, %v2220_v56  ;;  %v1458_v63 = vpop.f32.mrb[55].mxu1  ;;  %v2076_v1 = vpop.f32.mrb[49].mxu0  ;;  %v2674_v53 = vsel %vm2644_vm9, %v2671_v26, %v2673_v32  ;;  %v1588_v34 = vld [vmem:[#allocation3 + $0x148] sm:$0xff] }
 0x1d4   : > { %v1625_v5 = vadd.f32 %v1577_v0, %v1458_v63  ;;  %v2267_v6 = vadd.f32 %v2219_v2, %v2076_v1  ;;  %v2222_v14 = vld [vmem:[#allocation3 + $0xd8] sm:$0xff]  ;;  %v2468_v44 = vsel %vm2435_vm10, %v2466_v29, %v2467_v31  ;;  %v4660_v63 = vld [vmem:[#allocation3 + $0xa8] sm:$0xff] }
 0x1d5   : > { %1674 = vst.msk [vmem:[#allocation3 + $0xf8] sm:$0xff] %vm995_vm8, %v1626_v59  ;;  %2316 = vst.msk [vmem:[#allocation3 + $0xc8] sm:$0xff] %vm995_vm8, %v2268_v62  ;;  %2741 = vrot.lane.b32.xlu0 %v2667_v7, %s3824_s7  ;;  %2536 = vrot.lane.b32.xlu1 %v2463_v8, %s3825_s8  ;;  %v2221_v22 = vld [vmem:[#allocation3 + $0xd0] sm:$0xff]  ;;  %v4641_v35 = vld [vmem:[#allocation3 + $0xa0] sm:$0xff]  ;;  %v2675_v59 = vrot.slane %v4625_v9, 2  ;;  %v2676_v62 = vrot.slane %v4627_v10, 2 }
 0x1d6   : > { %1673 = vst.msk [vmem:[#allocation3 + $0xf0] sm:$0xff] %vm995_vm8, %v1625_v5  ;;  %2315 = vst.msk [vmem:[#allocation3 + $0xc0] sm:$0xff] %vm995_vm8, %v2267_v6  ;;  %v3672_v11 = vpop.f32.mrb[56].mxu1  ;;  %v3739_v13 = vpop.f32.mrb[50].mxu0  ;;  %v2469_v45 = vrot.slane %v4641_v35, 1  ;;  %v1586_v7 = vld [vmem:[#allocation3 + $0x138] sm:$0xff] }
 0x1d7   : > { %v1628_v16 = vadd.f32 %v3672_v11, %v1580_v12  ;;  %v2270_v17 = vadd.f32 %v3739_v13, %v2222_v14  ;;  %v1468_v18 = vpop.f32.mrb[57].mxu1  ;;  %v2086_v21 = vpop.f32.mrb[51].mxu0  ;;  %v2471_v12 = vrot.slane %v4660_v63, 1  ;;  %v2678_v13 = vrot.slane %v4641_v35, 2 }
 0x1d8   : > { %v1627_v27 = vadd.f32 %v1579_v20, %v1468_v18  ;;  %v2269_v3 = vadd.f32 %v2221_v22, %v2086_v21  ;;  %v2224_v28 = vld [vmem:[#allocation3 + $0xe8] sm:$0xff]  ;;  %v2470_v2 = vsel %vm2435_vm10, %v2467_v31, %v2469_v45  ;;  %v4664_v5 = vld [vmem:[#allocation3 + $0xb8] sm:$0xff]  ;;  %v2677_v26 = vsel %vm2644_vm9, %v2675_v59, %v2676_v62 }
 0x1d9   : > { %1676 = vst.msk [vmem:[#allocation3 + $0x108] sm:$0xff] %vm995_vm8, %v1628_v16  ;;  %2318 = vst.msk [vmem:[#allocation3 + $0xd8] sm:$0xff] %vm995_vm8, %v2270_v17  ;;  %2743 = vrot.lane.b32.xlu0 %v2669_v15, %s3824_s7  ;;  %2538 = vrot.lane.b32.xlu1 %v2465_v25, %s3825_s8  ;;  %v2223_v40 = vld [vmem:[#allocation3 + $0xe0] sm:$0xff]  ;;  %v4653_v46 = vld [vmem:[#allocation3 + $0xb0] sm:$0xff]  ;;  %v2474_v21 = vrot.slane %v4664_v5, 1 }
 0x1da   : > { %1675 = vst.msk [vmem:[#allocation3 + $0x100] sm:$0xff] %vm995_vm8, %v1627_v27  ;;  %2317 = vst.msk [vmem:[#allocation3 + $0xd0] sm:$0xff] %vm995_vm8, %v2269_v3  ;;  %v3675_v19 = vpop.f32.mrb[58].mxu1  ;;  %v3742_v24 = vpop.f32.mrb[52].mxu0  ;;  %v2472_v4 = vrot.slane %v4653_v46, 1  ;;  %v1585_v17 = vld [vmem:[#allocation3 + $0x130] sm:$0xff] }
 0x1db   : > { %v1630_v33 = vadd.f32 %v3675_v19, %v1582_v23  ;;  %v2272_v36 = vadd.f32 %v3742_v24, %v2224_v28  ;;  %v1478_v37 = vpop.f32.mrb[59].mxu1  ;;  %v2096_v39 = vpop.f32.mrb[53].mxu0  ;;  %v2679_v23 = vsel %vm2644_vm9, %v2676_v62, %v2678_v13 }
 0x1dc   : > { %v1629_v42 = vadd.f32 %v1581_v38, %v1478_v37  ;;  %v2271_v43 = vadd.f32 %v2223_v40, %v2096_v39  ;;  %v2226_v51 = vld [vmem:[#allocation3 + $0xf8] sm:$0xff]  ;;  %v2473_v27 = vsel %vm2435_vm10, %v2471_v12, %v2472_v4  ;;  %v4683_v29 = vld [vmem:[#allocation3 + $0xc8] sm:$0xff]  ;;  %v2475_v38 = vsel %vm2435_vm10, %v2472_v4, %v2474_v21 }
 0x1dd   : > { %1678 = vst.msk [vmem:[#allocation3 + $0x118] sm:$0xff] %vm995_vm8, %v1630_v33  ;;  %2320 = vst.msk [vmem:[#allocation3 + $0xe8] sm:$0xff] %vm995_vm8, %v2272_v36  ;;  %2745 = vrot.lane.b32.xlu0 %v2672_v41, %s3824_s7  ;;  %2540 = vrot.lane.b32.xlu1 %v2468_v44, %s3825_s8  ;;  %v2225_v58 = vld [vmem:[#allocation3 + $0xf0] sm:$0xff]  ;;  %v4681_v3 = vld [vmem:[#allocation3 + $0xc0] sm:$0xff]  ;;  %v2681_v39 = vrot.slane %v4653_v46, 2  ;;  %v2680_v44 = vrot.slane %v4660_v63, 2 }
 0x1de   : > { %1677 = vst.msk [vmem:[#allocation3 + $0x110] sm:$0xff] %vm995_vm8, %v1629_v42  ;;  %2319 = vst.msk [vmem:[#allocation3 + $0xe0] sm:$0xff] %vm995_vm8, %v2271_v43  ;;  %v3678_v48 = vpop.f32.mrb[60].mxu1  ;;  %v3745_v50 = vpop.f32.mrb[54].mxu0  ;;  %v1587_v33 = vld [vmem:[#allocation3 + $0x140] sm:$0xff]  ;;  %v2476_v42 = vrot.slane %v4681_v3, 1 }
 0x1df   : > { %v1632_v54 = vadd.f32 %v3678_v48, %v1584_v49  ;;  %v2274_v55 = vadd.f32 %v3745_v50, %v2226_v51  ;;  %v1488_v56 = vpop.f32.mrb[61].mxu1  ;;  %v2106_v57 = vpop.f32.mrb[55].mxu0  ;;  %v2477_v43 = vrot.slane %v4683_v29, 1  ;;  %v1590_v49 = vld [vmem:[#allocation3 + $0x158] sm:$0xff]  ;;  %v2682_v59 = vsel %vm2644_vm9, %v2680_v44, %v2681_v39 }
 0x1e0   : > { %v1631_v0 = vadd.f32 %v1583_v52, %v1488_v56  ;;  %v2273_v1 = vadd.f32 %v2225_v58, %v2106_v57  ;;  %v2228_v11 = vld [vmem:[#allocation3 + $0x108] sm:$0xff]  ;;  %v2683_v52 = vrot.slane %v4664_v5, 2  ;;  %v1589_v56 = vld [vmem:[#allocation3 + $0x150] sm:$0xff]  ;;  %v4716_v21 = vld [vmem:[#allocation3 + $0xd8] sm:$0xff] }
 0x1e1   : > { %1680 = vst.msk [vmem:[#allocation3 + $0x128] sm:$0xff] %vm995_vm8, %v1632_v54  ;;  %2322 = vst.msk [vmem:[#allocation3 + $0xf8] sm:$0xff] %vm995_vm8, %v2274_v55  ;;  %2747 = vrot.lane.b32.xlu0 %v2674_v53, %s3824_s7  ;;  %2542 = vrot.lane.b32.xlu1 %v2470_v2, %s3825_s8  ;;  %v2227_v20 = vld [vmem:[#allocation3 + $0x100] sm:$0xff]  ;;  %v4697_v45 = vld [vmem:[#allocation3 + $0xd0] sm:$0xff] }
 0x1e2   : > { %1679 = vst.msk [vmem:[#allocation3 + $0x120] sm:$0xff] %vm995_vm8, %v1631_v0  ;;  %2321 = vst.msk [vmem:[#allocation3 + $0xf0] sm:$0xff] %vm995_vm8, %v2273_v1  ;;  %v3681_v6 = vpop.f32.mrb[62].mxu1  ;;  %v3748_v8 = vpop.f32.mrb[56].mxu0  ;;  %v2478_v1 = vsel %vm2435_vm10, %v2476_v42, %v2477_v43  ;;  %v2479_v2 = vrot.slane %v4697_v45, 1  ;;  %v2684_v12 = vsel %vm2644_vm9, %v2681_v39, %v2683_v52 }
 0x1e3   : > { %v1634_v14 = vadd.f32 %v3681_v6, %v1586_v7  ;;  %v2276_v15 = vadd.f32 %v3748_v8, %v2228_v11  ;;  %v1498_v16 = vpop.f32.mrb[63].mxu1  ;;  %v2116_v18 = vpop.f32.mrb[57].mxu0  ;;  %v1592_v6 = vld [vmem:[#allocation3 + $0x168] sm:$0xff]  ;;  %v1591_v11 = vld [vmem:[#allocation3 + $0x160] sm:$0xff] }
 0x1e4   : > { %v1633_v22 = vadd.f32 %v1585_v17, %v1498_v16  ;;  %v2275_v25 = vadd.f32 %v2227_v20, %v2116_v18  ;;  %v2230_v19 = vld [vmem:[#allocation3 + $0x118] sm:$0xff]  ;;  %v2685_v18 = vrot.slane %v4681_v3, 2  ;;  %v2686_v20 = vrot.slane %v4683_v29, 2 }
 0x1e5   : > { %1682 = vst.msk [vmem:[#allocation3 + $0x138] sm:$0xff] %vm995_vm8, %v1634_v14  ;;  %2324 = vst.msk [vmem:[#allocation3 + $0x108] sm:$0xff] %vm995_vm8, %v2276_v15  ;;  %2749 = vrot.lane.b32.xlu0 %v2677_v26, %s3824_s7  ;;  %2544 = vrot.lane.b32.xlu1 %v2473_v27, %s3825_s8  ;;  %v2229_v37 = vld [vmem:[#allocation3 + $0x110] sm:$0xff]  ;;  %v4709_v4 = vld [vmem:[#allocation3 + $0xe0] sm:$0xff]  ;;  %v2480_v26 = vsel %vm2435_vm10, %v2477_v43, %v2479_v2  ;;  %v2690_v2 = vrot.slane %v4716_v21, 2 }
 0x1e6   : > { %1681 = vst.msk [vmem:[#allocation3 + $0x130] sm:$0xff] %vm995_vm8, %v1633_v22  ;;  %2323 = vst.msk [vmem:[#allocation3 + $0x100] sm:$0xff] %vm995_vm8, %v2275_v25  ;;  %v3684_v31 = vpop.f32.mrb[64].mxu1  ;;  %v3751_v35 = vpop.f32.mrb[58].mxu0  ;;  %v2482_v27 = vrot.slane %v4709_v4, 1  ;;  %v2687_v39 = vsel %vm2644_vm9, %v2685_v18, %v2686_v20 }
 0x1e7   : > { %v1636_v24 = vadd.f32 %v3684_v31, %v1588_v34  ;;  %v2278_v28 = vadd.f32 %v3751_v35, %v2230_v19  ;;  %v1508_v32 = vpop.f32.mrb[65].mxu1  ;;  %v2126_v36 = vpop.f32.mrb[59].mxu0  ;;  %v4724_v31 = vld [vmem:[#allocation3 + $0xe8] sm:$0xff]  ;;  %v1594_v35 = vld [vmem:[#allocation3 + $0x178] sm:$0xff] }
 0x1e8   : > { %v1635_v40 = vadd.f32 %v1587_v33, %v1508_v32  ;;  %v2277_v41 = vadd.f32 %v2229_v37, %v2126_v36  ;;  %v2232_v51 = vld [vmem:[#allocation3 + $0x128] sm:$0xff]  ;;  %v1593_v36 = vld [vmem:[#allocation3 + $0x170] sm:$0xff]  ;;  %v2484_v44 = vrot.slane %v4724_v31, 1 }
 0x1e9   : > { %1684 = vst.msk [vmem:[#allocation3 + $0x148] sm:$0xff] %vm995_vm8, %v1636_v24  ;;  %2326 = vst.msk [vmem:[#allocation3 + $0x118] sm:$0xff] %vm995_vm8, %v2278_v28  ;;  %2751 = vrot.lane.b32.xlu0 %v2679_v23, %s3824_s7  ;;  %2546 = vrot.lane.b32.xlu1 %v2475_v38, %s3825_s8  ;;  %v2231_v58 = vld [vmem:[#allocation3 + $0x120] sm:$0xff]  ;;  %v2481_v24 = vrot.slane %v4716_v21, 1 }
 0x1ea   : > { %1683 = vst.msk [vmem:[#allocation3 + $0x140] sm:$0xff] %vm995_vm8, %v1635_v40  ;;  %2325 = vst.msk [vmem:[#allocation3 + $0x110] sm:$0xff] %vm995_vm8, %v2277_v41  ;;  %v3687_v48 = vpop.f32.mrb[66].mxu1  ;;  %v3754_v50 = vpop.f32.mrb[60].mxu0  ;;  %v2688_v40 = vrot.slane %v4697_v45, 2 }
 0x1eb   : > { %v1638_v53 = vadd.f32 %v3687_v48, %v1590_v49  ;;  %v2280_v54 = vadd.f32 %v3754_v50, %v2232_v51  ;;  %v1518_v55 = vpop.f32.mrb[67].mxu1  ;;  %v2136_v57 = vpop.f32.mrb[61].mxu0  ;;  %v2483_v43 = vsel %vm2435_vm10, %v2481_v24, %v2482_v27  ;;  %v4737_v48 = vld [vmem:[#allocation3 + $0xf0] sm:$0xff]  ;;  %v4739_v49 = vld [vmem:[#allocation3 + $0xf8] sm:$0xff] }
 0x1ec   : > { %v1637_v62 = vadd.f32 %v1589_v56, %v1518_v55  ;;  %v2279_v0 = vadd.f32 %v2231_v58, %v2136_v57  ;;  %v2234_v8 = vld [vmem:[#allocation3 + $0x138] sm:$0xff]  ;;  %v2691_v55 = vrot.slane %v4709_v4, 2  ;;  %v2485_v57 = vsel %vm2435_vm10, %v2482_v27, %v2484_v44  ;;  %v4764_v27 = vld [vmem:[#allocation3 + $0x108] sm:$0xff] }
 0x1ed   : > { %1686 = vst.msk [vmem:[#allocation3 + $0x158] sm:$0xff] %vm995_vm8, %v1638_v53  ;;  %2328 = vst.msk [vmem:[#allocation3 + $0x128] sm:$0xff] %vm995_vm8, %v2280_v54  ;;  %2753 = vrot.lane.b32.xlu0 %v2682_v59, %s3824_s7  ;;  %2548 = vrot.lane.b32.xlu1 %v2478_v1, %s3825_s8  ;;  %v2233_v17 = vld [vmem:[#allocation3 + $0x130] sm:$0xff]  ;;  %v2689_v54 = vsel %vm2644_vm9, %v2686_v20, %v2688_v40  ;;  %v2486_v58 = vrot.slane %v4737_v48, 1  ;;  %v2487_v59 = vrot.slane %v4739_v49, 1  ;;  %v2491_v24 = vrot.slane %v4764_v27, 1 }
 0x1ee   : > { %1685 = vst.msk [vmem:[#allocation3 + $0x150] sm:$0xff] %vm995_vm8, %v1637_v62  ;;  %2327 = vst.msk [vmem:[#allocation3 + $0x120] sm:$0xff] %vm995_vm8, %v2279_v0  ;;  %v3690_v5 = vpop.f32.mrb[68].mxu1  ;;  %v3757_v7 = vpop.f32.mrb[62].mxu0  ;;  %v2371_v62 = vld [vmem:[#allocation3 + $0x100] sm:$0xff] }
 0x1ef   : > { %v1640_v13 = vadd.f32 %v3690_v5, %v1592_v6  ;;  %v2282_v14 = vadd.f32 %v3757_v7, %v2234_v8  ;;  %v1528_v15 = vpop.f32.mrb[69].mxu1  ;;  %v2146_v16 = vpop.f32.mrb[63].mxu0  ;;  %v2693_v8 = vrot.slane %v4724_v31, 2 }
 0x1f0   : > { %v1639_v22 = vadd.f32 %v1591_v11, %v1528_v15  ;;  %v2281_v25 = vadd.f32 %v2233_v17, %v2146_v16  ;;  %v2236_v23 = vld [vmem:[#allocation3 + $0x148] sm:$0xff] }
 0x1f1   : > { %1688 = vst.msk [vmem:[#allocation3 + $0x168] sm:$0xff] %vm995_vm8, %v1640_v13  ;;  %2330 = vst.msk [vmem:[#allocation3 + $0x138] sm:$0xff] %vm995_vm8, %v2282_v14  ;;  %2755 = vrot.lane.b32.xlu0 %v2684_v12, %s3824_s7  ;;  %2550 = vrot.lane.b32.xlu1 %v2480_v26, %s3825_s8  ;;  %v2235_v38 = vld [vmem:[#allocation3 + $0x140] sm:$0xff]  ;;  %v2692_v12 = vsel %vm2644_vm9, %v2690_v2, %v2691_v55  ;;  %v2488_v13 = vsel %vm2435_vm10, %v2486_v58, %v2487_v59  ;;  %v2489_v14 = vrot.slane %v2371_v62, 1  ;;  %v4759_v15 = vld [vmem:[#allocation3 + $0x110] sm:$0xff] }
 0x1f2   : > { %1687 = vst.msk [vmem:[#allocation3 + $0x160] sm:$0xff] %vm995_vm8, %v1639_v22  ;;  %2329 = vst.msk [vmem:[#allocation3 + $0x130] sm:$0xff] %vm995_vm8, %v2281_v25  ;;  %v3693_v34 = vpop.f32.mrb[70].mxu1  ;;  %v3760_v19 = vpop.f32.mrb[64].mxu0  ;;  %v2694_v25 = vsel %vm2644_vm9, %v2691_v55, %v2693_v8  ;;  %v2696_v26 = vrot.slane %v4739_v49, 2 }
 0x1f3   : > { %v1642_v28 = vadd.f32 %v3693_v34, %v1594_v35  ;;  %v2284_v32 = vadd.f32 %v3760_v19, %v2236_v23  ;;  %v1538_v33 = vpop.f32.mrb[71].mxu1  ;;  %v2156_v37 = vpop.f32.mrb[65].mxu0  ;;  %v2490_v34 = vsel %vm2435_vm10, %v2487_v59, %v2489_v14  ;;  %v2695_v35 = vrot.slane %v4737_v48, 2  ;;  %v2374_v23 = vld [vmem:[#allocation3 + $0x118] sm:$0xff] }
 0x1f4   : > { %v1641_v41 = vadd.f32 %v1593_v36, %v1538_v33  ;;  %v2283_v42 = vadd.f32 %v2235_v38, %v2156_v37  ;;  %v2238_v50 = vld [vmem:[#allocation3 + $0x158] sm:$0xff]  ;;  %v2492_v19 = vrot.slane %v4759_v15, 1  ;;  %v2494_v36 = vrot.slane %v2374_v23, 1  ;;  %v4780_v38 = vld [vmem:[#allocation3 + $0x128] sm:$0xff] }
 0x1f5   : > { %1690 = vst.msk [vmem:[#allocation3 + $0x178] sm:$0xff] %vm995_vm8, %v1642_v28  ;;  %2332 = vst.msk [vmem:[#allocation3 + $0x148] sm:$0xff] %vm995_vm8, %v2284_v32  ;;  %2757 = vrot.lane.b32.xlu0 %v2687_v39, %s3824_s7  ;;  %2552 = vrot.lane.b32.xlu1 %v2483_v43, %s3825_s8  ;;  %v2237_v53 = vld [vmem:[#allocation3 + $0x150] sm:$0xff]  ;;  %v2698_v28 = vrot.slane %v2371_v62, 2  ;;  %v2697_v32 = vsel %vm2644_vm9, %v2695_v35, %v2696_v26  ;;  %v4778_v37 = vld [vmem:[#allocation3 + $0x120] sm:$0xff]  ;;  %v2497_v43 = vrot.slane %v4780_v38, 1 }
 0x1f6   : > { %1689 = vst.msk [vmem:[#allocation3 + $0x170] sm:$0xff] %vm995_vm8, %v1641_v41  ;;  %2331 = vst.msk [vmem:[#allocation3 + $0x140] sm:$0xff] %vm995_vm8, %v2283_v42  ;;  %v3763_v45 = vpop.f32.mrb[66].mxu0  ;;  %v2493_v33 = vsel %vm2435_vm10, %v2491_v24, %v2492_v19  ;;  %v2495_v40 = vsel %vm2435_vm10, %v2492_v19, %v2494_v36  ;;  %v2701_v41 = vrot.slane %v4759_v15, 2  ;;  %v2496_v42 = vrot.slane %v4778_v37, 1 }
 0x1f7   : > { %v2286_v51 = vadd.f32 %v3763_v45, %v2238_v50  ;;  %v2166_v52 = vpop.f32.mrb[67].mxu0  ;;  %5366 = vst [vmem:[#allocation4_spill] sm:$0xff] %v4778_v37  ;;  %5367 = vst [vmem:[#allocation5_spill] sm:$0xff] %v4780_v38  ;;  %v2699_v39 = vsel %vm2644_vm9, %v2696_v26, %v2698_v28  ;;  %v2700_v45 = vrot.slane %v4764_v27, 2  ;;  %v2703_v50 = vrot.slane %v2374_v23, 2 }
 0x1f8   : > { %v2285_v56 = vadd.f32 %v2237_v53, %v2166_v52  ;;  %v2240_v1 = vld [vmem:[#allocation3 + $0x168] sm:$0xff]  ;;  %v2498_v52 = vsel %vm2435_vm10, %v2496_v42, %v2497_v43  ;;  %v2705_v58 = vrot.slane %v4778_v37, 2  ;;  %v2706_v59 = vrot.slane %v4780_v38, 2  ;;  %v3805_v42 = vld [vmem:[#allocation3] sm:$0xff] }
 0x1f9   : > { %2334 = vst.msk [vmem:[#allocation3 + $0x158] sm:$0xff] %vm995_vm8, %v2286_v51  ;;  %2759 = vrot.lane.b32.xlu0 %v2689_v54, %s3824_s7  ;;  %2554 = vrot.lane.b32.xlu1 %v2485_v57, %s3825_s8  ;;  %v2239_v7 = vld [vmem:[#allocation3 + $0x160] sm:$0xff]  ;;  %v2377_v44 = vld [vmem:[#allocation3 + $0x130] sm:$0xff]  ;;  %v2702_v51 = vsel %vm2644_vm9, %v2700_v45, %v2701_v41  ;;  %v2704_v55 = vsel %vm2644_vm9, %v2701_v41, %v2703_v50 }
 0x1fa   : > { %2333 = vst.msk [vmem:[#allocation3 + $0x150] sm:$0xff] %vm995_vm8, %v2285_v56  ;;  %v3766_v0 = vpop.f32.mrb[68].mxu0  ;;  %v2499_v53 = vrot.slane %v2377_v44, 1  ;;  %v4797_v56 = vld [vmem:[#allocation3 + $0x138] sm:$0xff]  ;;  %v2708_v2 = vrot.slane %v2377_v44, 2 }
 0x1fb   : > { %v2288_v5 = vadd.f32 %v3766_v0, %v2240_v1  ;;  %v2176_v6 = vpop.f32.mrb[69].mxu0  ;;  %5369 = vst [vmem:[#allocation7_spill] sm:$0xff] %v4797_v56  ;;  %v2501_v1 = vrot.slane %v4797_v56, 1 }
 0x1fc   : > { %v2287_v11 = vadd.f32 %v2239_v7, %v2176_v6  ;;  %v2242_v17 = vld [vmem:[#allocation3 + $0x178] sm:$0xff]  ;;  %v2500_v57 = vsel %vm2435_vm10, %v2497_v43, %v2499_v53  ;;  %v2380_v0 = vld [vmem:[#allocation3 + $0x148] sm:$0xff] }
 0x1fd   : > { %2336 = vst.msk [vmem:[#allocation3 + $0x168] sm:$0xff] %vm995_vm8, %v2288_v5  ;;  %2761 = vrot.lane.b32.xlu0 %v2692_v12, %s3824_s7  ;;  %2556 = vrot.lane.b32.xlu1 %v2488_v13, %s3825_s8  ;;  %v2241_v22 = vld [vmem:[#allocation3 + $0x170] sm:$0xff]  ;;  %v4794_v54 = vld [vmem:[#allocation3 + $0x140] sm:$0xff]  ;;  %v2707_v5 = vsel %vm2644_vm9, %v2705_v58, %v2706_v59  ;;  %v2504_v7 = vrot.slane %v2380_v0, 1  ;;  %v2709_v12 = vsel %vm2644_vm9, %v2706_v59, %v2708_v2  ;;  %v2713_v26 = vrot.slane %v2380_v0, 2 }
 0x1fe   : > { %2335 = vst.msk [vmem:[#allocation3 + $0x160] sm:$0xff] %vm995_vm8, %v2287_v11  ;;  %v3769_v16 = vpop.f32.mrb[70].mxu0  ;;  %5368 = vst [vmem:[#allocation6_spill] sm:$0xff] %v4794_v54  ;;  %v2502_v62 = vrot.slane %v4794_v54, 1  ;;  %v2711_v14 = vrot.slane %v4794_v54, 2 }
 0x1ff   : > { %v2290_v18 = vadd.f32 %v3769_v16, %v2242_v17  ;;  %v2186_v20 = vpop.f32.mrb[71].mxu0 }
 0x200   : > { %v2289_v31 = vadd.f32 %v2241_v22, %v2186_v20  ;;  %v2503_v6 = vsel %vm2435_vm10, %v2501_v1, %v2502_v62  ;;  %v4812_v11 = vld [vmem:[#allocation3 + $0x158] sm:$0xff]  ;;  %v2505_v13 = vsel %vm2435_vm10, %v2502_v62, %v2504_v7  ;;  %v2710_v20 = vrot.slane %v4797_v56, 2 }
 0x201   : > { %2338 = vst.msk [vmem:[#allocation3 + $0x178] sm:$0xff] %vm995_vm8, %v2290_v18  ;;  %2763 = vrot.lane.b32.xlu0 %v2694_v25, %s3824_s7  ;;  %2558 = vrot.lane.b32.xlu1 %v2490_v34, %s3825_s8  ;;  %v4810_v8 = vld [vmem:[#allocation3 + $0x150] sm:$0xff]  ;;  %5371 = vst [vmem:[#allocation9_spill] sm:$0xff] %v4812_v11  ;;  %v2507_v17 = vrot.slane %v4812_v11, 1  ;;  %v2716_v19 = vrot.slane %v4812_v11, 2  ;;  %v2714_v24 = vsel %vm2644_vm9, %v2711_v14, %v2713_v26  ;;  %v3811_v11 = vld [vmem:[#allocation3 + $0x48] sm:$0xff] }
 0x202   : > { %2337 = vst.msk [vmem:[#allocation3 + $0x170] sm:$0xff] %vm995_vm8, %v2289_v31  ;;  %5370 = vst [vmem:[#allocation8_spill] sm:$0xff] %v4810_v8  ;;  %v2506_v16 = vrot.slane %v4810_v8, 1  ;;  %v2712_v22 = vsel %vm2644_vm9, %v2710_v20, %v2711_v14  ;;  %v2715_v35 = vrot.slane %v4810_v8, 2 }
 0x204   : > { %v2508_v25 = vsel %vm2435_vm10, %v2506_v16, %v2507_v17  ;;  %v4830_v23 = vld [vmem:[#allocation3 + $0x168] sm:$0xff]  ;;  %v2717_v41 = vsel %vm2644_vm9, %v2715_v35, %v2716_v19 }
 0x205   : > { %2765 = vrot.lane.b32.xlu0 %v2697_v32, %s3824_s7  ;;  %2560 = vrot.lane.b32.xlu1 %v2493_v33, %s3825_s8  ;;  %v2383_v18 = vld [vmem:[#allocation3 + $0x160] sm:$0xff]  ;;  %5373 = vst [vmem:[#allocation11_spill] sm:$0xff] %v4830_v23  ;;  %v2511_v36 = vrot.slane %v4830_v23, 1  ;;  %v2720_v62 = vrot.slane %v4830_v23, 2 }
 0x206   : > { %v2509_v31 = vrot.slane %v2383_v18, 1  ;;  %v2718_v45 = vrot.slane %v2383_v18, 2 }
 0x208   : > { %v2510_v28 = vsel %vm2435_vm10, %v2507_v17, %v2509_v31  ;;  %v2386_v33 = vld [vmem:[#allocation3 + $0x178] sm:$0xff] }
 0x209   : > { %2767 = vrot.lane.b32.xlu0 %v2699_v39, %s3824_s7  ;;  %2562 = vrot.lane.b32.xlu1 %v2495_v40, %s3825_s8  ;;  %v4826_v34 = vld [vmem:[#allocation3 + $0x170] sm:$0xff]  ;;  %v2514_v50 = vrot.slane %v2386_v33, 1  ;;  %v2723_v59 = vrot.slane %v2386_v33, 2 }
 0x20a   : > { %5372 = vst [vmem:[#allocation10_spill] sm:$0xff] %v4826_v34  ;;  %v2512_v32 = vrot.slane %v4826_v34, 1  ;;  %v2721_v58 = vrot.slane %v4826_v34, 2  ;;  %v3809_v34 = vld [vmem:[#allocation3 + $0x30] sm:$0xff] }
 0x20c   : > { %v2513_v44 = vsel %vm2435_vm10, %v2511_v36, %v2512_v32  ;;  %v2722_v2 = vsel %vm2644_vm9, %v2720_v62, %v2721_v58 }
 0x20d   : > { %2769 = vrot.lane.b32.xlu0 %v2702_v51, %s3824_s7  ;;  %2564 = vrot.lane.b32.xlu1 %v2498_v52, %s3825_s8 }
 0x211   : > { %2771 = vrot.lane.b32.xlu0 %v2704_v55, %s3824_s7  ;;  %2566 = vrot.lane.b32.xlu1 %v2500_v57, %s3825_s8  ;;  %v2719_v55 = vsel %vm2644_vm9, %v2716_v19, %v2718_v45  ;;  %v2515_v57 = vsel %vm2435_vm10, %v2512_v32, %v2514_v50 }
 0x215   : > { %2773 = vrot.lane.b32.xlu0 %v2707_v5, %s3824_s7  ;;  %2568 = vrot.lane.b32.xlu1 %v2503_v6, %s3825_s8  ;;  %v2724_v5 = vsel %vm2644_vm9, %v2721_v58, %v2723_v59  ;;  %v3808_v59 = vld [vmem:[#allocation3 + $0x20] sm:$0xff] }
 0x219   : > { %2775 = vrot.lane.b32.xlu0 %v2709_v12, %s3824_s7  ;;  %2570 = vrot.lane.b32.xlu1 %v2505_v13, %s3825_s8 }
 0x21d   : > { %2777 = vrot.lane.b32.xlu0 %v2712_v22, %s3824_s7  ;;  %2572 = vrot.lane.b32.xlu1 %v2508_v25, %s3825_s8 }
 0x221   : > { %2779 = vrot.lane.b32.xlu0 %v2714_v24, %s3824_s7  ;;  %2574 = vrot.lane.b32.xlu1 %v2510_v28, %s3825_s8 }
 0x223   : > { %v2726_v39 = vpop.permute.xlu1 %2725  ;;  %v2517_v40 = vpop.permute.xlu0 %2516 }
 0x224   : > { %v2612_v43 = vadd.f32 %v3805_v42, %v2517_v40 }
 0x225   : > { %2781 = vrot.lane.b32.xlu0 %v2717_v41, %s3824_s7  ;;  %2576 = vrot.lane.b32.xlu1 %v2513_v44, %s3825_s8  ;;  %v3806_v41 = vld [vmem:[#allocation3 + $0x8] sm:$0xff] }
 0x226   : > { %v4842_v51 = vadd.f32 %v2726_v39, %v2612_v43 }
 0x227   : > { %v2728_v52 = vpop.permute.xlu0 %2727  ;;  %v2519_v53 = vpop.permute.xlu1 %2518 }
 0x228   : > { %5374 = vst [vmem:[#allocation12_spill] sm:$0xff] %v4842_v51  ;;  %v2613_v42 = vadd.f32 %v3806_v41, %v2519_v53  ;;  %v2923_v23 = vmul.f32 %v4842_v51, %v4842_v51 }
 0x229   : > { %2783 = vrot.lane.b32.xlu0 %v2719_v55, %s3824_s7  ;;  %2578 = vrot.lane.b32.xlu1 %v2515_v57, %s3825_s8  ;;  %v3807_v57 = vld [vmem:[#allocation3 + $0x18] sm:$0xff] }
 0x22a   : > { %v4878_v45 = vadd.f32 %v2728_v52, %v2613_v42 }
 0x22b   : > { %v2523_v0 = vpop.permute.xlu1 %2522  ;;  %v2521_v1 = vpop.permute.xlu0 %2520 }
 0x22c   : > { %5375 = vst [vmem:[#allocation13_spill] sm:$0xff] %v4878_v45  ;;  %v2614_v58 = vadd.f32 %v3807_v57, %v2521_v1  ;;  %v2615_v62 = vadd.f32 %v3808_v59, %v2523_v0  ;;  %v2854_v1 = vsel %vm266_vm6, %v4878_v45, 0.0  ;;  %v2853_v59 = vsel %vm266_vm6, %v4842_v51, 0.0 }
 0x22d   : > { %2785 = vrot.lane.b32.xlu0 %v2722_v2, %s3824_s7  ;;  %2787 = vrot.lane.b32.xlu1 %v2724_v5, %s3824_s7  ;;  %v2924_v5 = vmul.f32 %v4878_v45, %v4878_v45 }
 0x22f   : > { %v2730_v6 = vpop.permute.xlu0 %2729  ;;  %v2525_v7 = vpop.permute.xlu1 %2524 }
 0x230   : > { %v4884_v2 = vadd.f32 %v2730_v6, %v2614_v58  ;;  %v2616_v52 = vadd.f32 %v3809_v34, %v2525_v7  ;;  %v3810_v6 = vld [vmem:[#allocation3 + $0x38] sm:$0xff]  ;;  %v2956_v34 = vsel %vm266_vm6, %v2924_v5, 0.0 }
 0x232   : > { %5376 = vst [vmem:[#allocation14_spill] sm:$0xff] %v4884_v2  ;;  %v2925_v0 = vmul.f32 %v4884_v2, %v4884_v2 }
 0x233   : > { %v2732_v12 = vpop.permute.xlu0 %2731  ;;  %v2527_v13 = vpop.permute.xlu1 %2526 }
 0x234   : > { %v4892_v42 = vadd.f32 %v2732_v12, %v2615_v62  ;;  %v2617_v57 = vadd.f32 %v3810_v6, %v2527_v13  ;;  %v2856_v62 = vsel %vm266_vm6, %v4884_v2, 0.0  ;;  %v3812_v6 = vld [vmem:[#allocation3 + $0x50] sm:$0xff]  ;;  %v2958_v5 = vsel %vm266_vm6, %v2925_v0, 0.0 }
 0x236   : > { %v2926_v45 = vmul.f32 %v4892_v42, %v4892_v42  ;;  %v2858_v54 = vsel %vm266_vm6, %v4892_v42, 0.0 }
 0x237   : > { %v2734_v14 = vpop.permute.xlu0 %2733  ;;  %v2529_v16 = vpop.permute.xlu1 %2528 }
 0x238   : > { %v4900_v58 = vadd.f32 %v2734_v14, %v2616_v52  ;;  %v2618_v8 = vadd.f32 %v3811_v11, %v2529_v16  ;;  %v2955_v14 = vsel %vm266_vm6, %v2923_v23, 0.0  ;;  %v2855_v52 = vadd.f32 %v2854_v1, %v2853_v59 }
 0x239   : > { %v2957_v38 = vadd.f32 %v2956_v34, %v2955_v14 }
 0x23a   : > { %v2927_v2 = vmul.f32 %v4900_v58, %v4900_v58  ;;  %v2857_v37 = vadd.f32 %v2856_v62, %v2855_v52  ;;  %v2860_v1 = vsel %vm266_vm6, %v4900_v58, 0.0 }
 0x23b   : > { %v2736_v17 = vpop.permute.xlu0 %2735  ;;  %v2531_v18 = vpop.permute.xlu1 %2530 }
 0x23c   : > { %v4913_v13 = vadd.f32 %v2736_v17, %v2617_v57  ;;  %v2619_v51 = vadd.f32 %v3812_v6, %v2531_v18  ;;  %v2960_v18 = vsel %vm266_vm6, %v2926_v45, 0.0 }
 0x23e   : > { %v2928_v0 = vmul.f32 %v4913_v13, %v4913_v13 }
 0x23f   : > { %v2738_v20 = vpop.permute.xlu0 %2737  ;;  %v2533_v22 = vpop.permute.xlu1 %2532 }
 0x240   : > { %v4921_v56 = vadd.f32 %v2738_v20, %v2618_v8  ;;  %v2620_v11 = vadd.f32 %v2533_v22, %v4569_v60  ;;  %v2959_v8 = vadd.f32 %v2958_v5, %v2957_v38  ;;  %v2859_v20 = vadd.f32 %v2858_v54, %v2857_v37 }
 0x241   : > { %v2962_v60 = vsel %vm266_vm6, %v2927_v2, 0.0  ;;  %v2964_v54 = vsel %vm266_vm6, %v2928_v0, 0.0 }
 0x242   : > { %v2929_v22 = vmul.f32 %v4921_v56, %v4921_v56  ;;  %v2961_v45 = vadd.f32 %v2960_v18, %v2959_v8  ;;  %v2861_v59 = vadd.f32 %v2860_v1, %v2859_v20 }
 0x243   : > { %v2740_v25 = vpop.permute.xlu0 %2739  ;;  %v4854_v26 = vpop.permute.xlu1 %2534 }
 0x244   : > { %v4924_v16 = vadd.f32 %v2740_v25, %v2619_v51  ;;  %v2862_v51 = vsel %vm266_vm6, %v4913_v13, 0.0  ;;  %v2621_v25 = vadd.f32 %v4854_v26, %v4571_v61  ;;  %v2963_v61 = vadd.f32 %v2962_v60, %v2961_v45 }
 0x245   : > { %v2863_v26 = vadd.f32 %v2862_v51, %v2861_v59  ;;  %v2966_v52 = vsel %vm266_vm6, %v2929_v22, 0.0 }
 0x246   : > { %v2930_v34 = vmul.f32 %v4924_v16, %v4924_v16  ;;  %v2866_v6 = vsel %vm266_vm6, %v4924_v16, 0.0 }
 0x247   : > { %v2742_v31 = vpop.permute.xlu0 %2741  ;;  %v4856_v35 = vpop.permute.xlu1 %2536 }
 0x248   : > { %v4935_v57 = vadd.f32 %v2742_v31, %v2620_v11  ;;  %v2864_v31 = vsel %vm266_vm6, %v4921_v56, 0.0  ;;  %v2622_v2 = vadd.f32 %v4856_v35, %v4604_v47  ;;  %v2965_v47 = vadd.f32 %v2964_v54, %v2963_v61 }
 0x249   : > { %v2865_v35 = vadd.f32 %v2864_v31, %v2863_v26 }
 0x24a   : > { %v2931_v14 = vmul.f32 %v4935_v57, %v4935_v57  ;;  %v2868_v0 = vsel %vm266_vm6, %v4935_v57, 0.0 }
 0x24b   : > { %v4858_v19 = vpop.permute.xlu0 %2743  ;;  %v4860_v24 = vpop.permute.xlu1 %2538  ;;  %v2867_v20 = vadd.f32 %v2866_v6, %v2865_v35 }
 0x24c   : > { %v4956_v62 = vadd.f32 %v4858_v19, %v2621_v25  ;;  %v2623_v5 = vadd.f32 %v4860_v24, %v4597_v30  ;;  %v2968_v19 = vsel %vm266_vm6, %v2930_v34, 0.0  ;;  %v2970_v60 = vsel %vm266_vm6, %v2931_v14, 0.0 }
 0x24e   : > { %v2932_v8 = vmul.f32 %v4956_v62, %v4956_v62  ;;  %v2870_v51 = vsel %vm266_vm6, %v4956_v62, 0.0 }
 0x24f   : > { %v4862_v28 = vpop.permute.xlu0 %2745  ;;  %v4864_v32 = vpop.permute.xlu1 %2540 }
 0x250   : > { %v4966_v11 = vadd.f32 %v4862_v28, %v2622_v2  ;;  %v2624_v30 = vadd.f32 %v4864_v32, %v4625_v9  ;;  %v2967_v28 = vadd.f32 %v2966_v52, %v2965_v47  ;;  %v2869_v32 = vadd.f32 %v2868_v0, %v2867_v20 }
 0x251   : > { %v2972_v54 = vsel %vm266_vm6, %v2932_v8, 0.0 }
 0x252   : > { %v2933_v22 = vmul.f32 %v4966_v11, %v4966_v11  ;;  %v2969_v9 = vadd.f32 %v2968_v19, %v2967_v28  ;;  %v2872_v31 = vsel %vm266_vm6, %v4966_v11, 0.0 }
 0x253   : > { %v4866_v33 = vpop.permute.xlu0 %2747  ;;  %v4868_v36 = vpop.permute.xlu1 %2542 }
 0x254   : > { %v4980_v24 = vadd.f32 %v4866_v33, %v2623_v5  ;;  %v2625_v25 = vadd.f32 %v4868_v36, %v4627_v10  ;;  %v2971_v36 = vadd.f32 %v2970_v60, %v2969_v9 }
 0x256   : > { %v2934_v2 = vmul.f32 %v4980_v24, %v4980_v24  ;;  %v2874_v26 = vsel %vm266_vm6, %v4980_v24, 0.0  ;;  %v2973_v52 = vadd.f32 %v2972_v54, %v2971_v36 }
 0x257   : > { %v4870_v39 = vpop.permute.xlu0 %2749  ;;  %v4872_v40 = vpop.permute.xlu1 %2544 }
 0x258   : > { %v4990_v45 = vadd.f32 %v4870_v39, %v2624_v30  ;;  %v2626_v33 = vadd.f32 %v4872_v40, %v4660_v63  ;;  %v2871_v39 = vadd.f32 %v2870_v51, %v2869_v32  ;;  %v2974_v40 = vsel %vm266_vm6, %v2933_v22, 0.0 }
 0x259   : > { %v2975_v19 = vadd.f32 %v2974_v40, %v2973_v52 }
 0x25a   : > { %v2935_v14 = vmul.f32 %v4990_v45, %v4990_v45  ;;  %v2873_v6 = vadd.f32 %v2872_v31, %v2871_v39 }
 0x25b   : > { %v4874_v43 = vpop.permute.xlu0 %2751  ;;  %v4876_v44 = vpop.permute.xlu1 %2546 }
 0x25c   : > { %v5000_v10 = vadd.f32 %v4874_v43, %v2625_v25  ;;  %v2627_v61 = vadd.f32 %v4876_v44, %v4653_v46  ;;  %v2976_v46 = vsel %vm266_vm6, %v2934_v2, 0.0  ;;  %v2876_v44 = vsel %vm266_vm6, %v4990_v45, 0.0 }
 0x25d   : > { %v2875_v0 = vadd.f32 %v2874_v26, %v2873_v6  ;;  %v2977_v60 = vadd.f32 %v2976_v46, %v2975_v19 }
 0x25e   : > { %v2878_v30 = vsel %vm266_vm6, %v5000_v10, 0.0 }
 0x25f   : > { %v4880_v50 = vpop.permute.xlu0 %2753  ;;  %v4882_v55 = vpop.permute.xlu1 %2548  ;;  %v2877_v51 = vadd.f32 %v2876_v44, %v2875_v0 }
 0x260   : > { %v5005_v63 = vadd.f32 %v4880_v50, %v2626_v33  ;;  %v2936_v50 = vmul.f32 %v5000_v10, %v5000_v10  ;;  %v2628_v35 = vadd.f32 %v4882_v55, %v4681_v3 }
 0x262   : > { %v2937_v8 = vmul.f32 %v5005_v63, %v5005_v63  ;;  %v2980_v25 = vsel %vm266_vm6, %v2936_v50, 0.0  ;;  %v2880_v9 = vsel %vm266_vm6, %v5005_v63, 0.0 }
 0x263   : > { %v4888_v53 = vpop.permute.xlu0 %2755  ;;  %v4890_v41 = vpop.permute.xlu1 %2550 }
 0x264   : > { %v5013_v43 = vadd.f32 %v4888_v53, %v2627_v61  ;;  %v2978_v53 = vsel %vm266_vm6, %v2935_v14, 0.0  ;;  %v2629_v28 = vadd.f32 %v4890_v41, %v4683_v29  ;;  %v2982_v33 = vsel %vm266_vm6, %v2937_v8, 0.0 }
 0x265   : > { %v2979_v41 = vadd.f32 %v2978_v53, %v2977_v60 }
 0x266   : > { %v2938_v3 = vmul.f32 %v5013_v43, %v5013_v43  ;;  %v2882_v54 = vsel %vm266_vm6, %v5013_v43, 0.0 }
 0x267   : > { %v4905_v7 = vpop.permute.xlu0 %2757  ;;  %v4907_v12 = vpop.permute.xlu1 %2552 }
 0x268   : > { %v5030_v20 = vadd.f32 %v4905_v7, %v2628_v35  ;;  %v2630_v32 = vadd.f32 %v4907_v12, %v4716_v21  ;;  %v2879_v7 = vadd.f32 %v2878_v30, %v2877_v51  ;;  %v2981_v21 = vadd.f32 %v2980_v25, %v2979_v41  ;;  %v5377_v41 = vld [vmem:[#allocation4_spill] sm:$0xff] }
 0x26a   : > { %v2939_v31 = vmul.f32 %v5030_v20, %v5030_v20  ;;  %v2881_v12 = vadd.f32 %v2880_v9, %v2879_v7  ;;  %v2884_v40 = vsel %vm266_vm6, %v5030_v20, 0.0 }
 0x26b   : > { %v4926_v23 = vpop.permute.xlu0 %2759  ;;  %v4928_v17 = vpop.permute.xlu1 %2554 }
 0x26c   : > { %v5040_v29 = vadd.f32 %v4926_v23, %v2629_v28  ;;  %v2631_v2 = vadd.f32 %v4928_v17, %v4709_v4  ;;  %v2984_v23 = vsel %vm266_vm6, %v2938_v3, 0.0  ;;  %v2983_v17 = vadd.f32 %v2982_v33, %v2981_v21  ;;  %v5378_v21 = vld [vmem:[#allocation5_spill] sm:$0xff] }
 0x26d   : > { %v2986_v6 = vsel %vm266_vm6, %v2939_v31, 0.0 }
 0x26e   : > { %v2940_v26 = vmul.f32 %v5040_v29, %v5040_v29  ;;  %v2886_v46 = vsel %vm266_vm6, %v5040_v29, 0.0  ;;  %v2985_v35 = vadd.f32 %v2984_v23, %v2983_v17 }
 0x26f   : > { %v4946_v38 = vpop.permute.xlu0 %2761  ;;  %v4948_v37 = vpop.permute.xlu1 %2556 }
 0x270   : > { %v5050_v36 = vadd.f32 %v4946_v38, %v2630_v32  ;;  %v2632_v14 = vadd.f32 %v4948_v37, %v4737_v48  ;;  %v2883_v38 = vadd.f32 %v2882_v54, %v2881_v12  ;;  %v2987_v53 = vadd.f32 %v2986_v6, %v2985_v35 }
 0x272   : > { %v2941_v44 = vmul.f32 %v5050_v36, %v5050_v36  ;;  %v2885_v48 = vadd.f32 %v2884_v40, %v2883_v38 }
 0x273   : > { %v4969_v18 = vpop.permute.xlu0 %2763  ;;  %v4971_v1 = vpop.permute.xlu1 %2558 }
 0x274   : > { %v5060_v4 = vadd.f32 %v4969_v18, %v2631_v2  ;;  %v2633_v52 = vadd.f32 %v4971_v1, %v4739_v49  ;;  %v2988_v49 = vsel %vm266_vm6, %v2940_v26, 0.0  ;;  %v2888_v1 = vsel %vm266_vm6, %v5050_v36, 0.0 }
 0x275   : > { %v2887_v30 = vadd.f32 %v2886_v46, %v2885_v48  ;;  %v2990_v28 = vsel %vm266_vm6, %v2941_v44, 0.0  ;;  %v2989_v60 = vadd.f32 %v2988_v49, %v2987_v53 }
 0x276   : > { %v2942_v8 = vmul.f32 %v5060_v4, %v5060_v4 }
 0x277   : > { %v2766_v59 = vpop.permute.xlu0 %2765  ;;  %v2561_v34 = vpop.permute.xlu1 %2560  ;;  %v2889_v51 = vadd.f32 %v2888_v1, %v2887_v30  ;;  %v2991_v54 = vadd.f32 %v2990_v28, %v2989_v60 }
 0x278   : > { %v5069_v50 = vadd.f32 %v2766_v59, %v2632_v14  ;;  %v2634_v37 = vadd.f32 %v2561_v34, %v4764_v27  ;;  %v2890_v27 = vsel %vm266_vm6, %v5060_v4, 0.0 }
 0x279   : > { %v2891_v31 = vadd.f32 %v2890_v27, %v2889_v51 }
 0x27a   : > { %v2943_v34 = vmul.f32 %v5069_v50, %v5069_v50  ;;  %v2892_v32 = vsel %vm266_vm6, %v5069_v50, 0.0 }
 0x27b   : > { %v2768_v5 = vpop.permute.xlu0 %2767  ;;  %v2563_v47 = vpop.permute.xlu1 %2562  ;;  %v2893_v26 = vadd.f32 %v2892_v32, %v2891_v31 }
 0x27c   : > { %v5072_v18 = vadd.f32 %v2768_v5, %v2633_v52  ;;  %v2635_v5 = vadd.f32 %v2563_v47, %v4759_v15  ;;  %v2994_v47 = vsel %vm266_vm6, %v2943_v34, 0.0  ;;  %v5379_v52 = vld [vmem:[#allocation7_spill] sm:$0xff] }
 0x27e   : > { %v2944_v3 = vmul.f32 %v5072_v18, %v5072_v18  ;;  %v2894_v2 = vsel %vm266_vm6, %v5072_v18, 0.0 }
 0x27f   : > { %v2770_v55 = vpop.permute.xlu0 %2769  ;;  %v2565_v22 = vpop.permute.xlu1 %2564 }
 0x280   : > { %v5079_v59 = vadd.f32 %v2770_v55, %v2634_v37  ;;  %v2992_v55 = vsel %vm266_vm6, %v2942_v8, 0.0  ;;  %v2636_v7 = vadd.f32 %v2565_v22, %v5377_v41  ;;  %v2996_v22 = vsel %vm266_vm6, %v2944_v3, 0.0 }
 0x281   : > { %v2993_v40 = vadd.f32 %v2992_v55, %v2991_v54  ;;  %v5381_v55 = vld [vmem:[#allocation8_spill] sm:$0xff] }
 0x282   : > { %v2945_v15 = vmul.f32 %v5079_v59, %v5079_v59  ;;  %v2896_v17 = vsel %vm266_vm6, %v5079_v59, 0.0 }
 0x283   : > { %v2772_v39 = vpop.permute.xlu0 %2771  ;;  %v2567_v61 = vpop.permute.xlu1 %2566  ;;  %v2995_v44 = vadd.f32 %v2994_v47, %v2993_v40 }
 0x284   : > { %v5093_v33 = vadd.f32 %v2772_v39, %v2635_v5  ;;  %v2637_v12 = vadd.f32 %v2567_v61, %v5378_v21  ;;  %v2895_v61 = vadd.f32 %v2894_v2, %v2893_v26  ;;  %v2998_v35 = vsel %vm266_vm6, %v2945_v15, 0.0 }
 0x285   : > { %v2997_v8 = vadd.f32 %v2996_v22, %v2995_v44 }
 0x286   : > { %v2946_v38 = vmul.f32 %v5093_v33, %v5093_v33  ;;  %v2898_v48 = vsel %vm266_vm6, %v5093_v33, 0.0  ;;  %v2897_v53 = vadd.f32 %v2896_v17, %v2895_v61 }
 0x287   : > { %v2774_v19 = vpop.permute.xlu0 %2773  ;;  %v2569_v0 = vpop.permute.xlu1 %2568  ;;  %v2999_v60 = vadd.f32 %v2998_v35, %v2997_v8 }
 0x288   : > { %v5101_v23 = vadd.f32 %v2774_v19, %v2636_v7  ;;  %v2638_v6 = vadd.f32 %v2569_v0, %v5379_v52  ;;  %v5380_v19 = vld [vmem:[#allocation6_spill] sm:$0xff]  ;;  %v3000_v28 = vsel %vm266_vm6, %v2946_v38, 0.0  ;;  %v2899_v51 = vadd.f32 %v2898_v48, %v2897_v53 }
 0x289   : > { %v3001_v41 = vadd.f32 %v3000_v28, %v2999_v60  ;;  %v5384_v28 = vld [vmem:[#allocation10_spill] sm:$0xff] }
 0x28a   : > { %v2947_v37 = vmul.f32 %v5101_v23, %v5101_v23  ;;  %v2900_v27 = vsel %vm266_vm6, %v5101_v23, 0.0 }
 0x28b   : > { %v2776_v25 = vpop.permute.xlu0 %2775  ;;  %v2571_v9 = vpop.permute.xlu1 %2570  ;;  %v2901_v7 = vadd.f32 %v2900_v27, %v2899_v51 }
 0x28c   : > { %v5109_v46 = vadd.f32 %v2776_v25, %v2637_v12  ;;  %v2639_v49 = vadd.f32 %v2571_v9, %v5380_v19  ;;  %v3002_v3 = vsel %vm266_vm6, %v2947_v37, 0.0 }
 0x28d   : > { %v3003_v12 = vadd.f32 %v3002_v3, %v3001_v41 }
 0x28e   : > { %v2948_v34 = vmul.f32 %v5109_v46, %v5109_v46  ;;  %v2902_v25 = vsel %vm266_vm6, %v5109_v46, 0.0 }
 0x28f   : > { %v2778_v39 = vpop.permute.xlu0 %2777  ;;  %v2573_v14 = vpop.permute.xlu1 %2572  ;;  %v2903_v40 = vadd.f32 %v2902_v25, %v2901_v7 }
 0x290   : > { %v5117_v1 = vadd.f32 %v2778_v39, %v2638_v6  ;;  %v2640_v32 = vadd.f32 %v2573_v14, %v5381_v55  ;;  %v3004_v15 = vsel %vm266_vm6, %v2948_v34, 0.0  ;;  %v5382_v39 = vld [vmem:[#allocation9_spill] sm:$0xff] }
 0x291   : > { %v3005_v38 = vadd.f32 %v3004_v15, %v3003_v12 }
 0x292   : > { %v2949_v9 = vmul.f32 %v5117_v1, %v5117_v1  ;;  %v2904_v47 = vsel %vm266_vm6, %v5117_v1, 0.0 }
 0x293   : > { %v2780_v30 = vpop.permute.xlu0 %2779  ;;  %v2575_v0 = vpop.permute.xlu1 %2574  ;;  %v2905_v52 = vadd.f32 %v2904_v47, %v2903_v40 }
 0x294   : > { %v5124_v5 = vadd.f32 %v2780_v30, %v2639_v49  ;;  %v3006_v26 = vsel %vm266_vm6, %v2949_v9, 0.0  ;;  %v2641_v14 = vadd.f32 %v2575_v0, %v5382_v39  ;;  %v5383_v49 = vld [vmem:[#allocation11_spill] sm:$0xff] }
 0x295   : > { %v3007_v37 = vadd.f32 %v3006_v26, %v3005_v38 }
 0x296   : > { %v2950_v2 = vmul.f32 %v5124_v5, %v5124_v5  ;;  %v2906_v22 = vsel %vm266_vm6, %v5124_v5, 0.0 }
 0x297   : > { %v2782_v54 = vpop.permute.xlu0 %2781  ;;  %v2577_v31 = vpop.permute.xlu1 %2576  ;;  %v2907_v19 = vadd.f32 %v2906_v22, %v2905_v52 }
 0x298   : > { %v5137_v21 = vadd.f32 %v2782_v54, %v2640_v32  ;;  %v3008_v61 = vsel %vm266_vm6, %v2950_v2, 0.0  ;;  %v2642_v8 = vadd.f32 %v2577_v31, %v5383_v49 }
 0x299   : > { %v3009_v34 = vadd.f32 %v3008_v61, %v3007_v37 }
 0x29a   : > { %v2951_v17 = vmul.f32 %v5137_v21, %v5137_v21  ;;  %v2908_v35 = vsel %vm266_vm6, %v5137_v21, 0.0 }
 0x29b   : > { %v2784_v6 = vpop.permute.xlu0 %2783  ;;  %v2579_v44 = vpop.permute.xlu1 %2578  ;;  %v2909_v60 = vadd.f32 %v2908_v35, %v2907_v19 }
 0x29c   : > { %v5148_v48 = vadd.f32 %v2784_v6, %v2641_v14  ;;  %v3010_v53 = vsel %vm266_vm6, %v2951_v17, 0.0  ;;  %v2643_v27 = vadd.f32 %v2579_v44, %v5384_v28 }
 0x29d   : > { %v3011_v32 = vadd.f32 %v3010_v53, %v3009_v34 }
 0x29e   : > { %v2910_v30 = vsel %vm266_vm6, %v5148_v48, 0.0  ;;  %v2952_v0 = vmul.f32 %v5148_v48, %v5148_v48 }
 0x29f   : > { %v2786_v51 = vpop.permute.xlu0 %2785  ;;  %v2788_v3 = vpop.permute.xlu1 %2787  ;;  %v2911_v41 = vadd.f32 %v2910_v30, %v2909_v60  ;;  %v5385_v60 = vld [vmem:[#allocation12_spill] sm:$0xff] }
 0x2a0   : > { %v3012_v25 = vsel %vm266_vm6, %v2952_v0, 0.0  ;;  %v5158_v9 = vadd.f32 %v2786_v51, %v2642_v8  ;;  %v5160_v55 = vadd.f32 %v2788_v3, %v2643_v27  ;;  %v5386_v3 = vld [vmem:[#allocation13_spill] sm:$0xff] }
 0x2a1   : > { %v3013_v15 = vadd.f32 %v3012_v25, %v3011_v32  ;;  %v5387_v32 = vld [vmem:[#allocation14_spill] sm:$0xff] }
 0x2a2   : > { %v2912_v7 = vsel %vm266_vm6, %v5158_v9, 0.0  ;;  %v2953_v54 = vmul.f32 %v5158_v9, %v5158_v9  ;;  %v2954_v31 = vmul.f32 %v5160_v55, %v5160_v55  ;;  %v2914_v12 = vsel %vm266_vm6, %v5160_v55, 0.0 }
 0x2a3   : > { %v2913_v47 = vadd.f32 %v2912_v7, %v2911_v41 }
 0x2a4   : > { %v3014_v2 = vsel %vm266_vm6, %v2953_v54, 0.0  ;;  %v3016_v22 = vsel %vm266_vm6, %v2954_v31, 0.0 }
 0x2a5   : > { %v3015_v40 = vadd.f32 %v3014_v2, %v3013_v15  ;;  %v2915_v26 = vadd.f32 %v2914_v12, %v2913_v47 }
 0x2a7   : > { %v2916_v39 = vrot.slane %v2915_v26, 4  ;;  %v3017_v14 = vadd.f32 %v3016_v22, %v3015_v40 }
 0x2a9   : > { %v2917_v17 = vadd.f32 %v2916_v39, %v2915_v26  ;;  %v3018_v38 = vrot.slane %v3017_v14, 4 }
 0x2ab   : > { %v2918_v52 = vrot.slane %v2917_v17, 2  ;;  %v3019_v6 = vadd.f32 %v3018_v38, %v3017_v14 }
 0x2ad   : > { %v2919_v44 = vadd.f32 %v2918_v52, %v2917_v17  ;;  %v3020_v61 = vrot.slane %v3019_v6, 2 }
 0x2af   : > { %v2920_v35 = vrot.slane %v2919_v44, 1  ;;  %v3021_v37 = vadd.f32 %v3020_v61, %v3019_v6 }
 0x2b1   : > { %v2921_v19 = vadd.f32 %v2920_v35, %v2919_v44  ;;  %v3022_v49 = vrot.slane %v3021_v37, 1 }
 0x2b3   : > { %v5172_v8 = vmul.f32 0.00390625, %v2921_v19  ;;  %v3023_v53 = vadd.f32 %v3022_v49, %v3021_v37 }
 0x2b5   : > { %v3024_v30 = vmul.f32 0.00390625, %v3023_v53  ;;  %v3025_v0 = vmul.f32 %v5172_v8, %v5172_v8  ;;  %v3028_v51 = vsub.f32 %v5385_v60, %v5172_v8  ;;  %v3029_v25 = vsub.f32 %v5386_v3, %v5172_v8 }
 0x2b6   : > { %v3030_v41 = vsub.f32 %v5387_v32, %v5172_v8  ;;  %v3031_v7 = vsub.f32 %v4892_v42, %v5172_v8  ;;  %v3032_v54 = vsub.f32 %v4900_v58, %v5172_v8  ;;  %v3033_v31 = vsub.f32 %v4913_v13, %v5172_v8 }
 0x2b7   : > { %v3026_v28 = vsub.f32 %v3024_v30, %v3025_v0  ;;  %v3034_v15 = vsub.f32 %v4921_v56, %v5172_v8  ;;  %v3035_v47 = vsub.f32 %v4924_v16, %v5172_v8  ;;  %v3036_v2 = vsub.f32 %v4935_v57, %v5172_v8 }
 0x2b8   : > { %v3037_v12 = vsub.f32 %v4956_v62, %v5172_v8  ;;  %v3038_v42 = vsub.f32 %v4966_v11, %v5172_v8  ;;  %v3039_v58 = vsub.f32 %v4980_v24, %v5172_v8  ;;  %v3040_v13 = vsub.f32 %v4990_v45, %v5172_v8 }
 0x2b9   : > { %v3027_v27 = vmax.f32 %v3026_v28, 0.0  ;;  %v3041_v56 = vsub.f32 %v5000_v10, %v5172_v8  ;;  %v3042_v16 = vsub.f32 %v5005_v63, %v5172_v8  ;;  %v3043_v57 = vsub.f32 %v5013_v43, %v5172_v8 }
 0x2ba   : > { %v3044_v62 = vsub.f32 %v5030_v20, %v5172_v8  ;;  %v3045_v11 = vsub.f32 %v5040_v29, %v5172_v8  ;;  %v3046_v24 = vsub.f32 %v5050_v36, %v5172_v8  ;;  %v3047_v45 = vsub.f32 %v5060_v4, %v5172_v8 }
 0x2bb   : > { %v3060_v34 = vadd.f32 1e-05, %v3027_v27  ;;  %v3048_v10 = vsub.f32 %v5069_v50, %v5172_v8  ;;  %v3049_v63 = vsub.f32 %v5072_v18, %v5172_v8  ;;  %v3050_v43 = vsub.f32 %v5079_v59, %v5172_v8 }
 0x2bc   : > { %v3051_v20 = vsub.f32 %v5093_v33, %v5172_v8  ;;  %v3052_v29 = vsub.f32 %v5101_v23, %v5172_v8  ;;  %v3053_v36 = vsub.f32 %v5109_v46, %v5172_v8  ;;  %v3054_v4 = vsub.f32 %v5117_v1, %v5172_v8 }
 0x2bd   : > { %3803 = vrsqrt.f32 %v3060_v34  ;;  %v3055_v50 = vsub.f32 %v5124_v5, %v5172_v8  ;;  %v3056_v18 = vsub.f32 %v5137_v21, %v5172_v8  ;;  %v3057_v59 = vsub.f32 %v5148_v48, %v5172_v8 }
 0x2be   : > { %v3058_v33 = vsub.f32 %v5158_v9, %v5172_v8  ;;  %v3059_v23 = vsub.f32 %v5160_v55, %v5172_v8 }
 0x2c7   : > { %v3804_v40 = vpop.eup %3803 }
 0x2c8   : > { %v3062_v46 = vmul.f32 %v3804_v40, %v3028_v51  ;;  %v3063_v26 = vmul.f32 %v3804_v40, %v3029_v25  ;;  %v3064_v22 = vmul.f32 %v3804_v40, %v3030_v41  ;;  %v3065_v1 = vmul.f32 %v3804_v40, %v3031_v7 }
 0x2c9   : > { %v3066_v39 = vmul.f32 %v3804_v40, %v3032_v54  ;;  %v3067_v14 = vmul.f32 %v3804_v40, %v3033_v31  ;;  %v3068_v5 = vmul.f32 %v3804_v40, %v3034_v15  ;;  %v3069_v17 = vmul.f32 %v3804_v40, %v3035_v47 }
 0x2ca   : > { %v3070_v38 = vmul.f32 %v3804_v40, %v3036_v2  ;;  %v3071_v52 = vmul.f32 %v3804_v40, %v3037_v12  ;;  %v3072_v21 = vmul.f32 %v3804_v40, %v3038_v42  ;;  %v3073_v6 = vmul.f32 %v3804_v40, %v3039_v58 }
 0x2cb   : > { %v3074_v44 = vmul.f32 %v3804_v40, %v3040_v13  ;;  %v3075_v48 = vmul.f32 %v3804_v40, %v3041_v56  ;;  %v3076_v61 = vmul.f32 %v3804_v40, %v3042_v16  ;;  %v3077_v9 = vmul.f32 %v3804_v40, %v3043_v57 }
 0x2cc   : > { %v3078_v35 = vmul.f32 %v3804_v40, %v3044_v62  ;;  %v3079_v37 = vmul.f32 %v3804_v40, %v3045_v11  ;;  %v3080_v55 = vmul.f32 %v3804_v40, %v3046_v24  ;;  %v3081_v19 = vmul.f32 %v3804_v40, %v3047_v45 }
 0x2cd   : > { %v5240_v49 = vmul.f32 %v3804_v40, %v3048_v10  ;;  %v5242_v8 = vmul.f32 %v3804_v40, %v3049_v63  ;;  %v5244_v53 = vmul.f32 %v3804_v40, %v3050_v43  ;;  %v5246_v30 = vmul.f32 %v3804_v40, %v3051_v20 }
 0x2ce   : > { %v5248_v0 = vmul.f32 %v3804_v40, %v3052_v29  ;;  %v5250_v28 = vmul.f32 %v3804_v40, %v3053_v36  ;;  %v5252_v27 = vmul.f32 %v3804_v40, %v3054_v4  ;;  %v5254_v34 = vmul.f32 %v3804_v40, %v3055_v50 }
 0x2cf   : > { %v5262_v60 = vmul.f32 %v3804_v40, %v3056_v18  ;;  %v5264_v51 = vmul.f32 %v3804_v40, %v3057_v59  ;;  %v5266_v3 = vmul.f32 %v3804_v40, %v3058_v33  ;;  %v5268_v25 = vmul.f32 %v3804_v40, %v3059_v23 }
 0x2d0   : > { %v3094_v32 = vmax.f32 %v3062_v46, 0.0  ;;  %v3095_v41 = vmax.f32 %v3063_v26, 0.0  ;;  %v3096_v7 = vmax.f32 %v3064_v22, 0.0  ;;  %v3097_v54 = vmax.f32 %v3065_v1, 0.0 }
 0x2d1   : > { %v3098_v31 = vmax.f32 %v3066_v39, 0.0  ;;  %v3099_v15 = vmax.f32 %v3067_v14, 0.0  ;;  %v3100_v47 = vmax.f32 %v3068_v5, 0.0  ;;  %v3101_v2 = vmax.f32 %v3069_v17, 0.0 }
 0x2d2   : > { %v3102_v12 = vmax.f32 %v3070_v38, 0.0  ;;  %v3103_v42 = vmax.f32 %v3071_v52, 0.0  ;;  %v3104_v58 = vmax.f32 %v3072_v21, 0.0  ;;  %v3105_v13 = vmax.f32 %v3073_v6, 0.0  ;;  %3126 = vst.msk [vmem:[%s5260_s11] sm:$0xff] %vm266_vm6, %v3094_v32  ;;  %3127 = vst.msk [vmem:[%s5260_s11 + $0x8] sm:$0xff] %vm266_vm6, %v3095_v41 }
 0x2d3   : > { %3128 = vst.msk [vmem:[%s5260_s11 + $0x10] sm:$0xff] %vm266_vm6, %v3096_v7  ;;  %3129 = vst.msk [vmem:[%s5260_s11 + $0x18] sm:$0xff] %vm266_vm6, %v3097_v54  ;;  %v3106_v56 = vmax.f32 %v3074_v44, 0.0  ;;  %v3107_v16 = vmax.f32 %v3075_v48, 0.0  ;;  %v3108_v57 = vmax.f32 %v3076_v61, 0.0  ;;  %v3109_v62 = vmax.f32 %v3077_v9, 0.0 }
 0x2d4   : > { %3130 = vst.msk [vmem:[%s5260_s11 + $0x20] sm:$0xff] %vm266_vm6, %v3098_v31  ;;  %3131 = vst.msk [vmem:[%s5260_s11 + $0x28] sm:$0xff] %vm266_vm6, %v3099_v15  ;;  %v3110_v11 = vmax.f32 %v3078_v35, 0.0  ;;  %v3111_v24 = vmax.f32 %v3079_v37, 0.0  ;;  %v3112_v45 = vmax.f32 %v3080_v55, 0.0  ;;  %v3113_v10 = vmax.f32 %v3081_v19, 0.0 }
 0x2d5   : > { %3132 = vst.msk [vmem:[%s5260_s11 + $0x30] sm:$0xff] %vm266_vm6, %v3100_v47  ;;  %3133 = vst.msk [vmem:[%s5260_s11 + $0x38] sm:$0xff] %vm266_vm6, %v3101_v2  ;;  %v3114_v63 = vmax.f32 %v5240_v49, 0.0  ;;  %v3115_v43 = vmax.f32 %v5242_v8, 0.0  ;;  %v3116_v20 = vmax.f32 %v5244_v53, 0.0  ;;  %v3117_v29 = vmax.f32 %v5246_v30, 0.0 }
 0x2d6   : > { %3134 = vst.msk [vmem:[%s5260_s11 + $0x40] sm:$0xff] %vm266_vm6, %v3102_v12  ;;  %3135 = vst.msk [vmem:[%s5260_s11 + $0x48] sm:$0xff] %vm266_vm6, %v3103_v42  ;;  %v3118_v36 = vmax.f32 %v5248_v0, 0.0  ;;  %v3119_v4 = vmax.f32 %v5250_v28, 0.0  ;;  %v3120_v50 = vmax.f32 %v5252_v27, 0.0  ;;  %v3121_v40 = vmax.f32 %v5254_v34, 0.0 }
 0x2d7   : > { %3136 = vst.msk [vmem:[%s5260_s11 + $0x50] sm:$0xff] %vm266_vm6, %v3104_v58  ;;  %3137 = vst.msk [vmem:[%s5260_s11 + $0x58] sm:$0xff] %vm266_vm6, %v3105_v13  ;;  %v3122_v18 = vmax.f32 %v5262_v60, 0.0  ;;  %v3123_v59 = vmax.f32 %v5264_v51, 0.0  ;;  %v3124_v33 = vmax.f32 %v5266_v3, 0.0  ;;  %v3125_v23 = vmax.f32 %v5268_v25, 0.0 }
 0x2d8   : > { %3138 = vst.msk [vmem:[%s5260_s11 + $0x60] sm:$0xff] %vm266_vm6, %v3106_v56  ;;  %3139 = vst.msk [vmem:[%s5260_s11 + $0x68] sm:$0xff] %vm266_vm6, %v3107_v16 }
 0x2d9   : > { %3140 = vst.msk [vmem:[%s5260_s11 + $0x70] sm:$0xff] %vm266_vm6, %v3108_v57  ;;  %3141 = vst.msk [vmem:[%s5260_s11 + $0x78] sm:$0xff] %vm266_vm6, %v3109_v62 }
 0x2da   : > { %3142 = vst.msk [vmem:[%s5260_s11 + $0x80] sm:$0xff] %vm266_vm6, %v3110_v11  ;;  %3143 = vst.msk [vmem:[%s5260_s11 + $0x88] sm:$0xff] %vm266_vm6, %v3111_v24 }
 0x2db   : > { %3144 = vst.msk [vmem:[%s5260_s11 + $0x90] sm:$0xff] %vm266_vm6, %v3112_v45  ;;  %3145 = vst.msk [vmem:[%s5260_s11 + $0x98] sm:$0xff] %vm266_vm6, %v3113_v10 }
 0x2dc   : > { %3146 = vst.msk [vmem:[%s5260_s11 + $0xa0] sm:$0xff] %vm266_vm6, %v3114_v63  ;;  %3147 = vst.msk [vmem:[%s5260_s11 + $0xa8] sm:$0xff] %vm266_vm6, %v3115_v43 }
 0x2dd   : > { %3148 = vst.msk [vmem:[%s5260_s11 + $0xb0] sm:$0xff] %vm266_vm6, %v3116_v20  ;;  %3149 = vst.msk [vmem:[%s5260_s11 + $0xb8] sm:$0xff] %vm266_vm6, %v3117_v29 }
 0x2de   : > { %3150 = vst.msk [vmem:[%s5260_s11 + $0xc0] sm:$0xff] %vm266_vm6, %v3118_v36  ;;  %3151 = vst.msk [vmem:[%s5260_s11 + $0xc8] sm:$0xff] %vm266_vm6, %v3119_v4 }
 0x2df   : > { %3152 = vst.msk [vmem:[%s5260_s11 + $0xd0] sm:$0xff] %vm266_vm6, %v3120_v50  ;;  %3153 = vst.msk [vmem:[%s5260_s11 + $0xd8] sm:$0xff] %vm266_vm6, %v3121_v40 }
 0x2e0   : > { %3154 = vst.msk [vmem:[%s5260_s11 + $0xe0] sm:$0xff] %vm266_vm6, %v3122_v18  ;;  %3155 = vst.msk [vmem:[%s5260_s11 + $0xe8] sm:$0xff] %vm266_vm6, %v3123_v59 }
 0x2e1   : > { %3156 = vst.msk [vmem:[%s5260_s11 + $0xf0] sm:$0xff] %vm266_vm6, %v3124_v33  ;;  %3157 = vst.msk [vmem:[%s5260_s11 + $0xf8] sm:$0xff] %vm266_vm6, %v3125_v23 }
 0x2e2 PF: > { %s13_s12 = sadd.s32 1, %s3819_s12  }
 0x2e3   : > { %p10_p4 = scmp.ge.s32.totalorder %s13_s12, 4  }
 0x2e5   :  { %12 = sbr.rel (!%p10_p4) target bundleno = 1 (0x1), region = 70 }

// kernel: upblock_forward.5
= control target key start
LH: loop header
LB: loop body
LE: loop exit
PB: predicated region body
PF: predicated region fallthrough
CT: control target
= control target key end

     0   :  { %s3535_s9 = smov 0   ;;  %s5042_s0 = inlined_call_operand.vmem [shape: f32[2,16,16,8], index: 0, kind: input, shape index: {}]   ;;  %s5043_s1 = inlined_call_operand.vmem [shape: f32[3,8,24], index: 1, kind: input, shape index: {}]   ;;  %s5044_s2 = inlined_call_operand.vmem [shape: f32[2,16,16,8], index: 2, kind: output, shape index: {}]  }
   0x1 LB: > { %s2959_s10 = sadd.s32 4294967295, %s3515_s9   ;;  %p2963_p0 = scmp.ge.s32.totalorder %s3515_s9, 1  ;;  %s3515_s9 = sphi %s3535_s9, %s12_s9  }
   0x2   : > { %p112_p1 = scmp.lt.s32.totalorder %s3515_s9, 3 }
   0x4   : > { %p113_p2 = pnand %p2963_p0, %p112_p1 }
   0x6   : > { %116 = sbr.rel (%p113_p2) target bundleno = 633 (0x279), region = 28 }
   0xd   : > { %v299_v0 = vld [vmem:[%s5043_s1] sm:$0xff]  ;;  %p3548_p3 = scmp.lt.s32.totalorder %s2959_s10, 1  ;;  %vm144_vm0 = vcmask 64512   ;;  %vm153_vm1 = vcmask 57344   ;;  %v3555_v1 = vld [vmem:[%s5043_s1 + $0x8] sm:$0xff]  ;;  %v3517_v2 = vmov 0.0  }
   0xe   : > { %3487 = vmatprep.subr.mxu1 %v299_v0  ;;  %161 = vst.msk [vmem:[#allocation2 + $0xc0] sm:$0x1] %vm153_vm1, %v3517_v2  ;;  %154 = vst.msk [vmem:[#allocation2 + $0x18] sm:$0x1] %vm153_vm1, %v3517_v2  ;;  %vm170_vm2 = vcmask 63488   ;;  %3265 = vmatprep.subr.mxu0 %v299_v0  ;;  %v3065_v3 = vld [vmem:[%s5043_s1 + $0x10] sm:$0xff] }
   0xf   : > { %145 = vst.msk [vmem:[#allocation2] sm:$0xff] %vm144_vm0, %v3517_v2  ;;  %146 = vst.msk [vmem:[#allocation2 + $0x8] sm:$0xff] %vm144_vm0, %v3517_v2  ;;  %3488 = vmatpush3.msra.mxu1 %v299_v0  ;;  %s5080_s10 = smov (!%p3548_p3, %s2959_s10), 1  ;;  %3266 = vmatpush3.msra.mxu0 %v299_v0  ;;  %vm749_vm3 = vcmask 195584   ;;  %vm2390_vm4 = vcmask 1045504   ;;  %vm2181_vm5 = vcmask 1046528  }
  0x10   : > { %147 = vst.msk [vmem:[#allocation2 + $0x10] sm:$0xff] %vm144_vm0, %v3517_v2  ;;  %149 = vst.msk [vmem:[#allocation2 + $0x198] sm:$0xff] %vm144_vm0, %v3517_v2  ;;  %3339 = vmatprep.subr.mxu1 %v3555_v1  ;;  %3413 = vmatprep.subr.mxu0 %v3065_v3  ;;  %s3116_s18 = sshll.u32 %s5080_s10, 8  ;;  %s3518_s22 = smov 112  }
  0x11   : > { %150 = vst.msk [vmem:[#allocation2 + $0x1a0] sm:$0xff] %vm144_vm0, %v3517_v2  ;;  %151 = vst.msk [vmem:[#allocation2 + $0x1a8] sm:$0xff] %vm144_vm0, %v3517_v2  ;;  %s3611_s21 = scalar_lea.vmem %s5042_s0, %s3116_s18  ;;  %s3519_s23 = smov 120  }
  0x12   : > { %155 = vst.msk [vmem:[#allocation2 + $0x30] sm:$0x1] %vm153_vm1, %v3517_v2  ;;  %156 = vst.msk [vmem:[#allocation2 + $0x48] sm:$0x1] %vm153_vm1, %v3517_v2  ;;  %v201_v4 = vld [vmem:[%s3611_s21 + $0x70] sm:$0xff]  ;;  %v202_v5 = vld [vmem:[%s3611_s21 + $0x78] sm:$0xff]  ;;  %s4953_s26 = scalar_lea.vmem %s5044_s2, %s3116_s18 }
  0x13   : > { %157 = vst.msk [vmem:[#allocation2 + $0x60] sm:$0x1] %vm153_vm1, %v3517_v2  ;;  %158 = vst.msk [vmem:[#allocation2 + $0x78] sm:$0x1] %vm153_vm1, %v3517_v2  ;;  %v203_v6 = vld [vmem:[%s3611_s21 + $0x80] sm:$0xff]  ;;  %v204_v7 = vld [vmem:[%s3611_s21 + $0x88] sm:$0xff] }
  0x14   : > { %159 = vst.msk [vmem:[#allocation2 + $0x90] sm:$0x1] %vm153_vm1, %v3517_v2  ;;  %160 = vst.msk [vmem:[#allocation2 + $0xa8] sm:$0x1] %vm153_vm1, %v3517_v2  ;;  %v205_v8 = vld [vmem:[%s3611_s21 + $0x90] sm:$0xff]  ;;  %v206_v9 = vld [vmem:[%s3611_s21 + $0x98] sm:$0xff] }
  0x15   : > { %162 = vst.msk [vmem:[#allocation2 + $0xd8] sm:$0x1] %vm153_vm1, %v3517_v2  ;;  %163 = vst.msk [vmem:[#allocation2 + $0xf0] sm:$0x1] %vm153_vm1, %v3517_v2  ;;  %v187_v13 = vld [vmem:[%s3611_s21] sm:$0xff]  ;;  %v188_v14 = vld [vmem:[%s3611_s21 + $0x8] sm:$0xff] }
  0x16   : > { %164 = vst.msk [vmem:[#allocation2 + $0x108] sm:$0x1] %vm153_vm1, %v3517_v2  ;;  %165 = vst.msk [vmem:[#allocation2 + $0x120] sm:$0x1] %vm153_vm1, %v3517_v2  ;;  %v251_v10 = vld [vmem:[#allocation2] sm:$0xff]  ;;  %v252_v11 = vld [vmem:[#allocation2 + $0x8] sm:$0xff] }
  0x17   : > { %166 = vst.msk [vmem:[#allocation2 + $0x138] sm:$0x1] %vm153_vm1, %v3517_v2  ;;  %167 = vst.msk [vmem:[#allocation2 + $0x150] sm:$0x1] %vm153_vm1, %v3517_v2  ;;  %v253_v12 = vld [vmem:[#allocation2 + $0x10] sm:$0xff]  ;;  %3267 = vmatprep.mubr.msk.f32.mxu0 %vm144_vm0, %v251_v10  ;;  %v207_v15 = vld [vmem:[%s3611_s21 + $0xa0] sm:$0xff] }
  0x18   : > { %168 = vst.msk [vmem:[#allocation2 + $0x168] sm:$0x1] %vm153_vm1, %v3517_v2  ;;  %169 = vst.msk [vmem:[#allocation2 + $0x180] sm:$0x1] %vm153_vm1, %v3517_v2  ;;  %3268 = vmatmul.mubr.msk.f32.vlgmr.msra.gmra.mrb[0].mxu0 %vm144_vm0, %v252_v11  ;;  %v208_v16 = vld [vmem:[%s3611_s21 + $0xa8] sm:$0xff]  ;;  %v189_v17 = vld [vmem:[%s3611_s21 + $0x10] sm:$0xff] }
  0x19   : > { %178 = vst.msk [vmem:[#allocation2 + $0xd1] sm:$0x7f] %vm170_vm2, %v3517_v2  ;;  %171 = vst.msk [vmem:[#allocation2 + $0x29] sm:$0x7f] %vm170_vm2, %v3517_v2  ;;  %v190_v18 = vld [vmem:[%s3611_s21 + $0x18] sm:$0xff]  ;;  %3414 = vmatpush3.msra.mxu0 %v3065_v3  ;;  %3270 = vmatprep.mubr.msk.f32.mxu0 %vm144_vm0, %v253_v12  ;;  %v209_v19 = vld [vmem:[%s3611_s21 + $0xb0] sm:$0xff] }
  0x1a   : > { %172 = vst.msk [vmem:[#allocation2 + $0x41] sm:$0x7f] %vm170_vm2, %v3517_v2  ;;  %173 = vst.msk [vmem:[#allocation2 + $0x59] sm:$0x7f] %vm170_vm2, %v3517_v2  ;;  %v210_v20 = vld [vmem:[%s3611_s21 + $0xb8] sm:$0xff]  ;;  %v191_v21 = vld [vmem:[%s3611_s21 + $0x20] sm:$0xff] }
  0x1b   : > { %174 = vst.msk [vmem:[#allocation2 + $0x71] sm:$0x7f] %vm170_vm2, %v3517_v2  ;;  %175 = vst.msk [vmem:[#allocation2 + $0x89] sm:$0x7f] %vm170_vm2, %v3517_v2  ;;  %v192_v22 = vld [vmem:[%s3611_s21 + $0x28] sm:$0xff]  ;;  %v211_v23 = vld [vmem:[%s3611_s21 + $0xc0] sm:$0xff] }
  0x1c   : > { %176 = vst.msk [vmem:[#allocation2 + $0xa1] sm:$0x7f] %vm170_vm2, %v3517_v2  ;;  %177 = vst.msk [vmem:[#allocation2 + $0xb9] sm:$0x7f] %vm170_vm2, %v3517_v2  ;;  %v212_v24 = vld [vmem:[%s3611_s21 + $0xc8] sm:$0xff]  ;;  %v193_v25 = vld [vmem:[%s3611_s21 + $0x30] sm:$0xff] }
  0x1d   : > { %179 = vst.msk [vmem:[#allocation2 + $0xe9] sm:$0x7f] %vm170_vm2, %v3517_v2  ;;  %180 = vst.msk [vmem:[#allocation2 + $0x101] sm:$0x7f] %vm170_vm2, %v3517_v2  ;;  %v194_v26 = vld [vmem:[%s3611_s21 + $0x38] sm:$0xff]  ;;  %v213_v27 = vld [vmem:[%s3611_s21 + $0xd0] sm:$0xff] }
  0x1e   : > { %181 = vst.msk [vmem:[#allocation2 + $0x119] sm:$0x7f] %vm170_vm2, %v3517_v2  ;;  %182 = vst.msk [vmem:[#allocation2 + $0x131] sm:$0x7f] %vm170_vm2, %v3517_v2  ;;  %v214_v43 = vld [vmem:[%s3611_s21 + $0xd8] sm:$0xff]  ;;  %v195_v44 = vld [vmem:[%s3611_s21 + $0x40] sm:$0xff] }
  0x1f   : > { %183 = vst.msk [vmem:[#allocation2 + $0x149] sm:$0x7f] %vm170_vm2, %v3517_v2  ;;  %184 = vst.msk [vmem:[#allocation2 + $0x161] sm:$0x7f] %vm170_vm2, %v3517_v2  ;;  %v196_v46 = vld [vmem:[%s3611_s21 + $0x48] sm:$0xff]  ;;  %v215_v47 = vld [vmem:[%s3611_s21 + $0xe0] sm:$0xff] }
  0x20   : > { %185 = vst.msk [vmem:[#allocation2 + $0x179] sm:$0x7f] %vm170_vm2, %v3517_v2  ;;  %186 = vst.msk [vmem:[#allocation2 + $0x191] sm:$0x7f] %vm170_vm2, %v3517_v2  ;;  %v216_v48 = vld [vmem:[%s3611_s21 + $0xe8] sm:$0xff]  ;;  %v197_v49 = vld [vmem:[%s3611_s21 + $0x50] sm:$0xff] }
  0x21   : > { %233 = vst.msk [vmem:[#allocation2 + $0xc1] sm:$0xff] %vm144_vm0, %v201_v4  ;;  %234 = vst.msk [vmem:[#allocation2 + $0xc9] sm:$0xff] %vm144_vm0, %v202_v5  ;;  %v198_v50 = vld [vmem:[%s3611_s21 + $0x58] sm:$0xff]  ;;  %v199_v51 = vld [vmem:[%s3611_s21 + $0x60] sm:$0xff] }
  0x22   : > { %235 = vst.msk [vmem:[#allocation2 + $0xd9] sm:$0xff] %vm144_vm0, %v203_v6  ;;  %236 = vst.msk [vmem:[#allocation2 + $0xe1] sm:$0xff] %vm144_vm0, %v204_v7  ;;  %v200_v52 = vld [vmem:[%s3611_s21 + $0x68] sm:$0xff]  ;;  %v217_v53 = vld [vmem:[%s3611_s21 + $0xf0] sm:$0xff] }
  0x23   : > { %237 = vst.msk [vmem:[#allocation2 + $0xf1] sm:$0xff] %vm144_vm0, %v205_v8  ;;  %238 = vst.msk [vmem:[#allocation2 + $0xf9] sm:$0xff] %vm144_vm0, %v206_v9  ;;  %v218_v54 = vld [vmem:[%s3611_s21 + $0xf8] sm:$0xff] }
  0x24   : > { %219 = vst.msk [vmem:[#allocation2 + $0x19] sm:$0xff] %vm144_vm0, %v187_v13  ;;  %220 = vst.msk [vmem:[#allocation2 + $0x21] sm:$0xff] %vm144_vm0, %v188_v14 }
  0x25   : > { %239 = vst.msk [vmem:[#allocation2 + $0x109] sm:$0xff] %vm144_vm0, %v207_v15  ;;  %240 = vst.msk [vmem:[#allocation2 + $0x111] sm:$0xff] %vm144_vm0, %v208_v16 }
  0x26   : > { %221 = vst.msk [vmem:[#allocation2 + $0x31] sm:$0xff] %vm144_vm0, %v189_v17  ;;  %222 = vst.msk [vmem:[#allocation2 + $0x39] sm:$0xff] %vm144_vm0, %v190_v18 }
  0x27   : > { %241 = vst.msk [vmem:[#allocation2 + $0x121] sm:$0xff] %vm144_vm0, %v209_v19  ;;  %242 = vst.msk [vmem:[#allocation2 + $0x129] sm:$0xff] %vm144_vm0, %v210_v20 }
  0x28   : > { %223 = vst.msk [vmem:[#allocation2 + $0x49] sm:$0xff] %vm144_vm0, %v191_v21  ;;  %224 = vst.msk [vmem:[#allocation2 + $0x51] sm:$0xff] %vm144_vm0, %v192_v22  ;;  %v3655_v28 = vld [vmem:[#allocation2 + $0xc0] sm:$0xff]  ;;  %v3657_v29 = vld [vmem:[#allocation2 + $0xc8] sm:$0xff] }
  0x29   : > { %243 = vst.msk [vmem:[#allocation2 + $0x139] sm:$0xff] %vm144_vm0, %v211_v23  ;;  %244 = vst.msk [vmem:[#allocation2 + $0x141] sm:$0xff] %vm144_vm0, %v212_v24  ;;  %v3659_v30 = vld [vmem:[#allocation2 + $0xd0] sm:$0xff]  ;;  %3303 = vmatprep.mubr.msk.f32.mxu1 %vm144_vm0, %v3655_v28  ;;  %v3671_v31 = vld [vmem:[#allocation2 + $0xd8] sm:$0xff] }
  0x2a   : > { %225 = vst.msk [vmem:[#allocation2 + $0x61] sm:$0xff] %vm144_vm0, %v193_v25  ;;  %226 = vst.msk [vmem:[#allocation2 + $0x69] sm:$0xff] %vm144_vm0, %v194_v26  ;;  %3304 = vmatmul.mubr.msk.f32.vlgmr.msra.gmra.mrb[0].mxu1 %vm144_vm0, %v3657_v29  ;;  %v3677_v34 = vld [vmem:[#allocation2 + $0xe0] sm:$0xff]  ;;  %v3691_v37 = vld [vmem:[#allocation2 + $0xe8] sm:$0xff] }
  0x2b   : > { %245 = vst.msk [vmem:[#allocation2 + $0x151] sm:$0xff] %vm144_vm0, %v213_v27  ;;  %3340 = vmatpush3.msra.mxu1 %v3555_v1  ;;  %3306 = vmatprep.mubr.msk.f32.mxu1 %vm144_vm0, %v3659_v30  ;;  %v3673_v32 = vld [vmem:[#allocation2 + $0x18] sm:$0xff]  ;;  %v3675_v33 = vld [vmem:[#allocation2 + $0x20] sm:$0xff]  ;;  %v3683_v35 = vld [vmem:[#allocation2 + $0x28] sm:$0xff] }
  0x2c   : > { %3271 = vmatmul.mubr.msk.f32.gmra.mrb[2].mxu0 %vm144_vm0, %v3673_v32  ;;  %v3693_v38 = vld [vmem:[#allocation2 + $0xf0] sm:$0xff]  ;;  %v3697_v39 = vld [vmem:[#allocation2 + $0xf8] sm:$0xff]  ;;  %v3705_v41 = vld [vmem:[#allocation2 + $0x100] sm:$0xff]  ;;  %246 = vst.msk [vmem:[#allocation2 + $0x159] sm:$0xff] %vm144_vm0, %v214_v43 }
  0x2d   : > { %3273 = vmatprep.mubr.msk.f32.mxu0 %vm144_vm0, %v3675_v33  ;;  %v3687_v36 = vld [vmem:[#allocation2 + $0x30] sm:$0xff]  ;;  %v3701_v40 = vld [vmem:[#allocation2 + $0x38] sm:$0xff]  ;;  %v3707_v42 = vld [vmem:[#allocation2 + $0x40] sm:$0xff]  ;;  %227 = vst.msk [vmem:[#allocation2 + $0x79] sm:$0xff] %vm144_vm0, %v195_v44 }
  0x2e   : > { %3307 = vmatmul.mubr.msk.f32.gmra.mrb[2].mxu1 %vm144_vm0, %v3671_v31  ;;  %228 = vst.msk [vmem:[#allocation2 + $0x81] sm:$0xff] %vm144_vm0, %v196_v46  ;;  %247 = vst.msk [vmem:[#allocation2 + $0x169] sm:$0xff] %vm144_vm0, %v215_v47  ;;  %v3745_v56 = vld [vmem:[#allocation2 + $0x108] sm:$0xff]  ;;  %v3747_v57 = vld [vmem:[#allocation2 + $0x110] sm:$0xff] }
  0x2f   : > { %3309 = vmatprep.mubr.msk.f32.mxu1 %vm144_vm0, %v3677_v34  ;;  %v3713_v45 = vld [vmem:[#allocation2 + $0x48] sm:$0xff]  ;;  %248 = vst.msk [vmem:[#allocation2 + $0x171] sm:$0xff] %vm144_vm0, %v216_v48  ;;  %229 = vst.msk [vmem:[#allocation2 + $0x91] sm:$0xff] %vm144_vm0, %v197_v49  ;;  %v3738_v55 = vld [vmem:[#allocation2 + $0x50] sm:$0xff] }
  0x30   : > { %3274 = vmatmul.mubr.msk.f32.gmra.mrb[4].mxu0 %vm144_vm0, %v3683_v35  ;;  %230 = vst.msk [vmem:[#allocation2 + $0x99] sm:$0xff] %vm144_vm0, %v198_v50  ;;  %231 = vst.msk [vmem:[#allocation2 + $0xa9] sm:$0xff] %vm144_vm0, %v199_v51  ;;  %v3753_v58 = vld [vmem:[#allocation2 + $0x58] sm:$0xff]  ;;  %v3763_v61 = vld [vmem:[#allocation2 + $0x120] sm:$0xff] }
  0x31   : > { %3276 = vmatprep.mubr.msk.f32.mxu0 %vm144_vm0, %v3687_v36  ;;  %232 = vst.msk [vmem:[#allocation2 + $0xb1] sm:$0xff] %vm144_vm0, %v200_v52  ;;  %249 = vst.msk [vmem:[#allocation2 + $0x181] sm:$0xff] %vm144_vm0, %v217_v53  ;;  %v3757_v59 = vld [vmem:[#allocation2 + $0x60] sm:$0xff]  ;;  %v3761_v60 = vld [vmem:[#allocation2 + $0x118] sm:$0xff] }
  0x32   : > { %3310 = vmatmul.mubr.msk.f32.gmra.mrb[4].mxu1 %vm144_vm0, %v3691_v37  ;;  %250 = vst.msk [vmem:[#allocation2 + $0x189] sm:$0xff] %vm144_vm0, %v218_v54  ;;  %v3769_v62 = vld [vmem:[#allocation2 + $0x68] sm:$0xff]  ;;  %v3773_v63 = vld [vmem:[#allocation2 + $0x70] sm:$0xff]  ;;  %v3793_v4 = vld [vmem:[#allocation2 + $0x138] sm:$0xff] }
  0x33   : > { %3312 = vmatprep.mubr.msk.f32.mxu1 %vm144_vm0, %v3693_v38  ;;  %v3777_v0 = vld [vmem:[#allocation2 + $0x128] sm:$0xff]  ;;  %v3779_v1 = vld [vmem:[#allocation2 + $0x130] sm:$0xff]  ;;  %v3795_v5 = vld [vmem:[#allocation2 + $0x140] sm:$0xff] }
  0x34   : > { %3277 = vmatmul.mubr.msk.f32.gmra.mrb[6].mxu0 %vm144_vm0, %v3701_v40  ;;  %v3785_v2 = vld [vmem:[#allocation2 + $0x78] sm:$0xff]  ;;  %v3805_v8 = vld [vmem:[#allocation2 + $0x148] sm:$0xff]  ;;  %v3807_v9 = vld [vmem:[#allocation2 + $0x150] sm:$0xff] }
  0x35   : > { %3279 = vmatprep.mubr.msk.f32.mxu0 %vm144_vm0, %v3707_v42  ;;  %v3789_v3 = vld [vmem:[#allocation2 + $0x80] sm:$0xff]  ;;  %v268_v6 = vld [vmem:[#allocation2 + $0x88] sm:$0xff]  ;;  %v3815_v12 = vld [vmem:[#allocation2 + $0x158] sm:$0xff] }
  0x36   : > { %3313 = vmatmul.mubr.msk.f32.gmra.mrb[6].mxu1 %vm144_vm0, %v3697_v39  ;;  %v269_v7 = vld [vmem:[#allocation2 + $0x90] sm:$0xff]  ;;  %v3817_v13 = vld [vmem:[#allocation2 + $0x160] sm:$0xff]  ;;  %v3825_v16 = vld [vmem:[#allocation2 + $0x168] sm:$0xff] }
  0x37   : > { %3315 = vmatprep.mubr.msk.f32.mxu1 %vm144_vm0, %v3705_v41  ;;  %v270_v10 = vld [vmem:[#allocation2 + $0x98] sm:$0xff]  ;;  %v271_v11 = vld [vmem:[#allocation2 + $0xa0] sm:$0xff]  ;;  %v272_v14 = vld [vmem:[#allocation2 + $0xa8] sm:$0xff] }
  0x38   : > { %3280 = vmatmul.mubr.msk.f32.gmra.mrb[8].mxu0 %vm144_vm0, %v3713_v45  ;;  %v273_v15 = vld [vmem:[#allocation2 + $0xb0] sm:$0xff]  ;;  %v274_v18 = vld [vmem:[#allocation2 + $0xb8] sm:$0xff]  ;;  %v843_v20 = vld [vmem:[#allocation2 + $0x180] sm:$0xff] }
  0x39   : > { %3282 = vmatprep.mubr.msk.f32.mxu0 %vm144_vm0, %v3738_v55  ;;  %v3827_v17 = vld [vmem:[#allocation2 + $0x170] sm:$0xff]  ;;  %v3835_v19 = vld [vmem:[#allocation2 + $0x178] sm:$0xff]  ;;  %v844_v21 = vld [vmem:[#allocation2 + $0x188] sm:$0xff] }
  0x3a   : > { %3316 = vmatmul.mubr.msk.f32.gmra.mrb[8].mxu1 %vm144_vm0, %v3745_v56  ;;  %v845_v22 = vld [vmem:[#allocation2 + $0x190] sm:$0xff]  ;;  %v1487_v23 = vld [vmem:[#allocation2 + $0x198] sm:$0xff]  ;;  %v1488_v24 = vld [vmem:[#allocation2 + $0x1a0] sm:$0xff] }
  0x3b   : > { %3318 = vmatprep.mubr.msk.f32.mxu1 %vm144_vm0, %v3747_v57  ;;  %v1489_v25 = vld [vmem:[#allocation2 + $0x1a8] sm:$0xff] }
  0x3c   : > { %3283 = vmatmul.mubr.msk.f32.gmra.mrb[10].mxu0 %vm144_vm0, %v3753_v58 }
  0x3d   : > { %3285 = vmatprep.mubr.msk.f32.mxu0 %vm144_vm0, %v3757_v59 }
  0x3e   : > { %3319 = vmatmul.mubr.msk.f32.gmra.mrb[10].mxu1 %vm144_vm0, %v3761_v60 }
  0x3f   : > { %3321 = vmatprep.mubr.msk.f32.mxu1 %vm144_vm0, %v3763_v61 }
  0x40   : > { %3286 = vmatmul.mubr.msk.f32.gmra.mrb[12].mxu0 %vm144_vm0, %v3769_v62 }
  0x41   : > { %3288 = vmatprep.mubr.msk.f32.mxu0 %vm144_vm0, %v3773_v63 }
  0x42   : > { %3322 = vmatmul.mubr.msk.f32.gmra.mrb[12].mxu1 %vm144_vm0, %v3777_v0 }
  0x43   : > { %3324 = vmatprep.mubr.msk.f32.mxu1 %vm144_vm0, %v3779_v1 }
  0x44   : > { %3289 = vmatmul.mubr.msk.f32.gmra.mrb[14].mxu0 %vm144_vm0, %v3785_v2 }
  0x45   : > { %3291 = vmatprep.mubr.msk.f32.mxu0 %vm144_vm0, %v3789_v3 }
  0x46   : > { %3325 = vmatmul.mubr.msk.f32.gmra.mrb[14].mxu1 %vm144_vm0, %v3793_v4 }
  0x47   : > { %3327 = vmatprep.mubr.msk.f32.mxu1 %vm144_vm0, %v3795_v5 }
  0x48   : > { %3292 = vmatmul.mubr.msk.f32.gmra.mrb[16].mxu0 %vm144_vm0, %v268_v6 }
  0x49   : > { %3294 = vmatprep.mubr.msk.f32.mxu0 %vm144_vm0, %v269_v7 }
  0x4a   : > { %3328 = vmatmul.mubr.msk.f32.gmra.mrb[16].mxu1 %vm144_vm0, %v3805_v8 }
  0x4b   : > { %3330 = vmatprep.mubr.msk.f32.mxu1 %vm144_vm0, %v3807_v9 }
  0x4c   : > { %3295 = vmatmul.mubr.msk.f32.gmra.mrb[18].mxu0 %vm144_vm0, %v270_v10 }
  0x4d   : > { %3297 = vmatprep.mubr.msk.f32.mxu0 %vm144_vm0, %v271_v11 }
  0x4e   : > { %3331 = vmatmul.mubr.msk.f32.gmra.mrb[18].mxu1 %vm144_vm0, %v3815_v12 }
  0x4f   : > { %3333 = vmatprep.mubr.msk.f32.mxu1 %vm144_vm0, %v3817_v13 }
  0x50   : > { %3298 = vmatmul.mubr.msk.f32.gmra.mrb[20].mxu0 %vm144_vm0, %v272_v14 }
  0x51   : > { %3300 = vmatprep.mubr.msk.f32.mxu0 %vm144_vm0, %v273_v15 }
  0x52   : > { %3334 = vmatmul.mubr.msk.f32.gmra.mrb[20].mxu1 %vm144_vm0, %v3825_v16 }
  0x53   : > { %3336 = vmatprep.mubr.msk.f32.mxu1 %vm144_vm0, %v3827_v17 }
  0x54   : > { %3301 = vmatmul.mubr.msk.f32.gmra.mrb[22].mxu0 %vm144_vm0, %v274_v18 }
  0x55   : > { %3415 = vmatprep.mubr.msk.f32.mxu0 %vm144_vm0, %v3687_v36 }
  0x56   : > { %3337 = vmatmul.mubr.msk.f32.gmra.mrb[22].mxu1 %vm144_vm0, %v3835_v19 }
  0x57   : > { %3341 = vmatprep.mubr.msk.f32.mxu1 %vm144_vm0, %v3673_v32 }
  0x58   : > { %3416 = vmatmul.mubr.msk.f32.vlgmr.msra.gmra.mrb[24].mxu0 %vm144_vm0, %v3701_v40 }
  0x59   : > { %3418 = vmatprep.mubr.msk.f32.mxu0 %vm144_vm0, %v3707_v42 }
  0x5a   : > { %3342 = vmatmul.mubr.msk.f32.vlgmr.msra.gmra.mrb[24].mxu1 %vm144_vm0, %v3675_v33 }
  0x5b   : > { %3344 = vmatprep.mubr.msk.f32.mxu1 %vm144_vm0, %v3683_v35 }
  0x5c   : > { %3419 = vmatmul.mubr.msk.f32.gmra.mrb[26].mxu0 %vm144_vm0, %v3713_v45 }
  0x5d   : > { %3421 = vmatprep.mubr.msk.f32.mxu0 %vm144_vm0, %v3738_v55 }
  0x5e   : > { %3345 = vmatmul.mubr.msk.f32.gmra.mrb[26].mxu1 %vm144_vm0, %v3687_v36 }
  0x5f   : > { %3347 = vmatprep.mubr.msk.f32.mxu1 %vm144_vm0, %v3701_v40 }
  0x60   : > { %3422 = vmatmul.mubr.msk.f32.gmra.mrb[28].mxu0 %vm144_vm0, %v3753_v58 }
  0x61   : > { %3424 = vmatprep.mubr.msk.f32.mxu0 %vm144_vm0, %v3757_v59 }
  0x62   : > { %3348 = vmatmul.mubr.msk.f32.gmra.mrb[28].mxu1 %vm144_vm0, %v3707_v42 }
  0x63   : > { %3350 = vmatprep.mubr.msk.f32.mxu1 %vm144_vm0, %v3713_v45 }
  0x64   : > { %3425 = vmatmul.mubr.msk.f32.gmra.mrb[30].mxu0 %vm144_vm0, %v3769_v62 }
  0x65   : > { %3427 = vmatprep.mubr.msk.f32.mxu0 %vm144_vm0, %v3773_v63 }
  0x66   : > { %3351 = vmatmul.mubr.msk.f32.gmra.mrb[30].mxu1 %vm144_vm0, %v3738_v55 }
  0x67   : > { %3353 = vmatprep.mubr.msk.f32.mxu1 %vm144_vm0, %v3753_v58 }
  0x68   : > { %3428 = vmatmul.mubr.msk.f32.gmra.mrb[32].mxu0 %vm144_vm0, %v3785_v2 }
  0x69   : > { %3430 = vmatprep.mubr.msk.f32.mxu0 %vm144_vm0, %v3789_v3 }
  0x6a   : > { %3354 = vmatmul.mubr.msk.f32.gmra.mrb[32].mxu1 %vm144_vm0, %v3757_v59 }
  0x6b   : > { %3356 = vmatprep.mubr.msk.f32.mxu1 %vm144_vm0, %v3769_v62 }
  0x6c   : > { %3431 = vmatmul.mubr.msk.f32.gmra.mrb[34].mxu0 %vm144_vm0, %v268_v6 }
  0x6d   : > { %3433 = vmatprep.mubr.msk.f32.mxu0 %vm144_vm0, %v269_v7 }
  0x6e   : > { %3357 = vmatmul.mubr.msk.f32.gmra.mrb[34].mxu1 %vm144_vm0, %v3773_v63 }
  0x6f   : > { %3359 = vmatprep.mubr.msk.f32.mxu1 %vm144_vm0, %v3785_v2 }
  0x70   : > { %3434 = vmatmul.mubr.msk.f32.gmra.mrb[36].mxu0 %vm144_vm0, %v270_v10 }
  0x71   : > { %3436 = vmatprep.mubr.msk.f32.mxu0 %vm144_vm0, %v271_v11 }
  0x72   : > { %3360 = vmatmul.mubr.msk.f32.gmra.mrb[36].mxu1 %vm144_vm0, %v3789_v3 }
  0x73   : > { %3362 = vmatprep.mubr.msk.f32.mxu1 %vm144_vm0, %v268_v6 }
  0x74   : > { %3437 = vmatmul.mubr.msk.f32.gmra.mrb[38].mxu0 %vm144_vm0, %v272_v14 }
  0x75   : > { %3439 = vmatprep.mubr.msk.f32.mxu0 %vm144_vm0, %v273_v15 }
  0x76   : > { %3363 = vmatmul.mubr.msk.f32.gmra.mrb[38].mxu1 %vm144_vm0, %v269_v7 }
  0x77   : > { %3365 = vmatprep.mubr.msk.f32.mxu1 %vm144_vm0, %v270_v10 }
  0x78   : > { %3440 = vmatmul.mubr.msk.f32.gmra.mrb[40].mxu0 %vm144_vm0, %v274_v18 }
  0x79   : > { %3442 = vmatprep.mubr.msk.f32.mxu0 %vm144_vm0, %v3655_v28 }
  0x7a   : > { %3366 = vmatmul.mubr.msk.f32.gmra.mrb[40].mxu1 %vm144_vm0, %v271_v11 }
  0x7b   : > { %3368 = vmatprep.mubr.msk.f32.mxu1 %vm144_vm0, %v272_v14 }
  0x7c   : > { %3443 = vmatmul.mubr.msk.f32.gmra.mrb[42].mxu0 %vm144_vm0, %v3657_v29 }
  0x7d   : > { %3445 = vmatprep.mubr.msk.f32.mxu0 %vm144_vm0, %v3659_v30 }
  0x7e   : > { %3369 = vmatmul.mubr.msk.f32.gmra.mrb[42].mxu1 %vm144_vm0, %v273_v15 }
  0x7f   : > { %3371 = vmatprep.mubr.msk.f32.mxu1 %vm144_vm0, %v274_v18 }
  0x80   : > { %3446 = vmatmul.mubr.msk.f32.gmra.mrb[44].mxu0 %vm144_vm0, %v3671_v31 }
  0x81   : > { %3448 = vmatprep.mubr.msk.f32.mxu0 %vm144_vm0, %v3677_v34 }
  0x82   : > { %3372 = vmatmul.mubr.msk.f32.gmra.mrb[44].mxu1 %vm144_vm0, %v3655_v28 }
  0x83   : > { %3374 = vmatprep.mubr.msk.f32.mxu1 %vm144_vm0, %v3657_v29 }
  0x84   : > { %3449 = vmatmul.mubr.msk.f32.gmra.mrb[46].mxu0 %vm144_vm0, %v3691_v37 }
  0x85   : > { %3451 = vmatprep.mubr.msk.f32.mxu0 %vm144_vm0, %v3693_v38 }
  0x86   : > { %3375 = vmatmul.mubr.msk.f32.gmra.mrb[46].mxu1 %vm144_vm0, %v3659_v30 }
  0x87   : > { %3377 = vmatprep.mubr.msk.f32.mxu1 %vm144_vm0, %v3671_v31 }
  0x88   : > { %3452 = vmatmul.mubr.msk.f32.gmra.mrb[48].mxu0 %vm144_vm0, %v3697_v39 }
  0x89   : > { %3454 = vmatprep.mubr.msk.f32.mxu0 %vm144_vm0, %v3705_v41 }
  0x8a   : > { %3378 = vmatmul.mubr.msk.f32.gmra.mrb[48].mxu1 %vm144_vm0, %v3677_v34 }
  0x8b   : > { %3380 = vmatprep.mubr.msk.f32.mxu1 %vm144_vm0, %v3691_v37 }
  0x8c   : > { %3455 = vmatmul.mubr.msk.f32.gmra.mrb[50].mxu0 %vm144_vm0, %v3745_v56 }
  0x8d   : > { %3457 = vmatprep.mubr.msk.f32.mxu0 %vm144_vm0, %v3747_v57 }
  0x8e   : > { %3381 = vmatmul.mubr.msk.f32.gmra.mrb[50].mxu1 %vm144_vm0, %v3693_v38 }
  0x8f   : > { %3383 = vmatprep.mubr.msk.f32.mxu1 %vm144_vm0, %v3697_v39 }
  0x90   : > { %3458 = vmatmul.mubr.msk.f32.gmra.mrb[52].mxu0 %vm144_vm0, %v3761_v60 }
  0x91   : > { %3460 = vmatprep.mubr.msk.f32.mxu0 %vm144_vm0, %v3763_v61 }
  0x92   : > { %3384 = vmatmul.mubr.msk.f32.gmra.mrb[52].mxu1 %vm144_vm0, %v3705_v41 }
  0x93   : > { %3386 = vmatprep.mubr.msk.f32.mxu1 %vm144_vm0, %v3745_v56 }
  0x94   : > { %3461 = vmatmul.mubr.msk.f32.gmra.mrb[54].mxu0 %vm144_vm0, %v3777_v0 }
  0x95   : > { %3463 = vmatprep.mubr.msk.f32.mxu0 %vm144_vm0, %v3779_v1 }
  0x96   : > { %3387 = vmatmul.mubr.msk.f32.gmra.mrb[54].mxu1 %vm144_vm0, %v3747_v57 }
  0x97   : > { %3389 = vmatprep.mubr.msk.f32.mxu1 %vm144_vm0, %v3761_v60 }
  0x98   : > { %3464 = vmatmul.mubr.msk.f32.gmra.mrb[56].mxu0 %vm144_vm0, %v3793_v4 }
  0x99   : > { %3466 = vmatprep.mubr.msk.f32.mxu0 %vm144_vm0, %v3795_v5 }
  0x9a   : > { %3390 = vmatmul.mubr.msk.f32.gmra.mrb[56].mxu1 %vm144_vm0, %v3763_v61 }
  0x9b   : > { %3392 = vmatprep.mubr.msk.f32.mxu1 %vm144_vm0, %v3777_v0 }
  0x9c   : > { %3467 = vmatmul.mubr.msk.f32.gmra.mrb[58].mxu0 %vm144_vm0, %v3805_v8 }
  0x9d   : > { %3469 = vmatprep.mubr.msk.f32.mxu0 %vm144_vm0, %v3807_v9 }
  0x9e   : > { %3393 = vmatmul.mubr.msk.f32.gmra.mrb[58].mxu1 %vm144_vm0, %v3779_v1 }
  0x9f   : > { %3395 = vmatprep.mubr.msk.f32.mxu1 %vm144_vm0, %v3793_v4 }
  0xa0   : > { %3470 = vmatmul.mubr.msk.f32.gmra.mrb[60].mxu0 %vm144_vm0, %v3815_v12 }
  0xa1   : > { %3472 = vmatprep.mubr.msk.f32.mxu0 %vm144_vm0, %v3817_v13 }
  0xa2   : > { %3396 = vmatmul.mubr.msk.f32.gmra.mrb[60].mxu1 %vm144_vm0, %v3795_v5 }
  0xa3   : > { %3398 = vmatprep.mubr.msk.f32.mxu1 %vm144_vm0, %v3805_v8 }
  0xa4   : > { %3473 = vmatmul.mubr.msk.f32.gmra.mrb[62].mxu0 %vm144_vm0, %v3825_v16 }
  0xa5   : > { %3475 = vmatprep.mubr.msk.f32.mxu0 %vm144_vm0, %v3827_v17 }
  0xa6   : > { %3399 = vmatmul.mubr.msk.f32.gmra.mrb[62].mxu1 %vm144_vm0, %v3807_v9 }
  0xa7   : > { %3401 = vmatprep.mubr.msk.f32.mxu1 %vm144_vm0, %v3815_v12 }
  0xa8   : > { %3476 = vmatmul.mubr.msk.f32.gmra.mrb[64].mxu0 %vm144_vm0, %v3835_v19 }
  0xa9   : > { %3478 = vmatprep.mubr.msk.f32.mxu0 %vm144_vm0, %v843_v20 }
  0xaa   : > { %3402 = vmatmul.mubr.msk.f32.gmra.mrb[64].mxu1 %vm144_vm0, %v3817_v13 }
  0xab   : > { %3404 = vmatprep.mubr.msk.f32.mxu1 %vm144_vm0, %v3825_v16 }
  0xac   : > { %3479 = vmatmul.mubr.msk.f32.gmra.mrb[66].mxu0 %vm144_vm0, %v844_v21 }
  0xad   : > { %3481 = vmatprep.mubr.msk.f32.mxu0 %vm144_vm0, %v845_v22 }
  0xae   : > { %3405 = vmatmul.mubr.msk.f32.gmra.mrb[66].mxu1 %vm144_vm0, %v3827_v17 }
  0xaf   : > { %3407 = vmatprep.mubr.msk.f32.mxu1 %vm144_vm0, %v3835_v19 }
  0xb0   : > { %3482 = vmatmul.mubr.msk.f32.gmra.mrb[68].mxu0 %vm144_vm0, %v1487_v23 }
  0xb1   : > { %3484 = vmatprep.mubr.msk.f32.mxu0 %vm144_vm0, %v1488_v24 }
  0xb2   : > { %3408 = vmatmul.mubr.msk.f32.gmra.mrb[68].mxu1 %vm144_vm0, %v843_v20 }
  0xb3   : > { %3410 = vmatprep.mubr.msk.f32.mxu1 %vm144_vm0, %v844_v21 }
  0xb4   : > { %3485 = vmatmul.mubr.msk.f32.gmra.mrb[70].mxu0 %vm144_vm0, %v1489_v25 }
  0xb6   : > { %3411 = vmatmul.mubr.msk.f32.gmra.mrb[70].mxu1 %vm144_vm0, %v845_v22 }
  0xeb   : > { %v3269_v26 = vpop.f32.mrb[0].mxu0 }
  0xec   : > { %751 = vst.msk [vmem:[#allocation3 + $0x8] sm:$0xff] %vm749_vm3, %v3269_v26  ;;  %v510_v27 = vpop.f32.mrb[1].mxu0 }
  0xed   : > { %750 = vst.msk [vmem:[#allocation3] sm:$0xff] %vm749_vm3, %v510_v27 }
  0xf3   : > { %v1298_v13 = vld [vmem:[#allocation3 + $0x8] sm:$0xff] }
  0xf4   : > { %v1297_v16 = vld [vmem:[#allocation3] sm:$0xff] }
  0xfd   : > { %v3305_v28 = vpop.f32.mrb[0].mxu1 }
  0xfe   : > { %775 = vst.msk [vmem:[#allocation3 + $0xc8] sm:$0xff] %vm749_vm3, %v3305_v28  ;;  %v630_v29 = vpop.f32.mrb[1].mxu1 }
  0xff   : > { %774 = vst.msk [vmem:[#allocation3 + $0xc0] sm:$0xff] %vm749_vm3, %v630_v29  ;;  %v3272_v30 = vpop.f32.mrb[2].mxu0 }
 0x100   : > { %753 = vst.msk [vmem:[#allocation3 + $0x18] sm:$0xff] %vm749_vm3, %v3272_v30  ;;  %v520_v31 = vpop.f32.mrb[3].mxu0 }
 0x101   : > { %v3308_v32 = vpop.f32.mrb[2].mxu1  ;;  %752 = vst.msk [vmem:[#allocation3 + $0x10] sm:$0xff] %vm749_vm3, %v520_v31 }
 0x102   : > { %777 = vst.msk [vmem:[#allocation3 + $0xd8] sm:$0xff] %vm749_vm3, %v3308_v32  ;;  %v640_v33 = vpop.f32.mrb[3].mxu1 }
 0x103   : > { %776 = vst.msk [vmem:[#allocation3 + $0xd0] sm:$0xff] %vm749_vm3, %v640_v33  ;;  %v3275_v34 = vpop.f32.mrb[4].mxu0 }
 0x104   : > { %755 = vst.msk [vmem:[#allocation3 + $0x28] sm:$0xff] %vm749_vm3, %v3275_v34  ;;  %v530_v35 = vpop.f32.mrb[5].mxu0 }
 0x105   : > { %v3311_v36 = vpop.f32.mrb[4].mxu1  ;;  %754 = vst.msk [vmem:[#allocation3 + $0x20] sm:$0xff] %vm749_vm3, %v530_v35 }
 0x106   : > { %779 = vst.msk [vmem:[#allocation3 + $0xe8] sm:$0xff] %vm749_vm3, %v3311_v36  ;;  %v650_v37 = vpop.f32.mrb[5].mxu1 }
 0x107   : > { %778 = vst.msk [vmem:[#allocation3 + $0xe0] sm:$0xff] %vm749_vm3, %v650_v37  ;;  %v3278_v38 = vpop.f32.mrb[6].mxu0  ;;  %v1300_v21 = vld [vmem:[#allocation3 + $0x18] sm:$0xff] }
 0x108   : > { %757 = vst.msk [vmem:[#allocation3 + $0x38] sm:$0xff] %vm749_vm3, %v3278_v38  ;;  %v540_v39 = vpop.f32.mrb[7].mxu0  ;;  %v1299_v24 = vld [vmem:[#allocation3 + $0x10] sm:$0xff] }
 0x109   : > { %v3314_v40 = vpop.f32.mrb[6].mxu1  ;;  %756 = vst.msk [vmem:[#allocation3 + $0x30] sm:$0xff] %vm749_vm3, %v540_v39 }
 0x10a   : > { %781 = vst.msk [vmem:[#allocation3 + $0xf8] sm:$0xff] %vm749_vm3, %v3314_v40  ;;  %v660_v41 = vpop.f32.mrb[7].mxu1 }
 0x10b   : > { %780 = vst.msk [vmem:[#allocation3 + $0xf0] sm:$0xff] %vm749_vm3, %v660_v41  ;;  %v3281_v42 = vpop.f32.mrb[8].mxu0  ;;  %v1302_v29 = vld [vmem:[#allocation3 + $0x28] sm:$0xff] }
 0x10c   : > { %759 = vst.msk [vmem:[#allocation3 + $0x48] sm:$0xff] %vm749_vm3, %v3281_v42  ;;  %v550_v43 = vpop.f32.mrb[9].mxu0  ;;  %v1301_v32 = vld [vmem:[#allocation3 + $0x20] sm:$0xff] }
 0x10d   : > { %v3317_v44 = vpop.f32.mrb[8].mxu1  ;;  %758 = vst.msk [vmem:[#allocation3 + $0x40] sm:$0xff] %vm749_vm3, %v550_v43 }
 0x10e   : > { %783 = vst.msk [vmem:[#allocation3 + $0x108] sm:$0xff] %vm749_vm3, %v3317_v44  ;;  %v670_v45 = vpop.f32.mrb[9].mxu1 }
 0x10f   : > { %782 = vst.msk [vmem:[#allocation3 + $0x100] sm:$0xff] %vm749_vm3, %v670_v45  ;;  %v3284_v46 = vpop.f32.mrb[10].mxu0  ;;  %v1304_v41 = vld [vmem:[#allocation3 + $0x38] sm:$0xff] }
 0x110   : > { %761 = vst.msk [vmem:[#allocation3 + $0x58] sm:$0xff] %vm749_vm3, %v3284_v46  ;;  %v560_v47 = vpop.f32.mrb[11].mxu0  ;;  %v1303_v44 = vld [vmem:[#allocation3 + $0x30] sm:$0xff] }
 0x111   : > { %v3320_v48 = vpop.f32.mrb[10].mxu1  ;;  %760 = vst.msk [vmem:[#allocation3 + $0x50] sm:$0xff] %vm749_vm3, %v560_v47 }
 0x112   : > { %785 = vst.msk [vmem:[#allocation3 + $0x118] sm:$0xff] %vm749_vm3, %v3320_v48  ;;  %v680_v49 = vpop.f32.mrb[11].mxu1 }
 0x113   : > { %784 = vst.msk [vmem:[#allocation3 + $0x110] sm:$0xff] %vm749_vm3, %v680_v49  ;;  %v3287_v50 = vpop.f32.mrb[12].mxu0 }
 0x114   : > { %763 = vst.msk [vmem:[#allocation3 + $0x68] sm:$0xff] %vm749_vm3, %v3287_v50  ;;  %v570_v51 = vpop.f32.mrb[13].mxu0 }
 0x115   : > { %v3323_v52 = vpop.f32.mrb[12].mxu1  ;;  %762 = vst.msk [vmem:[#allocation3 + $0x60] sm:$0xff] %vm749_vm3, %v570_v51 }
 0x116   : > { %787 = vst.msk [vmem:[#allocation3 + $0x128] sm:$0xff] %vm749_vm3, %v3323_v52  ;;  %v690_v53 = vpop.f32.mrb[13].mxu1 }
 0x117   : > { %786 = vst.msk [vmem:[#allocation3 + $0x120] sm:$0xff] %vm749_vm3, %v690_v53  ;;  %v3290_v54 = vpop.f32.mrb[14].mxu0  ;;  %v1306_v53 = vld [vmem:[#allocation3 + $0x48] sm:$0xff] }
 0x118   : > { %765 = vst.msk [vmem:[#allocation3 + $0x78] sm:$0xff] %vm749_vm3, %v3290_v54  ;;  %v580_v55 = vpop.f32.mrb[15].mxu0 }
 0x119   : > { %v3326_v56 = vpop.f32.mrb[14].mxu1  ;;  %764 = vst.msk [vmem:[#allocation3 + $0x70] sm:$0xff] %vm749_vm3, %v580_v55 }
 0x11a   : > { %789 = vst.msk [vmem:[#allocation3 + $0x138] sm:$0xff] %vm749_vm3, %v3326_v56  ;;  %v700_v57 = vpop.f32.mrb[15].mxu1  ;;  %v1305_v56 = vld [vmem:[#allocation3 + $0x40] sm:$0xff] }
 0x11b   : > { %788 = vst.msk [vmem:[#allocation3 + $0x130] sm:$0xff] %vm749_vm3, %v700_v57  ;;  %v3293_v58 = vpop.f32.mrb[16].mxu0 }
 0x11c   : > { %767 = vst.msk [vmem:[#allocation3 + $0x88] sm:$0xff] %vm749_vm3, %v3293_v58  ;;  %v590_v59 = vpop.f32.mrb[17].mxu0 }
 0x11d   : > { %v3329_v60 = vpop.f32.mrb[16].mxu1  ;;  %766 = vst.msk [vmem:[#allocation3 + $0x80] sm:$0xff] %vm749_vm3, %v590_v59 }
 0x11e   : > { %791 = vst.msk [vmem:[#allocation3 + $0x148] sm:$0xff] %vm749_vm3, %v3329_v60  ;;  %v710_v61 = vpop.f32.mrb[17].mxu1 }
 0x11f   : > { %790 = vst.msk [vmem:[#allocation3 + $0x140] sm:$0xff] %vm749_vm3, %v710_v61  ;;  %v3296_v62 = vpop.f32.mrb[18].mxu0 }
 0x120   : > { %769 = vst.msk [vmem:[#allocation3 + $0x98] sm:$0xff] %vm749_vm3, %v3296_v62  ;;  %v600_v63 = vpop.f32.mrb[19].mxu0 }
 0x121   : > { %v3332_v0 = vpop.f32.mrb[18].mxu1  ;;  %768 = vst.msk [vmem:[#allocation3 + $0x90] sm:$0xff] %vm749_vm3, %v600_v63 }
 0x122   : > { %793 = vst.msk [vmem:[#allocation3 + $0x158] sm:$0xff] %vm749_vm3, %v3332_v0  ;;  %v720_v1 = vpop.f32.mrb[19].mxu1 }
 0x123   : > { %792 = vst.msk [vmem:[#allocation3 + $0x150] sm:$0xff] %vm749_vm3, %v720_v1  ;;  %v3299_v2 = vpop.f32.mrb[20].mxu0  ;;  %v1308_v1 = vld [vmem:[#allocation3 + $0x58] sm:$0xff] }
 0x124   : > { %771 = vst.msk [vmem:[#allocation3 + $0xa8] sm:$0xff] %vm749_vm3, %v3299_v2  ;;  %v610_v3 = vpop.f32.mrb[21].mxu0 }
 0x125   : > { %v3335_v4 = vpop.f32.mrb[20].mxu1  ;;  %770 = vst.msk [vmem:[#allocation3 + $0xa0] sm:$0xff] %vm749_vm3, %v610_v3 }
 0x126   : > { %795 = vst.msk [vmem:[#allocation3 + $0x168] sm:$0xff] %vm749_vm3, %v3335_v4  ;;  %v730_v5 = vpop.f32.mrb[21].mxu1 }
 0x127   : > { %794 = vst.msk [vmem:[#allocation3 + $0x160] sm:$0xff] %vm749_vm3, %v730_v5  ;;  %v3302_v6 = vpop.f32.mrb[22].mxu0  ;;  %v1307_v5 = vld [vmem:[#allocation3 + $0x50] sm:$0xff] }
 0x128   : > { %773 = vst.msk [vmem:[#allocation3 + $0xb8] sm:$0xff] %vm749_vm3, %v3302_v6  ;;  %v620_v7 = vpop.f32.mrb[23].mxu0 }
 0x129   : > { %v3338_v8 = vpop.f32.mrb[22].mxu1  ;;  %772 = vst.msk [vmem:[#allocation3 + $0xb0] sm:$0xff] %vm749_vm3, %v620_v7 }
 0x12a   : > { %797 = vst.msk [vmem:[#allocation3 + $0x178] sm:$0xff] %vm749_vm3, %v3338_v8  ;;  %v740_v9 = vpop.f32.mrb[23].mxu1 }
 0x12b   : > { %796 = vst.msk [vmem:[#allocation3 + $0x170] sm:$0xff] %vm749_vm3, %v740_v9  ;;  %v3417_v10 = vpop.f32.mrb[24].mxu0 }
 0x12c   : > { %v1702_v11 = vpop.f32.mrb[25].mxu0 }
 0x12d   : > { %v3343_v12 = vpop.f32.mrb[24].mxu1 }
 0x12e   : > { %v1346_v14 = vadd.f32 %v3343_v12, %v1298_v13  ;;  %v1058_v15 = vpop.f32.mrb[25].mxu1 }
 0x12f   : > { %v1345_v17 = vadd.f32 %v1297_v16, %v1058_v15  ;;  %v3420_v18 = vpop.f32.mrb[26].mxu0 }
 0x130   : > { %1394 = vst.msk [vmem:[#allocation3 + $0x8] sm:$0xff] %vm749_vm3, %v1346_v14  ;;  %v1712_v19 = vpop.f32.mrb[27].mxu0 }
 0x131   : > { %1393 = vst.msk [vmem:[#allocation3] sm:$0xff] %vm749_vm3, %v1345_v17  ;;  %v3346_v20 = vpop.f32.mrb[26].mxu1 }
 0x132   : > { %v1348_v22 = vadd.f32 %v3346_v20, %v1300_v21  ;;  %v1068_v23 = vpop.f32.mrb[27].mxu1 }
 0x133   : > { %v1347_v25 = vadd.f32 %v1299_v24, %v1068_v23  ;;  %v3423_v26 = vpop.f32.mrb[28].mxu0  ;;  %v1309_v24 = vld [vmem:[#allocation3 + $0x60] sm:$0xff] }
 0x134   : > { %1396 = vst.msk [vmem:[#allocation3 + $0x18] sm:$0xff] %vm749_vm3, %v1348_v22  ;;  %v1722_v27 = vpop.f32.mrb[29].mxu0 }
 0x135   : > { %1395 = vst.msk [vmem:[#allocation3 + $0x10] sm:$0xff] %vm749_vm3, %v1347_v25  ;;  %v3349_v28 = vpop.f32.mrb[28].mxu1 }
 0x136   : > { %v1350_v30 = vadd.f32 %v3349_v28, %v1302_v29  ;;  %v1078_v31 = vpop.f32.mrb[29].mxu1 }
 0x137   : > { %v1349_v33 = vadd.f32 %v1301_v32, %v1078_v31  ;;  %v1942_v34 = vld [vmem:[#allocation3 + $0x8] sm:$0xff]  ;;  %v3426_v35 = vpop.f32.mrb[30].mxu0 }
 0x138   : > { %1398 = vst.msk [vmem:[#allocation3 + $0x28] sm:$0xff] %vm749_vm3, %v1350_v30  ;;  %v1990_v36 = vadd.f32 %v3417_v10, %v1942_v34  ;;  %v1941_v37 = vld [vmem:[#allocation3] sm:$0xff]  ;;  %v1732_v38 = vpop.f32.mrb[31].mxu0 }
 0x139   : > { %1397 = vst.msk [vmem:[#allocation3 + $0x20] sm:$0xff] %vm749_vm3, %v1349_v33  ;;  %v1989_v39 = vadd.f32 %v1941_v37, %v1702_v11  ;;  %v3352_v40 = vpop.f32.mrb[30].mxu1 }
 0x13a   : > { %2038 = vst.msk [vmem:[#allocation3 + $0x8] sm:$0xff] %vm749_vm3, %v1990_v36  ;;  %v1352_v42 = vadd.f32 %v3352_v40, %v1304_v41  ;;  %v1088_v43 = vpop.f32.mrb[31].mxu1  ;;  %v1312_v36 = vld [vmem:[#allocation3 + $0x78] sm:$0xff]  ;;  %v1311_v41 = vld [vmem:[#allocation3 + $0x70] sm:$0xff] }
 0x13b   : > { %2037 = vst.msk [vmem:[#allocation3] sm:$0xff] %vm749_vm3, %v1989_v39  ;;  %v1351_v45 = vadd.f32 %v1303_v44, %v1088_v43  ;;  %v1944_v46 = vld [vmem:[#allocation3 + $0x18] sm:$0xff]  ;;  %v4065_v47 = vpop.f32.mrb[32].mxu0 }
 0x13c   : > { %1400 = vst.msk [vmem:[#allocation3 + $0x38] sm:$0xff] %vm749_vm3, %v1352_v42  ;;  %v1992_v48 = vadd.f32 %v3420_v18, %v1944_v46  ;;  %v1943_v49 = vld [vmem:[#allocation3 + $0x10] sm:$0xff]  ;;  %v4068_v50 = vpop.f32.mrb[33].mxu0 }
 0x13d   : > { %1399 = vst.msk [vmem:[#allocation3 + $0x30] sm:$0xff] %vm749_vm3, %v1351_v45  ;;  %v1991_v51 = vadd.f32 %v1943_v49, %v1712_v19  ;;  %v3355_v52 = vpop.f32.mrb[32].mxu1  ;;  %v1310_v19 = vld [vmem:[#allocation3 + $0x68] sm:$0xff] }
 0x13e   : > { %2040 = vst.msk [vmem:[#allocation3 + $0x18] sm:$0xff] %vm749_vm3, %v1992_v48  ;;  %v1354_v54 = vadd.f32 %v3355_v52, %v1306_v53  ;;  %v1098_v55 = vpop.f32.mrb[33].mxu1 }
 0x13f   : > { %2039 = vst.msk [vmem:[#allocation3 + $0x10] sm:$0xff] %vm749_vm3, %v1991_v51  ;;  %v1353_v57 = vadd.f32 %v1305_v56, %v1098_v55  ;;  %v1946_v58 = vld [vmem:[#allocation3 + $0x28] sm:$0xff]  ;;  %v4073_v59 = vpop.f32.mrb[34].mxu0 }
 0x140   : > { %1402 = vst.msk [vmem:[#allocation3 + $0x48] sm:$0xff] %vm749_vm3, %v1354_v54  ;;  %v1994_v60 = vadd.f32 %v3423_v26, %v1946_v58  ;;  %v1945_v61 = vld [vmem:[#allocation3 + $0x20] sm:$0xff]  ;;  %v4076_v62 = vpop.f32.mrb[35].mxu0  ;;  %v1314_v55 = vld [vmem:[#allocation3 + $0x88] sm:$0xff] }
 0x141   : > { %1401 = vst.msk [vmem:[#allocation3 + $0x40] sm:$0xff] %vm749_vm3, %v1353_v57  ;;  %v1993_v63 = vadd.f32 %v1945_v61, %v1722_v27  ;;  %v3358_v0 = vpop.f32.mrb[34].mxu1  ;;  %v4079_v2 = vld [vmem:[#allocation3 + $0x8] sm:$0xff]  ;;  %v1313_v61 = vld [vmem:[#allocation3 + $0x80] sm:$0xff] }
 0x142   : > { %2042 = vst.msk [vmem:[#allocation3 + $0x28] sm:$0xff] %vm749_vm3, %v1994_v60  ;;  %v1356_v3 = vadd.f32 %v3358_v0, %v1308_v1  ;;  %v1108_v4 = vpop.f32.mrb[35].mxu1  ;;  %v2085_v6 = vld [vmem:[#allocation3] sm:$0xff]  ;;  %v2392_v7 = vrot.slane %v4079_v2, 2  ;;  %v2183_v8 = vrot.slane %v4079_v2, 1 }
 0x143   : > { %2041 = vst.msk [vmem:[#allocation3 + $0x20] sm:$0xff] %vm749_vm3, %v1993_v63  ;;  %v1355_v9 = vadd.f32 %v1307_v5, %v1108_v4  ;;  %v1948_v10 = vld [vmem:[#allocation3 + $0x38] sm:$0xff]  ;;  %v2391_v11 = vrot.slane %v2085_v6, 2  ;;  %v2182_v12 = vrot.slane %v2085_v6, 1  ;;  %v4085_v13 = vpop.f32.mrb[36].mxu0 }
 0x144   : > { %1404 = vst.msk [vmem:[#allocation3 + $0x58] sm:$0xff] %vm749_vm3, %v1356_v3  ;;  %v1996_v14 = vadd.f32 %v3426_v35, %v1948_v10  ;;  %v1947_v15 = vld [vmem:[#allocation3 + $0x30] sm:$0xff]  ;;  %v4088_v16 = vpop.f32.mrb[37].mxu0 }
 0x145   : > { %1403 = vst.msk [vmem:[#allocation3 + $0x50] sm:$0xff] %vm749_vm3, %v1355_v9  ;;  %v1995_v17 = vadd.f32 %v1947_v15, %v1732_v38  ;;  %v3361_v18 = vpop.f32.mrb[36].mxu1  ;;  %v2393_v20 = vsel %vm2390_vm4, %v2391_v11, %v2392_v7  ;;  %v2184_v21 = vsel %vm2181_vm5, %v2182_v12, %v2183_v8  ;;  %v2088_v32 = vld [vmem:[#allocation3 + $0x18] sm:$0xff] }
 0x146   : > { %2044 = vst.msk [vmem:[#allocation3 + $0x38] sm:$0xff] %vm749_vm3, %v1996_v14  ;;  %v1358_v22 = vadd.f32 %v3361_v18, %v1310_v19  ;;  %v1118_v23 = vpop.f32.mrb[37].mxu1  ;;  %2471 = vrot.lane.b32.xlu1 %v2393_v20, %s3518_s22  ;;  %2262 = vrot.lane.b32.xlu0 %v2184_v21, %s3519_s23  ;;  %v2087_v25 = vld [vmem:[#allocation3 + $0x10] sm:$0xff]  ;;  %v2187_v46 = vrot.slane %v2088_v32, 1  ;;  %v1316_v11 = vld [vmem:[#allocation3 + $0x98] sm:$0xff] }
 0x147   : > { %2043 = vst.msk [vmem:[#allocation3 + $0x30] sm:$0xff] %vm749_vm3, %v1995_v17  ;;  %v1357_v26 = vadd.f32 %v1309_v24, %v1118_v23  ;;  %v1950_v27 = vld [vmem:[#allocation3 + $0x48] sm:$0xff]  ;;  %v2185_v28 = vrot.slane %v2087_v25, 1  ;;  %v4099_v29 = vpop.f32.mrb[38].mxu0  ;;  %v2394_v38 = vrot.slane %v2087_v25, 2  ;;  %v1315_v18 = vld [vmem:[#allocation3 + $0x90] sm:$0xff] }
 0x148   : > { %1406 = vst.msk [vmem:[#allocation3 + $0x68] sm:$0xff] %vm749_vm3, %v1358_v22  ;;  %v1998_v30 = vadd.f32 %v4065_v47, %v1950_v27  ;;  %v1949_v31 = vld [vmem:[#allocation3 + $0x40] sm:$0xff]  ;;  %v4103_v33 = vpop.f32.mrb[39].mxu0 }
 0x149   : > { %1405 = vst.msk [vmem:[#allocation3 + $0x60] sm:$0xff] %vm749_vm3, %v1357_v26  ;;  %v1997_v34 = vadd.f32 %v1949_v31, %v4068_v50  ;;  %v3364_v35 = vpop.f32.mrb[38].mxu1  ;;  %v2186_v37 = vsel %vm2181_vm5, %v2183_v8, %v2185_v28  ;;  %v4112_v43 = vld [vmem:[#allocation3 + $0x28] sm:$0xff]  ;;  %v2395_v56 = vsel %vm2390_vm4, %v2392_v7, %v2394_v38 }
 0x14a   : > { %2046 = vst.msk [vmem:[#allocation3 + $0x48] sm:$0xff] %vm749_vm3, %v1998_v30  ;;  %v1360_v39 = vadd.f32 %v3364_v35, %v1312_v36  ;;  %v1128_v40 = vpop.f32.mrb[39].mxu1  ;;  %2264 = vrot.lane.b32.xlu0 %v2186_v37, %s3519_s23  ;;  %v4110_v42 = vld [vmem:[#allocation3 + $0x20] sm:$0xff]  ;;  %v2190_v58 = vrot.slane %v4112_v43, 1  ;;  %v2399_v7 = vrot.slane %v4112_v43, 2  ;;  %v1318_v30 = vld [vmem:[#allocation3 + $0xa8] sm:$0xff] }
 0x14b   : > { %2045 = vst.msk [vmem:[#allocation3 + $0x40] sm:$0xff] %vm749_vm3, %v1997_v34  ;;  %v1359_v44 = vadd.f32 %v1311_v41, %v1128_v40  ;;  %v1952_v45 = vld [vmem:[#allocation3 + $0x58] sm:$0xff]  ;;  %v2188_v47 = vrot.slane %v4110_v42, 1  ;;  %v4116_v48 = vpop.f32.mrb[40].mxu0  ;;  %v2397_v51 = vrot.slane %v4110_v42, 2  ;;  %v1317_v36 = vld [vmem:[#allocation3 + $0xa0] sm:$0xff] }
 0x14c   : > { %1408 = vst.msk [vmem:[#allocation3 + $0x78] sm:$0xff] %vm749_vm3, %v1360_v39  ;;  %v2000_v49 = vadd.f32 %v4073_v59, %v1952_v45  ;;  %v1951_v50 = vld [vmem:[#allocation3 + $0x50] sm:$0xff]  ;;  %v4121_v52 = vpop.f32.mrb[41].mxu0 }
 0x14d   : > { %1407 = vst.msk [vmem:[#allocation3 + $0x70] sm:$0xff] %vm749_vm3, %v1359_v44  ;;  %v1999_v53 = vadd.f32 %v1951_v50, %v4076_v62  ;;  %v3367_v54 = vpop.f32.mrb[40].mxu1  ;;  %v2189_v57 = vsel %vm2181_vm5, %v2187_v46, %v2188_v47  ;;  %v2396_v62 = vrot.slane %v2088_v32, 2  ;;  %v4133_v0 = vld [vmem:[#allocation3 + $0x38] sm:$0xff]  ;;  %v2191_v12 = vsel %vm2181_vm5, %v2188_v47, %v2190_v58 }
 0x14e   : > { %2048 = vst.msk [vmem:[#allocation3 + $0x58] sm:$0xff] %vm749_vm3, %v2000_v49  ;;  %v1362_v59 = vadd.f32 %v3367_v54, %v1314_v55  ;;  %v1138_v60 = vpop.f32.mrb[41].mxu1  ;;  %2473 = vrot.lane.b32.xlu0 %v2395_v56, %s3518_s22  ;;  %2266 = vrot.lane.b32.xlu1 %v2189_v57, %s3519_s23  ;;  %v2091_v63 = vld [vmem:[#allocation3 + $0x30] sm:$0xff]  ;;  %v2193_v15 = vrot.slane %v4133_v0, 1  ;;  %v2402_v25 = vrot.slane %v4133_v0, 2  ;;  %v2400_v31 = vsel %vm2390_vm4, %v2397_v51, %v2399_v7  ;;  %v1320_v47 = vld [vmem:[#allocation3 + $0xb8] sm:$0xff] }
 0x14f   : > { %2047 = vst.msk [vmem:[#allocation3 + $0x50] sm:$0xff] %vm749_vm3, %v1999_v53  ;;  %v1361_v1 = vadd.f32 %v1313_v61, %v1138_v60  ;;  %v1954_v2 = vld [vmem:[#allocation3 + $0x68] sm:$0xff]  ;;  %v4136_v3 = vpop.f32.mrb[42].mxu0  ;;  %v2398_v6 = vsel %vm2390_vm4, %v2396_v62, %v2397_v51  ;;  %v2192_v14 = vrot.slane %v2091_v63, 1  ;;  %v2401_v24 = vrot.slane %v2091_v63, 2  ;;  %v1319_v54 = vld [vmem:[#allocation3 + $0xb0] sm:$0xff] }
 0x150   : > { %1410 = vst.msk [vmem:[#allocation3 + $0x88] sm:$0xff] %vm749_vm3, %v1362_v59  ;;  %v2002_v4 = vadd.f32 %v4085_v13, %v1954_v2  ;;  %v1953_v5 = vld [vmem:[#allocation3 + $0x60] sm:$0xff]  ;;  %v4142_v8 = vpop.f32.mrb[43].mxu0 }
 0x151   : > { %1409 = vst.msk [vmem:[#allocation3 + $0x80] sm:$0xff] %vm749_vm3, %v1361_v1  ;;  %v2001_v9 = vadd.f32 %v1953_v5, %v4088_v16  ;;  %v3370_v10 = vpop.f32.mrb[42].mxu1  ;;  %v2194_v32 = vsel %vm2181_vm5, %v2192_v14, %v2193_v15  ;;  %v2403_v42 = vsel %vm2390_vm4, %v2401_v24, %v2402_v25  ;;  %v4177_v43 = vld [vmem:[#allocation3 + $0x48] sm:$0xff]  ;;  %v1321_v7 = vld [vmem:[#allocation3 + $0xc0] sm:$0xff] }
 0x152   : > { %2050 = vst.msk [vmem:[#allocation3 + $0x68] sm:$0xff] %vm749_vm3, %v2002_v4  ;;  %v1364_v13 = vadd.f32 %v3370_v10, %v1316_v11  ;;  %v1148_v17 = vpop.f32.mrb[43].mxu1  ;;  %2475 = vrot.lane.b32.xlu0 %v2398_v6, %s3518_s22  ;;  %2268 = vrot.lane.b32.xlu1 %v2191_v12, %s3519_s23  ;;  %v4151_v19 = vld [vmem:[#allocation3 + $0x40] sm:$0xff]  ;;  %v2197_v57 = vrot.slane %v4177_v43, 1  ;;  %v1322_v1 = vld [vmem:[#allocation3 + $0xc8] sm:$0xff] }
 0x153   : > { %2049 = vst.msk [vmem:[#allocation3 + $0x60] sm:$0xff] %vm749_vm3, %v2001_v9  ;;  %v1363_v16 = vadd.f32 %v1315_v18, %v1148_v17  ;;  %v1956_v20 = vld [vmem:[#allocation3 + $0x78] sm:$0xff]  ;;  %v4154_v21 = vpop.f32.mrb[44].mxu0  ;;  %v2195_v34 = vrot.slane %v4151_v19, 1  ;;  %v2404_v50 = vrot.slane %v4151_v19, 2  ;;  %v2406_v9 = vrot.slane %v4177_v43, 2 }
 0x154   : > { %1412 = vst.msk [vmem:[#allocation3 + $0x98] sm:$0xff] %vm749_vm3, %v1364_v13  ;;  %v2004_v22 = vadd.f32 %v4099_v29, %v1956_v20  ;;  %v1955_v23 = vld [vmem:[#allocation3 + $0x70] sm:$0xff]  ;;  %v4159_v26 = vpop.f32.mrb[45].mxu0 }
 0x155   : > { %1411 = vst.msk [vmem:[#allocation3 + $0x90] sm:$0xff] %vm749_vm3, %v1363_v16  ;;  %v2003_v27 = vadd.f32 %v1955_v23, %v4103_v33  ;;  %v3373_v28 = vpop.f32.mrb[44].mxu1  ;;  %v2196_v49 = vsel %vm2181_vm5, %v2193_v15, %v2195_v34  ;;  %v4189_v55 = vld [vmem:[#allocation3 + $0x58] sm:$0xff]  ;;  %v2405_v2 = vsel %vm2390_vm4, %v2402_v25, %v2404_v50 }
 0x156   : > { %2052 = vst.msk [vmem:[#allocation3 + $0x78] sm:$0xff] %vm749_vm3, %v2004_v22  ;;  %v1366_v29 = vadd.f32 %v3373_v28, %v1318_v30  ;;  %v1158_v35 = vpop.f32.mrb[45].mxu1  ;;  %2477 = vrot.lane.b32.xlu0 %v2400_v31, %s3518_s22  ;;  %2270 = vrot.lane.b32.xlu1 %v2194_v32, %s3519_s23  ;;  %v4169_v37 = vld [vmem:[#allocation3 + $0x50] sm:$0xff]  ;;  %v2200_v5 = vrot.slane %v4189_v55, 1  ;;  %v2409_v18 = vrot.slane %v4189_v55, 2  ;;  %v1324_v22 = vld [vmem:[#allocation3 + $0xd8] sm:$0xff] }
 0x157   : > { %2051 = vst.msk [vmem:[#allocation3 + $0x70] sm:$0xff] %vm749_vm3, %v2003_v27  ;;  %v1365_v33 = vadd.f32 %v1317_v36, %v1158_v35  ;;  %v1958_v38 = vld [vmem:[#allocation3 + $0x88] sm:$0xff]  ;;  %v4172_v39 = vpop.f32.mrb[46].mxu0  ;;  %v2198_v51 = vrot.slane %v4169_v37, 1  ;;  %v2407_v61 = vrot.slane %v4169_v37, 2  ;;  %v1323_v28 = vld [vmem:[#allocation3 + $0xd0] sm:$0xff] }
 0x158   : > { %1414 = vst.msk [vmem:[#allocation3 + $0xa8] sm:$0xff] %vm749_vm3, %v1366_v29  ;;  %v2006_v40 = vadd.f32 %v4116_v48, %v1958_v38  ;;  %v1957_v41 = vld [vmem:[#allocation3 + $0x80] sm:$0xff]  ;;  %v4179_v44 = vpop.f32.mrb[47].mxu0 }
 0x159   : > { %1413 = vst.msk [vmem:[#allocation3 + $0xa0] sm:$0xff] %vm749_vm3, %v1365_v33  ;;  %v2005_v45 = vadd.f32 %v1957_v41, %v4121_v52  ;;  %v3376_v46 = vpop.f32.mrb[46].mxu1  ;;  %v2199_v4 = vsel %vm2181_vm5, %v2197_v57, %v2198_v51  ;;  %v4211_v10 = vld [vmem:[#allocation3 + $0x68] sm:$0xff]  ;;  %v2408_v17 = vsel %vm2390_vm4, %v2406_v9, %v2407_v61  ;;  %v2201_v23 = vsel %vm2181_vm5, %v2198_v51, %v2200_v5 }
 0x15a   : > { %2054 = vst.msk [vmem:[#allocation3 + $0x88] sm:$0xff] %vm749_vm3, %v2006_v40  ;;  %v1368_v48 = vadd.f32 %v3376_v46, %v1320_v47  ;;  %v1168_v53 = vpop.f32.mrb[47].mxu1  ;;  %2479 = vrot.lane.b32.xlu0 %v2403_v42, %s3518_s22  ;;  %2272 = vrot.lane.b32.xlu1 %v2196_v49, %s3519_s23  ;;  %v2203_v25 = vrot.slane %v4211_v10, 1  ;;  %v2412_v36 = vrot.slane %v4211_v10, 2  ;;  %v1326_v40 = vld [vmem:[#allocation3 + $0xe8] sm:$0xff]  ;;  %v2410_v41 = vsel %vm2390_vm4, %v2407_v61, %v2409_v18  ;;  %v1325_v47 = vld [vmem:[#allocation3 + $0xe0] sm:$0xff] }
 0x15b   : > { %2053 = vst.msk [vmem:[#allocation3 + $0x80] sm:$0xff] %vm749_vm3, %v2005_v45  ;;  %v1367_v52 = vadd.f32 %v1319_v54, %v1168_v53  ;;  %v1960_v56 = vld [vmem:[#allocation3 + $0x98] sm:$0xff]  ;;  %v4193_v58 = vpop.f32.mrb[48].mxu0 }
 0x15c   : > { %1416 = vst.msk [vmem:[#allocation3 + $0xb8] sm:$0xff] %vm749_vm3, %v1368_v48  ;;  %v2008_v59 = vadd.f32 %v4136_v3, %v1960_v56  ;;  %v1959_v60 = vld [vmem:[#allocation3 + $0x90] sm:$0xff]  ;;  %v4198_v62 = vpop.f32.mrb[49].mxu0 }
 0x15d   : > { %1415 = vst.msk [vmem:[#allocation3 + $0xb0] sm:$0xff] %vm749_vm3, %v1367_v52  ;;  %v2007_v63 = vadd.f32 %v1959_v60, %v4142_v8  ;;  %v3379_v0 = vpop.f32.mrb[48].mxu1  ;;  %v4209_v8 = vld [vmem:[#allocation3 + $0x60] sm:$0xff]  ;;  %v4257_v55 = vld [vmem:[#allocation3 + $0x78] sm:$0xff] }
 0x15e   : > { %2056 = vst.msk [vmem:[#allocation3 + $0x98] sm:$0xff] %vm749_vm3, %v2008_v59  ;;  %v1370_v3 = vadd.f32 %v3379_v0, %v1322_v1  ;;  %v1178_v6 = vpop.f32.mrb[49].mxu1  ;;  %2481 = vrot.lane.b32.xlu0 %v2405_v2, %s3518_s22  ;;  %2274 = vrot.lane.b32.xlu1 %v2199_v4, %s3519_s23  ;;  %v2202_v24 = vrot.slane %v4209_v8, 1  ;;  %v4230_v30 = vld [vmem:[#allocation3 + $0x70] sm:$0xff]  ;;  %v2411_v35 = vrot.slane %v4209_v8, 2  ;;  %v1328_v59 = vld [vmem:[#allocation3 + $0xf8] sm:$0xff] }
 0x15f   : > { %2055 = vst.msk [vmem:[#allocation3 + $0x90] sm:$0xff] %vm749_vm3, %v2007_v63  ;;  %v1369_v11 = vadd.f32 %v1321_v7, %v1178_v6  ;;  %v1962_v12 = vld [vmem:[#allocation3 + $0xa8] sm:$0xff]  ;;  %v4214_v14 = vpop.f32.mrb[50].mxu0  ;;  %v2205_v45 = vrot.slane %v4230_v30, 1  ;;  %v2414_v61 = vrot.slane %v4230_v30, 2  ;;  %v1327_v1 = vld [vmem:[#allocation3 + $0xf0] sm:$0xff] }
 0x160   : > { %1418 = vst.msk [vmem:[#allocation3 + $0xc8] sm:$0xff] %vm749_vm3, %v1370_v3  ;;  %v2010_v15 = vadd.f32 %v4154_v21, %v1962_v12  ;;  %v1961_v13 = vld [vmem:[#allocation3 + $0xa0] sm:$0xff]  ;;  %v4220_v19 = vpop.f32.mrb[51].mxu0  ;;  %v2204_v42 = vsel %vm2181_vm5, %v2202_v24, %v2203_v25  ;;  %v2413_v54 = vsel %vm2390_vm4, %v2411_v35, %v2412_v36  ;;  %v2207_v5 = vrot.slane %v4257_v55, 1 }
 0x161   : > { %1417 = vst.msk [vmem:[#allocation3 + $0xc0] sm:$0xff] %vm749_vm3, %v1369_v11  ;;  %v2009_v16 = vadd.f32 %v1961_v13, %v4159_v26  ;;  %v3382_v20 = vpop.f32.mrb[50].mxu1  ;;  %v2206_v60 = vsel %vm2181_vm5, %v2203_v25, %v2205_v45  ;;  %v4269_v2 = vld [vmem:[#allocation3 + $0x88] sm:$0xff] }
 0x162   : > { %2058 = vst.msk [vmem:[#allocation3 + $0xa8] sm:$0xff] %vm749_vm3, %v2010_v15  ;;  %v1372_v21 = vadd.f32 %v3382_v20, %v1324_v22  ;;  %v1188_v27 = vpop.f32.mrb[51].mxu1  ;;  %2483 = vrot.lane.b32.xlu0 %v2408_v17, %s3518_s22  ;;  %2276 = vrot.lane.b32.xlu1 %v2201_v23, %s3519_s23  ;;  %v4249_v49 = vld [vmem:[#allocation3 + $0x80] sm:$0xff]  ;;  %v1330_v13 = vld [vmem:[#allocation3 + $0x108] sm:$0xff]  ;;  %v2415_v17 = vsel %vm2390_vm4, %v2412_v36, %v2414_v61  ;;  %v2416_v23 = vrot.slane %v4257_v55, 2  ;;  %v1332_v36 = vld [vmem:[#allocation3 + $0x118] sm:$0xff] }
 0x163   : > { %2057 = vst.msk [vmem:[#allocation3 + $0xa0] sm:$0xff] %vm749_vm3, %v2009_v16  ;;  %v1371_v26 = vadd.f32 %v1323_v28, %v1188_v27  ;;  %v1964_v31 = vld [vmem:[#allocation3 + $0xb8] sm:$0xff]  ;;  %v4233_v32 = vpop.f32.mrb[52].mxu0  ;;  %v2208_v63 = vrot.slane %v4249_v49, 1  ;;  %v2417_v9 = vrot.slane %v4249_v49, 2  ;;  %v2210_v16 = vrot.slane %v4269_v2, 1 }
 0x164   : > { %1420 = vst.msk [vmem:[#allocation3 + $0xd8] sm:$0xff] %vm749_vm3, %v1372_v21  ;;  %v2012_v34 = vadd.f32 %v4172_v39, %v1964_v31  ;;  %v1963_v29 = vld [vmem:[#allocation3 + $0xb0] sm:$0xff]  ;;  %v4239_v37 = vpop.f32.mrb[53].mxu0  ;;  %v1329_v22 = vld [vmem:[#allocation3 + $0x100] sm:$0xff]  ;;  %v2419_v31 = vrot.slane %v4269_v2, 2 }
 0x165   : > { %1419 = vst.msk [vmem:[#allocation3 + $0xd0] sm:$0xff] %vm749_vm3, %v1371_v26  ;;  %v2011_v33 = vadd.f32 %v1963_v29, %v4179_v44  ;;  %v3385_v38 = vpop.f32.mrb[52].mxu1  ;;  %v2209_v18 = vsel %vm2181_vm5, %v2207_v5, %v2208_v63  ;;  %v4291_v24 = vld [vmem:[#allocation3 + $0x98] sm:$0xff]  ;;  %v2418_v26 = vsel %vm2390_vm4, %v2416_v23, %v2417_v9 }
 0x166   : > { %2060 = vst.msk [vmem:[#allocation3 + $0xb8] sm:$0xff] %vm749_vm3, %v2012_v34  ;;  %v1374_v39 = vadd.f32 %v3385_v38, %v1326_v40  ;;  %v1198_v46 = vpop.f32.mrb[53].mxu1  ;;  %2485 = vrot.lane.b32.xlu0 %v2410_v41, %s3518_s22  ;;  %2278 = vrot.lane.b32.xlu1 %v2204_v42, %s3519_s23  ;;  %v2213_v40 = vrot.slane %v4291_v24, 1  ;;  %v1331_v42 = vld [vmem:[#allocation3 + $0x110] sm:$0xff] }
 0x167   : > { %2059 = vst.msk [vmem:[#allocation3 + $0xb0] sm:$0xff] %vm749_vm3, %v2011_v33  ;;  %v1373_v44 = vadd.f32 %v1325_v47, %v1198_v46  ;;  %v1966_v50 = vld [vmem:[#allocation3 + $0xc8] sm:$0xff]  ;;  %v4252_v51 = vpop.f32.mrb[54].mxu0  ;;  %v2211_v33 = vsel %vm2181_vm5, %v2208_v63, %v2210_v16 }
 0x168   : > { %1422 = vst.msk [vmem:[#allocation3 + $0xe8] sm:$0xff] %vm749_vm3, %v1374_v39  ;;  %v2014_v48 = vadd.f32 %v4193_v58, %v1966_v50  ;;  %v1965_v53 = vld [vmem:[#allocation3 + $0xc0] sm:$0xff]  ;;  %v4259_v52 = vpop.f32.mrb[55].mxu0 }
 0x169   : > { %1421 = vst.msk [vmem:[#allocation3 + $0xe0] sm:$0xff] %vm749_vm3, %v1373_v44  ;;  %v2013_v56 = vadd.f32 %v1965_v53, %v4198_v62  ;;  %v3388_v57 = vpop.f32.mrb[54].mxu1 }
 0x16a   : > { %2062 = vst.msk [vmem:[#allocation3 + $0xc8] sm:$0xff] %vm749_vm3, %v2014_v48  ;;  %v1376_v58 = vadd.f32 %v3388_v57, %v1328_v59  ;;  %v1208_v0 = vpop.f32.mrb[55].mxu1  ;;  %2487 = vrot.lane.b32.xlu0 %v2413_v54, %s3518_s22  ;;  %2280 = vrot.lane.b32.xlu1 %v2206_v60, %s3519_s23  ;;  %v4310_v45 = vld [vmem:[#allocation3 + $0xa0] sm:$0xff]  ;;  %v2422_v48 = vrot.slane %v4291_v24, 2  ;;  %v1334_v57 = vld [vmem:[#allocation3 + $0x128] sm:$0xff]  ;;  %v2420_v59 = vsel %vm2390_vm4, %v2417_v9, %v2419_v31 }
 0x16b   : > { %2061 = vst.msk [vmem:[#allocation3 + $0xc0] sm:$0xff] %vm749_vm3, %v2013_v56  ;;  %v1375_v62 = vadd.f32 %v1327_v1, %v1208_v0  ;;  %v1968_v4 = vld [vmem:[#allocation3 + $0xd8] sm:$0xff]  ;;  %v4273_v3 = vpop.f32.mrb[56].mxu0  ;;  %v2215_v61 = vrot.slane %v4310_v45, 1 }
 0x16c   : > { %1424 = vst.msk [vmem:[#allocation3 + $0xf8] sm:$0xff] %vm749_vm3, %v1376_v58  ;;  %v2016_v6 = vadd.f32 %v4214_v14, %v1968_v4  ;;  %v1967_v7 = vld [vmem:[#allocation3 + $0xd0] sm:$0xff]  ;;  %v4278_v11 = vpop.f32.mrb[57].mxu0  ;;  %v1333_v58 = vld [vmem:[#allocation3 + $0x120] sm:$0xff] }
 0x16d   : > { %1423 = vst.msk [vmem:[#allocation3 + $0xf0] sm:$0xff] %vm749_vm3, %v1375_v62  ;;  %v2015_v12 = vadd.f32 %v1967_v7, %v4220_v19  ;;  %v3391_v15 = vpop.f32.mrb[56].mxu1  ;;  %v4289_v19 = vld [vmem:[#allocation3 + $0x90] sm:$0xff] }
 0x16e   : > { %2064 = vst.msk [vmem:[#allocation3 + $0xd8] sm:$0xff] %vm749_vm3, %v2016_v6  ;;  %v1378_v14 = vadd.f32 %v3391_v15, %v1330_v13  ;;  %v1218_v20 = vpop.f32.mrb[57].mxu1  ;;  %2489 = vrot.lane.b32.xlu0 %v2415_v17, %s3518_s22  ;;  %2282 = vrot.lane.b32.xlu1 %v2209_v18, %s3519_s23  ;;  %v2212_v38 = vrot.slane %v4289_v19, 1  ;;  %v2421_v50 = vrot.slane %v4289_v19, 2  ;;  %v4329_v0 = vld [vmem:[#allocation3 + $0xb0] sm:$0xff]  ;;  %v4337_v6 = vld [vmem:[#allocation3 + $0xa8] sm:$0xff]  ;;  %v2216_v13 = vsel %vm2181_vm5, %v2213_v40, %v2215_v61 }
 0x16f   : > { %2063 = vst.msk [vmem:[#allocation3 + $0xd0] sm:$0xff] %vm749_vm3, %v2015_v12  ;;  %v1377_v25 = vadd.f32 %v1329_v22, %v1218_v20  ;;  %v1970_v21 = vld [vmem:[#allocation3 + $0xe8] sm:$0xff]  ;;  %v4294_v27 = vpop.f32.mrb[58].mxu0  ;;  %v1336_v15 = vld [vmem:[#allocation3 + $0x138] sm:$0xff]  ;;  %v2424_v17 = vrot.slane %v4310_v45, 2  ;;  %v2218_v18 = vrot.slane %v4329_v0, 1 }
 0x170   : > { %1426 = vst.msk [vmem:[#allocation3 + $0x108] sm:$0xff] %vm749_vm3, %v1378_v14  ;;  %v2018_v28 = vadd.f32 %v4233_v32, %v1970_v21  ;;  %v1969_v30 = vld [vmem:[#allocation3 + $0xe0] sm:$0xff]  ;;  %v4300_v34 = vpop.f32.mrb[59].mxu0  ;;  %v2214_v60 = vsel %vm2181_vm5, %v2212_v38, %v2213_v40  ;;  %v2423_v5 = vsel %vm2390_vm4, %v2421_v50, %v2422_v48  ;;  %v1335_v14 = vld [vmem:[#allocation3 + $0x130] sm:$0xff]  ;;  %v4349_v20 = vld [vmem:[#allocation3 + $0xb8] sm:$0xff]  ;;  %v2217_v23 = vrot.slane %v4337_v6, 1 }
 0x171   : > { %1425 = vst.msk [vmem:[#allocation3 + $0x100] sm:$0xff] %vm749_vm3, %v1377_v25  ;;  %v2017_v29 = vadd.f32 %v1969_v30, %v4239_v37  ;;  %v3394_v35 = vpop.f32.mrb[58].mxu1  ;;  %v2427_v30 = vrot.slane %v4329_v0, 2  ;;  %v2220_v38 = vrot.slane %v4349_v20, 1 }
 0x172   : > { %2066 = vst.msk [vmem:[#allocation3 + $0xe8] sm:$0xff] %vm749_vm3, %v2018_v28  ;;  %v1380_v32 = vadd.f32 %v3394_v35, %v1332_v36  ;;  %v1228_v41 = vpop.f32.mrb[59].mxu1  ;;  %2491 = vrot.lane.b32.xlu0 %v2418_v26, %s3518_s22  ;;  %2284 = vrot.lane.b32.xlu1 %v2211_v33, %s3519_s23  ;;  %v1338_v35 = vld [vmem:[#allocation3 + $0x148] sm:$0xff]  ;;  %v2425_v36 = vsel %vm2390_vm4, %v2422_v48, %v2424_v17  ;;  %v2429_v48 = vrot.slane %v4349_v20, 2 }
 0x173   : > { %2065 = vst.msk [vmem:[#allocation3 + $0xe0] sm:$0xff] %vm749_vm3, %v2017_v29  ;;  %v1379_v37 = vadd.f32 %v1331_v42, %v1228_v41  ;;  %v1972_v39 = vld [vmem:[#allocation3 + $0xf8] sm:$0xff]  ;;  %v4313_v46 = vpop.f32.mrb[60].mxu0  ;;  %v2219_v33 = vsel %vm2181_vm5, %v2217_v23, %v2218_v18  ;;  %v2426_v41 = vrot.slane %v4337_v6, 2  ;;  %v4371_v42 = vld [vmem:[#allocation3 + $0xc8] sm:$0xff] }
 0x174   : > { %1428 = vst.msk [vmem:[#allocation3 + $0x118] sm:$0xff] %vm749_vm3, %v1380_v32  ;;  %v2020_v47 = vadd.f32 %v4252_v51, %v1972_v39  ;;  %v1971_v44 = vld [vmem:[#allocation3 + $0xf0] sm:$0xff]  ;;  %v4319_v53 = vpop.f32.mrb[61].mxu0  ;;  %v1337_v32 = vld [vmem:[#allocation3 + $0x140] sm:$0xff] }
 0x175   : > { %1427 = vst.msk [vmem:[#allocation3 + $0x110] sm:$0xff] %vm749_vm3, %v1379_v37  ;;  %v2019_v54 = vadd.f32 %v1971_v44, %v4259_v52  ;;  %v3397_v56 = vpop.f32.mrb[60].mxu1  ;;  %v2428_v50 = vsel %vm2390_vm4, %v2426_v41, %v2427_v30 }
 0x176   : > { %2068 = vst.msk [vmem:[#allocation3 + $0xf8] sm:$0xff] %vm749_vm3, %v2020_v47  ;;  %v1382_v51 = vadd.f32 %v3397_v56, %v1334_v57  ;;  %v1238_v63 = vpop.f32.mrb[61].mxu1  ;;  %2493 = vrot.lane.b32.xlu0 %v2420_v59, %s3518_s22  ;;  %2286 = vrot.lane.b32.xlu1 %v2214_v60, %s3519_s23  ;;  %v1340_v59 = vld [vmem:[#allocation3 + $0x158] sm:$0xff]  ;;  %v2221_v60 = vsel %vm2181_vm5, %v2218_v18, %v2220_v38  ;;  %v1342_v18 = vld [vmem:[#allocation3 + $0x168] sm:$0xff] }
 0x177   : > { %2067 = vst.msk [vmem:[#allocation3 + $0xf0] sm:$0xff] %vm749_vm3, %v2019_v54  ;;  %v1381_v52 = vadd.f32 %v1333_v58, %v1238_v63  ;;  %v1974_v1 = vld [vmem:[#allocation3 + $0x108] sm:$0xff]  ;;  %v4332_v2 = vpop.f32.mrb[62].mxu0  ;;  %v1339_v58 = vld [vmem:[#allocation3 + $0x150] sm:$0xff]  ;;  %v1344_v38 = vld [vmem:[#allocation3 + $0x178] sm:$0xff] }
 0x178   : > { %1430 = vst.msk [vmem:[#allocation3 + $0x128] sm:$0xff] %vm749_vm3, %v1382_v51  ;;  %v2022_v62 = vadd.f32 %v4273_v3, %v1974_v1  ;;  %v1973_v4 = vld [vmem:[#allocation3 + $0x100] sm:$0xff]  ;;  %v4339_v7 = vpop.f32.mrb[63].mxu0  ;;  %v2223_v51 = vrot.slane %v4371_v42, 1 }
 0x179   : > { %1429 = vst.msk [vmem:[#allocation3 + $0x120] sm:$0xff] %vm749_vm3, %v1381_v52  ;;  %v2021_v9 = vadd.f32 %v1973_v4, %v4278_v11  ;;  %v3400_v12 = vpop.f32.mrb[62].mxu1  ;;  %v2111_v52 = vld [vmem:[#allocation3 + $0xd0] sm:$0xff] }
 0x17a   : > { %2070 = vst.msk [vmem:[#allocation3 + $0x108] sm:$0xff] %vm749_vm3, %v2022_v62  ;;  %v1384_v3 = vadd.f32 %v3400_v12, %v1336_v15  ;;  %v1248_v16 = vpop.f32.mrb[63].mxu1  ;;  %2495 = vrot.lane.b32.xlu0 %v2423_v5, %s3518_s22  ;;  %2288 = vrot.lane.b32.xlu1 %v2216_v13, %s3519_s23  ;;  %v2432_v12 = vrot.slane %v4371_v42, 2 }
 0x17b   : > { %2069 = vst.msk [vmem:[#allocation3 + $0x100] sm:$0xff] %vm749_vm3, %v2021_v9  ;;  %v1383_v11 = vadd.f32 %v1335_v14, %v1248_v16  ;;  %v1976_v22 = vld [vmem:[#allocation3 + $0x118] sm:$0xff]  ;;  %v4353_v25 = vpop.f32.mrb[64].mxu0  ;;  %v2225_v14 = vrot.slane %v2111_v52, 1 }
 0x17c   : > { %1432 = vst.msk [vmem:[#allocation3 + $0x138] sm:$0xff] %vm749_vm3, %v1384_v3  ;;  %v2024_v21 = vadd.f32 %v4294_v27, %v1976_v22  ;;  %v1975_v28 = vld [vmem:[#allocation3 + $0x110] sm:$0xff]  ;;  %v4358_v26 = vpop.f32.mrb[65].mxu0  ;;  %v2430_v3 = vsel %vm2390_vm4, %v2427_v30, %v2429_v48  ;;  %v4406_v22 = vld [vmem:[#allocation3 + $0xe0] sm:$0xff] }
 0x17d   : > { %1431 = vst.msk [vmem:[#allocation3 + $0x130] sm:$0xff] %vm749_vm3, %v1383_v11  ;;  %v2023_v31 = vadd.f32 %v1975_v28, %v4300_v34  ;;  %v3403_v29 = vpop.f32.mrb[64].mxu1  ;;  %v4369_v34 = vld [vmem:[#allocation3 + $0xc0] sm:$0xff] }
 0x17e   : > { %2072 = vst.msk [vmem:[#allocation3 + $0x118] sm:$0xff] %vm749_vm3, %v2024_v21  ;;  %v1386_v27 = vadd.f32 %v3403_v29, %v1338_v35  ;;  %v1258_v40 = vpop.f32.mrb[65].mxu1  ;;  %2497 = vrot.lane.b32.xlu0 %v2425_v36, %s3518_s22  ;;  %2290 = vrot.lane.b32.xlu1 %v2219_v33, %s3519_s23  ;;  %v2222_v61 = vrot.slane %v4369_v34, 1  ;;  %v2431_v9 = vrot.slane %v4369_v34, 2  ;;  %v1341_v11 = vld [vmem:[#allocation3 + $0x160] sm:$0xff]  ;;  %v4412_v29 = vld [vmem:[#allocation3 + $0xd8] sm:$0xff] }
 0x17f   : > { %2071 = vst.msk [vmem:[#allocation3 + $0x110] sm:$0xff] %vm749_vm3, %v2023_v31  ;;  %v1385_v45 = vadd.f32 %v1337_v32, %v1258_v40  ;;  %v1978_v37 = vld [vmem:[#allocation3 + $0x128] sm:$0xff]  ;;  %v4374_v39 = vpop.f32.mrb[66].mxu0  ;;  %v2434_v40 = vrot.slane %v2111_v52, 2  ;;  %v2228_v32 = vrot.slane %v4406_v22, 1 }
 0x180   : > { %1434 = vst.msk [vmem:[#allocation3 + $0x148] sm:$0xff] %vm749_vm3, %v1386_v27  ;;  %v2026_v47 = vadd.f32 %v4313_v46, %v1978_v37  ;;  %v1977_v44 = vld [vmem:[#allocation3 + $0x120] sm:$0xff]  ;;  %v4380_v54 = vpop.f32.mrb[67].mxu0  ;;  %v2224_v16 = vsel %vm2181_vm5, %v2222_v61, %v2223_v51  ;;  %v2433_v31 = vsel %vm2390_vm4, %v2431_v9, %v2432_v12  ;;  %v2226_v27 = vsel %vm2181_vm5, %v2223_v51, %v2225_v14  ;;  %v2114_v37 = vld [vmem:[#allocation3 + $0xe8] sm:$0xff]  ;;  %v4434_v51 = vld [vmem:[#allocation3 + $0xf0] sm:$0xff] }
 0x181   : > { %1433 = vst.msk [vmem:[#allocation3 + $0x140] sm:$0xff] %vm749_vm3, %v1385_v45  ;;  %v2025_v56 = vadd.f32 %v1977_v44, %v4319_v53  ;;  %v3406_v57 = vpop.f32.mrb[66].mxu1  ;;  %v1343_v45 = vld [vmem:[#allocation3 + $0x170] sm:$0xff]  ;;  %v2227_v44 = vrot.slane %v4412_v29, 1  ;;  %v2230_v61 = vrot.slane %v2114_v37, 1  ;;  %v2441_v14 = vrot.slane %v4434_v51, 2 }
 0x182   : > { %2074 = vst.msk [vmem:[#allocation3 + $0x128] sm:$0xff] %vm749_vm3, %v2026_v47  ;;  %v1388_v46 = vadd.f32 %v3406_v57, %v1340_v59  ;;  %v1268_v63 = vpop.f32.mrb[67].mxu1  ;;  %2499 = vrot.lane.b32.xlu0 %v2428_v50, %s3518_s22  ;;  %2292 = vrot.lane.b32.xlu1 %v2221_v60, %s3519_s23  ;;  %v2435_v59 = vsel %vm2390_vm4, %v2432_v12, %v2434_v40  ;;  %v2117_v12 = vld [vmem:[#allocation3 + $0x100] sm:$0xff] }
 0x183   : > { %2073 = vst.msk [vmem:[#allocation3 + $0x120] sm:$0xff] %vm749_vm3, %v2025_v56  ;;  %v1387_v53 = vadd.f32 %v1339_v58, %v1268_v63  ;;  %v1980_v1 = vld [vmem:[#allocation3 + $0x138] sm:$0xff]  ;;  %v4391_v62 = vpop.f32.mrb[68].mxu0  ;;  %v2437_v56 = vrot.slane %v4406_v22, 2  ;;  %v2229_v60 = vsel %vm2181_vm5, %v2227_v44, %v2228_v32 }
 0x184   : > { %1436 = vst.msk [vmem:[#allocation3 + $0x158] sm:$0xff] %vm749_vm3, %v1388_v46  ;;  %v2028_v4 = vadd.f32 %v4332_v2, %v1980_v1  ;;  %v1979_v5 = vld [vmem:[#allocation3 + $0x130] sm:$0xff]  ;;  %v4397_v15 = vpop.f32.mrb[69].mxu0  ;;  %v4436_v46 = vld [vmem:[#allocation3 + $0xf8] sm:$0xff] }
 0x185   : > { %1435 = vst.msk [vmem:[#allocation3 + $0x150] sm:$0xff] %vm749_vm3, %v1387_v53  ;;  %v2027_v13 = vadd.f32 %v1979_v5, %v4339_v7  ;;  %v3409_v17 = vpop.f32.mrb[68].mxu1  ;;  %v2439_v53 = vrot.slane %v2114_v37, 2  ;;  %v2232_v5 = vrot.slane %v4434_v51, 1  ;;  %v2233_v9 = vrot.slane %v4436_v46, 1 }
 0x186   : > { %2076 = vst.msk [vmem:[#allocation3 + $0x138] sm:$0xff] %vm749_vm3, %v2028_v4  ;;  %v1390_v2 = vadd.f32 %v3409_v17, %v1342_v18  ;;  %v1278_v20 = vpop.f32.mrb[69].mxu1  ;;  %2501 = vrot.lane.b32.xlu0 %v2430_v3, %s3518_s22  ;;  %2294 = vrot.lane.b32.xlu1 %v2224_v16, %s3519_s23  ;;  %v2231_v4 = vsel %vm2181_vm5, %v2228_v32, %v2230_v61  ;;  %v2442_v18 = vrot.slane %v4436_v46, 2 }
 0x187   : > { %2075 = vst.msk [vmem:[#allocation3 + $0x130] sm:$0xff] %vm749_vm3, %v2027_v13  ;;  %v1389_v7 = vadd.f32 %v1341_v11, %v1278_v20  ;;  %v1982_v23 = vld [vmem:[#allocation3 + $0x148] sm:$0xff]  ;;  %v3486_v21 = vpop.f32.mrb[70].mxu0  ;;  %v2234_v16 = vsel %vm2181_vm5, %v2232_v5, %v2233_v9  ;;  %v4456_v20 = vld [vmem:[#allocation3 + $0x110] sm:$0xff] }
 0x188   : > { %1438 = vst.msk [vmem:[#allocation3 + $0x168] sm:$0xff] %vm749_vm3, %v1390_v2  ;;  %v2030_v28 = vadd.f32 %v4353_v25, %v1982_v23  ;;  %v1981_v30 = vld [vmem:[#allocation3 + $0x140] sm:$0xff]  ;;  %v1932_v35 = vpop.f32.mrb[71].mxu0  ;;  %v2235_v2 = vrot.slane %v2117_v12, 1  ;;  %v4459_v11 = vld [vmem:[#allocation3 + $0x108] sm:$0xff] }
 0x189   : > { %1437 = vst.msk [vmem:[#allocation3 + $0x160] sm:$0xff] %vm749_vm3, %v1389_v7  ;;  %v2029_v36 = vadd.f32 %v1981_v30, %v4358_v26  ;;  %v3412_v33 = vpop.f32.mrb[70].mxu1  ;;  %v2443_v7 = vsel %vm2390_vm4, %v2441_v14, %v2442_v18  ;;  %v2120_v30 = vld [vmem:[#allocation3 + $0x118] sm:$0xff]  ;;  %v4474_v40 = vld [vmem:[#allocation3 + $0x128] sm:$0xff]  ;;  %v2446_v32 = vrot.slane %v4459_v11, 2 }
 0x18a   : > { %2078 = vst.msk [vmem:[#allocation3 + $0x148] sm:$0xff] %vm749_vm3, %v2030_v28  ;;  %v1392_v25 = vadd.f32 %v3412_v33, %v1344_v38  ;;  %v1288_v41 = vpop.f32.mrb[71].mxu1  ;;  %2503 = vrot.lane.b32.xlu0 %v2433_v31, %s3518_s22  ;;  %2296 = vrot.lane.b32.xlu1 %v2226_v27, %s3519_s23  ;;  %v2236_v23 = vsel %vm2181_vm5, %v2233_v9, %v2235_v2  ;;  %v2238_v28 = vrot.slane %v4456_v20, 1  ;;  %v2237_v31 = vrot.slane %v4459_v11, 1  ;;  %v4472_v27 = vld [vmem:[#allocation3 + $0x120] sm:$0xff] }
 0x18b   : > { %2077 = vst.msk [vmem:[#allocation3 + $0x140] sm:$0xff] %vm749_vm3, %v2029_v36  ;;  %v1391_v26 = vadd.f32 %v1343_v45, %v1288_v41  ;;  %v1984_v47 = vld [vmem:[#allocation3 + $0x158] sm:$0xff]  ;;  %v2447_v33 = vrot.slane %v4456_v20, 2  ;;  %v2240_v38 = vrot.slane %v2120_v30, 1  ;;  %5057 = vst [vmem:[#allocation4_spill] sm:$0xff] %v4474_v40  ;;  %v2242_v37 = vrot.slane %v4472_v27, 1 }
 0x18c   : > { %1440 = vst.msk [vmem:[#allocation3 + $0x178] sm:$0xff] %vm749_vm3, %v1392_v25  ;;  %v2032_v50 = vadd.f32 %v4374_v39, %v1984_v47  ;;  %v1983_v48 = vld [vmem:[#allocation3 + $0x150] sm:$0xff]  ;;  %v2436_v39 = vrot.slane %v4412_v29, 2  ;;  %v2239_v36 = vsel %vm2181_vm5, %v2237_v31, %v2238_v28  ;;  %v2449_v25 = vrot.slane %v2120_v30, 2 }
 0x18d   : > { %1439 = vst.msk [vmem:[#allocation3 + $0x170] sm:$0xff] %vm749_vm3, %v1391_v26  ;;  %v2031_v57 = vadd.f32 %v1983_v48, %v4380_v54  ;;  %v2448_v41 = vsel %vm2390_vm4, %v2446_v32, %v2447_v33  ;;  %v2241_v45 = vsel %vm2181_vm5, %v2238_v28, %v2240_v38  ;;  %v2243_v26 = vrot.slane %v4474_v40, 1 }
 0x18e   : > { %2080 = vst.msk [vmem:[#allocation3 + $0x158] sm:$0xff] %vm749_vm3, %v2032_v50  ;;  %2505 = vrot.lane.b32.xlu0 %v2435_v59, %s3518_s22  ;;  %2298 = vrot.lane.b32.xlu1 %v2229_v60, %s3519_s23  ;;  %v2438_v52 = vsel %vm2390_vm4, %v2436_v39, %v2437_v56  ;;  %v2123_v47 = vld [vmem:[#allocation3 + $0x130] sm:$0xff]  ;;  %v2450_v44 = vsel %vm2390_vm4, %v2447_v33, %v2449_v25  ;;  %v2451_v48 = vrot.slane %v4472_v27, 2  ;;  %v4491_v60 = vld [vmem:[#allocation3 + $0x138] sm:$0xff] }
 0x18f   : > { %2079 = vst.msk [vmem:[#allocation3 + $0x150] sm:$0xff] %vm749_vm3, %v2031_v57  ;;  %v1986_v54 = vld [vmem:[#allocation3 + $0x168] sm:$0xff]  ;;  %v2244_v50 = vsel %vm2181_vm5, %v2242_v37, %v2243_v26  ;;  %v2245_v57 = vrot.slane %v2123_v47, 1  ;;  %5059 = vst [vmem:[#allocation6_spill] sm:$0xff] %v4491_v60 }
 0x190   : > { %v2034_v63 = vadd.f32 %v4391_v62, %v1986_v54  ;;  %v1985_v58 = vld [vmem:[#allocation3 + $0x160] sm:$0xff]  ;;  %v2454_v54 = vrot.slane %v2123_v47, 2 }
 0x191   : > { %v2033_v1 = vadd.f32 %v1985_v58, %v4397_v15  ;;  %v2440_v15 = vsel %vm2390_vm4, %v2437_v56, %v2439_v53  ;;  %v2452_v56 = vrot.slane %v4474_v40, 2  ;;  %v2246_v39 = vsel %vm2181_vm5, %v2243_v26, %v2245_v57  ;;  %v2126_v58 = vld [vmem:[#allocation3 + $0x148] sm:$0xff] }
 0x192   : > { %2082 = vst.msk [vmem:[#allocation3 + $0x168] sm:$0xff] %vm749_vm3, %v2034_v63  ;;  %2507 = vrot.lane.b32.xlu0 %v2438_v52, %s3518_s22  ;;  %2300 = vrot.lane.b32.xlu1 %v2231_v4, %s3519_s23  ;;  %v4489_v59 = vld [vmem:[#allocation3 + $0x140] sm:$0xff]  ;;  %v2247_v52 = vrot.slane %v4491_v60, 1  ;;  %v2250_v5 = vrot.slane %v2126_v58, 1 }
 0x193   : > { %2081 = vst.msk [vmem:[#allocation3 + $0x160] sm:$0xff] %vm749_vm3, %v2033_v1  ;;  %v1988_v62 = vld [vmem:[#allocation3 + $0x178] sm:$0xff]  ;;  %5058 = vst [vmem:[#allocation5_spill] sm:$0xff] %v4489_v59  ;;  %v2453_v61 = vsel %vm2390_vm4, %v2451_v48, %v2452_v56  ;;  %v2248_v63 = vrot.slane %v4489_v59, 1  ;;  %v2455_v53 = vsel %vm2390_vm4, %v2452_v56, %v2454_v54  ;;  %v2457_v4 = vrot.slane %v4489_v59, 2 }
 0x194   : > { %v2036_v13 = vadd.f32 %v3486_v21, %v1988_v62  ;;  %v1987_v17 = vld [vmem:[#allocation3 + $0x170] sm:$0xff]  ;;  %v2444_v21 = vrot.slane %v2117_v12, 2  ;;  %v2456_v62 = vrot.slane %v4491_v60, 2 }
 0x195   : > { %v2035_v3 = vadd.f32 %v1987_v17, %v1932_v35  ;;  %v2249_v1 = vsel %vm2181_vm5, %v2247_v52, %v2248_v63  ;;  %v4506_v12 = vld [vmem:[#allocation3 + $0x158] sm:$0xff] }
 0x196   : > { %2084 = vst.msk [vmem:[#allocation3 + $0x178] sm:$0xff] %vm749_vm3, %v2036_v13  ;;  %2509 = vrot.lane.b32.xlu0 %v2440_v15, %s3518_s22  ;;  %2302 = vrot.lane.b32.xlu1 %v2234_v16, %s3519_s23  ;;  %v2445_v35 = vsel %vm2390_vm4, %v2442_v18, %v2444_v21  ;;  %v4504_v9 = vld [vmem:[#allocation3 + $0x150] sm:$0xff]  ;;  %5061 = vst [vmem:[#allocation8_spill] sm:$0xff] %v4506_v12  ;;  %v2459_v13 = vrot.slane %v2126_v58, 2  ;;  %v2458_v17 = vsel %vm2390_vm4, %v2456_v62, %v2457_v4 }
 0x197   : > { %2083 = vst.msk [vmem:[#allocation3 + $0x170] sm:$0xff] %vm749_vm3, %v2035_v3  ;;  %5060 = vst [vmem:[#allocation7_spill] sm:$0xff] %v4504_v9  ;;  %v2251_v15 = vsel %vm2181_vm5, %v2248_v63, %v2250_v5  ;;  %v2252_v18 = vrot.slane %v4504_v9, 1  ;;  %v2253_v3 = vrot.slane %v4506_v12, 1  ;;  %v2461_v14 = vrot.slane %v4504_v9, 2 }
 0x198   : > { %v2462_v2 = vrot.slane %v4506_v12, 2 }
 0x19a   : > { %2511 = vrot.lane.b32.xlu0 %v2443_v7, %s3518_s22  ;;  %2304 = vrot.lane.b32.xlu1 %v2236_v23, %s3519_s23  ;;  %v2129_v16 = vld [vmem:[#allocation3 + $0x160] sm:$0xff]  ;;  %v2460_v7 = vsel %vm2390_vm4, %v2457_v4, %v2459_v13  ;;  %v2254_v23 = vsel %vm2181_vm5, %v2252_v18, %v2253_v3  ;;  %v2463_v31 = vsel %vm2390_vm4, %v2461_v14, %v2462_v2 }
 0x19b   : > { %v2255_v21 = vrot.slane %v2129_v16, 1  ;;  %v2464_v32 = vrot.slane %v2129_v16, 2 }
 0x19d   : > { %v2256_v38 = vsel %vm2181_vm5, %v2253_v3, %v2255_v21 }
 0x19e   : > { %2513 = vrot.lane.b32.xlu0 %v2445_v35, %s3518_s22  ;;  %2306 = vrot.lane.b32.xlu1 %v2239_v36, %s3519_s23  ;;  %v4521_v28 = vld [vmem:[#allocation3 + $0x170] sm:$0xff]  ;;  %v4524_v35 = vld [vmem:[#allocation3 + $0x168] sm:$0xff]  ;;  %v3502_v36 = vld [vmem:[#allocation3] sm:$0xff] }
 0x19f   : > { %5062 = vst [vmem:[#allocation9_spill] sm:$0xff] %v4521_v28  ;;  %5063 = vst [vmem:[#allocation10_spill] sm:$0xff] %v4524_v35  ;;  %v2258_v25 = vrot.slane %v4521_v28, 1  ;;  %v2257_v26 = vrot.slane %v4524_v35, 1  ;;  %v2467_v48 = vrot.slane %v4521_v28, 2  ;;  %v2466_v57 = vrot.slane %v4524_v35, 2 }
 0x1a1   : > { %v2468_v54 = vsel %vm2390_vm4, %v2466_v57, %v2467_v48 }
 0x1a2   : > { %2515 = vrot.lane.b32.xlu0 %v2448_v41, %s3518_s22  ;;  %2308 = vrot.lane.b32.xlu1 %v2241_v45, %s3519_s23  ;;  %v2132_v45 = vld [vmem:[#allocation3 + $0x178] sm:$0xff] }
 0x1a3   : > { %v2260_v56 = vrot.slane %v2132_v45, 1  ;;  %v2469_v58 = vrot.slane %v2132_v45, 2  ;;  %v3503_v45 = vld [vmem:[#allocation3 + $0x8] sm:$0xff] }
 0x1a5   : > { %v2261_v63 = vsel %vm2181_vm5, %v2258_v25, %v2260_v56  ;;  %v3504_v56 = vld [vmem:[#allocation3 + $0x18] sm:$0xff] }
 0x1a6   : > { %2517 = vrot.lane.b32.xlu0 %v2450_v44, %s3518_s22  ;;  %2310 = vrot.lane.b32.xlu1 %v2244_v50, %s3519_s23  ;;  %v2465_v44 = vsel %vm2390_vm4, %v2462_v2, %v2464_v32  ;;  %v2259_v50 = vsel %vm2181_vm5, %v2257_v26, %v2258_v25 }
 0x1aa   : > { %2519 = vrot.lane.b32.xlu0 %v2453_v61, %s3518_s22  ;;  %2312 = vrot.lane.b32.xlu1 %v2246_v39, %s3519_s23 }
 0x1ae   : > { %2521 = vrot.lane.b32.xlu0 %v2455_v53, %s3518_s22  ;;  %2314 = vrot.lane.b32.xlu1 %v2249_v1, %s3519_s23  ;;  %v2470_v1 = vsel %vm2390_vm4, %v2467_v48, %v2469_v58 }
 0x1b2   : > { %2523 = vrot.lane.b32.xlu0 %v2458_v17, %s3518_s22  ;;  %2316 = vrot.lane.b32.xlu1 %v2251_v15, %s3519_s23 }
 0x1b6   : > { %2525 = vrot.lane.b32.xlu0 %v2460_v7, %s3518_s22  ;;  %2318 = vrot.lane.b32.xlu1 %v2254_v23, %s3519_s23 }
 0x1b8   : > { %v2263_v30 = vpop.permute.xlu0 %2262  ;;  %v2472_v41 = vpop.permute.xlu1 %2471 }
 0x1b9   : > { %v2358_v33 = vadd.f32 %v3502_v36, %v2263_v30 }
 0x1ba   : > { %2527 = vrot.lane.b32.xlu0 %v2463_v31, %s3518_s22  ;;  %2320 = vrot.lane.b32.xlu1 %v2256_v38, %s3519_s23 }
 0x1bb   : > { %v4530_v37 = vadd.f32 %v2472_v41, %v2358_v33 }
 0x1bc   : > { %v2265_v47 = vpop.permute.xlu0 %2264 }
 0x1bd   : > { %5064 = vst [vmem:[#allocation11_spill] sm:$0xff] %v4530_v37  ;;  %v2359_v26 = vadd.f32 %v3503_v45, %v2265_v47  ;;  %v3506_v45 = vld [vmem:[#allocation3 + $0x30] sm:$0xff] }
 0x1be   : > { %2529 = vrot.lane.b32.xlu0 %v2465_v44, %s3518_s22  ;;  %2322 = vrot.lane.b32.xlu1 %v2259_v50, %s3519_s23 }
 0x1c0   : > { %v2474_v61 = vpop.permute.xlu0 %2473  ;;  %v2267_v39 = vpop.permute.xlu1 %2266 }
 0x1c1   : > { %v4569_v48 = vadd.f32 %v2474_v61, %v2359_v26  ;;  %v2360_v57 = vadd.f32 %v3504_v56, %v2267_v39  ;;  %v2669_v61 = vmul.f32 %v4530_v37, %v4530_v37 }
 0x1c2   : > { %2531 = vrot.lane.b32.xlu0 %v2468_v54, %s3518_s22  ;;  %2324 = vrot.lane.b32.xlu1 %v2261_v63, %s3519_s23 }
 0x1c3   : > { %5065 = vst [vmem:[#allocation12_spill] sm:$0xff] %v4569_v48  ;;  %v2670_v35 = vmul.f32 %v4569_v48, %v4569_v48 }
 0x1c4   : > { %v2476_v52 = vpop.permute.xlu0 %2475  ;;  %v2269_v53 = vpop.permute.xlu1 %2268 }
 0x1c5   : > { %v4571_v54 = vadd.f32 %v2476_v52, %v2360_v57  ;;  %v3507_v57 = vld [vmem:[#allocation3 + $0x38] sm:$0xff] }
 0x1c6   : > { %2533 = vrot.lane.b32.xlu1 %v2470_v1, %s3518_s22  ;;  %v3505_v1 = vld [vmem:[#allocation3 + $0x20] sm:$0xff] }
 0x1c7   : > { %5066 = vst [vmem:[#allocation13_spill] sm:$0xff] %v4571_v54  ;;  %v2361_v28 = vadd.f32 %v3505_v1, %v2269_v53  ;;  %v2671_v39 = vmul.f32 %v4571_v54, %v4571_v54  ;;  %v2600_v53 = vsel %vm144_vm0, %v4569_v48, 0.0  ;;  %v2602_v1 = vsel %vm144_vm0, %v4571_v54, 0.0 }
 0x1c8   : > { %v2478_v4 = vpop.permute.xlu0 %2477  ;;  %v2271_v5 = vpop.permute.xlu1 %2270 }
 0x1c9   : > { %v4579_v47 = vadd.f32 %v2478_v4, %v2361_v28  ;;  %v2362_v12 = vadd.f32 %v3506_v45, %v2271_v5  ;;  %v2599_v4 = vsel %vm144_vm0, %v4530_v37, 0.0  ;;  %v2702_v5 = vsel %vm144_vm0, %v2670_v35, 0.0 }
 0x1cb   : > { %5067 = vst [vmem:[#allocation14_spill] sm:$0xff] %v4579_v47  ;;  %v2672_v45 = vmul.f32 %v4579_v47, %v4579_v47  ;;  %v2604_v35 = vsel %vm144_vm0, %v4579_v47, 0.0 }
 0x1cc   : > { %v2480_v62 = vpop.permute.xlu0 %2479  ;;  %v2273_v13 = vpop.permute.xlu1 %2272 }
 0x1cd   : > { %v4591_v56 = vadd.f32 %v2480_v62, %v2362_v12  ;;  %v2363_v28 = vadd.f32 %v3507_v57, %v2273_v13  ;;  %v2701_v12 = vsel %vm144_vm0, %v2669_v61, 0.0  ;;  %v2601_v62 = vadd.f32 %v2600_v53, %v2599_v4 }
 0x1ce   : > { %v2704_v13 = vsel %vm144_vm0, %v2671_v39, 0.0  ;;  %v2706_v39 = vsel %vm144_vm0, %v2672_v45, 0.0 }
 0x1cf   : > { %v2673_v54 = vmul.f32 %v4591_v56, %v4591_v56  ;;  %v2606_v53 = vsel %vm144_vm0, %v4591_v56, 0.0 }
 0x1d0   : > { %v2482_v17 = vpop.permute.xlu0 %2481  ;;  %v2275_v15 = vpop.permute.xlu1 %2274 }
 0x1d1   : > { %v4600_v9 = vadd.f32 %v2482_v17, %v2363_v28  ;;  %v2364_v59 = vadd.f32 %v2275_v15, %v4177_v43  ;;  %v3508_v17 = vld [vmem:[#allocation3 + $0x50] sm:$0xff]  ;;  %v2703_v43 = vadd.f32 %v2702_v5, %v2701_v12  ;;  %v2603_v15 = vadd.f32 %v2602_v1, %v2601_v62 }
 0x1d3   : > { %v2674_v4 = vmul.f32 %v4600_v9, %v4600_v9  ;;  %v2705_v60 = vadd.f32 %v2704_v13, %v2703_v43  ;;  %v2605_v40 = vadd.f32 %v2604_v35, %v2603_v15 }
 0x1d4   : > { %v2484_v18 = vpop.permute.xlu0 %2483  ;;  %v2277_v3 = vpop.permute.xlu1 %2276 }
 0x1d5   : > { %v4613_v37 = vadd.f32 %v2484_v18, %v2364_v59  ;;  %v2365_v28 = vadd.f32 %v3508_v17, %v2277_v3  ;;  %v2607_v45 = vadd.f32 %v2606_v53, %v2605_v40 }
 0x1d7   : > { %v2675_v1 = vmul.f32 %v4613_v37, %v4613_v37 }
 0x1d8   : > { %v2486_v16 = vpop.permute.xlu0 %2485  ;;  %v2279_v14 = vpop.permute.xlu1 %2278 }
 0x1d9   : > { %v2366_v61 = vadd.f32 %v2279_v14, %v4209_v8  ;;  %v4621_v47 = vadd.f32 %v2486_v16, %v2365_v28  ;;  %v2708_v8 = vsel %vm144_vm0, %v2673_v54, 0.0  ;;  %v2608_v14 = vsel %vm144_vm0, %v4600_v9, 0.0 }
 0x1da   : > { %v2707_v16 = vadd.f32 %v2706_v39, %v2705_v60  ;;  %v2609_v13 = vadd.f32 %v2608_v14, %v2607_v45  ;;  %v2712_v35 = vsel %vm144_vm0, %v2675_v1, 0.0 }
 0x1db   : > { %v2612_v17 = vsel %vm144_vm0, %v4621_v47, 0.0 }
 0x1dc   : > { %v2488_v2 = vpop.permute.xlu0 %2487  ;;  %v2281_v7 = vpop.permute.xlu1 %2280  ;;  %v2709_v62 = vadd.f32 %v2708_v8, %v2707_v16 }
 0x1dd   : > { %v4623_v59 = vadd.f32 %v2488_v2, %v2366_v61  ;;  %v2367_v18 = vadd.f32 %v2281_v7, %v4211_v10  ;;  %v2710_v2 = vsel %vm144_vm0, %v2674_v4, 0.0  ;;  %v2610_v10 = vsel %vm144_vm0, %v4613_v37, 0.0 }
 0x1de   : > { %v2676_v7 = vmul.f32 %v4621_v47, %v4621_v47  ;;  %v2611_v43 = vadd.f32 %v2610_v10, %v2609_v13 }
 0x1df   : > { %v2677_v60 = vmul.f32 %v4623_v59, %v4623_v59  ;;  %v2614_v39 = vsel %vm144_vm0, %v4623_v59, 0.0 }
 0x1e0   : > { %v4545_v23 = vpop.permute.xlu0 %2489  ;;  %v4547_v21 = vpop.permute.xlu1 %2282  ;;  %v2714_v61 = vsel %vm144_vm0, %v2676_v7, 0.0 }
 0x1e1   : > { %v4636_v12 = vadd.f32 %v4545_v23, %v2367_v18  ;;  %v2368_v54 = vadd.f32 %v4547_v21, %v4257_v55  ;;  %v2711_v21 = vadd.f32 %v2710_v2, %v2709_v62  ;;  %v2613_v18 = vadd.f32 %v2612_v17, %v2611_v43 }
 0x1e3   : > { %v2678_v15 = vmul.f32 %v4636_v12, %v4636_v12  ;;  %v2713_v4 = vadd.f32 %v2712_v35, %v2711_v21  ;;  %v2616_v14 = vsel %vm144_vm0, %v4636_v12, 0.0  ;;  %v2615_v16 = vadd.f32 %v2614_v39, %v2613_v18 }
 0x1e4   : > { %v4549_v30 = vpop.permute.xlu0 %2491  ;;  %v4551_v31 = vpop.permute.xlu1 %2284 }
 0x1e5   : > { %v4655_v28 = vadd.f32 %v4549_v30, %v2368_v54  ;;  %v2369_v55 = vadd.f32 %v4551_v31, %v4249_v49  ;;  %v2716_v49 = vsel %vm144_vm0, %v2677_v60, 0.0  ;;  %v2718_v45 = vsel %vm144_vm0, %v2678_v15, 0.0 }
 0x1e6   : > { %v2617_v62 = vadd.f32 %v2616_v14, %v2615_v16 }
 0x1e7   : > { %v2679_v1 = vmul.f32 %v4655_v28, %v4655_v28  ;;  %v2618_v2 = vsel %vm144_vm0, %v4655_v28, 0.0 }
 0x1e8   : > { %v4553_v36 = vpop.permute.xlu0 %2493  ;;  %v4555_v33 = vpop.permute.xlu1 %2286 }
 0x1e9   : > { %v4665_v53 = vadd.f32 %v4553_v36, %v2369_v55  ;;  %v2370_v30 = vadd.f32 %v4555_v33, %v4289_v19  ;;  %v2715_v33 = vadd.f32 %v2714_v61, %v2713_v4  ;;  %v2720_v60 = vsel %vm144_vm0, %v2679_v1, 0.0 }
 0x1eb   : > { %v2680_v10 = vmul.f32 %v4665_v53, %v4665_v53  ;;  %v2717_v54 = vadd.f32 %v2716_v49, %v2715_v33  ;;  %v2620_v35 = vsel %vm144_vm0, %v4665_v53, 0.0 }
 0x1ec   : > { %v4557_v38 = vpop.permute.xlu0 %2495  ;;  %v4559_v32 = vpop.permute.xlu1 %2288 }
 0x1ed   : > { %v4679_v36 = vadd.f32 %v4557_v38, %v2370_v30  ;;  %v2371_v19 = vadd.f32 %v4559_v32, %v4291_v24  ;;  %v2719_v55 = vadd.f32 %v2718_v45, %v2717_v54 }
 0x1ef   : > { %v2681_v17 = vmul.f32 %v4679_v36, %v4679_v36  ;;  %v2622_v21 = vsel %vm144_vm0, %v4679_v36, 0.0  ;;  %v2721_v15 = vadd.f32 %v2720_v60, %v2719_v55 }
 0x1f0   : > { %v4561_v25 = vpop.permute.xlu0 %2497  ;;  %v4563_v41 = vpop.permute.xlu1 %2290 }
 0x1f1   : > { %v4689_v7 = vadd.f32 %v4561_v25, %v2371_v19  ;;  %v2372_v38 = vadd.f32 %v4563_v41, %v4337_v6  ;;  %v2619_v6 = vadd.f32 %v2618_v2, %v2617_v62 }
 0x1f3   : > { %v2682_v43 = vmul.f32 %v4689_v7, %v4689_v7  ;;  %v2621_v61 = vadd.f32 %v2620_v35, %v2619_v6 }
 0x1f4   : > { %v4565_v44 = vpop.permute.xlu0 %2499  ;;  %v4567_v50 = vpop.permute.xlu1 %2292 }
 0x1f5   : > { %v2373_v24 = vadd.f32 %v4567_v50, %v4329_v0  ;;  %v4701_v25 = vadd.f32 %v4565_v44, %v2372_v38  ;;  %v2722_v50 = vsel %vm144_vm0, %v2680_v10, 0.0  ;;  %v2623_v49 = vadd.f32 %v2622_v21, %v2621_v61 }
 0x1f6   : > { %v2723_v18 = vadd.f32 %v2722_v50, %v2721_v15 }
 0x1f7   : > { %v2626_v1 = vsel %vm144_vm0, %v4701_v25, 0.0 }
 0x1f8   : > { %v4573_v63 = vpop.permute.xlu0 %2501  ;;  %v4575_v58 = vpop.permute.xlu1 %2294 }
 0x1f9   : > { %v4704_v41 = vadd.f32 %v4573_v63, %v2373_v24  ;;  %v2374_v0 = vadd.f32 %v4575_v58, %v4369_v34  ;;  %v2724_v63 = vsel %vm144_vm0, %v2681_v17, 0.0  ;;  %v2624_v34 = vsel %vm144_vm0, %v4689_v7, 0.0 }
 0x1fa   : > { %v2683_v58 = vmul.f32 %v4701_v25, %v4701_v25  ;;  %v2725_v16 = vadd.f32 %v2724_v63, %v2723_v18  ;;  %v2625_v45 = vadd.f32 %v2624_v34, %v2623_v49 }
 0x1fb   : > { %v2684_v14 = vmul.f32 %v4704_v41, %v4704_v41  ;;  %v2628_v38 = vsel %vm144_vm0, %v4704_v41, 0.0 }
 0x1fc   : > { %v4585_v52 = vpop.permute.xlu0 %2503  ;;  %v4587_v26 = vpop.permute.xlu1 %2296  ;;  %v2728_v10 = vsel %vm144_vm0, %v2683_v58, 0.0 }
 0x1fd   : > { %v4714_v44 = vadd.f32 %v4585_v52, %v2374_v0  ;;  %v2375_v4 = vadd.f32 %v4587_v26, %v4371_v42  ;;  %v2726_v52 = vsel %vm144_vm0, %v2682_v43, 0.0 }
 0x1fe   : > { %v2727_v62 = vadd.f32 %v2726_v52, %v2725_v16 }
 0x1ff   : > { %v2685_v42 = vmul.f32 %v4714_v44, %v4714_v44  ;;  %v2630_v24 = vsel %vm144_vm0, %v4714_v44, 0.0 }
 0x200   : > { %v4605_v57 = vpop.permute.xlu0 %2505  ;;  %v4607_v48 = vpop.permute.xlu1 %2298  ;;  %v2729_v17 = vadd.f32 %v2728_v10, %v2727_v62  ;;  %v5068_v62 = vld [vmem:[#allocation4_spill] sm:$0xff] }
 0x201   : > { %v4729_v19 = vadd.f32 %v4605_v57, %v2375_v4  ;;  %v2376_v33 = vadd.f32 %v4607_v48, %v4412_v29  ;;  %v2627_v29 = vadd.f32 %v2626_v1, %v2625_v45  ;;  %v2730_v48 = vsel %vm144_vm0, %v2684_v14, 0.0 }
 0x202   : > { %v2731_v43 = vadd.f32 %v2730_v48, %v2729_v17  ;;  %v5069_v17 = vld [vmem:[#allocation6_spill] sm:$0xff] }
 0x203   : > { %v2686_v60 = vmul.f32 %v4729_v19, %v4729_v19  ;;  %v2629_v55 = vadd.f32 %v2628_v38, %v2627_v29  ;;  %v2632_v0 = vsel %vm144_vm0, %v4729_v19, 0.0 }
 0x204   : > { %v4626_v3 = vpop.permute.xlu0 %2507  ;;  %v4628_v5 = vpop.permute.xlu1 %2300 }
 0x205   : > { %v4739_v54 = vadd.f32 %v4626_v3, %v2376_v33  ;;  %v2377_v57 = vadd.f32 %v4628_v5, %v4406_v22  ;;  %v2732_v22 = vsel %vm144_vm0, %v2685_v42, 0.0  ;;  %v2734_v15 = vsel %vm144_vm0, %v2686_v60, 0.0 }
 0x206   : > { %v2733_v58 = vadd.f32 %v2732_v22, %v2731_v43 }
 0x207   : > { %v2687_v50 = vmul.f32 %v4739_v54, %v4739_v54  ;;  %v2634_v61 = vsel %vm144_vm0, %v4739_v54, 0.0 }
 0x208   : > { %v4647_v40 = vpop.permute.xlu0 %2509  ;;  %v4649_v23 = vpop.permute.xlu1 %2302  ;;  %v2735_v14 = vadd.f32 %v2734_v15, %v2733_v58 }
 0x209   : > { %v4749_v35 = vadd.f32 %v4647_v40, %v2377_v57  ;;  %v2378_v3 = vadd.f32 %v4649_v23, %v4434_v51  ;;  %v2631_v51 = vadd.f32 %v2630_v24, %v2629_v55 }
 0x20b   : > { %v2688_v63 = vmul.f32 %v4749_v35, %v4749_v35 }
 0x20c   : > { %v4670_v31 = vpop.permute.xlu0 %2511  ;;  %v4672_v8 = vpop.permute.xlu1 %2304 }
 0x20d   : > { %v4759_v21 = vadd.f32 %v4670_v31, %v2378_v3  ;;  %v2379_v40 = vadd.f32 %v4672_v8, %v4436_v46  ;;  %v2633_v31 = vadd.f32 %v2632_v0, %v2631_v51  ;;  %v2738_v1 = vsel %vm144_vm0, %v2688_v63, 0.0 }
 0x20f   : > { %v2689_v49 = vmul.f32 %v4759_v21, %v4759_v21  ;;  %v2635_v52 = vadd.f32 %v2634_v61, %v2633_v31 }
 0x210   : > { %v2514_v32 = vpop.permute.xlu0 %2513  ;;  %v2307_v13 = vpop.permute.xlu1 %2306 }
 0x211   : > { %v2380_v23 = vadd.f32 %v2307_v13, %v4459_v11  ;;  %v4769_v34 = vadd.f32 %v2514_v32, %v2379_v40  ;;  %v2736_v11 = vsel %vm144_vm0, %v2687_v50, 0.0  ;;  %v2636_v13 = vsel %vm144_vm0, %v4749_v35, 0.0 }
 0x212   : > { %v2737_v33 = vadd.f32 %v2736_v11, %v2735_v14  ;;  %v2637_v16 = vadd.f32 %v2636_v13, %v2635_v52 }
 0x213   : > { %v2640_v38 = vsel %vm144_vm0, %v4769_v34, 0.0 }
 0x214   : > { %v2516_v39 = vpop.permute.xlu0 %2515  ;;  %v2309_v30 = vpop.permute.xlu1 %2308  ;;  %v2739_v48 = vadd.f32 %v2738_v1, %v2737_v33 }
 0x215   : > { %v4771_v4 = vadd.f32 %v2516_v39, %v2380_v23  ;;  %v2381_v46 = vadd.f32 %v2309_v30, %v4456_v20  ;;  %v2638_v39 = vsel %vm144_vm0, %v4759_v21, 0.0  ;;  %v2690_v20 = vmul.f32 %v4769_v34, %v4769_v34  ;;  %v5070_v23 = vld [vmem:[#allocation5_spill] sm:$0xff] }
 0x216   : > { %v2639_v24 = vadd.f32 %v2638_v39, %v2637_v16 }
 0x217   : > { %v2691_v45 = vmul.f32 %v4771_v4, %v4771_v4  ;;  %v2642_v60 = vsel %vm144_vm0, %v4771_v4, 0.0 }
 0x218   : > { %v2518_v26 = vpop.permute.xlu0 %2517  ;;  %v2311_v2 = vpop.permute.xlu1 %2310  ;;  %v2641_v0 = vadd.f32 %v2640_v38, %v2639_v24 }
 0x219   : > { %v4779_v32 = vadd.f32 %v2518_v26, %v2381_v46  ;;  %v2382_v30 = vadd.f32 %v2311_v2, %v4472_v27  ;;  %v2740_v26 = vsel %vm144_vm0, %v2689_v49, 0.0  ;;  %v2742_v2 = vsel %vm144_vm0, %v2690_v20, 0.0 }
 0x21a   : > { %v2741_v22 = vadd.f32 %v2740_v26, %v2739_v48  ;;  %v2643_v63 = vadd.f32 %v2642_v60, %v2641_v0  ;;  %v5072_v26 = vld [vmem:[#allocation8_spill] sm:$0xff] }
 0x21b   : > { %v2692_v27 = vmul.f32 %v4779_v32, %v4779_v32  ;;  %v2644_v40 = vsel %vm144_vm0, %v4779_v32, 0.0 }
 0x21c   : > { %v2520_v5 = vpop.permute.xlu0 %2519  ;;  %v2313_v6 = vpop.permute.xlu1 %2312  ;;  %v2743_v61 = vadd.f32 %v2742_v2, %v2741_v22  ;;  %v2645_v49 = vadd.f32 %v2644_v40, %v2643_v63 }
 0x21d   : > { %v4792_v57 = vadd.f32 %v2520_v5, %v2382_v30  ;;  %v2383_v29 = vadd.f32 %v2313_v6, %v5068_v62  ;;  %v2744_v5 = vsel %vm144_vm0, %v2691_v45, 0.0  ;;  %v2746_v58 = vsel %vm144_vm0, %v2692_v27, 0.0 }
 0x21e   : > { %v2745_v13 = vadd.f32 %v2744_v5, %v2743_v61 }
 0x21f   : > { %v2693_v43 = vmul.f32 %v4792_v57, %v4792_v57  ;;  %v2646_v31 = vsel %vm144_vm0, %v4792_v57, 0.0 }
 0x220   : > { %v2522_v8 = vpop.permute.xlu0 %2521  ;;  %v2315_v18 = vpop.permute.xlu1 %2314  ;;  %v2747_v33 = vadd.f32 %v2746_v58, %v2745_v13  ;;  %v2647_v16 = vadd.f32 %v2646_v31, %v2645_v49 }
 0x221   : > { %v4800_v3 = vadd.f32 %v2522_v8, %v2383_v29  ;;  %v2384_v55 = vadd.f32 %v2315_v18, %v5069_v17  ;;  %v5071_v18 = vld [vmem:[#allocation7_spill] sm:$0xff]  ;;  %v2748_v1 = vsel %vm144_vm0, %v2693_v43, 0.0 }
 0x222   : > { %v2749_v62 = vadd.f32 %v2748_v1, %v2747_v33 }
 0x223   : > { %v2694_v46 = vmul.f32 %v4800_v3, %v4800_v3  ;;  %v2648_v39 = vsel %vm144_vm0, %v4800_v3, 0.0 }
 0x224   : > { %v2524_v42 = vpop.permute.xlu0 %2523  ;;  %v2317_v10 = vpop.permute.xlu1 %2316  ;;  %v2649_v29 = vadd.f32 %v2648_v39, %v2647_v16 }
 0x225   : > { %v4808_v51 = vadd.f32 %v2524_v42, %v2384_v55  ;;  %v2385_v15 = vadd.f32 %v2317_v10, %v5070_v23  ;;  %v2750_v45 = vsel %vm144_vm0, %v2694_v46, 0.0 }
 0x226   : > { %v2751_v55 = vadd.f32 %v2750_v45, %v2749_v62 }
 0x227   : > { %v2695_v20 = vmul.f32 %v4808_v51, %v4808_v51  ;;  %v2650_v42 = vsel %vm144_vm0, %v4808_v51, 0.0 }
 0x228   : > { %v2526_v50 = vpop.permute.xlu0 %2525  ;;  %v2319_v6 = vpop.permute.xlu1 %2318  ;;  %v2651_v22 = vadd.f32 %v2650_v42, %v2649_v29 }
 0x229   : > { %v4816_v8 = vadd.f32 %v2526_v50, %v2385_v15  ;;  %v2386_v11 = vadd.f32 %v2319_v6, %v5071_v18  ;;  %v2752_v27 = vsel %vm144_vm0, %v2695_v20, 0.0  ;;  %v5073_v6 = vld [vmem:[#allocation10_spill] sm:$0xff] }
 0x22a   : > { %v2753_v43 = vadd.f32 %v2752_v27, %v2751_v55 }
 0x22b   : > { %v2696_v10 = vmul.f32 %v4816_v8, %v4816_v8  ;;  %v2652_v2 = vsel %vm144_vm0, %v4816_v8, 0.0 }
 0x22c   : > { %v2528_v14 = vpop.permute.xlu0 %2527  ;;  %v2321_v52 = vpop.permute.xlu1 %2320  ;;  %v2653_v23 = vadd.f32 %v2652_v2, %v2651_v22 }
 0x22d   : > { %v4824_v30 = vadd.f32 %v2528_v14, %v2386_v11  ;;  %v2387_v38 = vadd.f32 %v2321_v52, %v5072_v26  ;;  %v2754_v0 = vsel %vm144_vm0, %v2696_v10, 0.0  ;;  %v5074_v14 = vld [vmem:[#allocation9_spill] sm:$0xff] }
 0x22e   : > { %v2755_v46 = vadd.f32 %v2754_v0, %v2753_v43 }
 0x22f   : > { %v2697_v60 = vmul.f32 %v4824_v30, %v4824_v30  ;;  %v2654_v5 = vsel %vm144_vm0, %v4824_v30, 0.0 }
 0x230   : > { %v2530_v48 = vpop.permute.xlu0 %2529  ;;  %v2323_v24 = vpop.permute.xlu1 %2322  ;;  %v2655_v18 = vadd.f32 %v2654_v5, %v2653_v23 }
 0x231   : > { %v4837_v17 = vadd.f32 %v2530_v48, %v2387_v38  ;;  %v2388_v40 = vadd.f32 %v2323_v24, %v5073_v6  ;;  %v2756_v63 = vsel %vm144_vm0, %v2697_v60, 0.0 }
 0x232   : > { %v2757_v1 = vadd.f32 %v2756_v63, %v2755_v46 }
 0x233   : > { %v2698_v50 = vmul.f32 %v4837_v17, %v4837_v17  ;;  %v2656_v58 = vsel %vm144_vm0, %v4837_v17, 0.0 }
 0x234   : > { %v2532_v15 = vpop.permute.xlu0 %2531  ;;  %v2325_v61 = vpop.permute.xlu1 %2324  ;;  %v2657_v39 = vadd.f32 %v2656_v58, %v2655_v18  ;;  %v5075_v18 = vld [vmem:[#allocation11_spill] sm:$0xff] }
 0x235   : > { %v4848_v31 = vadd.f32 %v2532_v15, %v2388_v40  ;;  %v2758_v11 = vsel %vm144_vm0, %v2698_v50, 0.0  ;;  %v2389_v52 = vadd.f32 %v2325_v61, %v5074_v14  ;;  %v5077_v14 = vld [vmem:[#allocation13_spill] sm:$0xff] }
 0x236   : > { %v2759_v45 = vadd.f32 %v2758_v11, %v2757_v1  ;;  %v5078_v1 = vld [vmem:[#allocation14_spill] sm:$0xff] }
 0x237   : > { %v2658_v13 = vsel %vm144_vm0, %v4848_v31, 0.0  ;;  %v2699_v49 = vmul.f32 %v4848_v31, %v4848_v31 }
 0x238   : > { %v2534_v20 = vpop.permute.xlu1 %2533  ;;  %v2659_v42 = vadd.f32 %v2658_v13, %v2657_v39  ;;  %v5076_v13 = vld [vmem:[#allocation12_spill] sm:$0xff] }
 0x239   : > { %v2760_v33 = vsel %vm144_vm0, %v2699_v49, 0.0  ;;  %v4857_v16 = vadd.f32 %v2534_v20, %v2389_v52 }
 0x23a   : > { %v2761_v38 = vadd.f32 %v2760_v33, %v2759_v45 }
 0x23b   : > { %v2660_v10 = vsel %vm144_vm0, %v4857_v16, 0.0  ;;  %v2700_v26 = vmul.f32 %v4857_v16, %v4857_v16 }
 0x23c   : > { %v2661_v62 = vadd.f32 %v2660_v10, %v2659_v42 }
 0x23d   : > { %v2762_v29 = vsel %vm144_vm0, %v2700_v26, 0.0 }
 0x23e   : > { %v2662_v48 = vrot.slane %v2661_v62, 4  ;;  %v2763_v24 = vadd.f32 %v2762_v29, %v2761_v38 }
 0x240   : > { %v2663_v27 = vadd.f32 %v2662_v48, %v2661_v62  ;;  %v2764_v2 = vrot.slane %v2763_v24, 4 }
 0x242   : > { %v2664_v60 = vrot.slane %v2663_v27, 2  ;;  %v2765_v55 = vadd.f32 %v2764_v2, %v2763_v24 }
 0x244   : > { %v2665_v22 = vadd.f32 %v2664_v60, %v2663_v27  ;;  %v2766_v0 = vrot.slane %v2765_v55, 2 }
 0x246   : > { %v2666_v5 = vrot.slane %v2665_v22, 1  ;;  %v2767_v50 = vadd.f32 %v2766_v0, %v2765_v55 }
 0x248   : > { %v2667_v6 = vadd.f32 %v2666_v5, %v2665_v22  ;;  %v2768_v40 = vrot.slane %v2767_v50, 1 }
 0x24a   : > { %v4864_v43 = vmul.f32 0.00390625, %v2667_v6  ;;  %v2769_v23 = vadd.f32 %v2768_v40, %v2767_v50 }
 0x24c   : > { %v2770_v15 = vmul.f32 0.00390625, %v2769_v23  ;;  %v2771_v61 = vmul.f32 %v4864_v43, %v4864_v43  ;;  %v2774_v11 = vsub.f32 %v5075_v18, %v4864_v43  ;;  %v2775_v49 = vsub.f32 %v5076_v13, %v4864_v43 }
 0x24d   : > { %v2776_v52 = vsub.f32 %v5077_v14, %v4864_v43  ;;  %v2777_v39 = vsub.f32 %v5078_v1, %v4864_v43  ;;  %v2778_v20 = vsub.f32 %v4591_v56, %v4864_v43  ;;  %v2779_v33 = vsub.f32 %v4600_v9, %v4864_v43 }
 0x24e   : > { %v2772_v63 = vsub.f32 %v2770_v15, %v2771_v61  ;;  %v2780_v45 = vsub.f32 %v4613_v37, %v4864_v43  ;;  %v2781_v42 = vsub.f32 %v4621_v47, %v4864_v43  ;;  %v2782_v10 = vsub.f32 %v4623_v59, %v4864_v43 }
 0x24f   : > { %v2783_v26 = vsub.f32 %v4636_v12, %v4864_v43  ;;  %v2784_v38 = vsub.f32 %v4655_v28, %v4864_v43  ;;  %v2785_v56 = vsub.f32 %v4665_v53, %v4864_v43  ;;  %v2786_v9 = vsub.f32 %v4679_v36, %v4864_v43 }
 0x250   : > { %v2773_v58 = vmax.f32 %v2772_v63, 0.0  ;;  %v2787_v37 = vsub.f32 %v4689_v7, %v4864_v43  ;;  %v2788_v47 = vsub.f32 %v4701_v25, %v4864_v43  ;;  %v2789_v59 = vsub.f32 %v4704_v41, %v4864_v43 }
 0x251   : > { %v2790_v12 = vsub.f32 %v4714_v44, %v4864_v43  ;;  %v2791_v28 = vsub.f32 %v4729_v19, %v4864_v43  ;;  %v2792_v53 = vsub.f32 %v4739_v54, %v4864_v43  ;;  %v2793_v36 = vsub.f32 %v4749_v35, %v4864_v43 }
 0x252   : > { %v2806_v46 = vadd.f32 1e-05, %v2773_v58  ;;  %v2794_v7 = vsub.f32 %v4759_v21, %v4864_v43  ;;  %v2795_v25 = vsub.f32 %v4769_v34, %v4864_v43  ;;  %v2796_v41 = vsub.f32 %v4771_v4, %v4864_v43 }
 0x253   : > { %v2797_v44 = vsub.f32 %v4779_v32, %v4864_v43  ;;  %v2798_v19 = vsub.f32 %v4792_v57, %v4864_v43  ;;  %v2799_v54 = vsub.f32 %v4800_v3, %v4864_v43  ;;  %v2800_v35 = vsub.f32 %v4808_v51, %v4864_v43 }
 0x254   : > { %3500 = vrsqrt.f32 %v2806_v46  ;;  %v2801_v21 = vsub.f32 %v4816_v8, %v4864_v43  ;;  %v2802_v34 = vsub.f32 %v4824_v30, %v4864_v43  ;;  %v2803_v4 = vsub.f32 %v4837_v17, %v4864_v43 }
 0x255   : > { %v2804_v32 = vsub.f32 %v4848_v31, %v4864_v43  ;;  %v2805_v57 = vsub.f32 %v4857_v16, %v4864_v43 }
 0x25e   : > { %v3501_v62 = vpop.eup %3500 }
 0x25f   : > { %v2808_v3 = vmul.f32 %v3501_v62, %v2774_v11  ;;  %v2809_v29 = vmul.f32 %v3501_v62, %v2775_v49  ;;  %v2810_v48 = vmul.f32 %v3501_v62, %v2776_v52  ;;  %v2811_v51 = vmul.f32 %v3501_v62, %v2777_v39 }
 0x260   : > { %v2812_v24 = vmul.f32 %v3501_v62, %v2778_v20  ;;  %v2813_v27 = vmul.f32 %v3501_v62, %v2779_v33  ;;  %v2814_v8 = vmul.f32 %v3501_v62, %v2780_v45  ;;  %v2815_v2 = vmul.f32 %v3501_v62, %v2781_v42 }
 0x261   : > { %v2816_v60 = vmul.f32 %v3501_v62, %v2782_v10  ;;  %v2817_v55 = vmul.f32 %v3501_v62, %v2783_v26  ;;  %v2818_v30 = vmul.f32 %v3501_v62, %v2784_v38  ;;  %v2819_v22 = vmul.f32 %v3501_v62, %v2785_v56 }
 0x262   : > { %v2820_v0 = vmul.f32 %v3501_v62, %v2786_v9  ;;  %v2821_v17 = vmul.f32 %v3501_v62, %v2787_v37  ;;  %v2822_v5 = vmul.f32 %v3501_v62, %v2788_v47  ;;  %v2823_v31 = vmul.f32 %v3501_v62, %v2789_v59 }
 0x263   : > { %v2824_v50 = vmul.f32 %v3501_v62, %v2790_v12  ;;  %v2825_v6 = vmul.f32 %v3501_v62, %v2791_v28  ;;  %v2826_v16 = vmul.f32 %v3501_v62, %v2792_v53  ;;  %v2827_v40 = vmul.f32 %v3501_v62, %v2793_v36 }
 0x264   : > { %v4932_v43 = vmul.f32 %v3501_v62, %v2794_v7  ;;  %v4934_v23 = vmul.f32 %v3501_v62, %v2795_v25  ;;  %v4936_v15 = vmul.f32 %v3501_v62, %v2796_v41  ;;  %v4938_v61 = vmul.f32 %v3501_v62, %v2797_v44 }
 0x265   : > { %v4940_v63 = vmul.f32 %v3501_v62, %v2798_v19  ;;  %v4942_v58 = vmul.f32 %v3501_v62, %v2799_v54  ;;  %v4944_v46 = vmul.f32 %v3501_v62, %v2800_v35  ;;  %v4946_v18 = vmul.f32 %v3501_v62, %v2801_v21 }
 0x266   : > { %v4955_v11 = vmul.f32 %v3501_v62, %v2802_v34  ;;  %v4957_v13 = vmul.f32 %v3501_v62, %v2803_v4  ;;  %v4959_v49 = vmul.f32 %v3501_v62, %v2804_v32  ;;  %v4961_v14 = vmul.f32 %v3501_v62, %v2805_v57 }
 0x267   : > { %v2840_v52 = vmax.f32 %v2808_v3, 0.0  ;;  %v2841_v1 = vmax.f32 %v2809_v29, 0.0  ;;  %v2842_v39 = vmax.f32 %v2810_v48, 0.0  ;;  %v2843_v20 = vmax.f32 %v2811_v51, 0.0 }
 0x268   : > { %v2844_v33 = vmax.f32 %v2812_v24, 0.0  ;;  %v2845_v45 = vmax.f32 %v2813_v27, 0.0  ;;  %v2846_v42 = vmax.f32 %v2814_v8, 0.0  ;;  %v2847_v10 = vmax.f32 %v2815_v2, 0.0 }
 0x269   : > { %v2848_v26 = vmax.f32 %v2816_v60, 0.0  ;;  %v2849_v38 = vmax.f32 %v2817_v55, 0.0  ;;  %v2850_v56 = vmax.f32 %v2818_v30, 0.0  ;;  %v2851_v9 = vmax.f32 %v2819_v22, 0.0  ;;  %2872 = vst.msk [vmem:[%s4953_s26] sm:$0xff] %vm144_vm0, %v2840_v52  ;;  %2873 = vst.msk [vmem:[%s4953_s26 + $0x8] sm:$0xff] %vm144_vm0, %v2841_v1 }
 0x26a   : > { %2874 = vst.msk [vmem:[%s4953_s26 + $0x10] sm:$0xff] %vm144_vm0, %v2842_v39  ;;  %2875 = vst.msk [vmem:[%s4953_s26 + $0x18] sm:$0xff] %vm144_vm0, %v2843_v20  ;;  %v2852_v37 = vmax.f32 %v2820_v0, 0.0  ;;  %v2853_v47 = vmax.f32 %v2821_v17, 0.0  ;;  %v2854_v59 = vmax.f32 %v2822_v5, 0.0  ;;  %v2855_v12 = vmax.f32 %v2823_v31, 0.0 }
 0x26b   : > { %2876 = vst.msk [vmem:[%s4953_s26 + $0x20] sm:$0xff] %vm144_vm0, %v2844_v33  ;;  %2877 = vst.msk [vmem:[%s4953_s26 + $0x28] sm:$0xff] %vm144_vm0, %v2845_v45  ;;  %v2856_v28 = vmax.f32 %v2824_v50, 0.0  ;;  %v2857_v53 = vmax.f32 %v2825_v6, 0.0  ;;  %v2858_v36 = vmax.f32 %v2826_v16, 0.0  ;;  %v2859_v7 = vmax.f32 %v2827_v40, 0.0 }
 0x26c   : > { %2878 = vst.msk [vmem:[%s4953_s26 + $0x30] sm:$0xff] %vm144_vm0, %v2846_v42  ;;  %2879 = vst.msk [vmem:[%s4953_s26 + $0x38] sm:$0xff] %vm144_vm0, %v2847_v10  ;;  %v2860_v25 = vmax.f32 %v4932_v43, 0.0  ;;  %v2861_v41 = vmax.f32 %v4934_v23, 0.0  ;;  %v2862_v44 = vmax.f32 %v4936_v15, 0.0  ;;  %v2863_v19 = vmax.f32 %v4938_v61, 0.0 }
 0x26d   : > { %2880 = vst.msk [vmem:[%s4953_s26 + $0x40] sm:$0xff] %vm144_vm0, %v2848_v26  ;;  %2881 = vst.msk [vmem:[%s4953_s26 + $0x48] sm:$0xff] %vm144_vm0, %v2849_v38  ;;  %v2864_v54 = vmax.f32 %v4940_v63, 0.0  ;;  %v2865_v35 = vmax.f32 %v4942_v58, 0.0  ;;  %v2866_v21 = vmax.f32 %v4944_v46, 0.0  ;;  %v2867_v62 = vmax.f32 %v4946_v18, 0.0 }
 0x26e   : > { %2882 = vst.msk [vmem:[%s4953_s26 + $0x50] sm:$0xff] %vm144_vm0, %v2850_v56  ;;  %2883 = vst.msk [vmem:[%s4953_s26 + $0x58] sm:$0xff] %vm144_vm0, %v2851_v9  ;;  %v2868_v34 = vmax.f32 %v4955_v11, 0.0  ;;  %v2869_v4 = vmax.f32 %v4957_v13, 0.0  ;;  %v2870_v32 = vmax.f32 %v4959_v49, 0.0  ;;  %v2871_v57 = vmax.f32 %v4961_v14, 0.0 }
 0x26f   : > { %2884 = vst.msk [vmem:[%s4953_s26 + $0x60] sm:$0xff] %vm144_vm0, %v2852_v37  ;;  %2885 = vst.msk [vmem:[%s4953_s26 + $0x68] sm:$0xff] %vm144_vm0, %v2853_v47 }
 0x270   : > { %2886 = vst.msk [vmem:[%s4953_s26 + $0x70] sm:$0xff] %vm144_vm0, %v2854_v59  ;;  %2887 = vst.msk [vmem:[%s4953_s26 + $0x78] sm:$0xff] %vm144_vm0, %v2855_v12 }
 0x271   : > { %2888 = vst.msk [vmem:[%s4953_s26 + $0x80] sm:$0xff] %vm144_vm0, %v2856_v28  ;;  %2889 = vst.msk [vmem:[%s4953_s26 + $0x88] sm:$0xff] %vm144_vm0, %v2857_v53 }
 0x272   : > { %2890 = vst.msk [vmem:[%s4953_s26 + $0x90] sm:$0xff] %vm144_vm0, %v2858_v36  ;;  %2891 = vst.msk [vmem:[%s4953_s26 + $0x98] sm:$0xff] %vm144_vm0, %v2859_v7 }
 0x273   : > { %2892 = vst.msk [vmem:[%s4953_s26 + $0xa0] sm:$0xff] %vm144_vm0, %v2860_v25  ;;  %2893 = vst.msk [vmem:[%s4953_s26 + $0xa8] sm:$0xff] %vm144_vm0, %v2861_v41 }
 0x274   : > { %2894 = vst.msk [vmem:[%s4953_s26 + $0xb0] sm:$0xff] %vm144_vm0, %v2862_v44  ;;  %2895 = vst.msk [vmem:[%s4953_s26 + $0xb8] sm:$0xff] %vm144_vm0, %v2863_v19 }
 0x275   : > { %2896 = vst.msk [vmem:[%s4953_s26 + $0xc0] sm:$0xff] %vm144_vm0, %v2864_v54  ;;  %2897 = vst.msk [vmem:[%s4953_s26 + $0xc8] sm:$0xff] %vm144_vm0, %v2865_v35 }
 0x276   : > { %2898 = vst.msk [vmem:[%s4953_s26 + $0xd0] sm:$0xff] %vm144_vm0, %v2866_v21  ;;  %2899 = vst.msk [vmem:[%s4953_s26 + $0xd8] sm:$0xff] %vm144_vm0, %v2867_v62 }
 0x277   : > { %2900 = vst.msk [vmem:[%s4953_s26 + $0xe0] sm:$0xff] %vm144_vm0, %v2868_v34  ;;  %2901 = vst.msk [vmem:[%s4953_s26 + $0xe8] sm:$0xff] %vm144_vm0, %v2869_v4 }
 0x278   : > { %2902 = vst.msk [vmem:[%s4953_s26 + $0xf0] sm:$0xff] %vm144_vm0, %v2870_v32  ;;  %2903 = vst.msk [vmem:[%s4953_s26 + $0xf8] sm:$0xff] %vm144_vm0, %v2871_v57 }
 0x279 PF: > { %s12_s9 = sadd.s32 1, %s3515_s9  }
 0x27a   : > { %p9_p4 = scmp.ge.s32.totalorder %s12_s9, 4  }
 0x27c   :  { %11 = sbr.rel (!%p9_p4) target bundleno = 1 (0x1), region = 63 }

</bundles_post_ra>
